<compile_context>
chip_gen: v5e
topology: v5e:2x2
jax: 0.10.0
libtpu: 0.0.40
codegen_flags: <defaults>
</compile_context>

<pallas_src>
import functools

import jax
import jax.numpy as jnp
from jax.experimental import pallas as pl
from jax.experimental.pallas import tpu as pltpu

BN_EPS = 1e-5
NUM_GROUPS = 4  # HMU default; the kernel is specialized to it.


# --------------------------- small index helpers ---------------------------- #

def _mod(a, m):
    """a % m on traced int32 vectors; bit-and when m is a power of two."""
    return (a & (m - 1)) if (m & (m - 1)) == 0 else a % m


def _div(a, d):
    """a // d on traced int32 vectors; shift when d is a power of two."""
    return (a >> (d.bit_length() - 1)) if (d & (d - 1)) == 0 else a // d


# ------------------------------ fused kernel ------------------------------- #

def _make_hmu_kernel(H, W, B, in_c, hid, offs):
    HW = H * W
    L = B * HW                      # lane extent: B images side by side
    g4 = NUM_GROUPS * hid
    BF16 = jnp.bfloat16

    def kernel(x_ref, we_ref, w0_ref, w1_ref, w2_ref, w3_ref,
               wg1_ref, wg2_ref, wf_ref, vec_ref, o_ref):

        def seg(name, c):
            """Static slice of the packed scale/bias operand -> (c, 1) f32."""
            o = offs[name]
            return vec_ref[o:o + c, :]

        # ---- per-lane border / per-image masks (built once, shared) -------
        lane = jax.lax.broadcasted_iota(jnp.int32, (1, L), 1)
        col = _mod(lane, W)                      # column inside the image
        row = _div(_mod(lane, HW), W)            # row inside the image
        row_ok = {0: row >= 1, 1: None, 2: row <= H - 2}
        col_ok = {0: col >= 1, 1: None, 2: col <= W - 2}
        tap_mask = {}
        for ky in range(3):
            for kx in range(3):
                m = row_ok[ky]
                if col_ok[kx] is not None:
                    m = col_ok[kx] if m is None else (m & col_ok[kx])
                tap_mask[(ky, kx)] = m           # None only for the center tap
        img_idx = _div(lane, HW)
        img_masks = [img_idx == b for b in range(B)]

        def conv3x3(x_in, w_ref, scale, bias, relu=True):
            """'Same' 3x3 conv + folded BN (+ReLU) as ONE MXU matmul.

            x_in : (Cin, L) f32, B images concatenated on the lane axis.
            Each tap is a pltpu.roll (XLU) + one combined row/col/image-border
            select; the 9 taps are concatenated into a (9*Cin, L) im2col patch
            and cast to bf16 once for the matmul.
            """
            taps = []
            for ky in range(3):
                for kx in range(3):
                    s = (ky - 1) * W + (kx - 1)   # output lane l reads lane l+s
                    if s == 0:
                        t = x_in
                    else:
                        t = jnp.where(tap_mask[(ky, kx)],
                                      pltpu.roll(x_in, shift=(-s) % L, axis=1),
                                      0.0)
                    taps.append(t)
            patch = jnp.concatenate(taps, axis=0).astype(BF16)   # (9Cin, L)
            y = jnp.dot(w_ref[...], patch, preferred_element_type=jnp.float32)
            y = y * scale + bias
            return jnp.maximum(y, 0.0) if relu else y

        # ---- lane-batch the B images: (B, C, HW) -> (C, B*HW) --------------
        x_all = jnp.concatenate([x_ref[b] for b in range(B)], axis=1)  # f32

        # ---- expand: 1x1 conv + folded BN + ReLU ---------------------------
        xe = jnp.dot(we_ref[...], x_all.astype(BF16),
                     preferred_element_type=jnp.float32)
        xe = jnp.maximum(xe * seg("e_s", g4) + seg("e_b", g4), 0.0)  # (4h, L)

        # ---- interact chain (channel cat == sublane concat in VMEM) -------
        out_parts, gate_parts = [], []
        b0 = conv3x3(xe[0:hid], w0_ref, seg("s0", 3 * hid), seg("b0", 3 * hid))
        out_parts.append(b0[0:hid])
        gate_parts.append(b0[2 * hid:3 * hid])
        prev_mid = b0[hid:2 * hid]
        for gi, w_r, sn, bn in ((1, w1_ref, "s1", "b1"),
                                (2, w2_ref, "s2", "b2")):
            inp = jnp.concatenate([xe[gi * hid:(gi + 1) * hid], prev_mid],
                                  axis=0)
            bo = conv3x3(inp, w_r, seg(sn, 3 * hid), seg(bn, 3 * hid))
            out_parts.append(bo[0:hid])
            gate_parts.append(bo[2 * hid:3 * hid])
            prev_mid = bo[hid:2 * hid]
        inp = jnp.concatenate([xe[3 * hid:4 * hid], prev_mid], axis=0)
        b3 = conv3x3(inp, w3_ref, seg("s3", 2 * hid), seg("b3", 2 * hid))
        out_parts.append(b3[0:hid])
        gate_parts.append(b3[hid:2 * hid])

        out_cat = jnp.concatenate(out_parts, axis=0)     # (4h, L)
        gate_cat = jnp.concatenate(gate_parts, axis=0)   # (4h, L)

        # ---- gate generator: per-image GAP -> FC -> ReLU -> FC -> softmax --
        # Runs at N = 1 on the pooled column (review: no HW-wide redundancy).
        bg1 = seg("bg1", hid)
        bg2 = seg("bg2", g4)
        inv_hw = 1.0 / HW
        gate_full = None
        for b in range(B):
            m_b = img_masks[b]
            pooled = jnp.sum(jnp.where(m_b, gate_cat, 0.0), axis=1,
                             keepdims=True) * inv_hw                 # (4h, 1)
            g1 = jnp.dot(wg1_ref[...], pooled.astype(BF16),
                         preferred_element_type=jnp.float32) + bg1   # (h, 1)
            g1 = jnp.maximum(g1, 0.0)
            g2 = jnp.dot(wg2_ref[...], g1.astype(BF16),
                         preferred_element_type=jnp.float32) + bg2   # (4h, 1)
            g2 = g2 - jnp.max(g2, axis=0, keepdims=True)
            eg = jnp.exp(g2)
            gate_b = eg * pl.reciprocal(
                jnp.sum(eg, axis=0, keepdims=True), approx=True)     # (4h, 1)
            gate_full = jnp.where(
                m_b, gate_b, 0.0 if gate_full is None else gate_full)

        # ---- fuse: 3x3 conv (conv-bias folded into BN) + residual + ReLU ---
        fused = conv3x3(out_cat * gate_full, wf_ref,
                        seg("sf", in_c), seg("bf", in_c), relu=False)
        for b in range(B):
            o_ref[b] = jnp.maximum(
                fused[:, b * HW:(b + 1) * HW] + x_ref[b], 0.0
            ).astype(o_ref.dtype)

    return kernel


# ------------------------------ host wrapper -------------------------------- #

def _pack_vecs(segments):
    """Pack the (Cout, 1) f32 vectors into one operand; 8-row aligned segs."""
    offs, parts, off = {}, [], 0
    for name, a in segments:
        a = jnp.asarray(a, jnp.float32).reshape(-1, 1)
        c = a.shape[0]
        offs[name] = off
        parts.append(a)
        pad = (-c) % 8
        if pad:
            parts.append(jnp.zeros((pad, 1), jnp.float32))
        off += c + pad
    return jnp.concatenate(parts, axis=0), offs


def _pick_block_n(n, max_b=8):
    """Largest divisor of n that is <= max_b and keeps the grid >= 2."""
    best = 1
    for b in range(2, min(n, max_b) + 1):
        if n % b == 0 and n // b >= 2:
            best = b
    return best


def hmu_forward(params, x, block_n=None):
    """x: (N, C, H, W) NCHW float32 -> (N, C, H, W)."""
    N, C, H, W = x.shape
    hid = params["hidden"]
    HW = H * W
    B = block_n or _pick_block_n(N)   # images lane-batched per grid step
    assert N % B == 0, (N, B)

    x_flat = x.reshape(N, C, HW)      # no transpose needed

    e, it, g, f = (params["expand"], params["interact"],
                   params["gate"], params["fuse"])
    vecs, offs = _pack_vecs([
        ("e_s", e["scale"]), ("e_b", e["bias"]),
        ("s0", it[0]["scale"]), ("b0", it[0]["bias"]),
        ("s1", it[1]["scale"]), ("b1", it[1]["bias"]),
        ("s2", it[2]["scale"]), ("b2", it[2]["bias"]),
        ("s3", it[3]["scale"]), ("b3", it[3]["bias"]),
        ("sf", f["scale"]), ("bf", f["bias"]),
        ("bg1", g["b1"]), ("bg2", g["b2"]),
    ])

    args = [x_flat,
            e["w"], it[0]["w"], it[1]["w"], it[2]["w"], it[3]["w"],
            g["w1"], g["w2"], f["w"],
            vecs]

    in_specs = ([pl.BlockSpec((B, C, HW), lambda n: (n, 0, 0))] +
                [pl.BlockSpec(a.shape, lambda n: (0, 0)) for a in args[1:]])

    out = pl.pallas_call(
        _make_hmu_kernel(H, W, B, C, hid, offs),
        grid=(N // B,),
        in_specs=in_specs,
        out_specs=pl.BlockSpec((B, C, HW), lambda n: (n, 0, 0)),
        out_shape=jax.ShapeDtypeStruct((N, C, HW), x.dtype),
        compiler_params=pltpu.CompilerParams(
            dimension_semantics=("parallel",)),
    )(*args)
    return out.reshape(N, C, H, W)


# ---------------------------- parameter setup ------------------------------- #

def _init_bn(key, c):
    kg, kb, km, kv = jax.random.split(key, 4)
    gamma = 1.0 + 0.1 * jax.random.normal(kg, (c,), jnp.float32)
    beta = 0.1 * jax.random.normal(kb, (c,), jnp.float32)
    mean = 0.1 * jax.random.normal(km, (c,), jnp.float32)
    var = jnp.abs(jax.random.normal(kv, (c,), jnp.float32)) + 0.5
    return gamma, beta, mean, var


def _basic_conv(key, cin, cout, ksize):
    """BasicConv2d = Conv(bias=False) -> BN -> ReLU; BN folded to scale/bias."""
    kw, kbn = jax.random.split(key)
    kdim = cin if ksize == 1 else 9 * cin
    w = 0.1 * jax.random.normal(kw, (cout, kdim), jnp.float32)
    gamma, beta, mean, var = _init_bn(kbn, cout)
    inv = gamma / jnp.sqrt(var + BN_EPS)
    return dict(w=w.astype(jnp.bfloat16),
                scale=inv.reshape(cout, 1),
                bias=(beta - mean * inv).reshape(cout, 1))


def _fuse_conv(key, cin, cout):
    """fuse = Conv(3x3, bias=True) -> BN (no ReLU); conv bias folded into BN."""
    kw, kb, kbn = jax.random.split(key, 3)
    w = 0.1 * jax.random.normal(kw, (cout, 9 * cin), jnp.float32)
    conv_b = 0.1 * jax.random.normal(kb, (cout,), jnp.float32)
    gamma, beta, mean, var = _init_bn(kbn, cout)
    inv = gamma / jnp.sqrt(var + BN_EPS)
    return dict(w=w.astype(jnp.bfloat16),
                scale=inv.reshape(cout, 1),
                bias=(beta + inv * (conv_b - mean)).reshape(cout, 1))


def make_hmu_params(key, in_c, hidden_dim=None):
    hid = hidden_dim or in_c // 2
    keys = jax.random.split(key, 7)
    gk1, gk2, gk3, gk4 = jax.random.split(keys[6], 4)
    return dict(
        in_c=in_c,
        hidden=hid,
        expand=_basic_conv(keys[0], in_c, NUM_GROUPS * hid, 1),
        interact=[
            _basic_conv(keys[1], hid, 3 * hid, 3),
            _basic_conv(keys[2], 2 * hid, 3 * hid, 3),
            _basic_conv(keys[3], 2 * hid, 3 * hid, 3),
            _basic_conv(keys[4], 2 * hid, 2 * hid, 3),
        ],
        gate=dict(
            w1=(0.1 * jax.random.normal(gk1, (hid, NUM_GROUPS * hid),
                                        jnp.float32)).astype(jnp.bfloat16),
            b1=0.1 * jax.random.normal(gk2, (hid, 1), jnp.float32),
            w2=(0.1 * jax.random.normal(gk3, (NUM_GROUPS * hid, hid),
                                        jnp.float32)).astype(jnp.bfloat16),
            b2=0.1 * jax.random.normal(gk4, (NUM_GROUPS * hid, 1), jnp.float32),
        ),
        fuse=_fuse_conv(keys[5], NUM_GROUPS * hid, in_c),
    )


# -------------------------- pure-JAX reference ------------------------------ #

def _conv3x3_ref(x, w_flat, scale, bias, relu=True):
    cout = w_flat.shape[0]
    cin = x.shape[1]
    w = (w_flat.astype(jnp.float32)
         .reshape(cout, 3, 3, cin).transpose(0, 3, 1, 2))
    y = jax.lax.conv_general_dilated(
        x, w, window_strides=(1, 1), padding=((1, 1), (1, 1)),
        dimension_numbers=("NCHW", "OIHW", "NCHW"))
    y = y * scale.reshape(1, cout, 1, 1) + bias.reshape(1, cout, 1, 1)
    return jnp.maximum(y, 0.0) if relu else y


def hmu_reference(params, x):
    hid = params["hidden"]
    e, it, g, f = (params["expand"], params["interact"],
                   params["gate"], params["fuse"])
    xe = jnp.einsum("oc,nchw->nohw", e["w"].astype(jnp.float32), x)
    xe = jnp.maximum(xe * e["scale"].reshape(1, -1, 1, 1)
                     + e["bias"].reshape(1, -1, 1, 1), 0.0)
    xs = [xe[:, i * hid:(i + 1) * hid] for i in range(NUM_GROUPS)]

    b0 = _conv3x3_ref(xs[0], it[0]["w"], it[0]["scale"], it[0]["bias"])
    outs = [(b0[:, :hid], b0[:, hid:2 * hid], b0[:, 2 * hid:])]
    for gi in (1, 2):
        inp = jnp.concatenate([xs[gi], outs[gi - 1][1]], axis=1)
        bg = _conv3x3_ref(inp, it[gi]["w"], it[gi]["scale"], it[gi]["bias"])
        outs.append((bg[:, :hid], bg[:, hid:2 * hid], bg[:, 2 * hid:]))
    inp = jnp.concatenate([xs[3], outs[2][1]], axis=1)
    b3 = _conv3x3_ref(inp, it[3]["w"], it[3]["scale"], it[3]["bias"])
    outs.append((b3[:, :hid], b3[:, hid:]))

    out_cat = jnp.concatenate([o[0] for o in outs], axis=1)
    gate_cat = jnp.concatenate([o[-1] for o in outs], axis=1)

    pooled = jnp.mean(gate_cat, axis=(2, 3))                     # (N, 4h)
    g1 = jnp.maximum(pooled @ g["w1"].astype(jnp.float32).T
                     + g["b1"].reshape(1, -1), 0.0)
    g2 = g1 @ g["w2"].astype(jnp.float32).T + g["b2"].reshape(1, -1)
    gate = jax.nn.softmax(g2, axis=1)[:, :, None, None]

    fused = _conv3x3_ref(out_cat * gate, f["w"], f["scale"], f["bias"],
                         relu=False)
    return jnp.maximum(fused + x, 0.0)


# ---------------------------------- main ------------------------------------ #

if __name__ == "__main__":
    key = jax.random.PRNGKey(0)
    kp, kx = jax.random.split(key)

    N, in_c, H, W = 8, 8, 16, 16          # hidden_dim = in_c // 2 = 4
    params = make_hmu_params(kp, in_c)
    x = jax.random.normal(kx, (N, in_c, H, W), jnp.float32)

    fwd = jax.jit(functools.partial(hmu_forward, params))
    y = fwd(x)                            # B = 4 images per step, grid = 2
    jax.block_until_ready(y)

    assert y.shape == (N, in_c, H, W), y.shape
    assert bool(jnp.all(jnp.isfinite(y)))
    assert bool(jnp.all(y >= 0.0))        # module ends in ReLU

    # Numerical check vs a pure-JAX reference (same bf16-rounded weights;
    # only bf16 rounding of matmul activations differs -> loose tolerance).
    y_ref = hmu_reference(params, x)
    max_err = float(jnp.max(jnp.abs(y - y_ref)))
    assert jnp.allclose(y, y_ref, atol=5e-2, rtol=5e-2), max_err

    print("KERNEL_OK")
</pallas_src>

<mosaic_0001>
module attributes {stable_mosaic.version = 11 : i64} {
  func.func @kernel(%arg0: i32, %arg1: memref<4x8x256xf32, #tpu.memory_space<vmem>>, %arg2: memref<16x8xbf16, #tpu.memory_space<vmem>>, %arg3: memref<12x36xbf16, #tpu.memory_space<vmem>>, %arg4: memref<12x72xbf16, #tpu.memory_space<vmem>>, %arg5: memref<12x72xbf16, #tpu.memory_space<vmem>>, %arg6: memref<8x72xbf16, #tpu.memory_space<vmem>>, %arg7: memref<4x16xbf16, #tpu.memory_space<vmem>>, %arg8: memref<16x4xbf16, #tpu.memory_space<vmem>>, %arg9: memref<8x144xbf16, #tpu.memory_space<vmem>>, %arg10: memref<184x1xf32, #tpu.memory_space<vmem>>, %arg11: memref<4x8x256xf32, #tpu.memory_space<vmem>>) attributes {dimension_semantics = [#tpu.dimension_semantics<parallel>], iteration_bounds = array<i64: 2>, scalar_prefetch = 0 : i64, scratch_operands = 0 : i64, tpu.core_type = #tpu.core_type<tc>, window_params = [{transform_indices = @transform_0, window_bounds = array<i64: 4, 8, 256>}, {pipeline_mode = #tpu.pipeline_mode<synchronous>, transform_indices = @transform_1, window_bounds = array<i64: 16, 8>}, {pipeline_mode = #tpu.pipeline_mode<synchronous>, transform_indices = @transform_2, window_bounds = array<i64: 12, 36>}, {pipeline_mode = #tpu.pipeline_mode<synchronous>, transform_indices = @transform_3, window_bounds = array<i64: 12, 72>}, {pipeline_mode = #tpu.pipeline_mode<synchronous>, transform_indices = @transform_4, window_bounds = array<i64: 12, 72>}, {pipeline_mode = #tpu.pipeline_mode<synchronous>, transform_indices = @transform_5, window_bounds = array<i64: 8, 72>}, {pipeline_mode = #tpu.pipeline_mode<synchronous>, transform_indices = @transform_6, window_bounds = array<i64: 4, 16>}, {pipeline_mode = #tpu.pipeline_mode<synchronous>, transform_indices = @transform_7, window_bounds = array<i64: 16, 4>}, {pipeline_mode = #tpu.pipeline_mode<synchronous>, transform_indices = @transform_8, window_bounds = array<i64: 8, 144>}, {pipeline_mode = #tpu.pipeline_mode<synchronous>, transform_indices = @transform_9, window_bounds = array<i64: 184, 1>}, {transform_indices = @transform_10, window_bounds = array<i64: 4, 8, 256>}]} {
    %0 = tpu.iota {dimensions = array<i32: 1>} : vector<1x1024xi32>
    %c15_i32 = arith.constant 15 : i32
    %1 = vector.broadcast %c15_i32 : i32 to vector<1x1024xi32>
    %2 = arith.andi %0, %1 : vector<1x1024xi32>
    %c255_i32 = arith.constant 255 : i32
    %3 = vector.broadcast %c255_i32 : i32 to vector<1x1024xi32>
    %4 = arith.andi %0, %3 : vector<1x1024xi32>
    %c4_i32 = arith.constant 4 : i32
    %5 = vector.broadcast %c4_i32 : i32 to vector<1x1024xi32>
    %6 = arith.shrsi %4, %5 : vector<1x1024xi32>
    %c1_i32 = arith.constant 1 : i32
    %7 = vector.broadcast %c1_i32 : i32 to vector<1x1024xi32>
    %8 = arith.cmpi sge, %6, %7 : vector<1x1024xi32>
    %c14_i32 = arith.constant 14 : i32
    %9 = vector.broadcast %c14_i32 : i32 to vector<1x1024xi32>
    %10 = arith.cmpi sle, %6, %9 : vector<1x1024xi32>
    %c1_i32_0 = arith.constant 1 : i32
    %11 = vector.broadcast %c1_i32_0 : i32 to vector<1x1024xi32>
    %12 = arith.cmpi sge, %2, %11 : vector<1x1024xi32>
    %c14_i32_1 = arith.constant 14 : i32
    %13 = vector.broadcast %c14_i32_1 : i32 to vector<1x1024xi32>
    %14 = arith.cmpi sle, %2, %13 : vector<1x1024xi32>
    %15 = arith.andi %8, %12 : vector<1x1024xi1>
    %16 = arith.andi %8, %14 : vector<1x1024xi1>
    %17 = arith.andi %10, %12 : vector<1x1024xi1>
    %18 = arith.andi %10, %14 : vector<1x1024xi1>
    %c8_i32 = arith.constant 8 : i32
    %19 = vector.broadcast %c8_i32 : i32 to vector<1x1024xi32>
    %20 = arith.shrsi %0, %19 : vector<1x1024xi32>
    %c0_i32 = arith.constant 0 : i32
    %21 = vector.broadcast %c0_i32 : i32 to vector<1x1024xi32>
    %22 = arith.cmpi eq, %20, %21 : vector<1x1024xi32>
    %c1_i32_2 = arith.constant 1 : i32
    %23 = vector.broadcast %c1_i32_2 : i32 to vector<1x1024xi32>
    %24 = arith.cmpi eq, %20, %23 : vector<1x1024xi32>
    %c2_i32 = arith.constant 2 : i32
    %25 = vector.broadcast %c2_i32 : i32 to vector<1x1024xi32>
    %26 = arith.cmpi eq, %20, %25 : vector<1x1024xi32>
    %c3_i32 = arith.constant 3 : i32
    %27 = vector.broadcast %c3_i32 : i32 to vector<1x1024xi32>
    %28 = arith.cmpi eq, %20, %27 : vector<1x1024xi32>
    %c0 = arith.constant 0 : index
    %c0_3 = arith.constant 0 : index
    %c0_4 = arith.constant 0 : index
    %29 = vector.load %arg1[%c0, %c0_3, %c0_4] : memref<4x8x256xf32, #tpu.memory_space<vmem>>, vector<1x8x256xf32>
    %30 = vector.shape_cast %29 : vector<1x8x256xf32> to vector<8x256xf32>
    %c1 = arith.constant 1 : index
    %c0_5 = arith.constant 0 : index
    %c0_6 = arith.constant 0 : index
    %31 = vector.load %arg1[%c1, %c0_5, %c0_6] : memref<4x8x256xf32, #tpu.memory_space<vmem>>, vector<1x8x256xf32>
    %32 = vector.shape_cast %31 : vector<1x8x256xf32> to vector<8x256xf32>
    %c2 = arith.constant 2 : index
    %c0_7 = arith.constant 0 : index
    %c0_8 = arith.constant 0 : index
    %33 = vector.load %arg1[%c2, %c0_7, %c0_8] : memref<4x8x256xf32, #tpu.memory_space<vmem>>, vector<1x8x256xf32>
    %34 = vector.shape_cast %33 : vector<1x8x256xf32> to vector<8x256xf32>
    %c3 = arith.constant 3 : index
    %c0_9 = arith.constant 0 : index
    %c0_10 = arith.constant 0 : index
    %35 = vector.load %arg1[%c3, %c0_9, %c0_10] : memref<4x8x256xf32, #tpu.memory_space<vmem>>, vector<1x8x256xf32>
    %36 = vector.shape_cast %35 : vector<1x8x256xf32> to vector<8x256xf32>
    %37 = tpu.concatenate %30, %32, %34, %36 in 1 : vector<8x256xf32>, vector<8x256xf32>, vector<8x256xf32>, vector<8x256xf32> -> vector<8x1024xf32>
    %c0_11 = arith.constant 0 : index
    %c0_12 = arith.constant 0 : index
    %38 = vector.load %arg2[%c0_11, %c0_12] : memref<16x8xbf16, #tpu.memory_space<vmem>>, vector<16x8xbf16>
    %39 = arith.truncf %37 : vector<8x1024xf32> to vector<8x1024xbf16>
    %cst = arith.constant dense<0.000000e+00> : vector<16x1024xf32>
    %40 = tpu.matmul %38, %39, %cst {dimension_numbers = #tpu.dot_dimension_numbers<[1], [0], [0], [1], [0, 0, 1, 1], [], []>} : vector<16x8xbf16>, vector<8x1024xbf16>, vector<16x1024xf32> -> vector<16x1024xf32>
    %c0_13 = arith.constant 0 : index
    %c0_14 = arith.constant 0 : index
    %41 = vector.load %arg10[%c0_13, %c0_14] : memref<184x1xf32, #tpu.memory_space<vmem>>, vector<16x1xf32>
    %42 = vector.broadcast %41 : vector<16x1xf32> to vector<16x1024xf32>
    %43 = arith.mulf %40, %42 : vector<16x1024xf32>
    %c16 = arith.constant 16 : index
    %c0_15 = arith.constant 0 : index
    %44 = vector.load %arg10[%c16, %c0_15] : memref<184x1xf32, #tpu.memory_space<vmem>>, vector<16x1xf32>
    %45 = vector.broadcast %44 : vector<16x1xf32> to vector<16x1024xf32>
    %46 = arith.addf %43, %45 : vector<16x1024xf32>
    %cst_16 = arith.constant 0.000000e+00 : f32
    %47 = vector.broadcast %cst_16 : f32 to vector<16x1024xf32>
    %48 = arith.maximumf %46, %47 : vector<16x1024xf32>
    %49 = vector.extract_strided_slice %48 {offsets = [0, 0], sizes = [4, 1024], strides = [1, 1]} : vector<16x1024xf32> to vector<4x1024xf32>
    %c32 = arith.constant 32 : index
    %c0_17 = arith.constant 0 : index
    %50 = vector.load %arg10[%c32, %c0_17] : memref<184x1xf32, #tpu.memory_space<vmem>>, vector<12x1xf32>
    %c48 = arith.constant 48 : index
    %c0_18 = arith.constant 0 : index
    %51 = vector.load %arg10[%c48, %c0_18] : memref<184x1xf32, #tpu.memory_space<vmem>>, vector<12x1xf32>
    %c17_i32 = arith.constant 17 : i32
    %52 = tpu.dynamic_rotate %49 by %c17_i32 dim 1 : vector<4x1024xf32>, i32 -> vector<4x1024xf32>
    %cst_19 = arith.constant 0.000000e+00 : f32
    %53 = vector.shape_cast %15 : vector<1x1024xi1> to vector<1x1024xi1>
    %54 = vector.broadcast %53 : vector<1x1024xi1> to vector<4x1024xi1>
    %55 = vector.broadcast %cst_19 : f32 to vector<4x1024xf32>
    %56 = arith.select %54, %52, %55 : vector<4x1024xi1>, vector<4x1024xf32>
    %c16_i32 = arith.constant 16 : i32
    %57 = tpu.dynamic_rotate %49 by %c16_i32 dim 1 : vector<4x1024xf32>, i32 -> vector<4x1024xf32>
    %cst_20 = arith.constant 0.000000e+00 : f32
    %58 = vector.shape_cast %8 : vector<1x1024xi1> to vector<1x1024xi1>
    %59 = vector.broadcast %58 : vector<1x1024xi1> to vector<4x1024xi1>
    %60 = vector.broadcast %cst_20 : f32 to vector<4x1024xf32>
    %61 = arith.select %59, %57, %60 : vector<4x1024xi1>, vector<4x1024xf32>
    %c15_i32_21 = arith.constant 15 : i32
    %62 = tpu.dynamic_rotate %49 by %c15_i32_21 dim 1 : vector<4x1024xf32>, i32 -> vector<4x1024xf32>
    %cst_22 = arith.constant 0.000000e+00 : f32
    %63 = vector.shape_cast %16 : vector<1x1024xi1> to vector<1x1024xi1>
    %64 = vector.broadcast %63 : vector<1x1024xi1> to vector<4x1024xi1>
    %65 = vector.broadcast %cst_22 : f32 to vector<4x1024xf32>
    %66 = arith.select %64, %62, %65 : vector<4x1024xi1>, vector<4x1024xf32>
    %c1_i32_23 = arith.constant 1 : i32
    %67 = tpu.dynamic_rotate %49 by %c1_i32_23 dim 1 : vector<4x1024xf32>, i32 -> vector<4x1024xf32>
    %cst_24 = arith.constant 0.000000e+00 : f32
    %68 = vector.shape_cast %12 : vector<1x1024xi1> to vector<1x1024xi1>
    %69 = vector.broadcast %68 : vector<1x1024xi1> to vector<4x1024xi1>
    %70 = vector.broadcast %cst_24 : f32 to vector<4x1024xf32>
    %71 = arith.select %69, %67, %70 : vector<4x1024xi1>, vector<4x1024xf32>
    %c1023_i32 = arith.constant 1023 : i32
    %72 = tpu.dynamic_rotate %49 by %c1023_i32 dim 1 : vector<4x1024xf32>, i32 -> vector<4x1024xf32>
    %cst_25 = arith.constant 0.000000e+00 : f32
    %73 = vector.shape_cast %14 : vector<1x1024xi1> to vector<1x1024xi1>
    %74 = vector.broadcast %73 : vector<1x1024xi1> to vector<4x1024xi1>
    %75 = vector.broadcast %cst_25 : f32 to vector<4x1024xf32>
    %76 = arith.select %74, %72, %75 : vector<4x1024xi1>, vector<4x1024xf32>
    %c1009_i32 = arith.constant 1009 : i32
    %77 = tpu.dynamic_rotate %49 by %c1009_i32 dim 1 : vector<4x1024xf32>, i32 -> vector<4x1024xf32>
    %cst_26 = arith.constant 0.000000e+00 : f32
    %78 = vector.shape_cast %17 : vector<1x1024xi1> to vector<1x1024xi1>
    %79 = vector.broadcast %78 : vector<1x1024xi1> to vector<4x1024xi1>
    %80 = vector.broadcast %cst_26 : f32 to vector<4x1024xf32>
    %81 = arith.select %79, %77, %80 : vector<4x1024xi1>, vector<4x1024xf32>
    %c1008_i32 = arith.constant 1008 : i32
    %82 = tpu.dynamic_rotate %49 by %c1008_i32 dim 1 : vector<4x1024xf32>, i32 -> vector<4x1024xf32>
    %cst_27 = arith.constant 0.000000e+00 : f32
    %83 = vector.shape_cast %10 : vector<1x1024xi1> to vector<1x1024xi1>
    %84 = vector.broadcast %83 : vector<1x1024xi1> to vector<4x1024xi1>
    %85 = vector.broadcast %cst_27 : f32 to vector<4x1024xf32>
    %86 = arith.select %84, %82, %85 : vector<4x1024xi1>, vector<4x1024xf32>
    %c1007_i32 = arith.constant 1007 : i32
    %87 = tpu.dynamic_rotate %49 by %c1007_i32 dim 1 : vector<4x1024xf32>, i32 -> vector<4x1024xf32>
    %cst_28 = arith.constant 0.000000e+00 : f32
    %88 = vector.shape_cast %18 : vector<1x1024xi1> to vector<1x1024xi1>
    %89 = vector.broadcast %88 : vector<1x1024xi1> to vector<4x1024xi1>
    %90 = vector.broadcast %cst_28 : f32 to vector<4x1024xf32>
    %91 = arith.select %89, %87, %90 : vector<4x1024xi1>, vector<4x1024xf32>
    %92 = tpu.concatenate %56, %61, %66, %71, %49, %76, %81, %86, %91 in 0 : vector<4x1024xf32>, vector<4x1024xf32>, vector<4x1024xf32>, vector<4x1024xf32>, vector<4x1024xf32>, vector<4x1024xf32>, vector<4x1024xf32>, vector<4x1024xf32>, vector<4x1024xf32> -> vector<36x1024xf32>
    %93 = arith.truncf %92 : vector<36x1024xf32> to vector<36x1024xbf16>
    %c0_29 = arith.constant 0 : index
    %c0_30 = arith.constant 0 : index
    %94 = vector.load %arg3[%c0_29, %c0_30] : memref<12x36xbf16, #tpu.memory_space<vmem>>, vector<12x36xbf16>
    %cst_31 = arith.constant dense<0.000000e+00> : vector<12x1024xf32>
    %95 = tpu.matmul %94, %93, %cst_31 {dimension_numbers = #tpu.dot_dimension_numbers<[1], [0], [0], [1], [0, 0, 1, 1], [], []>} : vector<12x36xbf16>, vector<36x1024xbf16>, vector<12x1024xf32> -> vector<12x1024xf32>
    %96 = vector.broadcast %50 : vector<12x1xf32> to vector<12x1024xf32>
    %97 = arith.mulf %95, %96 : vector<12x1024xf32>
    %98 = vector.broadcast %51 : vector<12x1xf32> to vector<12x1024xf32>
    %99 = arith.addf %97, %98 : vector<12x1024xf32>
    %cst_32 = arith.constant 0.000000e+00 : f32
    %100 = vector.broadcast %cst_32 : f32 to vector<12x1024xf32>
    %101 = arith.maximumf %99, %100 : vector<12x1024xf32>
    %102 = vector.extract_strided_slice %101 {offsets = [0, 0], sizes = [4, 1024], strides = [1, 1]} : vector<12x1024xf32> to vector<4x1024xf32>
    %103 = vector.extract_strided_slice %101 {offsets = [8, 0], sizes = [4, 1024], strides = [1, 1]} : vector<12x1024xf32> to vector<4x1024xf32>
    %104 = vector.extract_strided_slice %101 {offsets = [4, 0], sizes = [4, 1024], strides = [1, 1]} : vector<12x1024xf32> to vector<4x1024xf32>
    %105 = vector.extract_strided_slice %48 {offsets = [4, 0], sizes = [4, 1024], strides = [1, 1]} : vector<16x1024xf32> to vector<4x1024xf32>
    %106 = tpu.concatenate %105, %104 in 0 : vector<4x1024xf32>, vector<4x1024xf32> -> vector<8x1024xf32>
    %c64 = arith.constant 64 : index
    %c0_33 = arith.constant 0 : index
    %107 = vector.load %arg10[%c64, %c0_33] : memref<184x1xf32, #tpu.memory_space<vmem>>, vector<12x1xf32>
    %c80 = arith.constant 80 : index
    %c0_34 = arith.constant 0 : index
    %108 = vector.load %arg10[%c80, %c0_34] : memref<184x1xf32, #tpu.memory_space<vmem>>, vector<12x1xf32>
    %c17_i32_35 = arith.constant 17 : i32
    %109 = tpu.dynamic_rotate %106 by %c17_i32_35 dim 1 : vector<8x1024xf32>, i32 -> vector<8x1024xf32>
    %cst_36 = arith.constant 0.000000e+00 : f32
    %110 = vector.shape_cast %15 : vector<1x1024xi1> to vector<1x1024xi1>
    %111 = vector.broadcast %110 : vector<1x1024xi1> to vector<8x1024xi1>
    %112 = vector.broadcast %cst_36 : f32 to vector<8x1024xf32>
    %113 = arith.select %111, %109, %112 : vector<8x1024xi1>, vector<8x1024xf32>
    %c16_i32_37 = arith.constant 16 : i32
    %114 = tpu.dynamic_rotate %106 by %c16_i32_37 dim 1 : vector<8x1024xf32>, i32 -> vector<8x1024xf32>
    %cst_38 = arith.constant 0.000000e+00 : f32
    %115 = vector.shape_cast %8 : vector<1x1024xi1> to vector<1x1024xi1>
    %116 = vector.broadcast %115 : vector<1x1024xi1> to vector<8x1024xi1>
    %117 = vector.broadcast %cst_38 : f32 to vector<8x1024xf32>
    %118 = arith.select %116, %114, %117 : vector<8x1024xi1>, vector<8x1024xf32>
    %c15_i32_39 = arith.constant 15 : i32
    %119 = tpu.dynamic_rotate %106 by %c15_i32_39 dim 1 : vector<8x1024xf32>, i32 -> vector<8x1024xf32>
    %cst_40 = arith.constant 0.000000e+00 : f32
    %120 = vector.shape_cast %16 : vector<1x1024xi1> to vector<1x1024xi1>
    %121 = vector.broadcast %120 : vector<1x1024xi1> to vector<8x1024xi1>
    %122 = vector.broadcast %cst_40 : f32 to vector<8x1024xf32>
    %123 = arith.select %121, %119, %122 : vector<8x1024xi1>, vector<8x1024xf32>
    %c1_i32_41 = arith.constant 1 : i32
    %124 = tpu.dynamic_rotate %106 by %c1_i32_41 dim 1 : vector<8x1024xf32>, i32 -> vector<8x1024xf32>
    %cst_42 = arith.constant 0.000000e+00 : f32
    %125 = vector.shape_cast %12 : vector<1x1024xi1> to vector<1x1024xi1>
    %126 = vector.broadcast %125 : vector<1x1024xi1> to vector<8x1024xi1>
    %127 = vector.broadcast %cst_42 : f32 to vector<8x1024xf32>
    %128 = arith.select %126, %124, %127 : vector<8x1024xi1>, vector<8x1024xf32>
    %c1023_i32_43 = arith.constant 1023 : i32
    %129 = tpu.dynamic_rotate %106 by %c1023_i32_43 dim 1 : vector<8x1024xf32>, i32 -> vector<8x1024xf32>
    %cst_44 = arith.constant 0.000000e+00 : f32
    %130 = vector.shape_cast %14 : vector<1x1024xi1> to vector<1x1024xi1>
    %131 = vector.broadcast %130 : vector<1x1024xi1> to vector<8x1024xi1>
    %132 = vector.broadcast %cst_44 : f32 to vector<8x1024xf32>
    %133 = arith.select %131, %129, %132 : vector<8x1024xi1>, vector<8x1024xf32>
    %c1009_i32_45 = arith.constant 1009 : i32
    %134 = tpu.dynamic_rotate %106 by %c1009_i32_45 dim 1 : vector<8x1024xf32>, i32 -> vector<8x1024xf32>
    %cst_46 = arith.constant 0.000000e+00 : f32
    %135 = vector.shape_cast %17 : vector<1x1024xi1> to vector<1x1024xi1>
    %136 = vector.broadcast %135 : vector<1x1024xi1> to vector<8x1024xi1>
    %137 = vector.broadcast %cst_46 : f32 to vector<8x1024xf32>
    %138 = arith.select %136, %134, %137 : vector<8x1024xi1>, vector<8x1024xf32>
    %c1008_i32_47 = arith.constant 1008 : i32
    %139 = tpu.dynamic_rotate %106 by %c1008_i32_47 dim 1 : vector<8x1024xf32>, i32 -> vector<8x1024xf32>
    %cst_48 = arith.constant 0.000000e+00 : f32
    %140 = vector.shape_cast %10 : vector<1x1024xi1> to vector<1x1024xi1>
    %141 = vector.broadcast %140 : vector<1x1024xi1> to vector<8x1024xi1>
    %142 = vector.broadcast %cst_48 : f32 to vector<8x1024xf32>
    %143 = arith.select %141, %139, %142 : vector<8x1024xi1>, vector<8x1024xf32>
    %c1007_i32_49 = arith.constant 1007 : i32
    %144 = tpu.dynamic_rotate %106 by %c1007_i32_49 dim 1 : vector<8x1024xf32>, i32 -> vector<8x1024xf32>
    %cst_50 = arith.constant 0.000000e+00 : f32
    %145 = vector.shape_cast %18 : vector<1x1024xi1> to vector<1x1024xi1>
    %146 = vector.broadcast %145 : vector<1x1024xi1> to vector<8x1024xi1>
    %147 = vector.broadcast %cst_50 : f32 to vector<8x1024xf32>
    %148 = arith.select %146, %144, %147 : vector<8x1024xi1>, vector<8x1024xf32>
    %149 = tpu.concatenate %113, %118, %123, %128, %106, %133, %138, %143, %148 in 0 : vector<8x1024xf32>, vector<8x1024xf32>, vector<8x1024xf32>, vector<8x1024xf32>, vector<8x1024xf32>, vector<8x1024xf32>, vector<8x1024xf32>, vector<8x1024xf32>, vector<8x1024xf32> -> vector<72x1024xf32>
    %150 = arith.truncf %149 : vector<72x1024xf32> to vector<72x1024xbf16>
    %c0_51 = arith.constant 0 : index
    %c0_52 = arith.constant 0 : index
    %151 = vector.load %arg4[%c0_51, %c0_52] : memref<12x72xbf16, #tpu.memory_space<vmem>>, vector<12x72xbf16>
    %cst_53 = arith.constant dense<0.000000e+00> : vector<12x1024xf32>
    %152 = tpu.matmul %151, %150, %cst_53 {dimension_numbers = #tpu.dot_dimension_numbers<[1], [0], [0], [1], [0, 0, 1, 1], [], []>} : vector<12x72xbf16>, vector<72x1024xbf16>, vector<12x1024xf32> -> vector<12x1024xf32>
    %153 = vector.broadcast %107 : vector<12x1xf32> to vector<12x1024xf32>
    %154 = arith.mulf %152, %153 : vector<12x1024xf32>
    %155 = vector.broadcast %108 : vector<12x1xf32> to vector<12x1024xf32>
    %156 = arith.addf %154, %155 : vector<12x1024xf32>
    %cst_54 = arith.constant 0.000000e+00 : f32
    %157 = vector.broadcast %cst_54 : f32 to vector<12x1024xf32>
    %158 = arith.maximumf %156, %157 : vector<12x1024xf32>
    %159 = vector.extract_strided_slice %158 {offsets = [0, 0], sizes = [4, 1024], strides = [1, 1]} : vector<12x1024xf32> to vector<4x1024xf32>
    %160 = vector.extract_strided_slice %158 {offsets = [8, 0], sizes = [4, 1024], strides = [1, 1]} : vector<12x1024xf32> to vector<4x1024xf32>
    %161 = vector.extract_strided_slice %158 {offsets = [4, 0], sizes = [4, 1024], strides = [1, 1]} : vector<12x1024xf32> to vector<4x1024xf32>
    %162 = vector.extract_strided_slice %48 {offsets = [8, 0], sizes = [4, 1024], strides = [1, 1]} : vector<16x1024xf32> to vector<4x1024xf32>
    %163 = tpu.concatenate %162, %161 in 0 : vector<4x1024xf32>, vector<4x1024xf32> -> vector<8x1024xf32>
    %c96 = arith.constant 96 : index
    %c0_55 = arith.constant 0 : index
    %164 = vector.load %arg10[%c96, %c0_55] : memref<184x1xf32, #tpu.memory_space<vmem>>, vector<12x1xf32>
    %c112 = arith.constant 112 : index
    %c0_56 = arith.constant 0 : index
    %165 = vector.load %arg10[%c112, %c0_56] : memref<184x1xf32, #tpu.memory_space<vmem>>, vector<12x1xf32>
    %c17_i32_57 = arith.constant 17 : i32
    %166 = tpu.dynamic_rotate %163 by %c17_i32_57 dim 1 : vector<8x1024xf32>, i32 -> vector<8x1024xf32>
    %cst_58 = arith.constant 0.000000e+00 : f32
    %167 = vector.shape_cast %15 : vector<1x1024xi1> to vector<1x1024xi1>
    %168 = vector.broadcast %167 : vector<1x1024xi1> to vector<8x1024xi1>
    %169 = vector.broadcast %cst_58 : f32 to vector<8x1024xf32>
    %170 = arith.select %168, %166, %169 : vector<8x1024xi1>, vector<8x1024xf32>
    %c16_i32_59 = arith.constant 16 : i32
    %171 = tpu.dynamic_rotate %163 by %c16_i32_59 dim 1 : vector<8x1024xf32>, i32 -> vector<8x1024xf32>
    %cst_60 = arith.constant 0.000000e+00 : f32
    %172 = vector.shape_cast %8 : vector<1x1024xi1> to vector<1x1024xi1>
    %173 = vector.broadcast %172 : vector<1x1024xi1> to vector<8x1024xi1>
    %174 = vector.broadcast %cst_60 : f32 to vector<8x1024xf32>
    %175 = arith.select %173, %171, %174 : vector<8x1024xi1>, vector<8x1024xf32>
    %c15_i32_61 = arith.constant 15 : i32
    %176 = tpu.dynamic_rotate %163 by %c15_i32_61 dim 1 : vector<8x1024xf32>, i32 -> vector<8x1024xf32>
    %cst_62 = arith.constant 0.000000e+00 : f32
    %177 = vector.shape_cast %16 : vector<1x1024xi1> to vector<1x1024xi1>
    %178 = vector.broadcast %177 : vector<1x1024xi1> to vector<8x1024xi1>
    %179 = vector.broadcast %cst_62 : f32 to vector<8x1024xf32>
    %180 = arith.select %178, %176, %179 : vector<8x1024xi1>, vector<8x1024xf32>
    %c1_i32_63 = arith.constant 1 : i32
    %181 = tpu.dynamic_rotate %163 by %c1_i32_63 dim 1 : vector<8x1024xf32>, i32 -> vector<8x1024xf32>
    %cst_64 = arith.constant 0.000000e+00 : f32
    %182 = vector.shape_cast %12 : vector<1x1024xi1> to vector<1x1024xi1>
    %183 = vector.broadcast %182 : vector<1x1024xi1> to vector<8x1024xi1>
    %184 = vector.broadcast %cst_64 : f32 to vector<8x1024xf32>
    %185 = arith.select %183, %181, %184 : vector<8x1024xi1>, vector<8x1024xf32>
    %c1023_i32_65 = arith.constant 1023 : i32
    %186 = tpu.dynamic_rotate %163 by %c1023_i32_65 dim 1 : vector<8x1024xf32>, i32 -> vector<8x1024xf32>
    %cst_66 = arith.constant 0.000000e+00 : f32
    %187 = vector.shape_cast %14 : vector<1x1024xi1> to vector<1x1024xi1>
    %188 = vector.broadcast %187 : vector<1x1024xi1> to vector<8x1024xi1>
    %189 = vector.broadcast %cst_66 : f32 to vector<8x1024xf32>
    %190 = arith.select %188, %186, %189 : vector<8x1024xi1>, vector<8x1024xf32>
    %c1009_i32_67 = arith.constant 1009 : i32
    %191 = tpu.dynamic_rotate %163 by %c1009_i32_67 dim 1 : vector<8x1024xf32>, i32 -> vector<8x1024xf32>
    %cst_68 = arith.constant 0.000000e+00 : f32
    %192 = vector.shape_cast %17 : vector<1x1024xi1> to vector<1x1024xi1>
    %193 = vector.broadcast %192 : vector<1x1024xi1> to vector<8x1024xi1>
    %194 = vector.broadcast %cst_68 : f32 to vector<8x1024xf32>
    %195 = arith.select %193, %191, %194 : vector<8x1024xi1>, vector<8x1024xf32>
    %c1008_i32_69 = arith.constant 1008 : i32
    %196 = tpu.dynamic_rotate %163 by %c1008_i32_69 dim 1 : vector<8x1024xf32>, i32 -> vector<8x1024xf32>
    %cst_70 = arith.constant 0.000000e+00 : f32
    %197 = vector.shape_cast %10 : vector<1x1024xi1> to vector<1x1024xi1>
    %198 = vector.broadcast %197 : vector<1x1024xi1> to vector<8x1024xi1>
    %199 = vector.broadcast %cst_70 : f32 to vector<8x1024xf32>
    %200 = arith.select %198, %196, %199 : vector<8x1024xi1>, vector<8x1024xf32>
    %c1007_i32_71 = arith.constant 1007 : i32
    %201 = tpu.dynamic_rotate %163 by %c1007_i32_71 dim 1 : vector<8x1024xf32>, i32 -> vector<8x1024xf32>
    %cst_72 = arith.constant 0.000000e+00 : f32
    %202 = vector.shape_cast %18 : vector<1x1024xi1> to vector<1x1024xi1>
    %203 = vector.broadcast %202 : vector<1x1024xi1> to vector<8x1024xi1>
    %204 = vector.broadcast %cst_72 : f32 to vector<8x1024xf32>
    %205 = arith.select %203, %201, %204 : vector<8x1024xi1>, vector<8x1024xf32>
    %206 = tpu.concatenate %170, %175, %180, %185, %163, %190, %195, %200, %205 in 0 : vector<8x1024xf32>, vector<8x1024xf32>, vector<8x1024xf32>, vector<8x1024xf32>, vector<8x1024xf32>, vector<8x1024xf32>, vector<8x1024xf32>, vector<8x1024xf32>, vector<8x1024xf32> -> vector<72x1024xf32>
    %207 = arith.truncf %206 : vector<72x1024xf32> to vector<72x1024xbf16>
    %c0_73 = arith.constant 0 : index
    %c0_74 = arith.constant 0 : index
    %208 = vector.load %arg5[%c0_73, %c0_74] : memref<12x72xbf16, #tpu.memory_space<vmem>>, vector<12x72xbf16>
    %cst_75 = arith.constant dense<0.000000e+00> : vector<12x1024xf32>
    %209 = tpu.matmul %208, %207, %cst_75 {dimension_numbers = #tpu.dot_dimension_numbers<[1], [0], [0], [1], [0, 0, 1, 1], [], []>} : vector<12x72xbf16>, vector<72x1024xbf16>, vector<12x1024xf32> -> vector<12x1024xf32>
    %210 = vector.broadcast %164 : vector<12x1xf32> to vector<12x1024xf32>
    %211 = arith.mulf %209, %210 : vector<12x1024xf32>
    %212 = vector.broadcast %165 : vector<12x1xf32> to vector<12x1024xf32>
    %213 = arith.addf %211, %212 : vector<12x1024xf32>
    %cst_76 = arith.constant 0.000000e+00 : f32
    %214 = vector.broadcast %cst_76 : f32 to vector<12x1024xf32>
    %215 = arith.maximumf %213, %214 : vector<12x1024xf32>
    %216 = vector.extract_strided_slice %215 {offsets = [0, 0], sizes = [4, 1024], strides = [1, 1]} : vector<12x1024xf32> to vector<4x1024xf32>
    %217 = vector.extract_strided_slice %215 {offsets = [8, 0], sizes = [4, 1024], strides = [1, 1]} : vector<12x1024xf32> to vector<4x1024xf32>
    %218 = vector.extract_strided_slice %215 {offsets = [4, 0], sizes = [4, 1024], strides = [1, 1]} : vector<12x1024xf32> to vector<4x1024xf32>
    %219 = vector.extract_strided_slice %48 {offsets = [12, 0], sizes = [4, 1024], strides = [1, 1]} : vector<16x1024xf32> to vector<4x1024xf32>
    %220 = tpu.concatenate %219, %218 in 0 : vector<4x1024xf32>, vector<4x1024xf32> -> vector<8x1024xf32>
    %c128 = arith.constant 128 : index
    %c0_77 = arith.constant 0 : index
    %221 = vector.load %arg10[%c128, %c0_77] : memref<184x1xf32, #tpu.memory_space<vmem>>, vector<8x1xf32>
    %c136 = arith.constant 136 : index
    %c0_78 = arith.constant 0 : index
    %222 = vector.load %arg10[%c136, %c0_78] : memref<184x1xf32, #tpu.memory_space<vmem>>, vector<8x1xf32>
    %c17_i32_79 = arith.constant 17 : i32
    %223 = tpu.dynamic_rotate %220 by %c17_i32_79 dim 1 : vector<8x1024xf32>, i32 -> vector<8x1024xf32>
    %cst_80 = arith.constant 0.000000e+00 : f32
    %224 = vector.shape_cast %15 : vector<1x1024xi1> to vector<1x1024xi1>
    %225 = vector.broadcast %224 : vector<1x1024xi1> to vector<8x1024xi1>
    %226 = vector.broadcast %cst_80 : f32 to vector<8x1024xf32>
    %227 = arith.select %225, %223, %226 : vector<8x1024xi1>, vector<8x1024xf32>
    %c16_i32_81 = arith.constant 16 : i32
    %228 = tpu.dynamic_rotate %220 by %c16_i32_81 dim 1 : vector<8x1024xf32>, i32 -> vector<8x1024xf32>
    %cst_82 = arith.constant 0.000000e+00 : f32
    %229 = vector.shape_cast %8 : vector<1x1024xi1> to vector<1x1024xi1>
    %230 = vector.broadcast %229 : vector<1x1024xi1> to vector<8x1024xi1>
    %231 = vector.broadcast %cst_82 : f32 to vector<8x1024xf32>
    %232 = arith.select %230, %228, %231 : vector<8x1024xi1>, vector<8x1024xf32>
    %c15_i32_83 = arith.constant 15 : i32
    %233 = tpu.dynamic_rotate %220 by %c15_i32_83 dim 1 : vector<8x1024xf32>, i32 -> vector<8x1024xf32>
    %cst_84 = arith.constant 0.000000e+00 : f32
    %234 = vector.shape_cast %16 : vector<1x1024xi1> to vector<1x1024xi1>
    %235 = vector.broadcast %234 : vector<1x1024xi1> to vector<8x1024xi1>
    %236 = vector.broadcast %cst_84 : f32 to vector<8x1024xf32>
    %237 = arith.select %235, %233, %236 : vector<8x1024xi1>, vector<8x1024xf32>
    %c1_i32_85 = arith.constant 1 : i32
    %238 = tpu.dynamic_rotate %220 by %c1_i32_85 dim 1 : vector<8x1024xf32>, i32 -> vector<8x1024xf32>
    %cst_86 = arith.constant 0.000000e+00 : f32
    %239 = vector.shape_cast %12 : vector<1x1024xi1> to vector<1x1024xi1>
    %240 = vector.broadcast %239 : vector<1x1024xi1> to vector<8x1024xi1>
    %241 = vector.broadcast %cst_86 : f32 to vector<8x1024xf32>
    %242 = arith.select %240, %238, %241 : vector<8x1024xi1>, vector<8x1024xf32>
    %c1023_i32_87 = arith.constant 1023 : i32
    %243 = tpu.dynamic_rotate %220 by %c1023_i32_87 dim 1 : vector<8x1024xf32>, i32 -> vector<8x1024xf32>
    %cst_88 = arith.constant 0.000000e+00 : f32
    %244 = vector.shape_cast %14 : vector<1x1024xi1> to vector<1x1024xi1>
    %245 = vector.broadcast %244 : vector<1x1024xi1> to vector<8x1024xi1>
    %246 = vector.broadcast %cst_88 : f32 to vector<8x1024xf32>
    %247 = arith.select %245, %243, %246 : vector<8x1024xi1>, vector<8x1024xf32>
    %c1009_i32_89 = arith.constant 1009 : i32
    %248 = tpu.dynamic_rotate %220 by %c1009_i32_89 dim 1 : vector<8x1024xf32>, i32 -> vector<8x1024xf32>
    %cst_90 = arith.constant 0.000000e+00 : f32
    %249 = vector.shape_cast %17 : vector<1x1024xi1> to vector<1x1024xi1>
    %250 = vector.broadcast %249 : vector<1x1024xi1> to vector<8x1024xi1>
    %251 = vector.broadcast %cst_90 : f32 to vector<8x1024xf32>
    %252 = arith.select %250, %248, %251 : vector<8x1024xi1>, vector<8x1024xf32>
    %c1008_i32_91 = arith.constant 1008 : i32
    %253 = tpu.dynamic_rotate %220 by %c1008_i32_91 dim 1 : vector<8x1024xf32>, i32 -> vector<8x1024xf32>
    %cst_92 = arith.constant 0.000000e+00 : f32
    %254 = vector.shape_cast %10 : vector<1x1024xi1> to vector<1x1024xi1>
    %255 = vector.broadcast %254 : vector<1x1024xi1> to vector<8x1024xi1>
    %256 = vector.broadcast %cst_92 : f32 to vector<8x1024xf32>
    %257 = arith.select %255, %253, %256 : vector<8x1024xi1>, vector<8x1024xf32>
    %c1007_i32_93 = arith.constant 1007 : i32
    %258 = tpu.dynamic_rotate %220 by %c1007_i32_93 dim 1 : vector<8x1024xf32>, i32 -> vector<8x1024xf32>
    %cst_94 = arith.constant 0.000000e+00 : f32
    %259 = vector.shape_cast %18 : vector<1x1024xi1> to vector<1x1024xi1>
    %260 = vector.broadcast %259 : vector<1x1024xi1> to vector<8x1024xi1>
    %261 = vector.broadcast %cst_94 : f32 to vector<8x1024xf32>
    %262 = arith.select %260, %258, %261 : vector<8x1024xi1>, vector<8x1024xf32>
    %263 = tpu.concatenate %227, %232, %237, %242, %220, %247, %252, %257, %262 in 0 : vector<8x1024xf32>, vector<8x1024xf32>, vector<8x1024xf32>, vector<8x1024xf32>, vector<8x1024xf32>, vector<8x1024xf32>, vector<8x1024xf32>, vector<8x1024xf32>, vector<8x1024xf32> -> vector<72x1024xf32>
    %264 = arith.truncf %263 : vector<72x1024xf32> to vector<72x1024xbf16>
    %c0_95 = arith.constant 0 : index
    %c0_96 = arith.constant 0 : index
    %265 = vector.load %arg6[%c0_95, %c0_96] : memref<8x72xbf16, #tpu.memory_space<vmem>>, vector<8x72xbf16>
    %cst_97 = arith.constant dense<0.000000e+00> : vector<8x1024xf32>
    %266 = tpu.matmul %265, %264, %cst_97 {dimension_numbers = #tpu.dot_dimension_numbers<[1], [0], [0], [1], [0, 0, 1, 1], [], []>} : vector<8x72xbf16>, vector<72x1024xbf16>, vector<8x1024xf32> -> vector<8x1024xf32>
    %267 = vector.broadcast %221 : vector<8x1xf32> to vector<8x1024xf32>
    %268 = arith.mulf %266, %267 : vector<8x1024xf32>
    %269 = vector.broadcast %222 : vector<8x1xf32> to vector<8x1024xf32>
    %270 = arith.addf %268, %269 : vector<8x1024xf32>
    %cst_98 = arith.constant 0.000000e+00 : f32
    %271 = vector.broadcast %cst_98 : f32 to vector<8x1024xf32>
    %272 = arith.maximumf %270, %271 : vector<8x1024xf32>
    %273 = vector.extract_strided_slice %272 {offsets = [0, 0], sizes = [4, 1024], strides = [1, 1]} : vector<8x1024xf32> to vector<4x1024xf32>
    %274 = vector.extract_strided_slice %272 {offsets = [4, 0], sizes = [4, 1024], strides = [1, 1]} : vector<8x1024xf32> to vector<4x1024xf32>
    %275 = tpu.concatenate %102, %159, %216, %273 in 0 : vector<4x1024xf32>, vector<4x1024xf32>, vector<4x1024xf32>, vector<4x1024xf32> -> vector<16x1024xf32>
    %276 = tpu.concatenate %103, %160, %217, %274 in 0 : vector<4x1024xf32>, vector<4x1024xf32>, vector<4x1024xf32>, vector<4x1024xf32> -> vector<16x1024xf32>
    %c160 = arith.constant 160 : index
    %c0_99 = arith.constant 0 : index
    %277 = vector.load %arg10[%c160, %c0_99] : memref<184x1xf32, #tpu.memory_space<vmem>>, vector<4x1xf32>
    %c168 = arith.constant 168 : index
    %c0_100 = arith.constant 0 : index
    %278 = vector.load %arg10[%c168, %c0_100] : memref<184x1xf32, #tpu.memory_space<vmem>>, vector<16x1xf32>
    %cst_101 = arith.constant 0.000000e+00 : f32
    %279 = vector.shape_cast %22 : vector<1x1024xi1> to vector<1x1024xi1>
    %280 = vector.broadcast %279 : vector<1x1024xi1> to vector<16x1024xi1>
    %281 = vector.broadcast %cst_101 : f32 to vector<16x1024xf32>
    %282 = arith.select %280, %276, %281 : vector<16x1024xi1>, vector<16x1024xf32>
    %cst_102 = arith.constant dense<0.000000e+00> : vector<16xf32>
    %283 = vector.multi_reduction <add>, %282, %cst_102 [1] : vector<16x1024xf32> to vector<16xf32>
    %284 = vector.shape_cast %283 : vector<16xf32> to vector<16x1xf32>
    %cst_103 = arith.constant 3.906250e-03 : f32
    %285 = vector.broadcast %cst_103 : f32 to vector<16x1xf32>
    %286 = arith.mulf %284, %285 : vector<16x1xf32>
    %c0_104 = arith.constant 0 : index
    %c0_105 = arith.constant 0 : index
    %287 = vector.load %arg7[%c0_104, %c0_105] : memref<4x16xbf16, #tpu.memory_space<vmem>>, vector<4x16xbf16>
    %288 = arith.truncf %286 : vector<16x1xf32> to vector<16x1xbf16>
    %cst_106 = arith.constant dense<0.000000e+00> : vector<4x1xf32>
    %289 = tpu.matmul %287, %288, %cst_106 {dimension_numbers = #tpu.dot_dimension_numbers<[1], [0], [0], [1], [0, 0, 1, 1], [], []>} : vector<4x16xbf16>, vector<16x1xbf16>, vector<4x1xf32> -> vector<4x1xf32>
    %290 = arith.addf %289, %277 : vector<4x1xf32>
    %cst_107 = arith.constant 0.000000e+00 : f32
    %291 = vector.broadcast %cst_107 : f32 to vector<4x1xf32>
    %292 = arith.maximumf %290, %291 : vector<4x1xf32>
    %c0_108 = arith.constant 0 : index
    %c0_109 = arith.constant 0 : index
    %293 = vector.load %arg8[%c0_108, %c0_109] : memref<16x4xbf16, #tpu.memory_space<vmem>>, vector<16x4xbf16>
    %294 = arith.truncf %292 : vector<4x1xf32> to vector<4x1xbf16>
    %cst_110 = arith.constant dense<0.000000e+00> : vector<16x1xf32>
    %295 = tpu.matmul %293, %294, %cst_110 {dimension_numbers = #tpu.dot_dimension_numbers<[1], [0], [0], [1], [0, 0, 1, 1], [], []>} : vector<16x4xbf16>, vector<4x1xbf16>, vector<16x1xf32> -> vector<16x1xf32>
    %296 = arith.addf %295, %278 : vector<16x1xf32>
    %cst_111 = arith.constant dense<0xFF800000> : vector<1xf32>
    %297 = vector.multi_reduction <maximumf>, %296, %cst_111 [0] : vector<16x1xf32> to vector<1xf32>
    %298 = vector.shape_cast %297 : vector<1xf32> to vector<1x1xf32>
    %299 = vector.broadcast %298 : vector<1x1xf32> to vector<16x1xf32>
    %300 = arith.subf %296, %299 : vector<16x1xf32>
    %301 = math.exp %300 : vector<16x1xf32>
    %cst_112 = arith.constant dense<0.000000e+00> : vector<1xf32>
    %302 = vector.multi_reduction <add>, %301, %cst_112 [0] : vector<16x1xf32> to vector<1xf32>
    %303 = vector.shape_cast %302 : vector<1xf32> to vector<1x1xf32>
    %304 = tpu.reciprocal %303 {approx = true} : vector<1x1xf32> -> vector<1x1xf32>
    %305 = vector.broadcast %304 : vector<1x1xf32> to vector<16x1xf32>
    %306 = arith.mulf %301, %305 : vector<16x1xf32>
    %cst_113 = arith.constant 0.000000e+00 : f32
    %307 = vector.shape_cast %22 : vector<1x1024xi1> to vector<1x1024xi1>
    %308 = vector.broadcast %307 : vector<1x1024xi1> to vector<16x1024xi1>
    %309 = vector.shape_cast %306 : vector<16x1xf32> to vector<16x1xf32>
    %310 = vector.broadcast %309 : vector<16x1xf32> to vector<16x1024xf32>
    %311 = vector.broadcast %cst_113 : f32 to vector<16x1024xf32>
    %312 = arith.select %308, %310, %311 : vector<16x1024xi1>, vector<16x1024xf32>
    %cst_114 = arith.constant 0.000000e+00 : f32
    %313 = vector.shape_cast %24 : vector<1x1024xi1> to vector<1x1024xi1>
    %314 = vector.broadcast %313 : vector<1x1024xi1> to vector<16x1024xi1>
    %315 = vector.broadcast %cst_114 : f32 to vector<16x1024xf32>
    %316 = arith.select %314, %276, %315 : vector<16x1024xi1>, vector<16x1024xf32>
    %cst_115 = arith.constant dense<0.000000e+00> : vector<16xf32>
    %317 = vector.multi_reduction <add>, %316, %cst_115 [1] : vector<16x1024xf32> to vector<16xf32>
    %318 = vector.shape_cast %317 : vector<16xf32> to vector<16x1xf32>
    %cst_116 = arith.constant 3.906250e-03 : f32
    %319 = vector.broadcast %cst_116 : f32 to vector<16x1xf32>
    %320 = arith.mulf %318, %319 : vector<16x1xf32>
    %c0_117 = arith.constant 0 : index
    %c0_118 = arith.constant 0 : index
    %321 = vector.load %arg7[%c0_117, %c0_118] : memref<4x16xbf16, #tpu.memory_space<vmem>>, vector<4x16xbf16>
    %322 = arith.truncf %320 : vector<16x1xf32> to vector<16x1xbf16>
    %cst_119 = arith.constant dense<0.000000e+00> : vector<4x1xf32>
    %323 = tpu.matmul %321, %322, %cst_119 {dimension_numbers = #tpu.dot_dimension_numbers<[1], [0], [0], [1], [0, 0, 1, 1], [], []>} : vector<4x16xbf16>, vector<16x1xbf16>, vector<4x1xf32> -> vector<4x1xf32>
    %324 = arith.addf %323, %277 : vector<4x1xf32>
    %cst_120 = arith.constant 0.000000e+00 : f32
    %325 = vector.broadcast %cst_120 : f32 to vector<4x1xf32>
    %326 = arith.maximumf %324, %325 : vector<4x1xf32>
    %c0_121 = arith.constant 0 : index
    %c0_122 = arith.constant 0 : index
    %327 = vector.load %arg8[%c0_121, %c0_122] : memref<16x4xbf16, #tpu.memory_space<vmem>>, vector<16x4xbf16>
    %328 = arith.truncf %326 : vector<4x1xf32> to vector<4x1xbf16>
    %cst_123 = arith.constant dense<0.000000e+00> : vector<16x1xf32>
    %329 = tpu.matmul %327, %328, %cst_123 {dimension_numbers = #tpu.dot_dimension_numbers<[1], [0], [0], [1], [0, 0, 1, 1], [], []>} : vector<16x4xbf16>, vector<4x1xbf16>, vector<16x1xf32> -> vector<16x1xf32>
    %330 = arith.addf %329, %278 : vector<16x1xf32>
    %cst_124 = arith.constant dense<0xFF800000> : vector<1xf32>
    %331 = vector.multi_reduction <maximumf>, %330, %cst_124 [0] : vector<16x1xf32> to vector<1xf32>
    %332 = vector.shape_cast %331 : vector<1xf32> to vector<1x1xf32>
    %333 = vector.broadcast %332 : vector<1x1xf32> to vector<16x1xf32>
    %334 = arith.subf %330, %333 : vector<16x1xf32>
    %335 = math.exp %334 : vector<16x1xf32>
    %cst_125 = arith.constant dense<0.000000e+00> : vector<1xf32>
    %336 = vector.multi_reduction <add>, %335, %cst_125 [0] : vector<16x1xf32> to vector<1xf32>
    %337 = vector.shape_cast %336 : vector<1xf32> to vector<1x1xf32>
    %338 = tpu.reciprocal %337 {approx = true} : vector<1x1xf32> -> vector<1x1xf32>
    %339 = vector.broadcast %338 : vector<1x1xf32> to vector<16x1xf32>
    %340 = arith.mulf %335, %339 : vector<16x1xf32>
    %341 = vector.shape_cast %24 : vector<1x1024xi1> to vector<1x1024xi1>
    %342 = vector.broadcast %341 : vector<1x1024xi1> to vector<16x1024xi1>
    %343 = vector.shape_cast %340 : vector<16x1xf32> to vector<16x1xf32>
    %344 = vector.broadcast %343 : vector<16x1xf32> to vector<16x1024xf32>
    %345 = arith.select %342, %344, %312 : vector<16x1024xi1>, vector<16x1024xf32>
    %cst_126 = arith.constant 0.000000e+00 : f32
    %346 = vector.shape_cast %26 : vector<1x1024xi1> to vector<1x1024xi1>
    %347 = vector.broadcast %346 : vector<1x1024xi1> to vector<16x1024xi1>
    %348 = vector.broadcast %cst_126 : f32 to vector<16x1024xf32>
    %349 = arith.select %347, %276, %348 : vector<16x1024xi1>, vector<16x1024xf32>
    %cst_127 = arith.constant dense<0.000000e+00> : vector<16xf32>
    %350 = vector.multi_reduction <add>, %349, %cst_127 [1] : vector<16x1024xf32> to vector<16xf32>
    %351 = vector.shape_cast %350 : vector<16xf32> to vector<16x1xf32>
    %cst_128 = arith.constant 3.906250e-03 : f32
    %352 = vector.broadcast %cst_128 : f32 to vector<16x1xf32>
    %353 = arith.mulf %351, %352 : vector<16x1xf32>
    %c0_129 = arith.constant 0 : index
    %c0_130 = arith.constant 0 : index
    %354 = vector.load %arg7[%c0_129, %c0_130] : memref<4x16xbf16, #tpu.memory_space<vmem>>, vector<4x16xbf16>
    %355 = arith.truncf %353 : vector<16x1xf32> to vector<16x1xbf16>
    %cst_131 = arith.constant dense<0.000000e+00> : vector<4x1xf32>
    %356 = tpu.matmul %354, %355, %cst_131 {dimension_numbers = #tpu.dot_dimension_numbers<[1], [0], [0], [1], [0, 0, 1, 1], [], []>} : vector<4x16xbf16>, vector<16x1xbf16>, vector<4x1xf32> -> vector<4x1xf32>
    %357 = arith.addf %356, %277 : vector<4x1xf32>
    %cst_132 = arith.constant 0.000000e+00 : f32
    %358 = vector.broadcast %cst_132 : f32 to vector<4x1xf32>
    %359 = arith.maximumf %357, %358 : vector<4x1xf32>
    %c0_133 = arith.constant 0 : index
    %c0_134 = arith.constant 0 : index
    %360 = vector.load %arg8[%c0_133, %c0_134] : memref<16x4xbf16, #tpu.memory_space<vmem>>, vector<16x4xbf16>
    %361 = arith.truncf %359 : vector<4x1xf32> to vector<4x1xbf16>
    %cst_135 = arith.constant dense<0.000000e+00> : vector<16x1xf32>
    %362 = tpu.matmul %360, %361, %cst_135 {dimension_numbers = #tpu.dot_dimension_numbers<[1], [0], [0], [1], [0, 0, 1, 1], [], []>} : vector<16x4xbf16>, vector<4x1xbf16>, vector<16x1xf32> -> vector<16x1xf32>
    %363 = arith.addf %362, %278 : vector<16x1xf32>
    %cst_136 = arith.constant dense<0xFF800000> : vector<1xf32>
    %364 = vector.multi_reduction <maximumf>, %363, %cst_136 [0] : vector<16x1xf32> to vector<1xf32>
    %365 = vector.shape_cast %364 : vector<1xf32> to vector<1x1xf32>
    %366 = vector.broadcast %365 : vector<1x1xf32> to vector<16x1xf32>
    %367 = arith.subf %363, %366 : vector<16x1xf32>
    %368 = math.exp %367 : vector<16x1xf32>
    %cst_137 = arith.constant dense<0.000000e+00> : vector<1xf32>
    %369 = vector.multi_reduction <add>, %368, %cst_137 [0] : vector<16x1xf32> to vector<1xf32>
    %370 = vector.shape_cast %369 : vector<1xf32> to vector<1x1xf32>
    %371 = tpu.reciprocal %370 {approx = true} : vector<1x1xf32> -> vector<1x1xf32>
    %372 = vector.broadcast %371 : vector<1x1xf32> to vector<16x1xf32>
    %373 = arith.mulf %368, %372 : vector<16x1xf32>
    %374 = vector.shape_cast %26 : vector<1x1024xi1> to vector<1x1024xi1>
    %375 = vector.broadcast %374 : vector<1x1024xi1> to vector<16x1024xi1>
    %376 = vector.shape_cast %373 : vector<16x1xf32> to vector<16x1xf32>
    %377 = vector.broadcast %376 : vector<16x1xf32> to vector<16x1024xf32>
    %378 = arith.select %375, %377, %345 : vector<16x1024xi1>, vector<16x1024xf32>
    %cst_138 = arith.constant 0.000000e+00 : f32
    %379 = vector.shape_cast %28 : vector<1x1024xi1> to vector<1x1024xi1>
    %380 = vector.broadcast %379 : vector<1x1024xi1> to vector<16x1024xi1>
    %381 = vector.broadcast %cst_138 : f32 to vector<16x1024xf32>
    %382 = arith.select %380, %276, %381 : vector<16x1024xi1>, vector<16x1024xf32>
    %cst_139 = arith.constant dense<0.000000e+00> : vector<16xf32>
    %383 = vector.multi_reduction <add>, %382, %cst_139 [1] : vector<16x1024xf32> to vector<16xf32>
    %384 = vector.shape_cast %383 : vector<16xf32> to vector<16x1xf32>
    %cst_140 = arith.constant 3.906250e-03 : f32
    %385 = vector.broadcast %cst_140 : f32 to vector<16x1xf32>
    %386 = arith.mulf %384, %385 : vector<16x1xf32>
    %c0_141 = arith.constant 0 : index
    %c0_142 = arith.constant 0 : index
    %387 = vector.load %arg7[%c0_141, %c0_142] : memref<4x16xbf16, #tpu.memory_space<vmem>>, vector<4x16xbf16>
    %388 = arith.truncf %386 : vector<16x1xf32> to vector<16x1xbf16>
    %cst_143 = arith.constant dense<0.000000e+00> : vector<4x1xf32>
    %389 = tpu.matmul %387, %388, %cst_143 {dimension_numbers = #tpu.dot_dimension_numbers<[1], [0], [0], [1], [0, 0, 1, 1], [], []>} : vector<4x16xbf16>, vector<16x1xbf16>, vector<4x1xf32> -> vector<4x1xf32>
    %390 = arith.addf %389, %277 : vector<4x1xf32>
    %cst_144 = arith.constant 0.000000e+00 : f32
    %391 = vector.broadcast %cst_144 : f32 to vector<4x1xf32>
    %392 = arith.maximumf %390, %391 : vector<4x1xf32>
    %c0_145 = arith.constant 0 : index
    %c0_146 = arith.constant 0 : index
    %393 = vector.load %arg8[%c0_145, %c0_146] : memref<16x4xbf16, #tpu.memory_space<vmem>>, vector<16x4xbf16>
    %394 = arith.truncf %392 : vector<4x1xf32> to vector<4x1xbf16>
    %cst_147 = arith.constant dense<0.000000e+00> : vector<16x1xf32>
    %395 = tpu.matmul %393, %394, %cst_147 {dimension_numbers = #tpu.dot_dimension_numbers<[1], [0], [0], [1], [0, 0, 1, 1], [], []>} : vector<16x4xbf16>, vector<4x1xbf16>, vector<16x1xf32> -> vector<16x1xf32>
    %396 = arith.addf %395, %278 : vector<16x1xf32>
    %cst_148 = arith.constant dense<0xFF800000> : vector<1xf32>
    %397 = vector.multi_reduction <maximumf>, %396, %cst_148 [0] : vector<16x1xf32> to vector<1xf32>
    %398 = vector.shape_cast %397 : vector<1xf32> to vector<1x1xf32>
    %399 = vector.broadcast %398 : vector<1x1xf32> to vector<16x1xf32>
    %400 = arith.subf %396, %399 : vector<16x1xf32>
    %401 = math.exp %400 : vector<16x1xf32>
    %cst_149 = arith.constant dense<0.000000e+00> : vector<1xf32>
    %402 = vector.multi_reduction <add>, %401, %cst_149 [0] : vector<16x1xf32> to vector<1xf32>
    %403 = vector.shape_cast %402 : vector<1xf32> to vector<1x1xf32>
    %404 = tpu.reciprocal %403 {approx = true} : vector<1x1xf32> -> vector<1x1xf32>
    %405 = vector.broadcast %404 : vector<1x1xf32> to vector<16x1xf32>
    %406 = arith.mulf %401, %405 : vector<16x1xf32>
    %407 = vector.shape_cast %28 : vector<1x1024xi1> to vector<1x1024xi1>
    %408 = vector.broadcast %407 : vector<1x1024xi1> to vector<16x1024xi1>
    %409 = vector.shape_cast %406 : vector<16x1xf32> to vector<16x1xf32>
    %410 = vector.broadcast %409 : vector<16x1xf32> to vector<16x1024xf32>
    %411 = arith.select %408, %410, %378 : vector<16x1024xi1>, vector<16x1024xf32>
    %412 = arith.mulf %275, %411 : vector<16x1024xf32>
    %c144 = arith.constant 144 : index
    %c0_150 = arith.constant 0 : index
    %413 = vector.load %arg10[%c144, %c0_150] : memref<184x1xf32, #tpu.memory_space<vmem>>, vector<8x1xf32>
    %c152 = arith.constant 152 : index
    %c0_151 = arith.constant 0 : index
    %414 = vector.load %arg10[%c152, %c0_151] : memref<184x1xf32, #tpu.memory_space<vmem>>, vector<8x1xf32>
    %c17_i32_152 = arith.constant 17 : i32
    %415 = tpu.dynamic_rotate %412 by %c17_i32_152 dim 1 : vector<16x1024xf32>, i32 -> vector<16x1024xf32>
    %cst_153 = arith.constant 0.000000e+00 : f32
    %416 = vector.shape_cast %15 : vector<1x1024xi1> to vector<1x1024xi1>
    %417 = vector.broadcast %416 : vector<1x1024xi1> to vector<16x1024xi1>
    %418 = vector.broadcast %cst_153 : f32 to vector<16x1024xf32>
    %419 = arith.select %417, %415, %418 : vector<16x1024xi1>, vector<16x1024xf32>
    %c16_i32_154 = arith.constant 16 : i32
    %420 = tpu.dynamic_rotate %412 by %c16_i32_154 dim 1 : vector<16x1024xf32>, i32 -> vector<16x1024xf32>
    %cst_155 = arith.constant 0.000000e+00 : f32
    %421 = vector.shape_cast %8 : vector<1x1024xi1> to vector<1x1024xi1>
    %422 = vector.broadcast %421 : vector<1x1024xi1> to vector<16x1024xi1>
    %423 = vector.broadcast %cst_155 : f32 to vector<16x1024xf32>
    %424 = arith.select %422, %420, %423 : vector<16x1024xi1>, vector<16x1024xf32>
    %c15_i32_156 = arith.constant 15 : i32
    %425 = tpu.dynamic_rotate %412 by %c15_i32_156 dim 1 : vector<16x1024xf32>, i32 -> vector<16x1024xf32>
    %cst_157 = arith.constant 0.000000e+00 : f32
    %426 = vector.shape_cast %16 : vector<1x1024xi1> to vector<1x1024xi1>
    %427 = vector.broadcast %426 : vector<1x1024xi1> to vector<16x1024xi1>
    %428 = vector.broadcast %cst_157 : f32 to vector<16x1024xf32>
    %429 = arith.select %427, %425, %428 : vector<16x1024xi1>, vector<16x1024xf32>
    %c1_i32_158 = arith.constant 1 : i32
    %430 = tpu.dynamic_rotate %412 by %c1_i32_158 dim 1 : vector<16x1024xf32>, i32 -> vector<16x1024xf32>
    %cst_159 = arith.constant 0.000000e+00 : f32
    %431 = vector.shape_cast %12 : vector<1x1024xi1> to vector<1x1024xi1>
    %432 = vector.broadcast %431 : vector<1x1024xi1> to vector<16x1024xi1>
    %433 = vector.broadcast %cst_159 : f32 to vector<16x1024xf32>
    %434 = arith.select %432, %430, %433 : vector<16x1024xi1>, vector<16x1024xf32>
    %c1023_i32_160 = arith.constant 1023 : i32
    %435 = tpu.dynamic_rotate %412 by %c1023_i32_160 dim 1 : vector<16x1024xf32>, i32 -> vector<16x1024xf32>
    %cst_161 = arith.constant 0.000000e+00 : f32
    %436 = vector.shape_cast %14 : vector<1x1024xi1> to vector<1x1024xi1>
    %437 = vector.broadcast %436 : vector<1x1024xi1> to vector<16x1024xi1>
    %438 = vector.broadcast %cst_161 : f32 to vector<16x1024xf32>
    %439 = arith.select %437, %435, %438 : vector<16x1024xi1>, vector<16x1024xf32>
    %c1009_i32_162 = arith.constant 1009 : i32
    %440 = tpu.dynamic_rotate %412 by %c1009_i32_162 dim 1 : vector<16x1024xf32>, i32 -> vector<16x1024xf32>
    %cst_163 = arith.constant 0.000000e+00 : f32
    %441 = vector.shape_cast %17 : vector<1x1024xi1> to vector<1x1024xi1>
    %442 = vector.broadcast %441 : vector<1x1024xi1> to vector<16x1024xi1>
    %443 = vector.broadcast %cst_163 : f32 to vector<16x1024xf32>
    %444 = arith.select %442, %440, %443 : vector<16x1024xi1>, vector<16x1024xf32>
    %c1008_i32_164 = arith.constant 1008 : i32
    %445 = tpu.dynamic_rotate %412 by %c1008_i32_164 dim 1 : vector<16x1024xf32>, i32 -> vector<16x1024xf32>
    %cst_165 = arith.constant 0.000000e+00 : f32
    %446 = vector.shape_cast %10 : vector<1x1024xi1> to vector<1x1024xi1>
    %447 = vector.broadcast %446 : vector<1x1024xi1> to vector<16x1024xi1>
    %448 = vector.broadcast %cst_165 : f32 to vector<16x1024xf32>
    %449 = arith.select %447, %445, %448 : vector<16x1024xi1>, vector<16x1024xf32>
    %c1007_i32_166 = arith.constant 1007 : i32
    %450 = tpu.dynamic_rotate %412 by %c1007_i32_166 dim 1 : vector<16x1024xf32>, i32 -> vector<16x1024xf32>
    %cst_167 = arith.constant 0.000000e+00 : f32
    %451 = vector.shape_cast %18 : vector<1x1024xi1> to vector<1x1024xi1>
    %452 = vector.broadcast %451 : vector<1x1024xi1> to vector<16x1024xi1>
    %453 = vector.broadcast %cst_167 : f32 to vector<16x1024xf32>
    %454 = arith.select %452, %450, %453 : vector<16x1024xi1>, vector<16x1024xf32>
    %455 = tpu.concatenate %419, %424, %429, %434, %412, %439, %444, %449, %454 in 0 : vector<16x1024xf32>, vector<16x1024xf32>, vector<16x1024xf32>, vector<16x1024xf32>, vector<16x1024xf32>, vector<16x1024xf32>, vector<16x1024xf32>, vector<16x1024xf32>, vector<16x1024xf32> -> vector<144x1024xf32>
    %456 = arith.truncf %455 : vector<144x1024xf32> to vector<144x1024xbf16>
    %c0_168 = arith.constant 0 : index
    %c0_169 = arith.constant 0 : index
    %457 = vector.load %arg9[%c0_168, %c0_169] : memref<8x144xbf16, #tpu.memory_space<vmem>>, vector<8x144xbf16>
    %cst_170 = arith.constant dense<0.000000e+00> : vector<8x1024xf32>
    %458 = tpu.matmul %457, %456, %cst_170 {dimension_numbers = #tpu.dot_dimension_numbers<[1], [0], [0], [1], [0, 0, 1, 1], [], []>} : vector<8x144xbf16>, vector<144x1024xbf16>, vector<8x1024xf32> -> vector<8x1024xf32>
    %459 = vector.broadcast %413 : vector<8x1xf32> to vector<8x1024xf32>
    %460 = arith.mulf %458, %459 : vector<8x1024xf32>
    %461 = vector.broadcast %414 : vector<8x1xf32> to vector<8x1024xf32>
    %462 = arith.addf %460, %461 : vector<8x1024xf32>
    %463 = vector.extract_strided_slice %462 {offsets = [0, 0], sizes = [8, 256], strides = [1, 1]} : vector<8x1024xf32> to vector<8x256xf32>
    %c0_171 = arith.constant 0 : index
    %c0_172 = arith.constant 0 : index
    %c0_173 = arith.constant 0 : index
    %464 = vector.load %arg1[%c0_171, %c0_172, %c0_173] : memref<4x8x256xf32, #tpu.memory_space<vmem>>, vector<1x8x256xf32>
    %465 = vector.shape_cast %464 : vector<1x8x256xf32> to vector<8x256xf32>
    %466 = arith.addf %463, %465 : vector<8x256xf32>
    %cst_174 = arith.constant 0.000000e+00 : f32
    %467 = vector.broadcast %cst_174 : f32 to vector<8x256xf32>
    %468 = arith.maximumf %466, %467 : vector<8x256xf32>
    %c0_175 = arith.constant 0 : index
    %c0_176 = arith.constant 0 : index
    %c0_177 = arith.constant 0 : index
    %469 = vector.load %arg11[%c0_175, %c0_176, %c0_177] : memref<4x8x256xf32, #tpu.memory_space<vmem>>, vector<1x8x256xf32>
    %470 = vector.shape_cast %469 : vector<1x8x256xf32> to vector<8x256xf32>
    %471 = vector.shape_cast %468 : vector<8x256xf32> to vector<1x8x256xf32>
    tpu.vector_store %arg11[%c0_175, %c0_176, %c0_177], %471 {strides = array<i32>} : memref<4x8x256xf32, #tpu.memory_space<vmem>>, vector<1x8x256xf32>,
    %472 = vector.extract_strided_slice %462 {offsets = [0, 256], sizes = [8, 256], strides = [1, 1]} : vector<8x1024xf32> to vector<8x256xf32>
    %c1_178 = arith.constant 1 : index
    %c0_179 = arith.constant 0 : index
    %c0_180 = arith.constant 0 : index
    %473 = vector.load %arg1[%c1_178, %c0_179, %c0_180] : memref<4x8x256xf32, #tpu.memory_space<vmem>>, vector<1x8x256xf32>
    %474 = vector.shape_cast %473 : vector<1x8x256xf32> to vector<8x256xf32>
    %475 = arith.addf %472, %474 : vector<8x256xf32>
    %cst_181 = arith.constant 0.000000e+00 : f32
    %476 = vector.broadcast %cst_181 : f32 to vector<8x256xf32>
    %477 = arith.maximumf %475, %476 : vector<8x256xf32>
    %c1_182 = arith.constant 1 : index
    %c0_183 = arith.constant 0 : index
    %c0_184 = arith.constant 0 : index
    %478 = vector.load %arg11[%c1_182, %c0_183, %c0_184] : memref<4x8x256xf32, #tpu.memory_space<vmem>>, vector<1x8x256xf32>
    %479 = vector.shape_cast %478 : vector<1x8x256xf32> to vector<8x256xf32>
    %480 = vector.shape_cast %477 : vector<8x256xf32> to vector<1x8x256xf32>
    tpu.vector_store %arg11[%c1_182, %c0_183, %c0_184], %480 {strides = array<i32>} : memref<4x8x256xf32, #tpu.memory_space<vmem>>, vector<1x8x256xf32>,
    %481 = vector.extract_strided_slice %462 {offsets = [0, 512], sizes = [8, 256], strides = [1, 1]} : vector<8x1024xf32> to vector<8x256xf32>
    %c2_185 = arith.constant 2 : index
    %c0_186 = arith.constant 0 : index
    %c0_187 = arith.constant 0 : index
    %482 = vector.load %arg1[%c2_185, %c0_186, %c0_187] : memref<4x8x256xf32, #tpu.memory_space<vmem>>, vector<1x8x256xf32>
    %483 = vector.shape_cast %482 : vector<1x8x256xf32> to vector<8x256xf32>
    %484 = arith.addf %481, %483 : vector<8x256xf32>
    %cst_188 = arith.constant 0.000000e+00 : f32
    %485 = vector.broadcast %cst_188 : f32 to vector<8x256xf32>
    %486 = arith.maximumf %484, %485 : vector<8x256xf32>
    %c2_189 = arith.constant 2 : index
    %c0_190 = arith.constant 0 : index
    %c0_191 = arith.constant 0 : index
    %487 = vector.load %arg11[%c2_189, %c0_190, %c0_191] : memref<4x8x256xf32, #tpu.memory_space<vmem>>, vector<1x8x256xf32>
    %488 = vector.shape_cast %487 : vector<1x8x256xf32> to vector<8x256xf32>
    %489 = vector.shape_cast %486 : vector<8x256xf32> to vector<1x8x256xf32>
    tpu.vector_store %arg11[%c2_189, %c0_190, %c0_191], %489 {strides = array<i32>} : memref<4x8x256xf32, #tpu.memory_space<vmem>>, vector<1x8x256xf32>,
    %490 = vector.extract_strided_slice %462 {offsets = [0, 768], sizes = [8, 256], strides = [1, 1]} : vector<8x1024xf32> to vector<8x256xf32>
    %c3_192 = arith.constant 3 : index
    %c0_193 = arith.constant 0 : index
    %c0_194 = arith.constant 0 : index
    %491 = vector.load %arg1[%c3_192, %c0_193, %c0_194] : memref<4x8x256xf32, #tpu.memory_space<vmem>>, vector<1x8x256xf32>
    %492 = vector.shape_cast %491 : vector<1x8x256xf32> to vector<8x256xf32>
    %493 = arith.addf %490, %492 : vector<8x256xf32>
    %cst_195 = arith.constant 0.000000e+00 : f32
    %494 = vector.broadcast %cst_195 : f32 to vector<8x256xf32>
    %495 = arith.maximumf %493, %494 : vector<8x256xf32>
    %c3_196 = arith.constant 3 : index
    %c0_197 = arith.constant 0 : index
    %c0_198 = arith.constant 0 : index
    %496 = vector.load %arg11[%c3_196, %c0_197, %c0_198] : memref<4x8x256xf32, #tpu.memory_space<vmem>>, vector<1x8x256xf32>
    %497 = vector.shape_cast %496 : vector<1x8x256xf32> to vector<8x256xf32>
    %498 = vector.shape_cast %495 : vector<8x256xf32> to vector<1x8x256xf32>
    tpu.vector_store %arg11[%c3_196, %c0_197, %c0_198], %498 {strides = array<i32>} : memref<4x8x256xf32, #tpu.memory_space<vmem>>, vector<1x8x256xf32>,
    return
  }
  func.func @transform_0(%arg0: i32) -> (i32, i32, i32) {
    %c0_i32 = arith.constant 0 : i32
    %c0_i32_0 = arith.constant 0 : i32
    %c0_i32_1 = arith.constant 0 : i32
    return %arg0, %c0_i32, %c0_i32_0 : i32, i32, i32
  }
  func.func @transform_1(%arg0: i32) -> (i32, i32) {
    %c0_i32 = arith.constant 0 : i32
    %c0_i32_0 = arith.constant 0 : i32
    %c0_i32_1 = arith.constant 0 : i32
    return %c0_i32, %c0_i32_0 : i32, i32
  }
  func.func @transform_2(%arg0: i32) -> (i32, i32) {
    %c0_i32 = arith.constant 0 : i32
    %c0_i32_0 = arith.constant 0 : i32
    %c0_i32_1 = arith.constant 0 : i32
    return %c0_i32, %c0_i32_0 : i32, i32
  }
  func.func @transform_3(%arg0: i32) -> (i32, i32) {
    %c0_i32 = arith.constant 0 : i32
    %c0_i32_0 = arith.constant 0 : i32
    %c0_i32_1 = arith.constant 0 : i32
    return %c0_i32, %c0_i32_0 : i32, i32
  }
  func.func @transform_4(%arg0: i32) -> (i32, i32) {
    %c0_i32 = arith.constant 0 : i32
    %c0_i32_0 = arith.constant 0 : i32
    %c0_i32_1 = arith.constant 0 : i32
    return %c0_i32, %c0_i32_0 : i32, i32
  }
  func.func @transform_5(%arg0: i32) -> (i32, i32) {
    %c0_i32 = arith.constant 0 : i32
    %c0_i32_0 = arith.constant 0 : i32
    %c0_i32_1 = arith.constant 0 : i32
    return %c0_i32, %c0_i32_0 : i32, i32
  }
  func.func @transform_6(%arg0: i32) -> (i32, i32) {
    %c0_i32 = arith.constant 0 : i32
    %c0_i32_0 = arith.constant 0 : i32
    %c0_i32_1 = arith.constant 0 : i32
    return %c0_i32, %c0_i32_0 : i32, i32
  }
  func.func @transform_7(%arg0: i32) -> (i32, i32) {
    %c0_i32 = arith.constant 0 : i32
    %c0_i32_0 = arith.constant 0 : i32
    %c0_i32_1 = arith.constant 0 : i32
    return %c0_i32, %c0_i32_0 : i32, i32
  }
  func.func @transform_8(%arg0: i32) -> (i32, i32) {
    %c0_i32 = arith.constant 0 : i32
    %c0_i32_0 = arith.constant 0 : i32
    %c0_i32_1 = arith.constant 0 : i32
    return %c0_i32, %c0_i32_0 : i32, i32
  }
  func.func @transform_9(%arg0: i32) -> (i32, i32) {
    %c0_i32 = arith.constant 0 : i32
    %c0_i32_0 = arith.constant 0 : i32
    %c0_i32_1 = arith.constant 0 : i32
    return %c0_i32, %c0_i32_0 : i32, i32
  }
  func.func @transform_10(%arg0: i32) -> (i32, i32, i32) {
    %c0_i32 = arith.constant 0 : i32
    %c0_i32_0 = arith.constant 0 : i32
    %c0_i32_1 = arith.constant 0 : i32
    return %arg0, %c0_i32, %c0_i32_0 : i32, i32, i32
  }
}

</mosaic_0001>

<bundles_post_ra>
// kernel: hmu_forward.1
= control target key start
LH: loop header
LB: loop body
LE: loop exit
PB: predicated region body
PF: predicated region fallthrough
CT: control target
= control target key end

     0   :  { %s6316_s13 = smov 0   ;;  %s11705_s0 = inlined_call_operand.vmem [shape: f32[8,8,256], index: 0, kind: input, shape index: {}]   ;;  %s11706_s1 = inlined_call_operand.vmem [shape: bf16[16,8], index: 1, kind: input, shape index: {}]   ;;  %s11707_s2 = inlined_call_operand.vmem [shape: bf16[12,36], index: 2, kind: input, shape index: {}]   ;;  %s11708_s3 = inlined_call_operand.vmem [shape: bf16[12,72], index: 3, kind: input, shape index: {}]   ;;  %s11709_s4 = inlined_call_operand.vmem [shape: bf16[12,72], index: 4, kind: input, shape index: {}]   ;;  %s11710_s5 = inlined_call_operand.vmem [shape: bf16[8,72], index: 5, kind: input, shape index: {}]   ;;  %s11711_s6 = inlined_call_operand.vmem [shape: bf16[4,16], index: 6, kind: input, shape index: {}]   ;;  %s11712_s7 = inlined_call_operand.vmem [shape: bf16[16,4], index: 7, kind: input, shape index: {}]   ;;  %s11713_s8 = inlined_call_operand.vmem [shape: bf16[8,144], index: 8, kind: input, shape index: {}]   ;;  %s11714_s9 = inlined_call_operand.vmem [shape: f32[184,1], index: 9, kind: input, shape index: {}]   ;;  %s11715_s10 = inlined_call_operand.vmem [shape: f32[8,8,256], index: 10, kind: output, shape index: {}]  }
   0x1 LB: > { %s4687_s14 = sadd.s32 4294967295, %s6249_s13   ;;  %p4691_p0 = scmp.ge.s32.totalorder %s6249_s13, 1  ;;  %s6249_s13 = sphi %s6316_s13, %s20_s13  }
   0x2   : > { %p314_p1 = scmp.lt.s32.totalorder %s6249_s13, 3 }
   0x4   : > { %p315_p2 = pnand %p4691_p0, %p314_p1 }
   0x6   : > { %318 = sbr.rel (%p315_p2) target bundleno = 2663 (0xa67), region = 60 }
   0xb   : > { %v673_v0 = vld [vmem:[%s11714_s9] sm:$0xff]  ;;  %s4692_s17 = sshll.u32 %s4687_s14, 2  ;;  %v6251_v1 = vmov 0   ;;  %v701_v2 = vld [vmem:[%s11714_s9 + $0x10] sm:$0xff]  ;;  %vm11735_vm0 = vcmask 1043456   ;;  %vm532_vm1 = vcmask 64512  }
   0xc   : > { %5299 = vset.pattern.permute.xlu0 %v6251_v1  ;;  %p355_p3 = scmp.lt.s32.totalorder %s4692_s17, 7  ;;  %5445 = vset.pattern.permute.xlu1 %v6251_v1  ;;  %v5276_v20 = vld [vmem:[%s11706_s1] sm:$0xff]  ;;  %s6252_s26 = smov 17   ;;  %vm11720_vm7 = vcmask 1041408  }
   0xd   : > { %677 = vperm.xlu0 %5299, %v673_v0   ;;  %5446 = vset.pattern.permute.xlu2 %v6251_v1  ;;  %s6253_s27 = smov 1   ;;  %s6254_s28 = smov 16  }
   0xe   : > { %s13914_s17 = smov (!%p355_p3, %s4692_s17), 7  ;;  %s6255_s29 = smov 112  }
   0xf   : > { %s12132_s18 = sshll.u32 %s13914_s17, 4  ;;  %s6256_s30 = smov 111  }
  0x10   : > { %s6335_s21 = scalar_lea.vmem %s11705_s0, %s12132_s18  ;;  %s6257_s11 = smov 113  }
  0x11   : > { %v506_v3 = vld [vmem:[%s6335_s21] sm:$0xff]  ;;  %v507_v4 = vld [vmem:[%s6335_s21 + $0x8] sm:$0xff]  ;;  %v4698_v5 = vld [vmem:[%s6335_s21 + $0x10] sm:$0xff]  ;;  %s6258_s12 = smov 127   ;;  %s6259_s14 = smov 15  }
  0x12   : > { %v519_v6 = vpack.c.bf16 %v506_v3, %v506_v3  ;;  %v520_v7 = vpack.c.bf16 %v507_v4, %v507_v4  ;;  %v521_v8 = vpack.c.bf16 %v4698_v5, %v4698_v5  ;;  %v4700_v9 = vld [vmem:[%s6335_s21 + $0x20] sm:$0xff]  ;;  %v4699_v10 = vld [vmem:[%s6335_s21 + $0x18] sm:$0xff]  ;;  %v4701_v11 = vld [vmem:[%s6335_s21 + $0x28] sm:$0xff] }
  0x13   : > { %v523_v12 = vpack.c.bf16 %v4700_v9, %v4700_v9  ;;  %v522_v13 = vpack.c.bf16 %v4699_v10, %v4699_v10  ;;  %v524_v14 = vpack.c.bf16 %v4701_v11, %v4701_v11  ;;  %v4702_v15 = vld [vmem:[%s6335_s21 + $0x30] sm:$0xff]  ;;  %v4703_v16 = vld [vmem:[%s6335_s21 + $0x38] sm:$0xff] }
  0x14   : > { %v538_v17 = vsel %vm11735_vm0, %v519_v6, 0  ;;  %v541_v18 = vsel %vm11735_vm0, %v520_v7, 0  ;;  %v544_v19 = vsel %vm11735_vm0, %v521_v8, 0  ;;  %v525_v21 = vpack.c.bf16 %v4702_v15, %v4702_v15 }
  0x15   : > { %705 = vperm.xlu0 %5299, %v701_v2   ;;  %568 = vmatpush.bf16.msra.mxu3 %v538_v17  ;;  %v550_v22 = vsel %vm11735_vm0, %v523_v12, 0  ;;  %v547_v23 = vsel %vm11735_vm0, %v522_v13, 0  ;;  %v553_v24 = vsel %vm11735_vm0, %v524_v14, 0  ;;  %v526_v25 = vpack.c.bf16 %v4703_v16, %v4703_v16 }
  0x16   : > { %582 = vmatpush.bf16.msra.mxu1 %v541_v18  ;;  %596 = vmatpush.bf16.msra.mxu2 %v544_v19  ;;  %v556_v26 = vsel %vm11735_vm0, %v525_v21, 0  ;;  %v369_v13 = vlaneseq }
  0x17   : > { %624 = vmatpush.bf16.msra.mxu0 %v550_v22  ;;  %v559_v27 = vsel %vm11735_vm0, %v526_v25, 0 }
  0x18   : > { %4708 = vmatmul.msk.bf16.vlgmr.msra.gmra.mxu3 %vm532_vm1, %v5276_v20  ;;  %v6480_v14 = vand.u32 127, %v369_v13 }
  0x19   : > { %610 = vmatpush.bf16.msrb.mxu3 %v547_v23  ;;  %4709 = vmatmul.msk.bf16.vlgmr.msra.gmra.mxu1 %vm532_vm1, %v5276_v20  ;;  %v12265_v23 = vmov 0 }
  0x1a   : > { %638 = vmatpush.bf16.msrb.mxu1 %v553_v24  ;;  %4710 = vmatmul.msk.bf16.vlgmr.msra.gmra.mxu2 %vm532_vm1, %v5276_v20  ;;  %v386_v17 = vand.u32 255, %v6480_v14  ;;  %v6488_v18 = vadd.s32 128, %v6480_v14  ;;  %v378_v19 = vand.u32 15, %v6480_v14  ;;  %vm11721_vm3 = vcmp.lt.s32.totalorder %v6480_v14, 111 }
  0x1b   : > { %4712 = vmatmul.msk.bf16.vlgmr.msra.gmra.mxu0 %vm532_vm1, %v5276_v20  ;;  %652 = vmatpush.bf16.msrb.mxu2 %v556_v26  ;;  %vm11722_vm6 = vcmp.lt.s32.totalorder %v6480_v14, 112  ;;  %vm11728_vm9 = vcmp.lt.s32.totalorder %v6480_v14, 113  ;;  %vm11734_vm13 = vcmp.lt.s32.totalorder %v6480_v14, 127 }
  0x1c   : > { %12263 = vst [vmem:[#allocation17_spill] sm:$0xff] %v6488_v18  ;;  %v387_v22 = vand.u32 255, %v6488_v18  ;;  %vm6496_vm2 = vcmp.le.s32.totalorder %v378_v19, 14  ;;  %v379_v26 = vand.u32 15, %v6488_v18  ;;  %vm6549_vm11 = vcmp.ge.s32.totalorder %v378_v19, 1 }
  0x1d   : > { %666 = vmatpush.bf16.msra.mxu3 %v559_v27  ;;  %v12266_v23 = vsel %vm6496_vm2, 4294967295, %v12265_v23 }
  0x1e   : > { %12267 = vst [vmem:[#allocation19_spill] sm:$0xff] %v12266_v23  ;;  %vm6537_vm8 = vcmp.le.s32.totalorder %v379_v26, 14 }
  0x28   : > { %4711 = vmatmul.msk.bf16.vlgmr.msrb.gmra.mxu3 %vm532_vm1, %v5276_v20 }
  0x29   : > { %4713 = vmatmul.msk.bf16.vlgmr.msrb.gmra.mxu1 %vm532_vm1, %v5276_v20 }
  0x2a   : > { %4714 = vmatmul.msk.bf16.vlgmr.msrb.gmra.mxu2 %vm532_vm1, %v5276_v20 }
  0x38   : > { %4715 = vmatmul.msk.bf16.vlgmr.msra.gmra.mxu3 %vm532_vm1, %v5276_v20  ;;  %v6491_v20 = vshra.s32 %v386_v17, 4 }
  0x3a   : > { %12264 = vst [vmem:[#allocation18_spill] sm:$0xff] %v6491_v20  ;;  %vm11719_vm4 = vcmp.le.s32.totalorder %v6491_v20, 14 }
  0x3b   : > { %vm6513_vm5 = vmand %vm11719_vm4, %vm6496_vm2 }
  0x3c   : > { %vm6585_vm14 = vmand %vm11719_vm4, %vm6549_vm11 }
  0x7f   : > { %v6367_v28 = vpop.permute.xlu0 %677 }
  0x87   : > { %v6370_v32 = vpop.permute.xlu0 %705 }
  0x96   : > { %v584_v29 = vpop.f32.mrf.mxu1 }
  0x97   : > { %v686_v30 = vmul.f32 %v6367_v28, %v584_v29  ;;  %v12268_v29 = vmov 0 }
  0x98   : > { %v626_v31 = vpop.f32.mrf.mxu0  ;;  %v12269_v29 = vsel %vm6513_vm5, 4294967295, %v12268_v29 }
  0x99   : > { %v689_v33 = vmul.f32 %v6367_v28, %v626_v31  ;;  %v714_v34 = vadd.f32 %v6370_v32, %v686_v30  ;;  %12270 = vst [vmem:[#allocation20_spill] sm:$0xff] %v12269_v29  ;;  %v6517_v30 = vshra.s32 %v387_v22, 4  ;;  %v6520_v31 = vadd.s32 384, %v6480_v14 }
  0x9b   : > { %v717_v35 = vadd.f32 %v6370_v32, %v689_v33  ;;  %v6375_v36 = vmax.f32 %v714_v34, 0.0  ;;  %v570_v38 = vpop.f32.mrf.mxu3  ;;  %12271 = vst [vmem:[#allocation21_spill] sm:$0xff] %v6517_v30  ;;  %vm11733_vm10 = vcmp.le.s32.totalorder %v6517_v30, 14 }
  0x9c   : > { %v685_v39 = vmul.f32 %v6367_v28, %v570_v38  ;;  %12272 = vst [vmem:[#allocation22_spill] sm:$0xff] %v6520_v31  ;;  %vm6566_vm12 = vmand %vm11733_vm10, %vm6537_vm8 }
  0x9d   : > { %12248 = vst [vmem:[#allocation2_spill] sm:$0xff] %v6375_v36  ;;  %v6377_v37 = vmax.f32 %v717_v35, 0.0  ;;  %v598_v43 = vpop.f32.mrf.mxu2 }
  0x9e   : > { %v6380_v40 = vpop.f32.mrf.mxu1  ;;  %v713_v42 = vadd.f32 %v6370_v32, %v685_v39  ;;  %v687_v45 = vmul.f32 %v6367_v28, %v598_v43  ;;  %v6535_v39 = vadd.s32 512, %v6480_v14 }
  0x9f   : > { %12249 = vst [vmem:[#allocation3_spill] sm:$0xff] %v6377_v37  ;;  %v6384_v41 = vpack.i.bf16 %v6377_v37, %v6375_v36 }
  0xa0   : > { %12250 = vst [vmem:[#allocation4_spill] sm:$0xff] %v6380_v40  ;;  %v6393_v44 = vmax.f32 %v713_v42, 0.0  ;;  %v715_v49 = vadd.f32 %v6370_v32, %v687_v45 }
  0xa1   : > { %5311 = vrot.lane.b32.xlu0 %v6384_v41, %s6252_s26  ;;  %5306 = vrot.lane.b32.xlu2 %v6384_v41, %s6253_s27  ;;  %12274 = vst [vmem:[#allocation24_spill] sm:$0xff] %v6535_v39 }
  0xa2   : > { %5301 = vrot.lane.b32.xlu1 %v6384_v41, %s6254_s28  ;;  %12251 = vst [vmem:[#allocation5_spill] sm:$0xff] %v6393_v44  ;;  %v5325_v48 = vpack.i.bf16 %v6375_v36, %v6393_v44  ;;  %v6405_v52 = vmax.f32 %v715_v49, 0.0 }
  0xa3   : > { %v6396_v46 = vpop.f32.mrf.mxu3 }
  0xa4   : > { %12252 = vst [vmem:[#allocation6_spill] sm:$0xff] %v6396_v46 }
  0xa5   : > { %12253 = vst [vmem:[#allocation7_spill] sm:$0xff] %v6405_v52  ;;  %v6429_v63 = vpop.f32.mrf.mxu2 }
  0xa6   : > { %v640_v47 = vpop.f32.mrf.mxu1  ;;  %12257 = vst [vmem:[#allocation11_spill] sm:$0xff] %v6429_v63 }
  0xa7   : > { %v690_v50 = vmul.f32 %v6367_v28, %v640_v47  ;;  %v11730_v47 = vand.u32 15, %v6520_v31 }
  0xa9   : > { %5326 = vrot.lane.b32.xlu2 %v5325_v48, %s6255_s29  ;;  %v718_v51 = vadd.f32 %v6370_v32, %v690_v50  ;;  %v12278_v50 = vmov 0  ;;  %vm6596_vm15 = vcmp.le.s32.totalorder %v11730_v47, 14 }
  0xaa   : > { %5316 = vrot.lane.b32.xlu1 %v5325_v48, %s6256_s30  ;;  %v12279_v50 = vsel %vm6549_vm11, 4294967295, %v12278_v50 }
  0xab   : > { %v6407_v53 = vmax.f32 %v718_v51, 0.0  ;;  %v612_v54 = vpop.f32.mrf.mxu3  ;;  %12280 = vst [vmem:[#allocation26_spill] sm:$0xff] %v12279_v50 }
  0xac   : > { %v688_v56 = vmul.f32 %v6367_v28, %v612_v54 }
  0xad   : > { %12254 = vst [vmem:[#allocation8_spill] sm:$0xff] %v6407_v53  ;;  %v5335_v55 = vpack.i.bf16 %v6407_v53, %v6405_v52  ;;  %v654_v4 = vpop.f32.mrf.mxu2 }
  0xae   : > { %v716_v58 = vadd.f32 %v6370_v32, %v688_v56  ;;  %v691_v5 = vmul.f32 %v6367_v28, %v654_v4  ;;  %v389_v56 = vand.u32 255, %v6520_v31 }
  0xaf   : > { %5336 = vrot.lane.b32.xlu0 %v5335_v55, %s6256_s30 }
  0xb0   : > { %v6420_v59 = vmax.f32 %v716_v58, 0.0  ;;  %v719_v6 = vadd.f32 %v6370_v32, %v691_v5  ;;  %v12284_v5 = vmov 0 }
  0xb1   : > { %5331 = vrot.lane.b32.xlu2 %v5325_v48, %s6257_s11  ;;  %v12285_v5 = vsel %vm6585_vm14, 4294967295, %v12284_v5 }
  0xb2   : > { %5321 = vrot.lane.b32.xlu1 %v5325_v48, %s6258_s12  ;;  %12256 = vst [vmem:[#allocation10_spill] sm:$0xff] %v6420_v59  ;;  %v5365_v60 = vpack.i.bf16 %v6377_v37, %v6420_v59  ;;  %v5380_v1 = vpack.i.bf16 %v6420_v59, %v6405_v52  ;;  %v6448_v7 = vmax.f32 %v719_v6, 0.0 }
  0xb3   : > { %v6415_v57 = vpop.f32.mrf.mxu3  ;;  %12286 = vst [vmem:[#allocation28_spill] sm:$0xff] %v12285_v5 }
  0xb4   : > { %12255 = vst [vmem:[#allocation9_spill] sm:$0xff] %v6415_v57  ;;  %v5420_v8 = vpack.i.bf16 %v6407_v53, %v6448_v7  ;;  %v12313_v57 = vmov 0 }
  0xb5   : > { %12259 = vst [vmem:[#allocation13_spill] sm:$0xff] %v6448_v7 }
  0xb7   : > { %5351 = vrot.lane.b32.xlu0 %v5335_v55, %s6257_s11 }
  0xb9   : > { %5346 = vrot.lane.b32.xlu2 %v5335_v55, %s6255_s29 }
  0xba   : > { %5341 = vrot.lane.b32.xlu1 %v5335_v55, %s6258_s12 }
  0xbb   : > { %v668_v61 = vpop.f32.mrf.mxu3 }
  0xbc   : > { %v692_v62 = vmul.f32 %v6367_v28, %v668_v61 }
  0xbe   : > { %v720_v0 = vadd.f32 %v6370_v32, %v692_v62  ;;  %v6523_v32 = vadd.s32 256, %v6480_v14 }
  0xbf   : > { %5366 = vrot.lane.b32.xlu0 %v5365_v60, %s6255_s29 }
  0xc0   : > { %v6436_v2 = vmax.f32 %v720_v0, 0.0  ;;  %12273 = vst [vmem:[#allocation23_spill] sm:$0xff] %v6523_v32  ;;  %v388_v49 = vand.u32 255, %v6523_v32  ;;  %v390_v0 = vand.u32 255, %v6535_v39 }
  0xc1   : > { %5361 = vrot.lane.b32.xlu2 %v5365_v60, %s6258_s12 }
  0xc2   : > { %5356 = vrot.lane.b32.xlu1 %v5365_v60, %s6256_s30  ;;  %12258 = vst [vmem:[#allocation12_spill] sm:$0xff] %v6436_v2  ;;  %v5395_v3 = vpack.i.bf16 %v6436_v2, %v6393_v44  ;;  %v5425_v9 = vpack.i.bf16 %v6448_v7, %v6436_v2 }
  0xc7   : > { %5381 = vrot.lane.b32.xlu0 %v5380_v1, %s6253_s27 }
  0xc9   : > { %5376 = vrot.lane.b32.xlu2 %v5380_v1, %s6254_s28 }
  0xca   : > { %5371 = vrot.lane.b32.xlu1 %v5365_v60, %s6257_s11  ;;  %v12281_v60 = vmov 0 }
  0xcb   : > { %v12282_v60 = vsel %vm6566_vm12, 4294967295, %v12281_v60 }
  0xcc   : > { %12283 = vst [vmem:[#allocation27_spill] sm:$0xff] %v12282_v60 }
  0xcf   : > { %5396 = vrot.lane.b32.xlu0 %v5395_v3, %s6254_s28 }
  0xd1   : > { %5391 = vrot.lane.b32.xlu2 %v5380_v1, %s6259_s14 }
  0xd2   : > { %5386 = vrot.lane.b32.xlu1 %v5380_v1, %s6252_s26 }
  0xd7   : > { %5416 = vrot.lane.b32.xlu0 %v5395_v3, %s6259_s14 }
  0xd9   : > { %5411 = vrot.lane.b32.xlu2 %v5395_v3, %s6252_s26 }
  0xda   : > { %5401 = vrot.lane.b32.xlu1 %v5395_v3, %s6253_s27 }
  0xdf   : > { %5421 = vrot.lane.b32.xlu0 %v5420_v8, %s6254_s28 }
  0xe1   : > { %5426 = vrot.lane.b32.xlu2 %v5425_v9, %s6256_s30 }
  0xe2   : > { %5406 = vrot.lane.b32.xlu1 %v6384_v41, %s6259_s14  ;;  %v12275_v41 = vmov 0 }
  0xe3   : > { %v12276_v41 = vsel %vm6537_vm8, 4294967295, %v12275_v41 }
  0xe4   : > { %12277 = vst [vmem:[#allocation25_spill] sm:$0xff] %v12276_v41 }
  0xe7   : > { %5431 = vrot.lane.b32.xlu0 %v5425_v9, %s6258_s12 }
  0xe9   : > { %5441 = vrot.lane.b32.xlu2 %v5425_v9, %s6257_s11 }
  0xea   : > { %5436 = vrot.lane.b32.xlu1 %v5425_v9, %s6255_s29  ;;  %v12287_v9 = vmov 0 }
  0xeb   : > { %v12288_v9 = vsel %vm6596_vm15, 4294967295, %v12287_v9 }
  0xec   : > { %12289 = vst [vmem:[#allocation29_spill] sm:$0xff] %v12288_v9 }
  0xef   : > { %859 = vrot.lane.b32.xlu0 %v6448_v7, %s6259_s14 }
  0xf1   : > { %761 = vrot.lane.b32.xlu2 %v6448_v7, %s6252_s26 }
  0xf2   : > { %908 = vrot.lane.b32.xlu1 %v6448_v7, %s6253_s27  ;;  %v12368_v7 = vand.u32 15, %v6535_v39 }
  0xf7   : > { %857 = vrot.lane.b32.xlu0 %v6407_v53, %s6259_s14 }
  0xf9   : > { %759 = vrot.lane.b32.xlu2 %v6407_v53, %s6252_s26 }
  0xfa   : > { %906 = vrot.lane.b32.xlu1 %v6407_v53, %s6253_s27  ;;  %v12369_v53 = vmov 0 }
  0xfb   : > { %v6474_v10 = vpop.permute.xlu2 %5306 }
 0x103   : > { %v6476_v11 = vpop.permute.xlu2 %5326 }
 0x104   : > { %12260 = vst [vmem:[#allocation14_spill] sm:$0xff] %v6476_v11  ;;  %v5329_v33 = vunpack.i.h.bf16 %v6476_v11  ;;  %v11716_v34 = vunpack.i.l.bf16 %v6476_v11 }
 0x106   : > { %v1066_v51 = vsel %vm11722_vm6, %v11716_v34, %v5329_v33 }
 0x107   : > { %v1084_v17 = vsel %vm11719_vm4, %v1066_v51, 0.0  ;;  %vm6626_vm4 = vcmp.ge.s32.totalorder %v379_v26, 1 }
 0x10b   : > { %v6478_v12 = vpop.permute.xlu2 %5331 }
 0x10c   : > { %v5334_v42 = vunpack.i.h.bf16 %v6478_v12  ;;  %v11718_v43 = vunpack.i.l.bf16 %v6478_v12 }
 0x10e   : > { %v1017_v6 = vsel %vm11728_vm9, %v11718_v43, %v5334_v42 }
 0x113   : > { %v6482_v15 = vpop.permute.xlu2 %5346  ;;  %v6493_v21 = vpop.permute.xlu0 %5311 }
 0x114   : > { %12261 = vst [vmem:[#allocation15_spill] sm:$0xff] %v6482_v15  ;;  %v6484_v16 = vpop.permute.xlu1 %5301  ;;  %v11724_v19 = vunpack.i.l.bf16 %v6482_v15 }
 0x115   : > { %12262 = vst [vmem:[#allocation16_spill] sm:$0xff] %v6484_v16 }
 0x116   : > { %v1065_v8 = vsel %vm11722_vm6, %v5329_v33, %v11724_v19  ;;  %v12301_v19 = vmov 0 }
 0x11b   : > { %v6500_v24 = vpop.permute.xlu2 %5361 }
 0x11c   : > { %v6503_v25 = vpop.permute.xlu1 %5316  ;;  %v11726_v51 = vunpack.i.h.bf16 %v6500_v24  ;;  %v11727_v34 = vunpack.i.l.bf16 %v6500_v24  ;;  %v12350_v2 = vunpack.i.h.bf16 %v6500_v24 }
 0x11d   : > { %v5319_v27 = vunpack.i.h.bf16 %v6503_v25  ;;  %v11723_v28 = vunpack.i.l.bf16 %v6503_v25 }
 0x11f   : > { %v1115_v35 = vsel %vm11721_vm3, %v11723_v28, %v5319_v27 }
 0x120   : > { %v1133_v38 = vsel %vm6513_vm5, %v1115_v35, 0.0  ;;  %v6611_v35 = vshra.s32 %v389_v56, 4 }
 0x121   : > { %v1285_v45 = vpack.c.bf16 %v1133_v38, %v1133_v38  ;;  %v6546_v48 = vpop.permute.xlu0 %5336  ;;  %v6613_v38 = vshra.s32 %v390_v0, 4 }
 0x122   : > { %v11725_v54 = vunpack.i.l.bf16 %v6546_v48  ;;  %12291 = vst [vmem:[#allocation31_spill] sm:$0xff] %v6611_v35  ;;  %v12340_v29 = vunpack.i.l.bf16 %v6546_v48 }
 0x123   : > { %v1306_v55 = vsel %vm11720_vm7, %v1285_v45, 0  ;;  %v6560_v58 = vpop.permute.xlu2 %5376  ;;  %12292 = vst [vmem:[#allocation32_spill] sm:$0xff] %v6613_v38  ;;  %v380_v45 = vand.u32 15, %v6523_v32  ;;  %vm12335_vm5 = vcmp.ge.s32.totalorder %v6613_v38, 1 }
 0x124   : > { %v6572_v62 = vpop.permute.xlu1 %5321  ;;  %1334 = vmatpush.bf16.msrb.mxu0 %v1306_v55  ;;  %v1114_v4 = vsel %vm11721_vm3, %v5319_v27, %v11725_v54  ;;  %v6609_v27 = vshra.s32 %v388_v49, 4  ;;  %v6687_v54 = vadd.s32 768, %v6480_v14 }
 0x125   : > { %v5324_v1 = vunpack.i.h.bf16 %v6572_v62  ;;  %v11717_v3 = vunpack.i.l.bf16 %v6572_v62  ;;  %v1134_v13 = vsel %vm6566_vm12, %v1114_v4, 0.0  ;;  %v1035_v4 = vsel %vm6585_vm14, %v1017_v6, 0.0 }
 0x126   : > { %12290 = vst [vmem:[#allocation30_spill] sm:$0xff] %v6609_v27  ;;  %v1286_v55 = vpack.c.bf16 %v1134_v13, %v1134_v13  ;;  %v12293_v13 = vmov 0  ;;  %v6631_v6 = vadd.s32 896, %v6480_v14  ;;  %vm6643_vm3 = vcmp.le.s32.totalorder %v380_v45, 14 }
 0x127   : > { %v968_v22 = vsel %vm11734_vm13, %v11717_v3, %v5324_v1  ;;  %v1221_v3 = vrot.slane %v1084_v17, 4  ;;  %v12294_v13 = vsel %vm6626_vm4, 4294967295, %v12293_v13  ;;  %vm11739_vm6 = vcmp.le.s32.totalorder %v6609_v27, 14  ;;  %12304 = vst [vmem:[#allocation38_spill] sm:$0xff] %v6687_v54 }
 0x128   : > { %v986_v49 = vsel %vm6496_vm2, %v968_v22, 0.0  ;;  %v1309_v0 = vsel %vm11720_vm7, %v1286_v55, 0  ;;  %12295 = vst [vmem:[#allocation33_spill] sm:$0xff] %v12294_v13  ;;  %v12297_v55 = vmov 0  ;;  %vm6671_vm7 = vmand %vm11733_vm10, %vm6626_vm4  ;;  %vm12339_vm14 = vcmp.lt.s32.totalorder %v6480_v14, 127 }
 0x129   : > { %v6623_v56 = vpop.permute.xlu0 %5351  ;;  %v1197_v43 = vrot.slane %v986_v49, 4  ;;  %12296 = vst [vmem:[#allocation34_spill] sm:$0xff] %v6631_v6  ;;  %1348 = vmatpush.bf16.msra.mxu1 %v1309_v0  ;;  %v1261_v26 = vsel %vm11735_vm0, %v1035_v4, %v1221_v3  ;;  %v12298_v55 = vsel %vm6643_vm3, 4294967295, %v12297_v55  ;;  %v6654_v0 = vadd.s32 640, %v6480_v14 }
 0x12a   : > { %v11729_v22 = vunpack.i.l.bf16 %v6623_v56  ;;  %12299 = vst [vmem:[#allocation35_spill] sm:$0xff] %v12298_v55  ;;  %v965_v3 = vsel %vm11734_vm13, %v11727_v34, %v11726_v51  ;;  %v12302_v19 = vsel %vm6671_vm7, 4294967295, %v12301_v19  ;;  %v1085_v34 = vsel %vm11733_vm10, %v1065_v8, 0.0 }
 0x12b   : > { %v6639_v61 = vpop.permute.xlu2 %5391  ;;  %v1253_v33 = vsel %vm11735_vm0, %v6393_v44, %v1197_v43  ;;  %12300 = vst [vmem:[#allocation36_spill] sm:$0xff] %v6654_v0  ;;  %v989_v8 = vsel %vm6596_vm15, %v965_v3, 0.0  ;;  %v5379_v51 = vunpack.i.h.bf16 %v6560_v58  ;;  %vm6701_vm10 = vcmp.ge.s32.totalorder %v380_v45, 1 }
 0x12c   : > { %v6647_v49 = vpop.permute.xlu1 %5341  ;;  %v1016_v4 = vsel %vm11728_vm9, %v5334_v42, %v11729_v22  ;;  %v1277_v28 = vpack.c.bf16 %v1261_v26, %v1253_v33  ;;  %12303 = vst [vmem:[#allocation37_spill] sm:$0xff] %v12302_v19  ;;  %v393_v42 = vand.u32 255, %v6631_v6  ;;  %v1222_v26 = vrot.slane %v1085_v34, 4 }
 0x12d   : > { %v5343_v43 = vunpack.i.l.bf16 %v6647_v49  ;;  %v1036_v17 = vsel %vm6671_vm7, %v1016_v4, 0.0  ;;  %v5378_v33 = vunpack.i.l.bf16 %v6560_v58  ;;  %v12305_v3 = vmov 0 }
 0x12e   : > { %1335 = vmatpush.bf16.msrb.mxu0 %v1277_v28  ;;  %v391_v28 = vand.u32 255, %v6654_v0  ;;  %v12306_v3 = vsel %vm6701_vm10, 4294967295, %v12305_v3  ;;  %v1200_v34 = vrot.slane %v989_v8, 4  ;;  %v1262_v58 = vsel %vm11735_vm0, %v1036_v17, %v1222_v26 }
 0x12f   : > { %v967_v22 = vsel %vm11734_vm13, %v5324_v1, %v5343_v43  ;;  %12307 = vst [vmem:[#allocation39_spill] sm:$0xff] %v12306_v3  ;;  %v392_v1 = vand.u32 255, %v6687_v54  ;;  %v12310_v45 = vunpack.i.h.bf16 %v6484_v16  ;;  %vm12311_vm9 = vcmp.lt.s32.totalorder %v6480_v14, 16 }
 0x130   : > { %v987_v47 = vsel %vm6537_vm8, %v967_v22, 0.0  ;;  %v6706_v22 = vshra.s32 %v393_v42, 4  ;;  %v12312_v42 = vand.u32 15, %v6535_v39  ;;  %v12317_v17 = vmov 0 }
 0x131   : > { %v1198_v32 = vrot.slane %v987_v47, 4  ;;  %v6699_v18 = vpop.permute.xlu0 %5366  ;;  %v818_v63 = vsel %vm12311_vm9, %v5379_v51, %v12310_v45  ;;  %v6780_v19 = vshra.s32 %v392_v1, 4  ;;  %vm12341_vm12 = vcmp.lt.s32.totalorder %v6480_v14, 111 }
 0x132   : > { %12308 = vst [vmem:[#allocation40_spill] sm:$0xff] %v6706_v22  ;;  %vm6721_vm13 = vcmp.le.s32.totalorder %v12312_v42, 14  ;;  %v12321_v42 = vmov 0  ;;  %v5368_v40 = vunpack.i.l.bf16 %v6699_v18  ;;  %vm12345_vm8 = vcmp.ge.s32.totalorder %v6611_v35, 1 }
 0x133   : > { %v6709_v4 = vpop.permute.xlu2 %5411  ;;  %v1254_v47 = vsel %vm11735_vm0, %v6375_v36, %v1198_v32  ;;  %v12314_v57 = vsel %vm6721_vm13, 4294967295, %v12313_v57  ;;  %v12316_v32 = vand.u32 15, %v6520_v31  ;;  %vm12320_vm0 = vmmov %vm12311_vm9  ;;  %12337 = vst [vmem:[#allocation48_spill] sm:$0xff] %v6780_v19  ;;  %v12349_v36 = vunpack.i.h.bf16 %v6647_v49 }
 0x134   : > { %12309 = vst [vmem:[#allocation41_spill] sm:$0xff] %v6709_v4  ;;  %v6725_v8 = vpop.permute.xlu1 %5356  ;;  %v1278_v46 = vpack.c.bf16 %v1262_v58, %v1254_v47  ;;  %v819_v45 = vsel %vm12320_vm0, %v5378_v33, %v5379_v51  ;;  %vm6741_vm9 = vmand %vm11739_vm6, %vm6643_vm3  ;;  %v6746_v58 = vshra.s32 %v391_v28, 4  ;;  %v5369_v51 = vunpack.i.h.bf16 %v6699_v18 }
 0x135   : > { %12315 = vst [vmem:[#allocation42_spill] sm:$0xff] %v12314_v57  ;;  %vm6729_vm1 = vcmp.ge.s32.totalorder %v12316_v32, 1  ;;  %v12322_v42 = vsel %vm6741_vm9, 4294967295, %v12321_v42  ;;  %v12325_v32 = vunpack.i.l.bf16 %v6484_v16  ;;  %vm12326_vm7 = vmmov %vm12320_vm0  ;;  %v5358_v31 = vunpack.i.l.bf16 %v6725_v8 }
 0x136   : > { %v12318_v17 = vsel %vm6729_vm1, 4294967295, %v12317_v17  ;;  %12323 = vst [vmem:[#allocation44_spill] sm:$0xff] %v12322_v42  ;;  %1349 = vmatpush.bf16.msra.mxu1 %v1278_v46  ;;  %vm12327_vm0 = vcmp.le.s32.totalorder %v6611_v35, 14  ;;  %v12328_v47 = vmov 0  ;;  %v12331_v28 = vand.u32 15, %v6631_v6 }
 0x137   : > { %12319 = vst [vmem:[#allocation43_spill] sm:$0xff] %v12318_v17  ;;  %v820_v26 = vsel %vm12326_vm7, %v12325_v32, %v5378_v33  ;;  %vm6759_vm6 = vmand %vm12327_vm0, %vm6596_vm15  ;;  %v12332_v33 = vmov 0  ;;  %v6774_v18 = vsel %vm12335_vm5, %v818_v63, 0.0  ;;  %vm12336_vm0 = vcmask 1043456  }
 0x138   : > { %12324 = vst [vmem:[#allocation45_spill] sm:$0xff] %v6746_v58  ;;  %v12329_v47 = vsel %vm6759_vm6, 4294967295, %v12328_v47  ;;  %vm6766_vm7 = vcmp.le.s32.totalorder %v12331_v28, 14  ;;  %v6778_v32 = vsel %vm12336_vm0, %v6420_v59, %v1200_v34  ;;  %v12338_v28 = vunpack.i.l.bf16 %v6500_v24  ;;  %vm12343_vm5 = vmmov %vm12341_vm12 }
 0x139   : > { %12330 = vst [vmem:[#allocation46_spill] sm:$0xff] %v12329_v47  ;;  %v12333_v33 = vsel %vm6766_vm7, 4294967295, %v12332_v33  ;;  %v1113_v46 = vsel %vm12341_vm12, %v12340_v29, %v5358_v31  ;;  %v12342_v63 = vunpack.i.h.bf16 %v6725_v8  ;;  %vm12344_vm0 = vcmp.ge.s32.totalorder %v6609_v27, 1 }
 0x13a   : > { %12334 = vst [vmem:[#allocation47_spill] sm:$0xff] %v12333_v33  ;;  %v966_v60 = vsel %vm12339_vm14, %v5343_v43, %v12338_v28  ;;  %v6797_v1 = vsel %vm12344_vm0, %v820_v26, 0.0  ;;  %v6801_v5 = vsel %vm12345_vm8, %v819_v45, 0.0  ;;  %v1135_v43 = vsel %vm6741_vm9, %v1113_v46, 0.0  ;;  %vm12351_vm8 = vmmov %vm12339_vm14 }
 0x13b   : > { %v1112_v34 = vsel %vm12343_vm5, %v5358_v31, %v12342_v63  ;;  %vm12346_vm12 = vcmp.lt.s32.totalorder %v6480_v14, 112  ;;  %v12347_v31 = vunpack.i.l.bf16 %v6482_v15  ;;  %v6814_v63 = vpop.permute.xlu0 %5381  ;;  %v1287_v45 = vpack.c.bf16 %v1135_v43, %v1135_v43  ;;  %v6821_v42 = vpop.permute.xlu2 %5426 }
 0x13c   : > { %v1136_v29 = vsel %vm6759_vm6, %v1112_v34, 0.0  ;;  %v1063_v28 = vsel %vm12346_vm12, %v5368_v40, %v5369_v51  ;;  %vm12348_vm5 = vmmov %vm12346_vm12  ;;  %v988_v46 = vsel %vm6643_vm3, %v966_v60, 0.0  ;;  %v11767_v47 = vunpack.i.h.bf16 %v6814_v63 }
 0x13d   : > { %v1064_v26 = vsel %vm12348_vm5, %v12347_v31, %v5368_v40  ;;  %v1288_v59 = vpack.c.bf16 %v1136_v29, %v1136_v29  ;;  %v964_v40 = vsel %vm12351_vm8, %v12350_v2, %v12349_v36  ;;  %v6830_v29 = vpop.permute.xlu1 %5371  ;;  %vm12352_vm0 = vcmask 1041408  }
 0x13e   : > { %v1312_v31 = vsel %vm12352_vm0, %v1287_v45, 0  ;;  %vm12353_vm12 = vmmov %vm12352_vm0  ;;  %vm12354_vm14 = vcmp.le.s32.totalorder %v6609_v27, 14  ;;  %vm12355_vm6 = vcmp.le.s32.totalorder %v6611_v35, 14  ;;  %v1199_v2 = vrot.slane %v988_v46, 4 }
 0x13f   : > { %v1315_v60 = vsel %vm12353_vm12, %v1288_v59, 0  ;;  %v1086_v44 = vsel %vm12354_vm14, %v1064_v26, 0.0  ;;  %v1087_v34 = vsel %vm12355_vm6, %v1063_v28, 0.0  ;;  %1362 = vmatpush.bf16.msra.mxu2 %v1312_v31  ;;  %vm12356_vm8 = vmmov %vm12354_vm14  ;;  %v12357_v59 = vmov 0 }
 0x140   : > { %1376 = vmatpush.bf16.msrb.mxu3 %v1315_v60  ;;  %vm6845_vm0 = vmand %vm12356_vm8, %vm6701_vm10  ;;  %v12360_v28 = vunpack.i.l.bf16 %v6814_v63  ;;  %vm12361_vm6 = vcmp.lt.s32.totalorder %v6480_v14, 1  ;;  %v5373_v31 = vunpack.i.l.bf16 %v6830_v29  ;;  %vm12362_vm14 = vcmp.le.s32.totalorder %v6611_v35, 14 }
 0x141   : > { %v12358_v59 = vsel %vm6845_vm0, 4294967295, %v12357_v59  ;;  %vm6861_vm12 = vmand %vm12362_vm14, %vm6729_vm1  ;;  %v12363_v60 = vmov 0  ;;  %v1152_v26 = vrot.slane %v6801_v5, 4  ;;  %v990_v43 = vsel %vm6721_vm13, %v964_v40, 0.0 }
 0x142   : > { %12359 = vst [vmem:[#allocation49_spill] sm:$0xff] %v12358_v59  ;;  %v917_v45 = vsel %vm12361_vm6, %v12360_v28, %v11767_v47  ;;  %v12364_v60 = vsel %vm6861_vm12, 4294967295, %v12363_v60  ;;  %v12366_v28 = vunpack.i.h.bf16 %v6482_v15  ;;  %vm12367_vm6 = vmmov %vm12348_vm5  ;;  %v1223_v36 = vrot.slane %v1086_v44, 4 }
 0x143   : > { %12365 = vst [vmem:[#allocation50_spill] sm:$0xff] %v12364_v60  ;;  %v1224_v24 = vrot.slane %v1087_v34, 4  ;;  %vm6877_vm14 = vcmp.ge.s32.totalorder %v12368_v7, 1  ;;  %v12372_v5 = vunpack.i.h.bf16 %v6830_v29  ;;  %vm12373_vm8 = vcmp.lt.s32.totalorder %v6480_v14, 113 }
 0x144   : > { %v1062_v47 = vsel %vm12367_vm6, %v5369_v51, %v12366_v28  ;;  %v12370_v53 = vsel %vm6877_vm14, 4294967295, %v12369_v53  ;;  %v12374_v46 = vunpack.i.l.bf16 %v6623_v56  ;;  %vm12375_vm9 = vmmov %vm12373_vm8  ;;  %v940_v44 = vsel %vm6729_vm1, %v917_v45, 0.0 }
 0x145   : > { %12371 = vst [vmem:[#allocation51_spill] sm:$0xff] %v12370_v53  ;;  %v1014_v40 = vsel %vm12373_vm8, %v5373_v31, %v12372_v5  ;;  %vm12376_vm6 = vcmp.le.s32.totalorder %v6706_v22, 14  ;;  %v12377_v28 = vmov 0  ;;  %v12380_v5 = vunpack.i.l.bf16 %v6503_v25  ;;  %v6919_v25 = vpop.permute.xlu0 %5396 }
 0x146   : > { %v1015_v51 = vsel %vm12375_vm9, %v12374_v46, %v5373_v31  ;;  %v1038_v7 = vsel %vm6861_vm12, %v1014_v40, 0.0  ;;  %vm6899_vm5 = vmand %vm12376_vm6, %vm6766_vm7  ;;  %v12381_v31 = vunpack.i.l.bf16 %v6821_v42  ;;  %vm12382_vm9 = vcmp.lt.s32.totalorder %v6480_v14, 111 }
 0x147   : > { %v1037_v34 = vsel %vm6845_vm0, %v1015_v51, 0.0  ;;  %v12378_v28 = vsel %vm6899_vm5, 4294967295, %v12377_v28  ;;  %v12383_v46 = vunpack.i.h.bf16 %v6639_v61  ;;  %v12384_v51 = vunpack.i.l.bf16 %v6639_v61 }
 0x148   : > { %12379 = vst [vmem:[#allocation52_spill] sm:$0xff] %v12378_v28  ;;  %v1116_v45 = vsel %vm12382_vm9, %v12381_v31, %v12380_v5  ;;  %vm12385_vm8 = vcmp.lt.s32.totalorder %v6480_v14, 15  ;;  %vm12386_vm12 = vcmask 1043456   ;;  %v745_v5 = vld [vmem:[%s11714_s9 + $0x20] sm:$0xff]  ;;  %v1201_v31 = vrot.slane %v990_v43, 4 }
 0x149   : > { %v868_v40 = vsel %vm12385_vm8, %v12384_v51, %v12383_v46  ;;  %v1255_v39 = vsel %vm12386_vm12, %v6405_v52, %v1199_v2  ;;  %vm12387_vm6 = vmmov %vm12386_vm12  ;;  %vm12389_vm12 = vcmp.ge.s32.totalorder %v6611_v35, 1  ;;  %v5277_v43 = vld [vmem:[%s11707_s2] sm:$0x30]  ;;  %1443 = vperm.xlu1 %5445, %v745_v5   ;;  %v5413_v2 = vunpack.i.l.bf16 %v6709_v4 }
 0x14a   : > { %v1263_v60 = vsel %vm12387_vm6, %v1037_v34, %v1223_v36  ;;  %vm12388_vm0 = vmmov %vm12387_vm6  ;;  %v12390_v36 = vmov 0  ;;  %vm12397_vm6 = vcmp.le.s32.totalorder %v6613_v38, 14  ;;  %v6952_v34 = vpop.permute.xlu1 %5386  ;;  %v12406_v5 = vunpack.i.h.bf16 %v6725_v8 }
 0x14b   : > { %v1264_v59 = vsel %vm12388_vm0, %v1038_v7, %v1224_v24  ;;  %v1279_v11 = vpack.c.bf16 %v1263_v60, %v1255_v39  ;;  %vm6930_vm9 = vmand %vm12389_vm12, %vm6596_vm15  ;;  %v4718_v24 = vld [vmem:[%s11707_s2] sm:$0xf]  ;;  %v12393_v39 = vand.u32 15, %v6654_v0  ;;  %v1176_v60 = vrot.slane %v940_v44, 4 }
 0x14c   : > { %v1280_v15 = vpack.c.bf16 %v1264_v59, %v6778_v32  ;;  %v12391_v36 = vsel %vm6930_vm9, 4294967295, %v12390_v36  ;;  %v12394_v32 = vmov 0  ;;  %v6949_v59 = vsel %vm12397_vm6, %v1062_v47, 0.0  ;;  %vm6964_vm6 = vmand %vm12389_vm12, %vm6729_vm1 }
 0x14d   : > { %12392 = vst [vmem:[#allocation53_spill] sm:$0xff] %v12391_v36  ;;  %vm6943_vm8 = vcmp.le.s32.totalorder %v12393_v39, 14  ;;  %v1140_v7 = vsel %vm6899_vm5, %v1116_v45, 0.0  ;;  %v11797_v46 = vunpack.i.h.bf16 %v6952_v34  ;;  %1363 = vmatpush.bf16.msra.mxu2 %v1279_v11  ;;  %v5398_v39 = vunpack.i.l.bf16 %v6919_v25 }
 0x14e   : > { %v12395_v32 = vsel %vm6943_vm8, 4294967295, %v12394_v32  ;;  %1377 = vmatpush.bf16.msrb.mxu3 %v1280_v15  ;;  %v12398_v47 = vmov 0  ;;  %v891_v45 = vsel %vm6930_vm9, %v868_v40, 0.0  ;;  %v6971_v33 = vor.u32 %v5277_v43, %v4718_v24 }
 0x14f   : > { %12396 = vst [vmem:[#allocation54_spill] sm:$0xff] %v12395_v32  ;;  %v12399_v47 = vsel %vm6964_vm6, 4294967295, %v12398_v47  ;;  %vm12401_vm0 = vcmp.le.s32.totalorder %v6613_v38, 14  ;;  %v12402_v11 = vmov 0  ;;  %v12405_v15 = vunpack.i.h.bf16 %v6546_v48 }
 0x150   : > { %12400 = vst [vmem:[#allocation55_spill] sm:$0xff] %v12399_v47  ;;  %vm6977_vm5 = vmand %vm12401_vm0, %vm6721_vm13  ;;  %vm12407_vm12 = vcmp.lt.s32.totalorder %v6480_v14, 111  ;;  %v12408_v40 = vunpack.i.l.bf16 %v6952_v34  ;;  %vm12409_vm1 = vcmp.lt.s32.totalorder %v6480_v14, 17  ;;  %vm12410_vm9 = vcmask 1043456  }
 0x151   : > { %v12403_v11 = vsel %vm6977_vm5, 4294967295, %v12402_v11  ;;  %v1111_v44 = vsel %vm12407_vm12, %v12406_v5, %v12405_v15  ;;  %v6996_v43 = vsel %vm12410_vm9, %v6377_v37, %v1201_v31  ;;  %v12411_v8 = vand.u32 15, %v6687_v54 }
 0x152   : > { %12404 = vst [vmem:[#allocation56_spill] sm:$0xff] %v12403_v11  ;;  %v770_v24 = vsel %vm12409_vm1, %v12408_v40, %v11797_v46  ;;  %v12412_v5 = vmov 0  ;;  %v12415_v15 = vunpack.i.h.bf16 %v6474_v10  ;;  %v12416_v51 = vunpack.i.h.bf16 %v6814_v63  ;;  %v7074_v47 = vpop.permute.xlu1 %5401 }
 0x153   : > { %vm7001_vm7 = vcmp.le.s32.totalorder %v12411_v8, 14  ;;  %vm12417_vm12 = vcmp.lt.s32.totalorder %v6480_v14, 1  ;;  %v793_v46 = vsel %vm6964_vm6, %v770_v24, 0.0  ;;  %v1292_v31 = vpack.c.bf16 %v1140_v7, %v1140_v7  ;;  %12442 = vst [vmem:[#allocation61_spill] sm:$0xff] %v7074_v47 }
 0x154   : > { %v12413_v5 = vsel %vm7001_vm7, 4294967295, %v12412_v5  ;;  %v916_v40 = vsel %vm12417_vm12, %v12416_v51, %v12415_v15  ;;  %v12418_v17 = vunpack.i.h.bf16 %v6709_v4  ;;  %v12419_v8 = vunpack.i.h.bf16 %v6919_v25 }
 0x155   : > { %12414 = vst [vmem:[#allocation57_spill] sm:$0xff] %v12413_v5  ;;  %vm12420_vm9 = vcmp.lt.s32.totalorder %v6480_v14, 16  ;;  %vm12421_vm15 = vcmask 1043456   ;;  %vm12423_vm12 = vcmp.ge.s32.totalorder %v6491_v20, 1  ;;  %v12424_v7 = vmov 0  ;;  %v12720_v5 = vld [vmem:[#allocation46_spill] sm:$0xff] }
 0x156   : > { %v773_v36 = vsel %vm12409_vm1, %v12418_v17, %v5413_v2  ;;  %v822_v28 = vsel %vm12420_vm9, %v12419_v8, %v5398_v39  ;;  %v1240_v9 = vsel %vm12421_vm15, %v793_v46, %v1152_v26  ;;  %vm12422_vm0 = vmmov %vm12421_vm15  ;;  %v1137_v17 = vsel %vm6977_vm5, %v1111_v44, 0.0  ;;  %v7046_v8 = vpop.permute.xlu0 %5416 }
 0x157   : > { %v1248_v35 = vsel %vm12422_vm0, %v891_v45, %v1176_v60  ;;  %vm7027_vm6 = vmand %vm12423_vm12, %vm6549_vm11  ;;  %v12427_v51 = vunpack.i.l.bf16 %v6493_v21  ;;  %v12428_v26 = vunpack.i.l.bf16 %v6814_v63  ;;  %v12429_v60 = vunpack.i.l.bf16 %v6474_v10 }
 0x158   : > { %v12425_v7 = vsel %vm7027_vm6, 4294967295, %v12424_v7  ;;  %vm12430_vm15 = vcmp.lt.s32.totalorder %v6480_v14, 1  ;;  %v5429_v45 = vunpack.i.h.bf16 %v6821_v42  ;;  %v1272_v15 = vpack.c.bf16 %v1248_v35, %v1240_v9 }
 0x159   : > { %12426 = vst [vmem:[#allocation58_spill] sm:$0xff] %v12425_v7  ;;  %v7037_v24 = vsel %vm12409_vm1, %v5413_v2, %v12427_v51  ;;  %v918_v46 = vsel %vm12430_vm15, %v12429_v60, %v12428_v26  ;;  %vm12431_vm0 = vcmp.ge.s32.totalorder %v6517_v30, 1  ;;  %v12432_v44 = vmov 0 }
 0x15a   : > { %vm7052_vm9 = vmand %vm12431_vm0, %vm6626_vm4  ;;  %v941_v63 = vsel %vm6877_vm14, %v916_v40, 0.0  ;;  %v12435_v2 = vunpack.i.h.bf16 %v6623_v56  ;;  %v12436_v51 = vunpack.i.h.bf16 %v6830_v29  ;;  %vm12437_vm12 = vcmp.lt.s32.totalorder %v6480_v14, 113  ;;  %v5442_v40 = vpop.permute.xlu2 %5441  ;;  %1378 = vmatpush.bf16.msrb.mxu3 %v1272_v15 }
 0x15b   : > { %v12433_v44 = vsel %vm7052_vm9, 4294967295, %v12432_v44  ;;  %vm12438_vm1 = vcmp.le.s32.totalorder %v6613_v38, 14  ;;  %v12439_v60 = vmov 0  ;;  %vm12443_vm0 = vcmask 1041408  }
 0x15c   : > { %12434 = vst [vmem:[#allocation59_spill] sm:$0xff] %v12433_v44  ;;  %v1013_v9 = vsel %vm12437_vm12, %v12436_v51, %v12435_v2  ;;  %vm7070_vm15 = vmand %vm12438_vm1, %vm6877_vm14  ;;  %v1327_v29 = vsel %vm12443_vm0, %v1292_v31, 0  ;;  %v790_v2 = vsel %vm7027_vm6, %v773_v36, 0.0  ;;  %vm12444_vm12 = vcmp.ge.s32.totalorder %v6491_v20, 1 }
 0x15d   : > { %v12440_v60 = vsel %vm7070_vm15, 4294967295, %v12439_v60  ;;  %v839_v51 = vsel %vm12444_vm12, %v822_v28, 0.0  ;;  %v1289_v35 = vpack.c.bf16 %v1137_v17, %v1137_v17  ;;  %v939_v26 = vsel %vm6701_vm10, %v918_v46, 0.0 }
 0x15e   : > { %12441 = vst [vmem:[#allocation60_spill] sm:$0xff] %v12440_v60  ;;  %v11828_v11 = vunpack.i.h.bf16 %v7074_v47  ;;  %v5403_v37 = vunpack.i.l.bf16 %v7074_v47  ;;  %1432 = vmatpush.bf16.msra.mxu3 %v1327_v29  ;;  %v12445_v15 = vand.u32 15, %v6654_v0  ;;  %v12446_v52 = vmov 0 }
 0x15f   : > { %v791_v36 = vsel %vm7052_vm9, %v7037_v24, 0.0  ;;  %v7094_v28 = vrot.slane %v941_v63, 4  ;;  %v12449_v31 = vunpack.i.l.bf16 %v6484_v16  ;;  %vm12450_vm0 = vcmp.lt.s32.totalorder %v6480_v14, 16 }
 0x160   : > { %vm7087_vm1 = vcmp.ge.s32.totalorder %v12445_v15, 1  ;;  %v12451_v46 = vand.u32 15, %v6687_v54  ;;  %v12452_v29 = vmov 0  ;;  %v1039_v15 = vsel %vm7070_vm15, %v1013_v9, 0.0 }
 0x161   : > { %v12447_v52 = vsel %vm7087_vm1, 4294967295, %v12446_v52  ;;  %v821_v17 = vsel %vm12450_vm0, %v5398_v39, %v12449_v31  ;;  %vm12455_vm9 = vcmp.le.s32.totalorder %v6746_v58, 14  ;;  %v12456_v24 = vmov 0 }
 0x162   : > { %12448 = vst [vmem:[#allocation62_spill] sm:$0xff] %v12447_v52  ;;  %vm7102_vm12 = vcmp.ge.s32.totalorder %v12451_v46, 1  ;;  %vm7112_vm5 = vmand %vm12455_vm9, %vm6943_vm8  ;;  %v12458_v63 = vunpack.i.h.bf16 %v6546_v48  ;;  %vm12459_vm0 = vcmp.lt.s32.totalorder %v6480_v14, 111  ;;  %v5444_v31 = vunpack.i.h.bf16 %v5442_v40 }
 0x163   : > { %v12453_v29 = vsel %vm7102_vm12, 4294967295, %v12452_v29  ;;  %v12457_v24 = vsel %vm7112_vm5, 4294967295, %v12456_v24  ;;  %vm12460_vm6 = vcmp.lt.s32.totalorder %v6480_v14, 1  ;;  %vm12461_vm15 = vcmask 293888  }
 0x164   : > { %12454 = vst [vmem:[#allocation63_spill] sm:$0xff] %v12453_v29  ;;  %v1110_v39 = vsel %vm12459_vm0, %v12458_v63, %v5429_v45  ;;  %v920_v46 = vsel %vm12460_vm6, %v11828_v11, %v5403_v37  ;;  %4723 = vmatmul.msk.bf16.vlgmr.msrb.gmra.mxu3 %vm12461_vm15, %v6971_v33  ;;  %vm12462_vm9 = vcmp.ge.s32.totalorder %v6491_v20, 1  ;;  %v12463_v9 = vmov 0 }
 0x165   : > { %vm7130_vm8 = vmand %vm12462_vm9, %vm6496_vm2  ;;  %v12466_v48 = vunpack.i.l.bf16 %v7046_v8  ;;  %v12467_v63 = vunpack.i.h.bf16 %v7046_v8  ;;  %vm12468_vm0 = vcmp.lt.s32.totalorder %v6480_v14, 15  ;;  %v1149_v0 = vrot.slane %v839_v51, 4 }
 0x166   : > { %v12464_v9 = vsel %vm7130_vm8, 4294967295, %v12463_v9  ;;  %v1175_v11 = vrot.slane %v939_v26, 4  ;;  %v5443_v44 = vunpack.i.l.bf16 %v5442_v40  ;;  %v937_v60 = vsel %vm6549_vm11, %v920_v46, 0.0 }
 0x167   : > { %12465 = vst [vmem:[#allocation64_spill] sm:$0xff] %v12464_v9  ;;  %v871_v54 = vsel %vm12468_vm0, %v12467_v63, %v12466_v48  ;;  %vm12469_vm6 = vcmask 1041408   ;;  %v12470_v23 = vunpack.i.l.bf16 %v6952_v34  ;;  %v12471_v20 = vunpack.i.l.bf16 %v6493_v21 }
 0x168   : > { %v1318_v7 = vsel %vm12469_vm6, %v1289_v35, 0  ;;  %vm12472_vm15 = vcmp.lt.s32.totalorder %v6480_v14, 17  ;;  %vm12473_vm9 = vcmp.ge.s32.totalorder %v6517_v30, 1  ;;  %v1173_v4 = vrot.slane %v937_v60, 4 }
 0x169   : > { %v771_v16 = vsel %vm12472_vm15, %v12471_v20, %v12470_v23  ;;  %v840_v47 = vsel %vm12473_vm9, %v821_v17, 0.0  ;;  %vm12474_vm0 = vcmp.ge.s32.totalorder %v6609_v27, 1  ;;  %v12475_v26 = vmov 0  ;;  %v7165_v23 = vpop.permute.xlu0 %5421 }
 0x16a   : > { %vm7155_vm2 = vmand %vm12474_vm0, %vm6701_vm10  ;;  %v1138_v35 = vsel %vm7112_vm5, %v1110_v39, 0.0  ;;  %v12478_v40 = vunpack.i.l.bf16 %v6474_v10  ;;  %vm12479_vm6 = vcmp.lt.s32.totalorder %v6480_v14, 1  ;;  %v888_v60 = vsel %vm7130_vm8, %v871_v54, 0.0 }
 0x16b   : > { %v12476_v26 = vsel %vm7155_vm2, 4294967295, %v12475_v26  ;;  %v12480_v51 = vrot.slane %v6949_v59, 4  ;;  %vm12481_vm15 = vcmask 1043456   ;;  %vm12482_vm9 = vcmp.le.s32.totalorder %v6780_v19, 14 }
 0x16c   : > { %12477 = vst [vmem:[#allocation65_spill] sm:$0xff] %v12476_v26  ;;  %v919_v20 = vsel %vm12479_vm6, %v5403_v37, %v12478_v40  ;;  %vm7176_vm0 = vmand %vm12482_vm9, %vm7001_vm7  ;;  %v12483_v39 = vmov 0  ;;  %v12486_v46 = vunpack.i.l.bf16 %v6821_v42  ;;  %vm12487_vm6 = vcmp.lt.s32.totalorder %v6480_v14, 111 }
 0x16d   : > { %v1265_v17 = vsel %vm12481_vm15, %v1039_v15, %v12480_v51  ;;  %v12484_v39 = vsel %vm7176_vm0, 4294967295, %v12483_v39  ;;  %v12488_v48 = vunpack.i.h.bf16 %v6493_v21  ;;  %v12489_v54 = vunpack.i.h.bf16 %v6952_v34  ;;  %v7206_v51 = vpop.permute.xlu1 %5406 }
 0x16e   : > { %12485 = vst [vmem:[#allocation66_spill] sm:$0xff] %v12484_v39  ;;  %v1109_v37 = vsel %vm12487_vm6, %v5429_v45, %v12486_v46  ;;  %vm12490_vm10 = vcmp.lt.s32.totalorder %v6480_v14, 17  ;;  %v12491_v15 = vunpack.i.h.bf16 %v6623_v56  ;;  %vm12492_vm15 = vcmp.lt.s32.totalorder %v6480_v14, 113 }
 0x16f   : > { %v769_v59 = vsel %vm12490_vm10, %v12489_v54, %v12488_v48  ;;  %vm12493_vm9 = vcmask 1043456   ;;  %vm12495_vm6 = vcmp.ge.s32.totalorder %v6613_v38, 1  ;;  %v12496_v45 = vmov 0 }
 0x170   : > { %v7194_v63 = vsel %vm12492_vm15, %v12491_v15, %v5444_v31  ;;  %v1237_v40 = vsel %vm12493_vm9, %v790_v2, %v1149_v0  ;;  %vm12494_vm5 = vmmov %vm12493_vm9  ;;  %v1150_v34 = vrot.slane %v840_v47, 4  ;;  %v792_v46 = vsel %vm7155_vm2, %v771_v16, 0.0 }
 0x171   : > { %v1245_v42 = vsel %vm12494_vm5, %v888_v60, %v1173_v4  ;;  %vm7202_vm11 = vmand %vm12495_vm6, %vm6877_vm14  ;;  %v1290_v48 = vpack.c.bf16 %v1138_v35, %v1138_v35  ;;  %v938_v0 = vsel %vm6626_vm4, %v919_v20, 0.0  ;;  %v11866_v4 = vunpack.i.h.bf16 %v7206_v51 }
 0x172   : > { %v12497_v45 = vsel %vm7202_vm11, 4294967295, %v12496_v45  ;;  %v1269_v56 = vpack.c.bf16 %v1245_v42, %v1237_v40  ;;  %v5408_v2 = vunpack.i.l.bf16 %v7206_v51  ;;  %vm12499_vm10 = vcmp.ge.s32.totalorder %v6609_v27, 1  ;;  %vm12504_vm9 = vmmov %vm12492_vm15 }
 0x173   : > { %12498 = vst [vmem:[#allocation67_spill] sm:$0xff] %v12497_v45  ;;  %vm7218_vm5 = vmand %vm12499_vm10, %vm6643_vm3  ;;  %v12500_v47 = vmov 0  ;;  %v1139_v60 = vsel %vm7176_vm0, %v1109_v37, 0.0  ;;  %v7226_v16 = vsel %vm12492_vm15, %v5444_v31, %v5443_v44  ;;  %v12503_v35 = vunpack.i.l.bf16 %v6478_v12 }
 0x174   : > { %v12501_v47 = vsel %vm7218_vm5, 4294967295, %v12500_v47  ;;  %v12505_v54 = vand.u32 15, %v6631_v6  ;;  %v12506_v15 = vmov 0  ;;  %1336 = vmatpush.bf16.msrb.mxu0 %v1269_v56  ;;  %v1281_v40 = vpack.c.bf16 %v1265_v17, %v6996_v43 }
 0x175   : > { %12502 = vst [vmem:[#allocation68_spill] sm:$0xff] %v12501_v47  ;;  %v7232_v20 = vsel %vm12504_vm9, %v5443_v44, %v12503_v35  ;;  %vm12509_vm10 = vnez %v12276_v41  ;;  %vm12510_vm15 = vcmp.ge.s32.totalorder %v6517_v30, 1  ;;  %v12511_v31 = vmov 0 }
 0x176   : > { %vm7236_vm6 = vcmp.ge.s32.totalorder %v12505_v54, 1  ;;  %vm7245_vm2 = vmand %vm12510_vm15, %vm12509_vm10  ;;  %v794_v12 = vsel %vm7202_vm11, %v769_v59, 0.0  ;;  %v12514_v44 = vunpack.i.h.bf16 %v6639_v61  ;;  %vm12515_vm9 = vcmp.lt.s32.totalorder %v6480_v14, 15 }
 0x177   : > { %v12507_v15 = vsel %vm7236_vm6, 4294967295, %v12506_v15  ;;  %v12512_v31 = vsel %vm7245_vm2, 4294967295, %v12511_v31  ;;  %v12516_v43 = vunpack.i.l.bf16 %v6639_v61  ;;  %vm12517_vm14 = vmmov %vm12515_vm9  ;;  %v12518_v42 = vunpack.i.l.bf16 %v7046_v8  ;;  %v747_v61 = vld [vmem:[%s11714_s9 + $0x30] sm:$0xff] }
 0x178   : > { %12508 = vst [vmem:[#allocation69_spill] sm:$0xff] %v12507_v15  ;;  %v867_v37 = vsel %vm12515_vm9, %v12514_v44, %v11866_v4  ;;  %vm12519_vm15 = vmmov %vm12515_vm9  ;;  %1390 = vmatpush.bf16.msra.mxu0 %v1318_v7  ;;  %v12520_v59 = vrot.slane %v6797_v1, 4  ;;  %vm12521_vm11 = vcmask 1043456   ;;  %vm12522_vm4 = vcmp.ge.s32.totalorder %v6613_v38, 1  ;;  %1469 = vperm.xlu2 %5446, %v747_v61   ;;  %v12722_v15 = vld [vmem:[#allocation56_spill] sm:$0xff] }
 0x179   : > { %12513 = vst [vmem:[#allocation70_spill] sm:$0xff] %v12512_v31  ;;  %v869_v17 = vsel %vm12517_vm14, %v5408_v2, %v12516_v43  ;;  %v870_v56 = vsel %vm12519_vm15, %v12518_v42, %v5408_v2  ;;  %vm7272_vm9 = vmand %vm12522_vm4, %vm6721_vm13  ;;  %v12523_v54 = vmov 0  ;;  %v1174_v44 = vrot.slane %v938_v0, 4 }
 0x17a   : > { %v1239_v35 = vsel %vm12521_vm11, %v792_v46, %v12520_v59  ;;  %v12524_v54 = vsel %vm7272_vm9, 4294967295, %v12523_v54  ;;  %v890_v7 = vsel %vm7218_vm5, %v869_v17, 0.0  ;;  %vm12526_vm14 = vmmov %vm12521_vm11  ;;  %v1291_v2 = vpack.c.bf16 %v1139_v60, %v1139_v60  ;;  %v5432_v59 = vpop.permute.xlu0 %5431 }
 0x17b   : > { %12525 = vst [vmem:[#allocation71_spill] sm:$0xff] %v12524_v54  ;;  %v1238_v1 = vsel %vm12526_vm14, %v791_v36, %v1150_v34  ;;  %vm12527_vm11 = vcmp.le.s32.totalorder %v6746_v58, 14  ;;  %v12528_v46 = vmov 0  ;;  %vm12531_vm0 = vcmask 293888   ;;  %vm12532_vm13 = vmmov %vm12526_vm14 }
 0x17c   : > { %vm7286_vm15 = vmand %vm12527_vm11, %vm7087_vm1  ;;  %4720 = vmatmul.msk.bf16.vlgmr.msrb.gmra.mxu0 %vm12531_vm0, %v6971_v33  ;;  %v1247_v0 = vsel %vm12532_vm13, %v890_v7, %v1175_v11  ;;  %v889_v36 = vsel %vm7245_vm2, %v870_v56, 0.0  ;;  %vm12533_vm14 = vcmask 1041408   ;;  %v12534_v60 = vrot.slane %v6774_v18, 4 }
 0x17d   : > { %v12529_v46 = vsel %vm7286_vm15, 4294967295, %v12528_v46  ;;  %v1321_v34 = vsel %vm12533_vm14, %v1290_v48, 0  ;;  %vm12535_vm5 = vmmov %vm12532_vm13  ;;  %vm12536_vm11 = vcmp.le.s32.totalorder %v6780_v19, 14  ;;  %v12537_v17 = vmov 0  ;;  %1391 = vmatpush.bf16.msra.mxu0 %v1281_v40 }
 0x17e   : > { %12530 = vst [vmem:[#allocation72_spill] sm:$0xff] %v12529_v46  ;;  %v1241_v43 = vsel %vm12535_vm5, %v794_v12, %v12534_v60  ;;  %vm7304_vm3 = vmand %vm12536_vm11, %vm7102_vm12  ;;  %v5423_v42 = vunpack.i.l.bf16 %v7165_v23  ;;  %v1271_v11 = vpack.c.bf16 %v1247_v0, %v1239_v35  ;;  %v892_v48 = vsel %vm7272_vm9, %v867_v37, 0.0  ;;  %v5437_v60 = vpop.permute.xlu1 %5436 }
 0x17f   : > { %v12538_v17 = vsel %vm7304_vm3, 4294967295, %v12537_v17  ;;  %vm12540_vm13 = vmmov %vm12535_vm5  ;;  %v5434_v18 = vunpack.i.h.bf16 %v5432_v59  ;;  %v5433_v12 = vunpack.i.l.bf16 %v5432_v59  ;;  %v1040_v35 = vsel %vm7286_vm15, %v7194_v63, 0.0 }
 0x180   : > { %12539 = vst [vmem:[#allocation73_spill] sm:$0xff] %v12538_v17  ;;  %v1246_v56 = vsel %vm12540_vm13, %v889_v36, %v1174_v44  ;;  %vm12541_vm0 = vmmov %vm12535_vm5  ;;  %1364 = vmatpush.bf16.msra.mxu2 %v1271_v11  ;;  %v1041_v37 = vsel %vm7304_vm3, %v7226_v16, 0.0  ;;  %v5439_v40 = vunpack.i.h.bf16 %v5437_v60  ;;  %v5438_v44 = vunpack.i.l.bf16 %v5437_v60  ;;  %v12551_v11 = vld [vmem:[#allocation15_spill] sm:$0xff] }
 0x181   : > { %v1270_v61 = vpack.c.bf16 %v1246_v56, %v1238_v1  ;;  %v1249_v7 = vsel %vm12541_vm0, %v892_v48, %v7094_v28  ;;  %vm12542_vm5 = vmmov %vm12533_vm14  ;;  %v12543_v1 = vunpack.i.h.bf16 %v6647_v49  ;;  %vm12544_vm14 = vcmp.lt.s32.totalorder %v6480_v14, 127  ;;  %v12555_v48 = vld [vmem:[#allocation14_spill] sm:$0xff]  ;;  %v12562_v60 = vld [vmem:[#allocation47_spill] sm:$0xff] }
 0x182   : > { %v1324_v4 = vsel %vm12542_vm5, %v1291_v2, 0  ;;  %v1273_v6 = vpack.c.bf16 %v1249_v7, %v1241_v43  ;;  %vm12545_vm11 = vmmov %vm12544_vm14  ;;  %v12546_v2 = vunpack.i.h.bf16 %v6919_v25  ;;  %vm12547_vm13 = vcmp.lt.s32.totalorder %v6480_v14, 16 }
 0x183   : > { %v963_v28 = vsel %vm12544_vm14, %v12543_v1, %v5434_v18  ;;  %v962_v0 = vsel %vm12545_vm11, %v5434_v18, %v5433_v12  ;;  %1350 = vmatpush.bf16.msra.mxu1 %v1270_v61  ;;  %vm12548_vm0 = vnez %v12395_v32  ;;  %v12549_v49 = vunpack.i.l.bf16 %v6572_v62  ;;  %vm12550_vm5 = vmmov %vm12545_vm11 }
 0x184   : > { %1418 = vmatpush.bf16.msrb.mxu2 %v1324_v4  ;;  %v815_v63 = vsel %vm12547_vm13, %v5423_v42, %v12546_v2  ;;  %v991_v16 = vsel %vm12548_vm0, %v963_v28, 0.0  ;;  %v992_v43 = vsel %vm7001_vm7, %v962_v0, 0.0  ;;  %v762_v4 = vpop.permute.xlu2 %761  ;;  %v12552_v25 = vunpack.i.h.bf16 %v12551_v11  ;;  %1392 = vmatpush.bf16.msra.mxu0 %v1273_v6  ;;  %v12570_v11 = vld [vmem:[#allocation8_spill] sm:$0xff] }
 0x185   : > { %v969_v36 = vsel %vm12550_vm5, %v5433_v12, %v12549_v49  ;;  %vm12553_vm14 = vcmp.lt.s32.totalorder %v6480_v14, 112  ;;  %v12556_v18 = vunpack.i.l.bf16 %v12555_v48  ;;  %v1202_v61 = vrot.slane %v991_v16, 4 }
 0x186   : > { %v1061_v59 = vsel %vm12553_vm14, %v12552_v25, %v5439_v40  ;;  %vm12554_vm11 = vmmov %vm12553_vm14  ;;  %vm12558_vm5 = vcmask 293888   ;;  %vm12559_vm4 = vcmp.le.s32.totalorder %v6746_v58, 14  ;;  %vm12560_vm3 = vcmp.le.s32.totalorder %v6780_v19, 14 }
 0x187   : > { %1404 = vmatpush.bf16.msrb.mxu1 %v1321_v34  ;;  %v1060_v56 = vsel %vm12554_vm11, %v5439_v40, %v5438_v44  ;;  %vm12557_vm13 = vmmov %vm12554_vm11  ;;  %4722 = vmatmul.msk.bf16.vlgmr.msra.gmra.mxu2 %vm12558_vm5, %v6971_v33  ;;  %v1089_v34 = vsel %vm12559_vm4, %v1061_v59, 0.0  ;;  %vm12561_vm14 = vcmp.le.s32.totalorder %v6706_v22, 14  ;;  %vm12563_vm11 = vnez %v12562_v60  ;;  %v12572_v59 = vld [vmem:[#allocation41_spill] sm:$0xff] }
 0x188   : > { %v1067_v62 = vsel %vm12557_vm13, %v5438_v44, %v12556_v18  ;;  %v1090_v12 = vsel %vm12560_vm3, %v1060_v56, 0.0  ;;  %v993_v40 = vsel %vm12563_vm11, %v969_v36, 0.0  ;;  %vm12564_vm15 = vmmov %vm12558_vm5  ;;  %v1226_v44 = vrot.slane %v1089_v34, 4  ;;  %v860_v36 = vpop.permute.xlu0 %859  ;;  %v12576_v18 = vld [vmem:[#allocation13_spill] sm:$0xff] }
 0x189   : > { %v1091_v7 = vsel %vm12561_vm14, %v1067_v62, 0.0  ;;  %4721 = vmatmul.msk.bf16.vlgmr.msra.gmra.mxu1 %vm12564_vm15, %v6971_v33  ;;  %v1227_v1 = vrot.slane %v1090_v12, 4  ;;  %v1203_v0 = vrot.slane %v992_v43, 4  ;;  %vm12565_vm4 = vmmov %vm12561_vm14  ;;  %v12566_v6 = vmov 0 }
 0x18a   : > { %v1228_v28 = vrot.slane %v1091_v7, 4  ;;  %vm7367_vm13 = vmand %vm12565_vm4, %vm7236_vm6  ;;  %v5424_v2 = vunpack.i.h.bf16 %v7165_v23  ;;  %vm12569_vm3 = vcmp.ge.s32.totalorder %v6706_v22, 1  ;;  %v1204_v49 = vrot.slane %v993_v40, 4  ;;  %v12582_v40 = vld [vmem:[#allocation12_spill] sm:$0xff] }
 0x18b   : > { %v12567_v6 = vsel %vm7367_vm13, 4294967295, %v12566_v6  ;;  %v846_v16 = vsel %vm12569_vm3, %v815_v63, 0.0  ;;  %vm12571_vm15 = vcmask 1043456   ;;  %v12573_v43 = vunpack.i.h.bf16 %v12572_v59  ;;  %vm7388_vm2 = vmand %vm12569_vm3, %vm7236_vm6 }
 0x18c   : > { %12568 = vst [vmem:[#allocation15_spill] sm:$0xff] %v12567_v6  ;;  %v1258_v25 = vsel %vm12571_vm15, %v12570_v11, %v1202_v61  ;;  %vm12574_vm5 = vcmp.lt.s32.totalorder %v6480_v14, 17  ;;  %vm12575_vm14 = vmmov %vm12571_vm15  ;;  %v12579_v63 = vmov 0  ;;  %v909_v61 = vpop.permute.xlu1 %908 }
 0x18d   : > { %v766_v56 = vsel %vm12574_vm5, %v762_v4, %v12573_v43  ;;  %v1266_v48 = vsel %vm12575_vm14, %v1040_v35, %v1226_v44  ;;  %vm12577_vm4 = vmmov %vm12575_vm14  ;;  %v12580_v63 = vsel %vm7388_vm2, 4294967295, %v12579_v63  ;;  %v1042_v35 = vsel %vm7367_vm13, %v7232_v20, 0.0 }
 0x18e   : > { %v1259_v62 = vsel %vm12577_vm4, %v12576_v18, %v1203_v0  ;;  %vm12578_vm9 = vmmov %vm12577_vm4  ;;  %12581 = vst [vmem:[#allocation14_spill] sm:$0xff] %v12580_v63  ;;  %v1282_v12 = vpack.c.bf16 %v1266_v48, %v1258_v25  ;;  %v1156_v0 = vrot.slane %v846_v16, 4  ;;  %v12588_v25 = vmov 0 }
 0x18f   : > { %v1267_v34 = vsel %vm12578_vm9, %v1041_v37, %v1227_v1  ;;  %vm12583_vm15 = vmmov %vm12577_vm4  ;;  %v12584_v37 = vld [vmem:[#allocation61_spill] sm:$0xff]  ;;  %vm12586_vm9 = vcmp.lt.s32.totalorder %v6480_v14, 1  ;;  %v12591_v43 = vunpack.i.h.bf16 %v7046_v8  ;;  %vm12592_vm4 = vcmp.lt.s32.totalorder %v6480_v14, 15 }
 0x190   : > { %v1283_v7 = vpack.c.bf16 %v1267_v34, %v1259_v62  ;;  %v1260_v44 = vsel %vm12583_vm15, %v12582_v40, %v1204_v49  ;;  %v12585_v1 = vunpack.i.h.bf16 %v12584_v37  ;;  %vm12587_vm5 = vmmov %vm12569_vm3  ;;  %v12594_v49 = vld [vmem:[#allocation16_spill] sm:$0xff]  ;;  %1405 = vmatpush.bf16.msrb.mxu1 %v1282_v12 }
 0x191   : > { %vm7405_vm14 = vmand %vm12587_vm5, %vm12563_vm11  ;;  %v864_v20 = vsel %vm12592_vm4, %v860_v36, %v12591_v43  ;;  %v12595_v48 = vunpack.i.h.bf16 %v12594_v49  ;;  %vm11883_vm5 = vcmp.ge.s32.totalorder %v6746_v58, 1  ;;  %vm11880_vm4 = vcmp.ge.s32.totalorder %v6780_v19, 1 }
 0x192   : > { %v913_v59 = vsel %vm12586_vm9, %v909_v61, %v12585_v1  ;;  %v12589_v25 = vsel %vm7405_vm14, 4294967295, %v12588_v25  ;;  %vm12593_vm3 = vmmov %vm12583_vm15  ;;  %vm12596_vm15 = vcmp.lt.s32.totalorder %v6480_v14, 16  ;;  %1419 = vmatpush.bf16.msrb.mxu2 %v1283_v7  ;;  %v895_v23 = vsel %vm7405_vm14, %v864_v20, 0.0 }
 0x193   : > { %12590 = vst [vmem:[#allocation8_spill] sm:$0xff] %v12589_v25  ;;  %v1268_v16 = vsel %vm12593_vm3, %v1042_v35, %v1228_v28  ;;  %v817_v62 = vsel %vm12596_vm15, %v12595_v48, %v5424_v2  ;;  %vm12597_vm9 = vmmov %vm12596_vm15  ;;  %v944_v37 = vsel %vm7236_vm6, %v913_v59, 0.0  ;;  %v797_v28 = vsel %vm7388_vm2, %v766_v56, 0.0  ;;  %v760_v35 = vpop.permute.xlu2 %759 }
 0x194   : > { %v816_v34 = vsel %vm12597_vm9, %v5424_v2, %v5423_v42  ;;  %v1284_v8 = vpack.c.bf16 %v1268_v16, %v1260_v44  ;;  %v1180_v1 = vrot.slane %v944_v37, 4  ;;  %v844_v42 = vsel %vm11883_vm5, %v817_v62, 0.0  ;;  %vm7442_vm2 = vmand %vm11883_vm5, %vm7087_vm1  ;;  %v858_v44 = vpop.permute.xlu0 %857  ;;  %v907_v62 = vpop.permute.xlu1 %906 }
 0x195   : > { %v845_v2 = vsel %vm11880_vm4, %v816_v34, 0.0  ;;  %vm12598_vm3 = vcmask 293888   ;;  %vm12599_vm15 = vcmask 1043456   ;;  %v12601_v7 = vmov 0  ;;  %vm7450_vm6 = vmand %vm11880_vm4, %vm7102_vm12 }
 0x196   : > { %1433 = vmatpush.bf16.msra.mxu3 %v1284_v8  ;;  %4724 = vmatmul.msk.bf16.vlgmr.msra.gmra.mxu0 %vm12598_vm3, %v6971_v33  ;;  %v1244_v12 = vsel %vm12599_vm15, %v797_v28, %v1156_v0  ;;  %vm12600_vm9 = vmmov %vm12599_vm15  ;;  %v12602_v7 = vsel %vm7442_vm2, 4294967295, %v12601_v7  ;;  %v12604_v43 = vmov 0  ;;  %vm12607_vm3 = vcmp.lt.s32.totalorder %v6480_v14, 17 }
 0x197   : > { %v1252_v56 = vsel %vm12600_vm9, %v895_v23, %v1180_v1  ;;  %12603 = vst [vmem:[#allocation41_spill] sm:$0xff] %v12602_v7  ;;  %v12605_v43 = vsel %vm7450_vm6, 4294967295, %v12604_v43  ;;  %v767_v0 = vsel %vm12607_vm3, %v760_v35, %v762_v4  ;;  %v12608_v20 = vunpack.i.h.bf16 %v6493_v21  ;;  %vm12609_vm15 = vmmov %vm12607_vm3 }
 0x198   : > { %v1276_v59 = vpack.c.bf16 %v1252_v56, %v1244_v12  ;;  %12606 = vst [vmem:[#allocation13_spill] sm:$0xff] %v12605_v43  ;;  %v1154_v49 = vrot.slane %v844_v42, 4  ;;  %v1155_v48 = vrot.slane %v845_v2, 4  ;;  %vm7464_vm9 = vmand %vm11883_vm5, %vm12548_vm0  ;;  %v12610_v34 = vmov 0  ;;  %v12664_v43 = vld [vmem:[#allocation27_spill] sm:$0xff] }
 0x199   : > { %v768_v16 = vsel %vm12609_vm15, %v12608_v20, %v760_v35  ;;  %v12611_v34 = vsel %vm7464_vm9, 4294967295, %v12610_v34  ;;  %vm12613_vm4 = vcmp.lt.s32.totalorder %v6480_v14, 1  ;;  %v12614_v21 = vunpack.i.h.bf16 %v6474_v10 }
 0x19a   : > { %12612 = vst [vmem:[#allocation12_spill] sm:$0xff] %v12611_v34  ;;  %1434 = vmatpush.bf16.msra.mxu3 %v1276_v59  ;;  %v914_v4 = vsel %vm12613_vm4, %v907_v62, %v909_v61  ;;  %vm12615_vm3 = vmmov %vm12613_vm4  ;;  %vm12616_vm15 = vcmp.ge.s32.totalorder %v6780_v19, 1  ;;  %v12617_v8 = vmov 0  ;;  %vm12620_vm5 = vcmp.lt.s32.totalorder %v6480_v14, 15 }
 0x19b   : > { %v915_v37 = vsel %vm12615_vm3, %v12614_v21, %v907_v62  ;;  %vm7478_vm14 = vmand %vm12616_vm15, %vm7001_vm7  ;;  %v865_v1 = vsel %vm12620_vm5, %v858_v44, %v860_v36  ;;  %v12621_v28 = vunpack.i.h.bf16 %v7206_v51  ;;  %v943_v23 = vsel %vm7102_vm12, %v914_v4, 0.0  ;;  %v7514_v21 = vpop.f32.mrf.mxu0 }
 0x19c   : > { %v12618_v8 = vsel %vm7478_vm14, 4294967295, %v12617_v8  ;;  %vm12622_vm4 = vmmov %vm12620_vm5  ;;  %v942_v10 = vsel %vm7087_vm1, %v915_v37, 0.0  ;;  %v1179_v42 = vrot.slane %v943_v23, 4  ;;  %vm12623_vm3 = vcmask 293888   ;;  %12631 = vst [vmem:[#allocation75_spill] sm:$0xff] %v7514_v21 }
 0x19d   : > { %12619 = vst [vmem:[#allocation61_spill] sm:$0xff] %v12618_v8  ;;  %v866_v61 = vsel %vm12622_vm4, %v12621_v28, %v858_v44  ;;  %v1178_v35 = vrot.slane %v942_v10, 4  ;;  %4727 = vmatmul.msk.bf16.vlgmr.msra.gmra.mxu3 %vm12623_vm3, %v6971_v33  ;;  %v795_v2 = vsel %vm7442_vm2, %v768_v16, 0.0  ;;  %v796_v51 = vsel %vm7450_vm6, %v767_v0, 0.0  ;;  %vm12628_vm6 = vmmov %vm12623_vm3  ;;  %v7510_v0 = vpop.f32.mrf.mxu1 }
 0x19e   : > { %v893_v36 = vsel %vm7464_vm9, %v866_v61, 0.0  ;;  %v894_v12 = vsel %vm7478_vm14, %v865_v1, 0.0  ;;  %vm12624_vm5 = vcmask 1043456   ;;  %12629 = vst [vmem:[#allocation16_spill] sm:$0xff] %v7510_v0  ;;  %v7518_v61 = vpop.f32.mrf.mxu3  ;;  %v12662_v0 = vld [vmem:[#allocation20_spill] sm:$0xff]  ;;  %vm12684_vm2 = vcmp.le.s32.totalorder %v6517_v30, 14 }
 0x19f   : > { %v1242_v56 = vsel %vm12624_vm5, %v795_v2, %v1154_v49  ;;  %vm12625_vm15 = vmmov %vm12624_vm5  ;;  %v7512_v49 = vpop.f32.mrf.mxu2  ;;  %12633 = vst [vmem:[#allocation77_spill] sm:$0xff] %v7518_v61  ;;  %v12745_v58 = vmov 0  ;;  %vm12835_vm14 = vcmask 588800  }
 0x1a0   : > { %v1250_v44 = vsel %vm12625_vm15, %v893_v36, %v1178_v35  ;;  %vm12626_vm4 = vmmov %vm12624_vm5  ;;  %12630 = vst [vmem:[#allocation74_spill] sm:$0xff] %v7512_v49 }
 0x1a1   : > { %v1243_v59 = vsel %vm12626_vm4, %v796_v51, %v1155_v48  ;;  %vm12627_vm12 = vmmov %vm12626_vm4  ;;  %v1274_v62 = vpack.c.bf16 %v1250_v44, %v1242_v56 }
 0x1a2   : > { %v1251_v20 = vsel %vm12627_vm12, %v894_v12, %v1179_v42  ;;  %vm12639_vm12 = vmmov %vm12626_vm4 }
 0x1a3   : > { %v1275_v4 = vpack.c.bf16 %v1251_v20, %v1243_v59  ;;  %1406 = vmatpush.bf16.msrb.mxu1 %v1274_v62  ;;  %v12637_v59 = vld [vmem:[#allocation7_spill] sm:$0xff]  ;;  %vm12645_vm5 = vmmov %vm12626_vm4 }
 0x1a4   : > { %v1519_v20 = vrot.slane %v12637_v59, 4  ;;  %v12644_v59 = vld [vmem:[#allocation5_spill] sm:$0xff]  ;;  %vm12646_vm15 = vmmov %vm12626_vm4 }
 0x1a5   : > { %1420 = vmatpush.bf16.msrb.mxu2 %v1275_v4  ;;  %v1522_v4 = vrot.slane %v12570_v11, 4 }
 0x1a6   : > { %4725 = vmatmul.msk.bf16.vlgmr.msrb.gmra.mxu1 %vm12623_vm3, %v6971_v33  ;;  %vm12653_vm3 = vmmov %vm12626_vm4 }
 0x1a8   : > { %4726 = vmatmul.msk.bf16.vlgmr.msrb.gmra.mxu2 %vm12628_vm6, %v6971_v33  ;;  %vm12640_vm6 = vmmov %vm12626_vm4 }
 0x1bb   : > { %v1444_v1 = vpop.permute.xlu1 %1443 }
 0x1d2   : > { %v7520_v10 = vpop.permute.xlu2 %1469 }
 0x1e7   : > { %v1380_v56 = vpop.f32.mrf.mxu3 }
 0x1f9   : > { %v1338_v33 = vpop.f32.mrf.mxu0 }
 0x1fa   : > { %v1451_v51 = vmul.f32 %v1444_v1, %v1338_v33 }
 0x206   : > { %v1352_v16 = vpop.f32.mrf.mxu1 }
 0x207   : > { %v1452_v42 = vmul.f32 %v1444_v1, %v1352_v16 }
 0x209   : > { %v7530_v44 = vadd.f32 %v7520_v10, %v1452_v42  ;;  %v12642_v42 = vld [vmem:[#allocation2_spill] sm:$0xff] }
 0x20a   : > { %v1366_v48 = vpop.f32.mrf.mxu2 }
 0x20b   : > { %v1453_v28 = vmul.f32 %v1444_v1, %v1366_v48  ;;  %12636 = vst [vmem:[#allocation80_spill] sm:$0xff] %v7530_v44  ;;  %v7536_v48 = vadd.f32 %v7520_v10, %v1451_v51  ;;  %v7556_v51 = vpop.f32.mrf.mxu3 }
 0x20c   : > { %12643 = vst [vmem:[#allocation2_spill] sm:$0xff] %v7556_v51 }
 0x20d   : > { %v7523_v23 = vadd.f32 %v7520_v10, %v1453_v28  ;;  %12638 = vst [vmem:[#allocation7_spill] sm:$0xff] %v7536_v48  ;;  %v11892_v11 = vmax.f32 %v7536_v48, 0.0  ;;  %v12652_v48 = vld [vmem:[#allocation10_spill] sm:$0xff] }
 0x20e   : > { %v7516_v37 = vpop.f32.mrf.mxu1 }
 0x20f   : > { %12632 = vst [vmem:[#allocation76_spill] sm:$0xff] %v7516_v37  ;;  %v11889_v36 = vmax.f32 %v7523_v23, 0.0 }
 0x210   : > { %12634 = vst [vmem:[#allocation78_spill] sm:$0xff] %v7523_v23 }
 0x211   : > { %v7541_v16 = vsel %vm12639_vm12, %v1519_v20, %v11889_v36  ;;  %v1517_v20 = vrot.slane %v12644_v59, 4  ;;  %vm12655_vm12 = vmmov %vm12653_vm3 }
 0x220   : > { %v1436_v59 = vpop.f32.mrf.mxu3 }
 0x223   : > { %v1408_v35 = vpop.f32.mrf.mxu1 }
 0x224   : > { %v1456_v2 = vmul.f32 %v1444_v1, %v1408_v35  ;;  %v11891_v35 = vmax.f32 %v7530_v44, 0.0 }
 0x226   : > { %v7527_v12 = vadd.f32 %v7520_v10, %v1456_v2  ;;  %v1518_v2 = vrot.slane %v12642_v42, 4  ;;  %v7574_v42 = vpop.f32.mrf.mxu2 }
 0x227   : > { %12647 = vst [vmem:[#allocation5_spill] sm:$0xff] %v7574_v42 }
 0x228   : > { %12635 = vst [vmem:[#allocation79_spill] sm:$0xff] %v7527_v12  ;;  %v11888_v62 = vmax.f32 %v7527_v12, 0.0  ;;  %v1458_v12 = vmul.f32 %v1444_v1, %v1436_v59 }
 0x22a   : > { %v7546_v28 = vsel %vm12640_vm6, %v1522_v4, %v11888_v62  ;;  %v7562_v4 = vsel %vm12645_vm5, %v1518_v2, %v11891_v35  ;;  %v7567_v62 = vsel %vm12646_vm15, %v1517_v20, %v11892_v11  ;;  %v1454_v20 = vmul.f32 %v1444_v1, %v1380_v56  ;;  %v7581_v35 = vpop.f32.mrf.mxu0  ;;  %vm12658_vm6 = vmmov %vm12653_vm3 }
 0x22b   : > { %12641 = vst [vmem:[#allocation81_spill] sm:$0xff] %v7546_v28  ;;  %v5457_v33 = vpack.i.bf16 %v7546_v28, %v7541_v16  ;;  %v5477_v36 = vpack.i.bf16 %v7562_v4, %v7567_v62  ;;  %v5487_v2 = vpack.i.bf16 %v7541_v16, %v7567_v62  ;;  %v1524_v56 = vrot.slane %v12582_v40, 4 }
 0x22c   : > { %12648 = vst [vmem:[#allocation82_spill] sm:$0xff] %v7581_v35  ;;  %v7587_v23 = vadd.f32 %v7520_v10, %v1454_v20  ;;  %vm12660_vm5 = vcmp.lt.s32.totalorder %v6480_v14, 111 }
 0x22d   : > { %5458 = vrot.lane.b32.xlu2 %v5457_v33, %s6255_s29  ;;  %5453 = vrot.lane.b32.xlu1 %v5457_v33, %s6257_s11  ;;  %vm12661_vm15 = vmmov %vm12660_vm5 }
 0x22e   : > { %5448 = vrot.lane.b32.xlu0 %v5457_v33, %s6256_s30  ;;  %v1422_v11 = vpop.f32.mrf.mxu2  ;;  %12650 = vst [vmem:[#allocation84_spill] sm:$0xff] %v7587_v23 }
 0x22f   : > { %v1457_v44 = vmul.f32 %v1444_v1, %v1422_v11  ;;  %v1520_v11 = vrot.slane %v12652_v48, 4 }
 0x231   : > { %v7601_v20 = vadd.f32 %v7520_v10, %v1457_v44  ;;  %v1523_v44 = vrot.slane %v12576_v18, 4  ;;  %v12657_v18 = vld [vmem:[#allocation3_spill] sm:$0xff] }
 0x232   : > { %v1394_v51 = vpop.f32.mrf.mxu0 }
 0x233   : > { %12651 = vst [vmem:[#allocation85_spill] sm:$0xff] %v7601_v20 }
 0x235   : > { %5463 = vrot.lane.b32.xlu2 %v5457_v33, %s6258_s12  ;;  %5478 = vrot.lane.b32.xlu1 %v5477_v36, %s6255_s29  ;;  %v7584_v33 = vadd.f32 %v7520_v10, %v1458_v12 }
 0x236   : > { %5468 = vrot.lane.b32.xlu0 %v5477_v36, %s6256_s30 }
 0x237   : > { %12649 = vst [vmem:[#allocation83_spill] sm:$0xff] %v7584_v33  ;;  %v11898_v59 = vmax.f32 %v7584_v33, 0.0  ;;  %v11897_v33 = vmax.f32 %v7601_v20, 0.0 }
 0x239   : > { %v7598_v12 = vsel %vm12626_vm4, %v1524_v56, %v11898_v59  ;;  %v7622_v56 = vsel %vm12655_vm12, %v1523_v44, %v11897_v33  ;;  %v1541_v44 = vld [vmem:[%s11714_s9 + $0x40] sm:$0xff]  ;;  %vm12663_vm4 = vnez %v12662_v0  ;;  %vm12666_vm12 = vcmp.lt.s32.totalorder %v6480_v14, 112 }
 0x23a   : > { %12656 = vst [vmem:[#allocation86_spill] sm:$0xff] %v7622_v56 }
 0x23d   : > { %5473 = vrot.lane.b32.xlu2 %v5477_v36, %s6257_s11  ;;  %5483 = vrot.lane.b32.xlu1 %v5477_v36, %s6258_s12  ;;  %v11900_v36 = vmax.f32 %v7587_v23, 0.0 }
 0x23e   : > { %5488 = vrot.lane.b32.xlu0 %v5487_v2, %s6259_s14 }
 0x23f   : > { %v7607_v42 = vsel %vm12653_vm3, %v1520_v11, %v11900_v36  ;;  %v1521_v11 = vrot.slane %v12657_v18, 4  ;;  %vm12665_vm3 = vnez %v12664_v43  ;;  %v12673_v43 = vld [vmem:[#allocation18_spill] sm:$0xff] }
 0x240   : > { %v5522_v40 = vpack.i.bf16 %v7598_v12, %v7607_v42 }
 0x245   : > { %5493 = vrot.lane.b32.xlu2 %v5487_v2, %s6253_s27  ;;  %5498 = vrot.lane.b32.xlu1 %v5487_v2, %s6252_s26 }
 0x246   : > { %5503 = vrot.lane.b32.xlu0 %v5487_v2, %s6254_s28  ;;  %v1455_v2 = vmul.f32 %v1444_v1, %v1394_v51  ;;  %v5532_v1 = vpack.i.bf16 %v7622_v56, %v7598_v12 }
 0x248   : > { %v7617_v48 = vadd.f32 %v7520_v10, %v1455_v2 }
 0x24a   : > { %12654 = vst [vmem:[#allocation10_spill] sm:$0xff] %v7617_v48  ;;  %v11899_v51 = vmax.f32 %v7617_v48, 0.0 }
 0x24c   : > { %v7634_v10 = vsel %vm12658_vm6, %v1521_v11, %v11899_v51  ;;  %v1543_v11 = vld [vmem:[%s11714_s9 + $0x50] sm:$0xff]  ;;  %vm12668_vm6 = vmmov %vm12666_vm12 }
 0x24d   : > { %5523 = vrot.lane.b32.xlu2 %v5522_v40, %s6252_s26  ;;  %5508 = vrot.lane.b32.xlu1 %v5522_v40, %s6259_s14  ;;  %v5552_v2 = vpack.i.bf16 %v7634_v10, %v7607_v42 }
 0x24e   : > { %5513 = vrot.lane.b32.xlu0 %v5522_v40, %s6253_s27 }
 0x255   : > { %5533 = vrot.lane.b32.xlu2 %v5532_v1, %s6257_s11  ;;  %5528 = vrot.lane.b32.xlu1 %v5522_v40, %s6254_s28  ;;  %v5567_v40 = vpack.i.bf16 %v7634_v10, %v7562_v4 }
 0x256   : > { %5518 = vrot.lane.b32.xlu0 %v5532_v1, %s6256_s30 }
 0x25d   : > { %5553 = vrot.lane.b32.xlu2 %v5552_v2, %s6255_s29  ;;  %5543 = vrot.lane.b32.xlu1 %v5552_v2, %s6256_s30 }
 0x25e   : > { %5538 = vrot.lane.b32.xlu0 %v5532_v1, %s6255_s29  ;;  %v674_v1 = vld [vmem:[%s11714_s9 + $0x8] sm:$0xff] }
 0x265   : > { %5558 = vrot.lane.b32.xlu2 %v5552_v2, %s6258_s12  ;;  %1621 = vrot.lane.b32.xlu1 %v7622_v56, %s6259_s14 }
 0x266   : > { %5548 = vrot.lane.b32.xlu0 %v5552_v2, %s6257_s11  ;;  %v702_v2 = vld [vmem:[%s11714_s9 + $0x18] sm:$0xff] }
 0x26d   : > { %1653 = vrot.lane.b32.xlu2 %v7622_v56, %s6253_s27  ;;  %5568 = vrot.lane.b32.xlu1 %v5567_v40, %s6253_s27 }
 0x26e   : > { %1687 = vrot.lane.b32.xlu0 %v7598_v12, %s6258_s12 }
 0x275   : > { %5578 = vrot.lane.b32.xlu2 %v5567_v40, %s6254_s28  ;;  %5573 = vrot.lane.b32.xlu1 %v5567_v40, %s6252_s26 }
 0x276   : > { %5563 = vrot.lane.b32.xlu0 %v5567_v40, %s6259_s14 }
 0x27d   : > { %1685 = vrot.lane.b32.xlu2 %v7622_v56, %s6258_s12  ;;  %1589 = vrot.lane.b32.xlu1 %v7622_v56, %s6254_s28 }
 0x27e   : > { %1557 = vrot.lane.b32.xlu0 %v7622_v56, %s6252_s26 }
 0x285   : > { %1555 = vrot.lane.b32.xlu2 %v7546_v28, %s6252_s26  ;;  %1651 = vrot.lane.b32.xlu1 %v7546_v28, %s6253_s27 }
 0x286   : > { %1619 = vrot.lane.b32.xlu0 %v7546_v28, %s6259_s14 }
 0x287   : > { %v7673_v18 = vpop.permute.xlu2 %5458 }
 0x288   : > { %v11914_v49 = vunpack.i.l.bf16 %v7673_v18 }
 0x28d   : > { %1990 = vperm.xlu2 %5446, %v1541_v44   ;;  %682 = vperm.xlu1 %5445, %v674_v1  }
 0x28e   : > { %1587 = vrot.lane.b32.xlu0 %v7546_v28, %s6254_s28 }
 0x28f   : > { %v7683_v40 = vpop.permute.xlu2 %5463 }
 0x290   : > { %v12688_v34 = vunpack.i.l.bf16 %v7683_v40 }
 0x295   : > { %2016 = vperm.xlu1 %5445, %v1543_v11  }
 0x296   : > { %710 = vperm.xlu0 %5299, %v702_v2  }
 0x297   : > { %v7687_v59 = vpop.permute.xlu2 %5473 }
 0x298   : > { %v5476_v61 = vunpack.i.h.bf16 %v7687_v59 }
 0x29f   : > { %v7685_v33 = vpop.permute.xlu1 %5453  ;;  %v7698_v11 = vpop.permute.xlu2 %5493 }
 0x2a0   : > { %12659 = vst [vmem:[#allocation3_spill] sm:$0xff] %v7685_v33  ;;  %v7689_v44 = vpop.permute.xlu0 %5448  ;;  %v11980_v17 = vunpack.i.h.bf16 %v7685_v33 }
 0x2a1   : > { %v11913_v36 = vunpack.i.l.bf16 %v7689_v44 }
 0x2a7   : > { %v7691_v1 = vpop.permute.xlu1 %5478 }
 0x2a8   : > { %v7693_v51 = vpop.permute.xlu0 %5468  ;;  %v5481_v2 = vunpack.i.h.bf16 %v7691_v1 }
 0x2a9   : > { %v5471_v20 = vunpack.i.h.bf16 %v7693_v51  ;;  %v11910_v48 = vunpack.i.l.bf16 %v7693_v51 }
 0x2ab   : > { %v1791_v37 = vsel %vm12660_vm5, %v11910_v48, %v5471_v20  ;;  %v1790_v35 = vsel %vm12661_vm15, %v5471_v20, %v11913_v36  ;;  %v1758_v20 = vsel %vm12666_vm12, %v5481_v2, %v11914_v49  ;;  %v12667_v36 = vunpack.i.l.bf16 %v7691_v1  ;;  %v12671_v49 = vld [vmem:[#allocation28_spill] sm:$0xff] }
 0x2ac   : > { %v1793_v21 = vsel %vm12663_vm4, %v1791_v37, 0.0  ;;  %v1794_v23 = vsel %vm12665_vm3, %v1790_v35, 0.0  ;;  %vm12669_vm5 = vcmask 1043456   ;;  %vm12672_vm12 = vnez %v12671_v49 }
 0x2ad   : > { %v1833_v48 = vpack.c.bf16 %v1793_v21, %v1793_v21  ;;  %v1834_v8 = vpack.c.bf16 %v1794_v23, %v1794_v23  ;;  %v1759_v0 = vsel %vm12668_vm6, %v12667_v36, %v5481_v2  ;;  %vm12670_vm15 = vmmov %vm12669_vm5  ;;  %vm12674_vm3 = vcmp.le.s32.totalorder %v12673_v43, 14 }
 0x2ae   : > { %vm7738_vm4 = vmpackc.low %vm12674_vm3, %vm12672_vm12  ;;  %v12675_v36 = vmov 0  ;;  %vm12679_vm6 = vcmp.lt.s32.totalorder %v6480_v14, 113  ;;  %v12680_v21 = vunpack.i.l.bf16 %v7685_v33  ;;  %v12685_v49 = vmov 0 }
 0x2af   : > { %v7726_v37 = vpop.permute.xlu1 %5483  ;;  %v1853_v35 = vsel %vm12669_vm5, %v1833_v48, 0  ;;  %v1856_v7 = vsel %vm12670_vm15, %v1834_v8, 0  ;;  %v12676_v36 = vsel %vm7738_vm4, 4294967295, %v12675_v36  ;;  %v12678_v8 = vunpack.i.l.bf16 %v7687_v59  ;;  %vm12681_vm5 = vmmov %vm12679_vm6 }
 0x2b0   : > { %v5486_v29 = vunpack.i.h.bf16 %v7726_v37  ;;  %v7732_v23 = vpop.permute.xlu0 %5488  ;;  %1879 = vmatpush.bf16.msrb.mxu0 %v1853_v35  ;;  %1893 = vmatpush.bf16.msra.mxu1 %v1856_v7  ;;  %12677 = vst [vmem:[#allocation87_spill] sm:$0xff] %v12676_v36  ;;  %v1726_v7 = vsel %vm12681_vm5, %v5476_v61, %v12680_v21  ;;  %v12682_v35 = vld [vmem:[#allocation37_spill] sm:$0xff]  ;;  %vm12689_vm12 = vcmp.lt.s32.totalorder %v6480_v14, 127  ;;  %v12690_v63 = vunpack.i.l.bf16 %v7726_v37  ;;  %v7767_v21 = vpop.permute.xlu2 %5523 }
 0x2b1   : > { %v1727_v2 = vsel %vm12679_vm6, %v12678_v8, %v5476_v61  ;;  %vm12683_vm15 = vnez %v12682_v35  ;;  %v4746_v48 = vpack.c.bf16 %v1758_v20, %v1726_v7  ;;  %vm12691_vm6 = vmmov %vm12689_vm12  ;;  %v12694_v20 = vmov 0 }
 0x2b2   : > { %vm7755_vm3 = vmpackc.low %vm12684_vm2, %vm12683_vm15  ;;  %v4733_v52 = vpack.c.bf16 %v1759_v0, %v1727_v2  ;;  %v1694_v8 = vsel %vm12689_vm12, %v5486_v29, %v12688_v34  ;;  %v1695_v61 = vsel %vm12691_vm6, %v12690_v63, %v5486_v29  ;;  %vm11924_vm2 = vmmov 1   ;;  %v12692_v0 = vld [vmem:[#allocation19_spill] sm:$0xff] }
 0x2b3   : > { %v12686_v49 = vsel %vm7755_vm3, 4294967295, %v12685_v49  ;;  %vm12693_vm5 = vnez %v12692_v0  ;;  %vm7783_vm12 = vmpackc.low %vm12509_vm10, %vm11924_vm2  ;;  %v12697_v29 = vmov 0  ;;  %v4749_v63 = vpack.c.bf16 %v1694_v8, %v7562_v4 }
 0x2b4   : > { %12687 = vst [vmem:[#allocation88_spill] sm:$0xff] %v12686_v49  ;;  %4734 = vmatpush.bf16.msk.msrb.mxu0 %vm7738_vm4, %v4733_v52  ;;  %4747 = vmatpush.bf16.msk.msra.mxu1 %vm7755_vm3, %v4746_v48  ;;  %vm7776_vm15 = vmpackc.low %vm12693_vm5, %vm11924_vm2  ;;  %v12698_v29 = vsel %vm7783_vm12, 4294967295, %v12697_v29  ;;  %v4736_v52 = vpack.c.bf16 %v1695_v61, %v7567_v62  ;;  %v11930_v0 = vunpack.i.l.bf16 %v7732_v23  ;;  %v11932_v4 = vunpack.i.l.bf16 %v7698_v11  ;;  %v12708_v49 = vld [vmem:[#allocation58_spill] sm:$0xff] }
 0x2b5   : > { %v12695_v20 = vsel %vm7776_vm15, 4294967295, %v12694_v20  ;;  %12699 = vst [vmem:[#allocation90_spill] sm:$0xff] %v12698_v29  ;;  %vm12700_vm6 = vcmp.lt.s32.totalorder %v6480_v14, 15  ;;  %vm12701_vm2 = vcmp.lt.s32.totalorder %v6480_v14, 1  ;;  %vm12702_vm5 = vnez %v12279_v50 }
 0x2b6   : > { %12696 = vst [vmem:[#allocation89_spill] sm:$0xff] %v12695_v20  ;;  %vm7823_vm10 = vmpackc.low %vm12702_vm5, %vm7130_vm8  ;;  %vm12709_vm8 = vnez %v12708_v49  ;;  %vm12710_vm5 = vcmp.ge.s32.totalorder %v12673_v43, 1  ;;  %v12711_v20 = vmov 0  ;;  %v12714_v43 = vunpack.i.l.bf16 %v7689_v44 }
 0x2b7   : > { %v7789_v34 = vpop.permute.xlu1 %5498 }
 0x2b8   : > { %v7791_v48 = vpop.permute.xlu0 %5503  ;;  %4737 = vmatpush.bf16.msk.msrb.mxu0 %vm7776_vm15, %v4736_v52  ;;  %4750 = vmatpush.bf16.msk.msra.mxu1 %vm7783_vm12, %v4749_v63  ;;  %v7797_v2 = vpop.permute.xlu2 %5533  ;;  %v12703_v63 = vmov 0  ;;  %v11948_v29 = vunpack.i.l.bf16 %v7789_v34  ;;  %vm12723_vm12 = vnez %v12722_v15 }
 0x2b9   : > { %v12704_v63 = vsel %vm7823_vm10, 4294967295, %v12703_v63 }
 0x2ba   : > { %12705 = vst [vmem:[#allocation91_spill] sm:$0xff] %v12704_v63 }
 0x2bf   : > { %v7799_v7 = vpop.permute.xlu1 %5508 }
 0x2c0   : > { %v7802_v41 = vpop.permute.xlu0 %5513  ;;  %v11929_v62 = vunpack.i.h.bf16 %v7799_v7 }
 0x2c1   : > { %v11931_v8 = vunpack.i.h.bf16 %v7802_v41 }
 0x2c2   : > { %v1632_v61 = vsel %vm12700_vm6, %v11929_v62, %v11930_v0  ;;  %v11947_v0 = vunpack.i.h.bf16 %v7767_v21  ;;  %vm12707_vm6 = vcmp.lt.s32.totalorder %v6480_v14, 16 }
 0x2c3   : > { %v1664_v52 = vsel %vm12701_vm2, %v11931_v8, %v11932_v4  ;;  %v11951_v8 = vunpack.i.l.bf16 %v7791_v48  ;;  %v5554_v4 = vpop.permute.xlu2 %5553  ;;  %vm12706_vm2 = vcmp.lt.s32.totalorder %v6480_v14, 17 }
 0x2c4   : > { %v4739_v35 = vpack.c.bf16 %v1664_v52, %v1632_v61  ;;  %v4730_v61 = vld [vmem:[%s11708_s3] sm:$0xf]  ;;  %v5278_v52 = vld [vmem:[%s11708_s3] sm:$0x30] }
 0x2c5   : > { %v7863_v56 = vor.u32 %v5278_v52, %v4730_v61  ;;  %v12716_v61 = vld [vmem:[#allocation44_spill] sm:$0xff] }
 0x2c6   : > { %4740 = vmatpush.bf16.msk.msrb.mxu0 %vm7823_vm10, %v4739_v35  ;;  %v1568_v35 = vsel %vm12706_vm2, %v11947_v0, %v11948_v29  ;;  %vm7859_vm10 = vmpackc.low %vm12710_vm5, %vm12709_vm8  ;;  %vm11959_vm2 = vcmask 588800   ;;  %vm12715_vm5 = vcmp.lt.s32.totalorder %v6480_v14, 111 }
 0x2c7   : > { %v7830_v62 = vpop.permute.xlu1 %5528  ;;  %v12712_v20 = vsel %vm7859_vm10, 4294967295, %v12711_v20  ;;  %vm12718_vm8 = vmmov %vm12715_vm5 }
 0x2c8   : > { %v7834_v9 = vpop.permute.xlu0 %5518  ;;  %v11950_v50 = vunpack.i.h.bf16 %v7830_v62  ;;  %12713 = vst [vmem:[#allocation92_spill] sm:$0xff] %v12712_v20  ;;  %v5556_v20 = vunpack.i.h.bf16 %v5554_v4 }
 0x2ca   : > { %v1600_v63 = vsel %vm12707_vm6, %v11950_v50, %v11951_v8  ;;  %v11972_v8 = vunpack.i.h.bf16 %v7689_v44  ;;  %vm12717_vm6 = vnez %v12716_v61 }
 0x2cb   : > { %v4742_v36 = vpack.c.bf16 %v1600_v63, %v1568_v35  ;;  %v5559_v49 = vpop.permute.xlu2 %5558 }
 0x2cc   : > { %v5560_v15 = vunpack.i.l.bf16 %v5559_v49 }
 0x2cd   : > { %4743 = vmatpush.bf16.msk.msrb.mxu0 %vm7859_vm10, %v4742_v36  ;;  %vm12719_vm10 = vmmov %vm12715_vm5 }
 0x2cf   : > { %v5544_v0 = vpop.permute.xlu1 %5543 }
 0x2d0   : > { %v7867_v29 = vpop.permute.xlu0 %5538  ;;  %v5546_v28 = vunpack.i.h.bf16 %v5544_v0  ;;  %v5545_v50 = vunpack.i.l.bf16 %v5544_v0  ;;  %4744 = vmatmul.msk.bf16.vlgmr.msrb.gmra.mxu0 %vm11959_vm2, %v7863_v56  ;;  %vm12721_vm2 = vnez %v12720_v5  ;;  %v5561_v5 = vunpack.i.h.bf16 %v5559_v49 }
 0x2d1   : > { %v12732_v49 = vmov 0 }
 0x2d2   : > { %v1789_v63 = vsel %vm12715_vm5, %v12714_v43, %v5545_v50  ;;  %v1788_v35 = vsel %vm12718_vm8, %v5545_v50, %v5546_v28  ;;  %v1787_v0 = vsel %vm12719_vm10, %v5546_v28, %v11972_v8  ;;  %v5555_v43 = vunpack.i.l.bf16 %v5554_v4 }
 0x2d3   : > { %v1795_v36 = vsel %vm12717_vm6, %v1789_v63, 0.0  ;;  %v1796_v32 = vsel %vm12721_vm2, %v1788_v35, 0.0  ;;  %v1797_v25 = vsel %vm12723_vm12, %v1787_v0, 0.0  ;;  %vm12724_vm5 = vcmask 1043456  }
 0x2d4   : > { %v1835_v52 = vpack.c.bf16 %v1795_v36, %v1795_v36  ;;  %v1836_v63 = vpack.c.bf16 %v1796_v32, %v1796_v32  ;;  %v1837_v36 = vpack.c.bf16 %v1797_v25, %v1797_v25  ;;  %v11975_v50 = vunpack.i.h.bf16 %v7673_v18  ;;  %vm12725_vm8 = vmmov %vm12724_vm5 }
 0x2d5   : > { %vm12726_vm10 = vmmov %vm12724_vm5 }
 0x2d6   : > { %v1859_v61 = vsel %vm12724_vm5, %v1835_v52, 0  ;;  %v1862_v8 = vsel %vm12725_vm8, %v1836_v63, 0  ;;  %v1865_v35 = vsel %vm12726_vm10, %v1837_v36, 0  ;;  %vm12727_vm5 = vcmp.lt.s32.totalorder %v6480_v14, 112  ;;  %v12729_v52 = vld [vmem:[#allocation49_spill] sm:$0xff] }
 0x2d7   : > { %v7889_v19 = vpop.permute.xlu1 %1621  ;;  %1907 = vmatpush.bf16.msra.mxu2 %v1859_v61  ;;  %1921 = vmatpush.bf16.msrb.mxu3 %v1862_v8  ;;  %v1755_v32 = vsel %vm12727_vm5, %v5556_v20, %v11975_v50  ;;  %vm12728_vm12 = vmmov %vm12727_vm5  ;;  %v5520_v61 = vunpack.i.l.bf16 %v7834_v9  ;;  %vm12730_vm8 = vnez %v12729_v52  ;;  %vm12731_vm10 = vcmp.le.s32.totalorder %v6609_v27, 14  ;;  %v12741_v50 = vld [vmem:[#allocation50_spill] sm:$0xff]  ;;  %v12743_v52 = vld [vmem:[#allocation31_spill] sm:$0xff] }
 0x2d8   : > { %v5549_v28 = vpop.permute.xlu0 %5548  ;;  %1935 = vmatpush.bf16.msra.mxu0 %v1865_v35  ;;  %v1756_v25 = vsel %vm12728_vm12, %v5555_v43, %v5556_v20  ;;  %vm7906_vm3 = vmpackc.low %vm12731_vm10, %vm12730_vm8  ;;  %v12735_v8 = vunpack.i.l.bf16 %v7673_v18  ;;  %vm12742_vm8 = vnez %v12741_v50  ;;  %vm12744_vm6 = vcmp.le.s32.totalorder %v12743_v52, 14 }
 0x2d9   : > { %v5551_v0 = vunpack.i.h.bf16 %v5549_v28  ;;  %v5550_v4 = vunpack.i.l.bf16 %v5549_v28  ;;  %v12733_v49 = vsel %vm7906_vm3, 4294967295, %v12732_v49  ;;  %vm12736_vm2 = vmmov %vm12727_vm5  ;;  %vm12737_vm5 = vcmp.lt.s32.totalorder %v6480_v14, 113 }
 0x2da   : > { %12734 = vst [vmem:[#allocation93_spill] sm:$0xff] %v12733_v49  ;;  %v1757_v63 = vsel %vm12736_vm2, %v12735_v8, %v5555_v43  ;;  %vm12738_vm12 = vmmov %vm12737_vm5  ;;  %v12739_v28 = vunpack.i.l.bf16 %v7685_v33  ;;  %v7933_v8 = vpop.permute.xlu2 %1653  ;;  %v12755_v33 = vunpack.i.l.bf16 %v7683_v40 }
 0x2db   : > { %v1723_v20 = vsel %vm12737_vm5, %v5551_v0, %v11980_v17  ;;  %v1724_v36 = vsel %vm12738_vm12, %v5550_v4, %v5551_v0  ;;  %vm12740_vm10 = vmmov %vm12737_vm5  ;;  %v12748_v0 = vld [vmem:[#allocation60_spill] sm:$0xff]  ;;  %vm12750_vm5 = vcmp.le.s32.totalorder %v6613_v38, 14 }
 0x2dc   : > { %v1725_v35 = vsel %vm12740_vm10, %v12739_v28, %v5550_v4  ;;  %vm7928_vm15 = vmpackc.low %vm12744_vm6, %vm12742_vm8  ;;  %v4772_v46 = vpack.c.bf16 %v1756_v25, %v1724_v36  ;;  %vm12749_vm2 = vnez %v12748_v0  ;;  %v12751_v4 = vmov 0 }
 0x2dd   : > { %v12746_v58 = vsel %vm7928_vm15, 4294967295, %v12745_v58  ;;  %v4759_v17 = vpack.c.bf16 %v1757_v63, %v1725_v35  ;;  %vm7939_vm12 = vmpackc.low %vm12750_vm5, %vm12749_vm2  ;;  %v4785_v28 = vpack.c.bf16 %v1755_v32, %v1723_v20  ;;  %vm12754_vm6 = vcmp.lt.s32.totalorder %v6480_v14, 127 }
 0x2de   : > { %12747 = vst [vmem:[#allocation94_spill] sm:$0xff] %v12746_v58  ;;  %v12752_v4 = vsel %vm7939_vm12, 4294967295, %v12751_v4  ;;  %v1692_v50 = vsel %vm12754_vm6, %v5560_v15, %v5561_v5  ;;  %vm12756_vm10 = vmmov %vm12754_vm6  ;;  %v12757_v63 = vunpack.i.h.bf16 %v7683_v40  ;;  %v5515_v36 = vunpack.i.l.bf16 %v7802_v41  ;;  %4773 = vmatpush.bf16.msk.msrb.mxu3 %vm7928_vm15, %v4772_v46  ;;  %v12775_v58 = vld [vmem:[#allocation52_spill] sm:$0xff] }
 0x2df   : > { %12753 = vst [vmem:[#allocation95_spill] sm:$0xff] %v12752_v4  ;;  %v1693_v43 = vsel %vm12756_vm10, %v12755_v33, %v5560_v15  ;;  %vm12758_vm8 = vmmov %vm12754_vm6  ;;  %v5510_v35 = vunpack.i.l.bf16 %v7799_v7  ;;  %4760 = vmatpush.bf16.msk.msra.mxu2 %vm7906_vm3, %v4759_v17  ;;  %vm12759_vm5 = vmmov 1   ;;  %vm12760_vm6 = vnez %v12298_v55  ;;  %4786 = vmatpush.bf16.msk.msra.mxu0 %vm7939_vm12, %v4785_v28  ;;  %v7972_v32 = vpop.permute.xlu1 %5568  ;;  %v12766_v17 = vld [vmem:[#allocation29_spill] sm:$0xff] }
 0x2e0   : > { %v1691_v25 = vsel %vm12758_vm8, %v5561_v5, %v12757_v63  ;;  %vm7962_vm2 = vmpackc.low %vm12760_vm6, %vm12759_vm5  ;;  %v12761_v15 = vmov 0  ;;  %v12764_v33 = vunpack.i.l.bf16 %v7693_v51  ;;  %vm12765_vm8 = vcmp.lt.s32.totalorder %v6480_v14, 111  ;;  %v7983_v51 = vpop.permute.xlu0 %1687 }
 0x2e1   : > { %v12762_v15 = vsel %vm7962_vm2, 4294967295, %v12761_v15  ;;  %vm12767_vm10 = vnez %v12766_v17  ;;  %v12768_v46 = vmov 0  ;;  %v5496_v20 = vunpack.i.h.bf16 %v7698_v11 }
 0x2e2   : > { %12763 = vst [vmem:[#allocation96_spill] sm:$0xff] %v12762_v15  ;;  %v1792_v5 = vsel %vm12765_vm8, %v5520_v61, %v12764_v33  ;;  %vm7977_vm15 = vmpackc.low %vm12767_vm10, %vm12759_vm5  ;;  %v5491_v63 = vunpack.i.h.bf16 %v7732_v23  ;;  %v4762_v33 = vpack.c.bf16 %v1693_v43, %v7541_v16  ;;  %v4775_v0 = vpack.c.bf16 %v1692_v50, %v7607_v42  ;;  %v12779_v43 = vld [vmem:[#allocation53_spill] sm:$0xff] }
 0x2e3   : > { %v12769_v46 = vsel %vm7977_vm15, 4294967295, %v12768_v46  ;;  %vm12771_vm8 = vnez %v12314_v57  ;;  %v12772_v28 = vmov 0  ;;  %v5521_v55 = vunpack.i.h.bf16 %v7834_v9 }
 0x2e4   : > { %12770 = vst [vmem:[#allocation97_spill] sm:$0xff] %v12769_v46  ;;  %vm7990_vm6 = vmpackc.low %vm12771_vm8, %vm12759_vm5  ;;  %v12009_v17 = vunpack.i.l.bf16 %v7830_v62  ;;  %v4788_v4 = vpack.c.bf16 %v1691_v25, %v7634_v10  ;;  %vm12776_vm10 = vnez %v12775_v58  ;;  %vm12777_vm12 = vcmp.lt.s32.totalorder %v6480_v14, 1  ;;  %4763 = vmatpush.bf16.msk.msra.mxu2 %vm7962_vm2, %v4762_v33  ;;  %4776 = vmatpush.bf16.msk.msrb.mxu3 %vm7977_vm15, %v4775_v0  ;;  %v12781_v25 = vld [vmem:[#allocation43_spill] sm:$0xff] }
 0x2e5   : > { %v12773_v28 = vsel %vm7990_vm6, 4294967295, %v12772_v28  ;;  %v1800_v49 = vsel %vm12776_vm10, %v1792_v5, 0.0  ;;  %v1661_v16 = vsel %vm12777_vm12, %v5496_v20, %v5515_v36  ;;  %vm12778_vm3 = vcmp.lt.s32.totalorder %v6480_v14, 15 }
 0x2e6   : > { %12774 = vst [vmem:[#allocation98_spill] sm:$0xff] %v12773_v28  ;;  %v1629_v42 = vsel %vm12778_vm3, %v5491_v63, %v5510_v35  ;;  %v5501_v50 = vunpack.i.h.bf16 %v7789_v34  ;;  %v12008_v9 = vunpack.i.h.bf16 %v7791_v48  ;;  %4789 = vmatpush.bf16.msk.msra.mxu0 %vm7990_vm6, %v4788_v4  ;;  %v5525_v10 = vunpack.i.l.bf16 %v7767_v21  ;;  %v8032_v28 = vpop.permute.xlu2 %5578 }
 0x2e7   : > { %vm12780_vm12 = vnez %v12779_v43  ;;  %vm12782_vm8 = vnez %v12781_v25  ;;  %v12783_v5 = vmov 0  ;;  %v1840_v33 = vpack.c.bf16 %v1800_v49, %v1800_v49 }
 0x2e8   : > { %vm8016_vm3 = vmpackc.low %vm12782_vm8, %vm12780_vm12  ;;  %vm12785_vm10 = vcmp.lt.s32.totalorder %v6480_v14, 16  ;;  %v4778_v57 = vpack.c.bf16 %v1661_v16, %v1629_v42  ;;  %v12786_v4 = vunpack.i.h.bf16 %v7689_v44  ;;  %vm12787_vm6 = vcmp.lt.s32.totalorder %v6480_v14, 111  ;;  %v8042_v44 = vpop.permute.xlu1 %5573  ;;  %v8044_v42 = vpop.permute.xlu0 %5563 }
 0x2e9   : > { %v12784_v5 = vsel %vm8016_vm3, 4294967295, %v12783_v5  ;;  %v1597_v0 = vsel %vm12785_vm10, %v12008_v9, %v12009_v17  ;;  %vm12788_vm15 = vmmov %vm12787_vm6  ;;  %v5570_v46 = vunpack.i.l.bf16 %v7972_v32  ;;  %vm12789_vm10 = vcmp.lt.s32.totalorder %v6480_v14, 17 }
 0x2ea   : > { %v1786_v43 = vsel %vm12787_vm6, %v12786_v4, %v5521_v55  ;;  %v1785_v25 = vsel %vm12788_vm15, %v5521_v55, %v5520_v61  ;;  %v1565_v16 = vsel %vm12789_vm10, %v5501_v50, %v5525_v10  ;;  %4779 = vmatpush.bf16.msk.msrb.mxu3 %vm8016_vm3, %v4778_v57  ;;  %v12790_v55 = vld [vmem:[#allocation55_spill] sm:$0xff]  ;;  %vm12792_vm6 = vcmp.ge.s32.totalorder %v12743_v52, 1 }
 0x2eb   : > { %vm12791_vm15 = vnez %v12790_v55  ;;  %v12793_v61 = vmov 0  ;;  %v4781_v4 = vpack.c.bf16 %v1597_v0, %v1565_v16  ;;  %vm12795_vm8 = vcmask 1043456  }
 0x2ec   : > { %vm8050_vm12 = vmpackc.low %vm12792_vm6, %vm12791_vm15  ;;  %v1874_v9 = vsel %vm12795_vm8, %v1840_v33, 0  ;;  %vm12796_vm10 = vnez %v12457_v24  ;;  %vm12797_vm3 = vnez %v12484_v39  ;;  %v5580_v15 = vunpack.i.l.bf16 %v8032_v28 }
 0x2ed   : > { %v12794_v61 = vsel %vm8050_vm12, 4294967295, %v12793_v61  ;;  %v1798_v17 = vsel %vm12796_vm10, %v1786_v43, 0.0  ;;  %v1799_v57 = vsel %vm12797_vm3, %v1785_v25, 0.0  ;;  %v5565_v49 = vunpack.i.l.bf16 %v8044_v42 }
 0x2ee   : > { %v5575_v55 = vunpack.i.l.bf16 %v8042_v44  ;;  %v12798_v52 = vunpack.i.l.bf16 %v7691_v1  ;;  %v12799_v0 = vunpack.i.l.bf16 %v7867_v29  ;;  %vm12800_vm8 = vcmp.lt.s32.totalorder %v6480_v14, 112  ;;  %4782 = vmatpush.bf16.msk.msrb.mxu3 %vm8050_vm12, %v4781_v4 }
 0x2ef   : > { %v12801_v43 = vunpack.i.h.bf16 %v7972_v32  ;;  %vm12802_vm6 = vcmp.lt.s32.totalorder %v6480_v14, 1  ;;  %vm12804_vm10 = vnez %v12512_v31  ;;  %vm12805_vm3 = vnez %v12294_v13 }
 0x2f0   : > { %v1760_v33 = vsel %vm12800_vm8, %v12799_v0, %v12798_v52  ;;  %vm12803_vm15 = vmmov %vm12802_vm6  ;;  %v12806_v1 = vmov 0  ;;  %v12808_v52 = vunpack.i.l.bf16 %v7698_v11  ;;  %v12813_v58 = vunpack.i.l.bf16 %v7732_v23 }
 0x2f1   : > { %v1660_v25 = vsel %vm12802_vm6, %v5515_v36, %v12801_v43  ;;  %v1662_v16 = vsel %vm12803_vm15, %v5570_v46, %v5496_v20  ;;  %vm8080_vm2 = vmpackc.low %vm12805_vm3, %vm12804_vm10  ;;  %v12810_v36 = vunpack.i.h.bf16 %v8044_v42  ;;  %vm12815_vm3 = vnez %v12501_v47  ;;  %4783 = vmatmul.msk.bf16.vlgmr.msrb.gmra.mxu3 %vm12835_vm14, %v7863_v56 }
 0x2f2   : > { %v12807_v1 = vsel %vm8080_vm2, 4294967295, %v12806_v1  ;;  %vm12809_vm8 = vmmov %vm12802_vm6  ;;  %vm12811_vm6 = vcmp.lt.s32.totalorder %v6480_v14, 15  ;;  %v12817_v11 = vmov 0  ;;  %1977 = vmatpush.bf16.msra.mxu3 %v1874_v9  ;;  %v12825_v4 = vunpack.i.l.bf16 %v7797_v2 }
 0x2f3   : > { %v1663_v0 = vsel %vm12809_vm8, %v12808_v52, %v5570_v46  ;;  %v1628_v20 = vsel %vm12811_vm6, %v5510_v35, %v12810_v36  ;;  %vm12812_vm15 = vmmov %vm12811_vm6  ;;  %vm12816_vm8 = vnez %v12306_v3  ;;  %v12034_v35 = vunpack.i.h.bf16 %v8032_v28 }
 0x2f4   : > { %v1630_v43 = vsel %vm12812_vm15, %v5565_v49, %v5491_v63  ;;  %vm12814_vm10 = vmmov %vm12811_vm6  ;;  %vm12820_vm6 = vnez %v12524_v54  ;;  %v4791_v23 = vpack.c.bf16 %v1660_v25, %v1628_v20  ;;  %v12827_v9 = vunpack.i.l.bf16 %v7789_v34  ;;  %v12836_v20 = vld [vmem:[#allocation59_spill] sm:$0xff]  ;;  %v12972_v54 = vld [vmem:[#allocation16_spill] sm:$0xff] }
 0x2f5   : > { %v1631_v31 = vsel %vm12814_vm10, %v12813_v58, %v5565_v49  ;;  %vm8104_vm4 = vmpackc.low %vm12816_vm8, %vm12815_vm3  ;;  %v4765_v63 = vpack.c.bf16 %v1662_v16, %v1630_v43  ;;  %vm12821_vm10 = vnez %v12370_v53  ;;  %v12822_v58 = vmov 0 }
 0x2f6   : > { %v12818_v11 = vsel %vm8104_vm4, 4294967295, %v12817_v11  ;;  %v4752_v46 = vpack.c.bf16 %v1663_v0, %v1631_v31  ;;  %vm8113_vm15 = vmpackc.low %vm12821_vm10, %vm12820_vm6  ;;  %v12824_v49 = vunpack.i.l.bf16 %v7687_v59  ;;  %vm12826_vm3 = vcmp.lt.s32.totalorder %v6480_v14, 113 }
 0x2f7   : > { %12819 = vst [vmem:[#allocation99_spill] sm:$0xff] %v12818_v11  ;;  %v12823_v58 = vsel %vm8113_vm15, 4294967295, %v12822_v58  ;;  %vm12828_vm8 = vcmp.lt.s32.totalorder %v6480_v14, 17  ;;  %vm12829_vm6 = vcmp.le.s32.totalorder %v6706_v22, 14  ;;  %v12830_v16 = vmov 0  ;;  %4766 = vmatpush.bf16.msk.msra.mxu2 %vm8104_vm4, %v4765_v63  ;;  %4792 = vmatpush.bf16.msk.msra.mxu0 %vm8113_vm15, %v4791_v23 }
 0x2f8   : > { %v1728_v52 = vsel %vm12826_vm3, %v12825_v4, %v12824_v49  ;;  %v1567_v31 = vsel %vm12828_vm8, %v12827_v9, %v5575_v55  ;;  %vm8131_vm10 = vmpackc.low %vm12829_vm6, %vm7367_vm13  ;;  %v1838_v25 = vpack.c.bf16 %v1798_v17, %v1798_v17  ;;  %v12832_v59 = vunpack.i.h.bf16 %v8042_v44  ;;  %4753 = vmatpush.bf16.msk.msra.mxu1 %vm8080_vm2, %v4752_v46 }
 0x2f9   : > { %v12831_v16 = vsel %vm8131_vm10, 4294967295, %v12830_v16  ;;  %vm12833_vm12 = vmmov %vm12828_vm8  ;;  %v4824_v36 = vpack.c.bf16 %v1760_v33, %v1728_v52  ;;  %vm12838_vm6 = vcmp.ge.s32.totalorder %v6517_v30, 1  ;;  %v12839_v17 = vmov 0  ;;  %v8162_v33 = vpop.permute.xlu1 %1589 }
 0x2fa   : > { %v1564_v0 = vsel %vm12833_vm12, %v5525_v10, %v12832_v59  ;;  %vm12834_vm3 = vmmov %vm12828_vm8  ;;  %vm12837_vm8 = vnez %v12836_v20  ;;  %v12841_v10 = vunpack.i.l.bf16 %v7791_v48  ;;  %vm12842_vm12 = vcmp.lt.s32.totalorder %v6480_v14, 16 }
 0x2fb   : > { %v1566_v34 = vsel %vm12834_vm3, %v5575_v55, %v5501_v50  ;;  %vm8149_vm13 = vmpackc.low %vm12838_vm6, %vm12837_vm8  ;;  %v5541_v55 = vunpack.i.h.bf16 %v7867_v29  ;;  %vm12843_vm14 = vnez %v12476_v26  ;;  %vm12844_vm3 = vcmp.ge.s32.totalorder %v6609_v27, 1  ;;  %4825 = vmatpush.bf16.msk.msra.mxu3 %vm8131_vm10, %v4824_v36 }
 0x2fc   : > { %v12840_v17 = vsel %vm8149_vm13, 4294967295, %v12839_v17  ;;  %v1599_v50 = vsel %vm12842_vm12, %v12841_v10, %v5580_v15  ;;  %vm8168_vm6 = vmpackc.low %vm12844_vm3, %vm12843_vm14  ;;  %v12845_v43 = vmov 0  ;;  %v1839_v46 = vpack.c.bf16 %v1799_v57, %v1799_v57  ;;  %v8189_v57 = vpop.permute.xlu0 %1557 }
 0x2fd   : > { %v12846_v43 = vsel %vm8168_vm6, 4294967295, %v12845_v43  ;;  %v12847_v49 = vunpack.i.l.bf16 %v7830_v62  ;;  %v12848_v23 = vunpack.i.h.bf16 %v7791_v48  ;;  %vm12849_vm8 = vmmov %vm12842_vm12  ;;  %v12850_v52 = vunpack.i.l.bf16 %v7726_v37 }
 0x2fe   : > { %vm12851_vm3 = vcmp.lt.s32.totalorder %v6480_v14, 127  ;;  %v4755_v59 = vpack.c.bf16 %v1599_v50, %v1567_v31  ;;  %vm12852_vm14 = vnez %v12497_v45  ;;  %v12854_v48 = vmov 0  ;;  %v8459_v45 = vpop.f32.mrf.mxu3 }
 0x2ff   : > { %v1596_v63 = vsel %vm12842_vm12, %v12847_v49, %v12034_v35  ;;  %v1598_v4 = vsel %vm12849_vm8, %v5580_v15, %v12848_v23  ;;  %v1696_v9 = vsel %vm12851_vm3, %v7983_v51, %v12850_v52  ;;  %vm12853_vm12 = vcmp.ge.s32.totalorder %v6613_v38, 1  ;;  %vm8206_vm3 = vmpackc.low %vm12563_vm11, %vm12759_vm5  ;;  %v1686_v23 = vpop.permute.xlu2 %1685  ;;  %v12872_v52 = vld [vmem:[#allocation3_spill] sm:$0xff]  ;;  %12966 = vst [vmem:[#allocation107_spill] sm:$0xff] %v8459_v45 }
 0x300   : > { %vm8195_vm15 = vmpackc.low %vm12853_vm12, %vm12852_vm14  ;;  %v5536_v37 = vunpack.i.h.bf16 %v7797_v2  ;;  %v4768_v15 = vpack.c.bf16 %v1598_v4, %v1566_v34  ;;  %v4794_v10 = vpack.c.bf16 %v1596_v63, %v1564_v0  ;;  %4756 = vmatpush.bf16.msk.msra.mxu1 %vm8149_vm13, %v4755_v59  ;;  %vm12857_vm8 = vcmask 1043456  }
 0x301   : > { %v12855_v48 = vsel %vm8195_vm15, 4294967295, %v12854_v48  ;;  %v1868_v36 = vsel %vm12857_vm8, %v1838_v25, 0  ;;  %v12858_v31 = vmov 0  ;;  %v12860_v50 = vunpack.i.h.bf16 %v7673_v18 }
 0x302   : > { %12856 = vst [vmem:[#allocation100_spill] sm:$0xff] %v12855_v48  ;;  %v12859_v31 = vsel %vm8206_vm3, 4294967295, %v12858_v31  ;;  %vm12861_vm12 = vcmp.lt.s32.totalorder %v6480_v14, 112  ;;  %v12862_v34 = vunpack.i.l.bf16 %v7867_v29  ;;  %v4827_v63 = vpack.c.bf16 %v1696_v9, %v7598_v12  ;;  %4769 = vmatpush.bf16.msk.msra.mxu2 %vm8168_vm6, %v4768_v15  ;;  %4795 = vmatpush.bf16.msk.msra.mxu0 %vm8195_vm15, %v4794_v10  ;;  %v12868_v12 = vld [vmem:[#allocation45_spill] sm:$0xff]  ;;  %v12880_v10 = vld [vmem:[#allocation48_spill] sm:$0xff] }
 0x303   : > { %v1754_v49 = vsel %vm12861_vm12, %v12860_v50, %v5541_v55  ;;  %vm12863_vm14 = vmmov %vm12861_vm12  ;;  %v1871_v25 = vsel %vm12857_vm8, %v1839_v46, 0  ;;  %v12864_v18 = vunpack.i.h.bf16 %v7799_v7  ;;  %vm12865_vm12 = vcmp.lt.s32.totalorder %v6480_v14, 15  ;;  %v12878_v15 = vld [vmem:[#allocation73_spill] sm:$0xff] }
 0x304   : > { %v1753_v0 = vsel %vm12863_vm14, %v5541_v55, %v12862_v34  ;;  %1949 = vmatpush.bf16.msrb.mxu1 %v1868_v36  ;;  %v12866_v55 = vld [vmem:[#allocation72_spill] sm:$0xff]  ;;  %vm12869_vm11 = vcmp.le.s32.totalorder %v12868_v12, 14  ;;  %v12873_v9 = vunpack.i.h.bf16 %v12872_v52  ;;  %vm12874_vm8 = vcmp.lt.s32.totalorder %v6480_v14, 113  ;;  %4828 = vmatpush.bf16.msk.msra.mxu3 %vm8206_vm3, %v4827_v63 }
 0x305   : > { %v1625_v29 = vsel %vm12865_vm12, %v7889_v19, %v12864_v18  ;;  %vm12867_vm14 = vnez %v12866_v55  ;;  %v12875_v7 = vunpack.i.l.bf16 %v7797_v2  ;;  %vm12876_vm15 = vmmov %vm12874_vm8  ;;  %vm12877_vm12 = vcmask 588800   ;;  %v12888_v63 = vld [vmem:[#allocation8_spill] sm:$0xff] }
 0x306   : > { %1963 = vmatpush.bf16.msrb.mxu2 %v1871_v25  ;;  %vm8233_vm10 = vmpackc.low %vm12869_vm11, %vm12867_vm14  ;;  %v1722_v46 = vsel %vm12874_vm8, %v12873_v9, %v5536_v37  ;;  %4757 = vmatmul.msk.bf16.vlgmr.msra.gmra.mxu1 %vm12877_vm12, %v7863_v56  ;;  %vm12879_vm11 = vnez %v12878_v15  ;;  %vm12881_vm14 = vcmp.le.s32.totalorder %v12880_v10, 14  ;;  %v12884_v50 = vunpack.i.h.bf16 %v7802_v41  ;;  %v12890_v25 = vld [vmem:[#allocation69_spill] sm:$0xff] }
 0x307   : > { %v1721_v59 = vsel %vm12876_vm15, %v5536_v37, %v12875_v7  ;;  %vm8253_vm13 = vmpackc.low %vm12881_vm14, %vm12879_vm11  ;;  %vm12885_vm8 = vcmp.lt.s32.totalorder %v6480_v14, 1  ;;  %v4798_v37 = vpack.c.bf16 %v1754_v49, %v1722_v46  ;;  %vm12891_vm14 = vnez %v12890_v25 }
 0x308   : > { %v1657_v2 = vsel %vm12885_vm8, %v7933_v8, %v12884_v50  ;;  %vm12886_vm15 = vmmov %vm12877_vm12  ;;  %v4811_v34 = vpack.c.bf16 %v1753_v0, %v1721_v59  ;;  %v12892_v18 = vmov 0  ;;  %v12894_v41 = vunpack.i.h.bf16 %v7683_v40  ;;  %v12907_v50 = vld [vmem:[#allocation81_spill] sm:$0xff] }
 0x309   : > { %4770 = vmatmul.msk.bf16.vlgmr.msra.gmra.mxu2 %vm12886_vm15, %v7863_v56  ;;  %vm12887_vm3 = vmmov %vm12877_vm12  ;;  %vm12889_vm12 = vnez %v12888_v63  ;;  %vm12895_vm8 = vcmp.lt.s32.totalorder %v6480_v14, 127  ;;  %v4830_v9 = vpack.c.bf16 %v1657_v2, %v1625_v29  ;;  %v12897_v49 = vunpack.i.h.bf16 %v7767_v21  ;;  %4799 = vmatpush.bf16.msk.msrb.mxu1 %vm8233_vm10, %v4798_v37  ;;  %v1620_v29 = vpop.permute.xlu0 %1619  ;;  %v12908_v37 = vld [vmem:[#allocation86_spill] sm:$0xff] }
 0x30a   : > { %4796 = vmatmul.msk.bf16.vlgmr.msra.gmra.mxu0 %vm12887_vm3, %v7863_v56  ;;  %vm8270_vm11 = vmpackc.low %vm12891_vm14, %vm12889_vm12  ;;  %v1690_v52 = vsel %vm12895_vm8, %v12894_v41, %v1686_v23  ;;  %vm12898_vm3 = vcmp.lt.s32.totalorder %v6480_v14, 17  ;;  %v12899_v46 = vunpack.i.h.bf16 %v7830_v62  ;;  %vm12900_vm12 = vcmp.lt.s32.totalorder %v6480_v14, 16  ;;  %4812 = vmatpush.bf16.msk.msrb.mxu2 %vm8253_vm13, %v4811_v34  ;;  %v12909_v41 = vld [vmem:[#allocation14_spill] sm:$0xff] }
 0x30b   : > { %v12893_v18 = vsel %vm8270_vm11, 4294967295, %v12892_v18  ;;  %vm12896_vm15 = vmmov %vm12895_vm8  ;;  %v1561_v0 = vsel %vm12898_vm3, %v8189_v57, %v12897_v49  ;;  %4831 = vmatpush.bf16.msk.msra.mxu3 %vm8270_vm11, %v4830_v9  ;;  %v12905_v59 = vmov 0  ;;  %v4801_v2 = vpack.c.bf16 %v1690_v52, %v12907_v50 }
 0x30c   : > { %v1689_v7 = vsel %vm12896_vm15, %v1686_v23, %v7983_v51  ;;  %v1593_v40 = vsel %vm12900_vm12, %v8162_v33, %v12899_v46  ;;  %v1652_v51 = vpop.permute.xlu1 %1651  ;;  %vm8298_vm8 = vmpackc.low %vm12548_vm0, %vm12759_vm5  ;;  %v12902_v23 = vmov 0  ;;  %vm12910_vm15 = vnez %v12909_v41 }
 0x30d   : > { %v12903_v23 = vsel %vm8298_vm8, 4294967295, %v12902_v23  ;;  %vm8307_vm12 = vmpackc.low %vm7001_vm7, %vm12759_vm5  ;;  %v4814_v34 = vpack.c.bf16 %v1689_v7, %v12908_v37  ;;  %vm12911_vm3 = vcmp.ge.s32.totalorder %v6706_v22, 1  ;;  %v12912_v49 = vmov 0  ;;  %4802 = vmatpush.bf16.msk.msrb.mxu1 %vm8298_vm8, %v4801_v2 }
 0x30e   : > { %v12906_v59 = vsel %vm8307_vm12, 4294967295, %v12905_v59  ;;  %vm8317_vm14 = vmpackc.low %vm12911_vm3, %vm12910_vm15  ;;  %v4833_v9 = vpack.c.bf16 %v1593_v40, %v1561_v0  ;;  %v12915_v46 = vunpack.i.h.bf16 %v8044_v42  ;;  %vm12916_vm5 = vcmp.lt.s32.totalorder %v6480_v14, 15  ;;  %v12925_v0 = vld [vmem:[#allocation61_spill] sm:$0xff] }
 0x30f   : > { %v12913_v49 = vsel %vm8317_vm14, 4294967295, %v12912_v49  ;;  %v12917_v63 = vunpack.i.h.bf16 %v7972_v32  ;;  %vm12918_vm7 = vcmp.lt.s32.totalorder %v6480_v14, 1  ;;  %vm12919_vm0 = vmmov %vm12916_vm5  ;;  %4815 = vmatpush.bf16.msk.msrb.mxu2 %vm8307_vm12, %v4814_v34  ;;  %v12929_v40 = vmov 0  ;;  %v12962_v32 = vld [vmem:[#allocation11_spill] sm:$0xff] }
 0x310   : > { %12914 = vst [vmem:[#allocation3_spill] sm:$0xff] %v12913_v49  ;;  %v1627_v35 = vsel %vm12916_vm5, %v12915_v46, %v1620_v29  ;;  %v1626_v7 = vsel %vm12919_vm0, %v1620_v29, %v7889_v19  ;;  %vm12920_vm3 = vmmov %vm12918_vm7  ;;  %4834 = vmatpush.bf16.msk.msra.mxu3 %vm8317_vm14, %v4833_v9  ;;  %vm12926_vm0 = vnez %v12925_v0  ;;  %vm12931_vm15 = vcmask 588800  }
 0x311   : > { %v1659_v52 = vsel %vm12918_vm7, %v12917_v63, %v1652_v51  ;;  %v1658_v50 = vsel %vm12920_vm3, %v1652_v51, %v7933_v8  ;;  %vm8345_vm7 = vmpackc.low %vm7087_vm1, %vm7464_vm9  ;;  %v12923_v63 = vmov 0  ;;  %v12927_v8 = vld [vmem:[#allocation63_spill] sm:$0xff]  ;;  %v1556_v51 = vpop.permute.xlu2 %1555  ;;  %v1588_v2 = vpop.permute.xlu0 %1587  ;;  %vm12932_vm9 = vcmp.lt.s32.totalorder %v6480_v14, 17 }
 0x312   : > { %v12924_v63 = vsel %vm8345_vm7, 4294967295, %v12923_v63  ;;  %v4804_v19 = vpack.c.bf16 %v1659_v52, %v1627_v35  ;;  %vm12928_vm5 = vnez %v12927_v8  ;;  %v4817_v29 = vpack.c.bf16 %v1658_v50, %v1626_v7  ;;  %v12938_v7 = vld [vmem:[#allocation41_spill] sm:$0xff] }
 0x313   : > { %vm8353_vm3 = vmpackc.low %vm12928_vm5, %vm12926_vm0  ;;  %4835 = vmatmul.msk.bf16.vlgmr.msra.gmra.mxu3 %vm12931_vm15, %v7863_v56  ;;  %v1562_v35 = vsel %vm12932_vm9, %v1556_v51, %v8189_v57  ;;  %v12933_v37 = vunpack.i.h.bf16 %v8042_v44  ;;  %vm12935_vm5 = vcmp.lt.s32.totalorder %v6480_v14, 16  ;;  %v12936_v46 = vunpack.i.h.bf16 %v8032_v28  ;;  %v8401_v28 = vpop.f32.mrf.mxu0 }
 0x314   : > { %v12930_v40 = vsel %vm8353_vm3, 4294967295, %v12929_v40  ;;  %4805 = vmatpush.bf16.msk.msrb.mxu1 %vm8345_vm7, %v4804_v19  ;;  %4818 = vmatpush.bf16.msk.msrb.mxu2 %vm8353_vm3, %v4817_v29  ;;  %vm12934_vm0 = vmmov %vm12932_vm9  ;;  %v1594_v9 = vsel %vm12935_vm5, %v1588_v2, %v8162_v33  ;;  %vm12939_vm1 = vnez %v12938_v7  ;;  %vm12940_vm9 = vcmp.ge.s32.totalorder %v12868_v12, 1  ;;  %v12944_v19 = vld [vmem:[#allocation13_spill] sm:$0xff]  ;;  %12952 = vst [vmem:[#allocation101_spill] sm:$0xff] %v8401_v28  ;;  %v8403_v29 = vpop.permute.xlu1 %682 }
 0x315   : > { %v1563_v34 = vsel %vm12934_vm0, %v12933_v37, %v1556_v51  ;;  %vm12937_vm15 = vmmov %vm12935_vm5  ;;  %v12941_v57 = vmov 0  ;;  %v4820_v50 = vpack.c.bf16 %v1594_v9, %v1562_v35  ;;  %vm12945_vm0 = vnez %v12944_v19  ;;  %v8405_v51 = vpop.f32.mrf.mxu1  ;;  %v8412_v9 = vpop.f32.mrf.mxu2 }
 0x316   : > { %v1595_v52 = vsel %vm12937_vm15, %v12936_v46, %v1588_v2  ;;  %vm8381_vm14 = vmpackc.low %vm12940_vm9, %vm12939_vm1  ;;  %vm12946_vm11 = vcmp.ge.s32.totalorder %v12880_v10, 1  ;;  %v12947_v33 = vmov 0  ;;  %vm12950_vm15 = vcmask 588800   ;;  %12953 = vst [vmem:[#allocation102_spill] sm:$0xff] %v8405_v51 }
 0x317   : > { %v12942_v57 = vsel %vm8381_vm14, 4294967295, %v12941_v57  ;;  %v4807_v44 = vpack.c.bf16 %v1595_v52, %v1563_v34  ;;  %vm8389_vm5 = vmpackc.low %vm12946_vm11, %vm12945_vm0  ;;  %12954 = vst [vmem:[#allocation103_spill] sm:$0xff] %v8412_v9  ;;  %v12955_v52 = vld [vmem:[#allocation4_spill] sm:$0xff]  ;;  %vm12963_vm11 = vcmask 1043456   ;;  %v698_v26 = vmul.f32 %v8403_v29, %v12972_v54 }
 0x318   : > { %12943 = vst [vmem:[#allocation81_spill] sm:$0xff] %v12942_v57  ;;  %v12948_v33 = vsel %vm8389_vm5, 4294967295, %v12947_v33  ;;  %4821 = vmatpush.bf16.msk.msrb.mxu2 %vm8389_vm5, %v4820_v50  ;;  %vm12951_vm9 = vmmov %vm12950_vm15  ;;  %vm13001_vm1 = vcmp.lt.s32.totalorder %v6480_v14, 111 }
 0x319   : > { %12949 = vst [vmem:[#allocation86_spill] sm:$0xff] %v12948_v33  ;;  %4808 = vmatpush.bf16.msk.msrb.mxu1 %vm8381_vm14, %v4807_v44  ;;  %v8407_v35 = vpop.permute.xlu2 %1990  ;;  %v8410_v34 = vpop.permute.xlu0 %710  ;;  %v12956_v44 = vld [vmem:[#allocation6_spill] sm:$0xff] }
 0x31a   : > { %v693_v50 = vmul.f32 %v8403_v29, %v12956_v44 }
 0x31b   : > { %4822 = vmatmul.msk.bf16.vlgmr.msrb.gmra.mxu2 %vm12951_vm9, %v7863_v56  ;;  %vm12969_vm9 = vmmov %vm12963_vm11 }
 0x31c   : > { %4809 = vmatmul.msk.bf16.vlgmr.msrb.gmra.mxu1 %vm12950_vm15, %v7863_v56  ;;  %v8414_v46 = vpop.permute.xlu1 %2016  ;;  %v694_v56 = vmul.f32 %v8403_v29, %v12955_v52  ;;  %v8430_v7 = vadd.f32 %v8410_v34, %v693_v50  ;;  %vm12964_vm15 = vmmov %vm12963_vm11 }
 0x31e   : > { %12960 = vst [vmem:[#allocation105_spill] sm:$0xff] %v8430_v7  ;;  %v12050_v62 = vmax.f32 %v8430_v7, 0.0 }
 0x34d   : > { %v1885_v2 = vpop.f32.mrf.mxu0 }
 0x34e   : > { %v1998_v37 = vmul.f32 %v8407_v35, %v1885_v2  ;;  %v8426_v2 = vadd.f32 %v8410_v34, %v694_v56  ;;  %v695_v56 = vmul.f32 %v8403_v29, %v12962_v32 }
 0x350   : > { %v8421_v19 = vadd.f32 %v8414_v46, %v1998_v37  ;;  %12959 = vst [vmem:[#allocation104_spill] sm:$0xff] %v8426_v2  ;;  %v12047_v44 = vmax.f32 %v8426_v2, 0.0  ;;  %v8456_v15 = vadd.f32 %v8410_v34, %v695_v56 }
 0x352   : > { %12957 = vst [vmem:[#allocation4_spill] sm:$0xff] %v8421_v19  ;;  %v12049_v52 = vmax.f32 %v8421_v19, 0.0  ;;  %v12059_v56 = vmax.f32 %v8456_v15, 0.0 }
 0x353   : > { %12965 = vst [vmem:[#allocation11_spill] sm:$0xff] %v8456_v15 }
 0x354   : > { %v8453_v50 = vsel %vm12964_vm15, %v12050_v62, %v12049_v52  ;;  %v12970_v62 = vld [vmem:[#allocation75_spill] sm:$0xff]  ;;  %vm12979_vm15 = vmmov %vm12969_vm9 }
 0x355   : > { %v8423_v41 = vpop.f32.mrf.mxu0  ;;  %v697_v42 = vmul.f32 %v8403_v29, %v12970_v62 }
 0x356   : > { %12958 = vst [vmem:[#allocation6_spill] sm:$0xff] %v8423_v41 }
 0x357   : > { %v8491_v53 = vadd.f32 %v8410_v34, %v697_v42 }
 0x359   : > { %12973 = vst [vmem:[#allocation16_spill] sm:$0xff] %v8491_v53  ;;  %v12063_v42 = vmax.f32 %v8491_v53, 0.0 }
 0x383   : > { %v1899_v0 = vpop.f32.mrf.mxu1 }
 0x384   : > { %v1999_v8 = vmul.f32 %v8407_v35, %v1899_v0 }
 0x386   : > { %v8433_v25 = vadd.f32 %v8414_v46, %v1999_v8 }
 0x388   : > { %12961 = vst [vmem:[#allocation106_spill] sm:$0xff] %v8433_v25  ;;  %v12046_v37 = vmax.f32 %v8433_v25, 0.0 }
 0x38a   : > { %v8446_v0 = vsel %vm12963_vm11, %v12047_v44, %v12046_v37  ;;  %v1941_v37 = vpop.f32.mrf.mxu0  ;;  %vm12978_vm11 = vmmov %vm12969_vm9 }
 0x38b   : > { %v5592_v60 = vpack.i.bf16 %v8446_v0, %v8453_v50  ;;  %v8466_v10 = vpop.f32.mrf.mxu1 }
 0x38c   : > { %v1913_v8 = vpop.f32.mrf.mxu2  ;;  %12968 = vst [vmem:[#allocation109_spill] sm:$0xff] %v8466_v10 }
 0x38d   : > { %v2000_v32 = vmul.f32 %v8407_v35, %v1913_v8  ;;  %5593 = vrot.lane.b32.xlu1 %v5592_v60, %s6255_s29  ;;  %5588 = vrot.lane.b32.xlu0 %v5592_v60, %s6257_s11  ;;  %v2002_v8 = vmul.f32 %v8407_v35, %v1941_v37  ;;  %v1927_v37 = vpop.f32.mrf.mxu3 }
 0x38e   : > { %5583 = vrot.lane.b32.xlu2 %v5592_v60, %s6256_s30  ;;  %v2001_v54 = vmul.f32 %v8407_v35, %v1927_v37 }
 0x38f   : > { %v8464_v44 = vadd.f32 %v8414_v46, %v2000_v32  ;;  %v8484_v6 = vadd.f32 %v8414_v46, %v2002_v8 }
 0x390   : > { %v8511_v47 = vadd.f32 %v8414_v46, %v2001_v54 }
 0x391   : > { %12967 = vst [vmem:[#allocation108_spill] sm:$0xff] %v8464_v44  ;;  %v12058_v52 = vmax.f32 %v8464_v44, 0.0  ;;  %v12062_v62 = vmax.f32 %v8484_v6, 0.0 }
 0x392   : > { %12971 = vst [vmem:[#allocation75_spill] sm:$0xff] %v8484_v6 }
 0x393   : > { %v8479_v32 = vsel %vm12969_vm9, %v12059_v56, %v12058_v52  ;;  %v8494_v52 = vadd.f32 %v8410_v34, %v698_v26  ;;  %v8518_v37 = vsel %vm12978_vm11, %v12063_v42, %v12062_v62  ;;  %v12071_v62 = vmax.f32 %v8511_v47, 0.0  ;;  %vm12988_vm11 = vmmov %vm12969_vm9 }
 0x394   : > { %v5602_v22 = vpack.i.bf16 %v8479_v32, %v8446_v0 }
 0x395   : > { %12974 = vst [vmem:[#allocation110_spill] sm:$0xff] %v8494_v52  ;;  %5598 = vrot.lane.b32.xlu1 %v5592_v60, %s6258_s12  ;;  %v12066_v26 = vmax.f32 %v8494_v52, 0.0  ;;  %v8536_v42 = vpop.f32.mrf.mxu3 }
 0x396   : > { %5603 = vrot.lane.b32.xlu0 %v5602_v22, %s6259_s14  ;;  %5608 = vrot.lane.b32.xlu2 %v5602_v22, %s6253_s27  ;;  %12981 = vst [vmem:[#allocation113_spill] sm:$0xff] %v8536_v42 }
 0x399   : > { %v1955_v21 = vpop.f32.mrf.mxu1 }
 0x39a   : > { %v2003_v56 = vmul.f32 %v8407_v35, %v1955_v21  ;;  %v12976_v21 = vld [vmem:[#allocation9_spill] sm:$0xff] }
 0x39b   : > { %v696_v60 = vmul.f32 %v8403_v29, %v12976_v21  ;;  %12977 = vst [vmem:[#allocation9_spill] sm:$0xff] %v8511_v47  ;;  %v12996_v47 = vld [vmem:[#allocation87_spill] sm:$0xff] }
 0x39c   : > { %v8503_v8 = vadd.f32 %v8414_v46, %v2003_v56  ;;  %vm12997_vm0 = vnez %v12996_v47 }
 0x39d   : > { %v8530_v54 = vadd.f32 %v8410_v34, %v696_v60  ;;  %5618 = vrot.lane.b32.xlu1 %v5602_v22, %s6254_s28 }
 0x39e   : > { %12975 = vst [vmem:[#allocation111_spill] sm:$0xff] %v8503_v8  ;;  %v12065_v55 = vmax.f32 %v8503_v8, 0.0  ;;  %5613 = vrot.lane.b32.xlu2 %v5602_v22, %s6252_s26  ;;  %v8551_v22 = vpop.f32.mrf.mxu2 }
 0x39f   : > { %12980 = vst [vmem:[#allocation112_spill] sm:$0xff] %v8530_v54  ;;  %v12072_v12 = vmax.f32 %v8530_v54, 0.0 }
 0x3a0   : > { %v8525_v56 = vsel %vm12979_vm15, %v12066_v26, %v12065_v55  ;;  %12982 = vst [vmem:[#allocation114_spill] sm:$0xff] %v8551_v22  ;;  %v1983_v26 = vpop.f32.mrf.mxu3  ;;  %vm12990_vm15 = vmmov %vm12969_vm9 }
 0x3a1   : > { %v5622_v21 = vpack.i.bf16 %v8525_v56, %v8518_v37  ;;  %v8544_v55 = vsel %vm12969_vm9, %v12072_v12, %v12071_v62  ;;  %v2005_v38 = vmul.f32 %v8407_v35, %v1983_v26  ;;  %v12983_v62 = vld [vmem:[#allocation77_spill] sm:$0xff]  ;;  %vm12991_vm9 = vcmp.lt.s32.totalorder %v6480_v14, 111 }
 0x3a2   : > { %v5652_v60 = vpack.i.bf16 %v8544_v55, %v8479_v32  ;;  %v5667_v3 = vpack.i.bf16 %v8518_v37, %v8544_v55  ;;  %v700_v12 = vmul.f32 %v8403_v29, %v12983_v62  ;;  %v12986_v62 = vld [vmem:[#allocation74_spill] sm:$0xff] }
 0x3a3   : > { %5623 = vrot.lane.b32.xlu0 %v5622_v21, %s6256_s30  ;;  %v8562_v27 = vadd.f32 %v8414_v46, %v2005_v38  ;;  %v699_v38 = vmul.f32 %v8403_v29, %v12986_v62  ;;  %v2064_v62 = vld [vmem:[%s11714_s9 + $0x60] sm:$0xff] }
 0x3a4   : > { %v8565_v13 = vadd.f32 %v8410_v34, %v700_v12 }
 0x3a5   : > { %5633 = vrot.lane.b32.xlu1 %v5622_v21, %s6255_s29  ;;  %12984 = vst [vmem:[#allocation77_spill] sm:$0xff] %v8562_v27  ;;  %v12080_v26 = vmax.f32 %v8562_v27, 0.0  ;;  %v8586_v12 = vadd.f32 %v8410_v34, %v699_v38 }
 0x3a6   : > { %5628 = vrot.lane.b32.xlu2 %v5622_v21, %s6257_s11  ;;  %v1969_v20 = vpop.f32.mrf.mxu2  ;;  %12985 = vst [vmem:[#allocation115_spill] sm:$0xff] %v8565_v13 }
 0x3a7   : > { %v2004_v30 = vmul.f32 %v8407_v35, %v1969_v20  ;;  %12989 = vst [vmem:[#allocation116_spill] sm:$0xff] %v8586_v12 }
 0x3a9   : > { %v8576_v8 = vadd.f32 %v8414_v46, %v2004_v30  ;;  %v12082_v30 = vmax.f32 %v8586_v12, 0.0 }
 0x3ab   : > { %5653 = vrot.lane.b32.xlu0 %v5652_v60, %s6255_s29  ;;  %12987 = vst [vmem:[#allocation74_spill] sm:$0xff] %v8576_v8  ;;  %v12079_v35 = vmax.f32 %v8576_v8, 0.0 }
 0x3ad   : > { %5648 = vrot.lane.b32.xlu1 %v5652_v60, %s6257_s11  ;;  %v8600_v29 = vsel %vm12990_vm15, %v12082_v30, %v12079_v35  ;;  %v12992_v35 = vld [vmem:[#allocation20_spill] sm:$0xff] }
 0x3ae   : > { %5638 = vrot.lane.b32.xlu2 %v5622_v21, %s6258_s12  ;;  %v12081_v21 = vmax.f32 %v8565_v13, 0.0  ;;  %v5722_v46 = vpack.i.bf16 %v8600_v29, %v8525_v56 }
 0x3b0   : > { %v8583_v20 = vsel %vm12988_vm11, %v12081_v21, %v12080_v26  ;;  %vm12993_vm11 = vnez %v12992_v35 }
 0x3b1   : > { %v5702_v34 = vpack.i.bf16 %v8583_v20, %v8600_v29 }
 0x3b3   : > { %5668 = vrot.lane.b32.xlu0 %v5667_v3, %s6253_s27 }
 0x3b5   : > { %5658 = vrot.lane.b32.xlu1 %v5652_v60, %s6258_s12 }
 0x3b6   : > { %5643 = vrot.lane.b32.xlu2 %v5652_v60, %s6256_s30  ;;  %v5677_v60 = vpack.i.bf16 %v8583_v20, %v8453_v50 }
 0x3bb   : > { %5673 = vrot.lane.b32.xlu0 %v5667_v3, %s6252_s26 }
 0x3bd   : > { %5663 = vrot.lane.b32.xlu1 %v5667_v3, %s6259_s14 }
 0x3be   : > { %5678 = vrot.lane.b32.xlu2 %v5677_v60, %s6259_s14 }
 0x3c3   : > { %5683 = vrot.lane.b32.xlu0 %v5677_v60, %s6253_s27 }
 0x3c5   : > { %5703 = vrot.lane.b32.xlu1 %v5702_v34, %s6256_s30 }
 0x3c6   : > { %5688 = vrot.lane.b32.xlu2 %v5677_v60, %s6252_s26 }
 0x3cb   : > { %5698 = vrot.lane.b32.xlu0 %v5677_v60, %s6254_s28 }
 0x3cd   : > { %5718 = vrot.lane.b32.xlu1 %v5702_v34, %s6255_s29 }
 0x3ce   : > { %5693 = vrot.lane.b32.xlu2 %v5667_v3, %s6254_s28  ;;  %v2066_v3 = vld [vmem:[%s11714_s9 + $0x70] sm:$0xff] }
 0x3d3   : > { %5708 = vrot.lane.b32.xlu0 %v5702_v34, %s6257_s11 }
 0x3d5   : > { %5723 = vrot.lane.b32.xlu1 %v5722_v46, %s6253_s27 }
 0x3d6   : > { %5728 = vrot.lane.b32.xlu2 %v5702_v34, %s6258_s12 }
 0x3db   : > { %5713 = vrot.lane.b32.xlu0 %v5722_v46, %s6259_s14 }
 0x3dd   : > { %2512 = vperm.xlu1 %5445, %v2064_v62  }
 0x3de   : > { %5733 = vrot.lane.b32.xlu2 %v5722_v46, %s6252_s26 }
 0x3e3   : > { %5738 = vrot.lane.b32.xlu0 %v5722_v46, %s6254_s28 }
 0x3e6   : > { %2538 = vperm.xlu2 %5446, %v2066_v3  }
 0x3e8   : > { %v8623_v38 = vpop.permute.xlu2 %5583 }
 0x3e9   : > { %v5586_v60 = vunpack.i.h.bf16 %v8623_v38  ;;  %v12087_v34 = vunpack.i.l.bf16 %v8623_v38 }
 0x3eb   : > { %v2314_v62 = vsel %vm12991_vm9, %v12087_v34, %v5586_v60  ;;  %vm12994_vm9 = vcmp.lt.s32.totalorder %v6480_v14, 112 }
 0x3ec   : > { %v2316_v26 = vsel %vm12993_vm11, %v2314_v62, 0.0 }
 0x3ed   : > { %v2356_v46 = vpack.c.bf16 %v2316_v26, %v2316_v26 }
 0x3ef   : > { %v2375_v21 = vsel %vm12990_vm15, %v2356_v46, 0  ;;  %vm12995_vm15 = vcmp.lt.s32.totalorder %v6480_v14, 113 }
 0x3f0   : > { %v8634_v30 = vpop.permute.xlu2 %5608  ;;  %2401 = vmatpush.bf16.msrb.mxu0 %v2375_v21 }
 0x3f8   : > { %v8636_v3 = vpop.permute.xlu2 %5613 }
 0x3ff   : > { %v8638_v8 = vpop.permute.xlu1 %5593  ;;  %v8640_v27 = vpop.permute.xlu0 %5588 }
 0x400   : > { %v5596_v44 = vunpack.i.h.bf16 %v8638_v8  ;;  %v12092_v6 = vunpack.i.l.bf16 %v8638_v8  ;;  %v5591_v34 = vunpack.i.h.bf16 %v8640_v27  ;;  %v12091_v62 = vunpack.i.l.bf16 %v8640_v27  ;;  %v8646_v26 = vpop.permute.xlu2 %5628 }
 0x402   : > { %v2282_v21 = vsel %vm12994_vm9, %v12092_v6, %v5596_v44  ;;  %v2250_v46 = vsel %vm12995_vm15, %v12091_v62, %v5591_v34  ;;  %vm12998_vm9 = vcmp.lt.s32.totalorder %v6480_v14, 127 }
 0x403   : > { %v4841_v25 = vpack.c.bf16 %v2282_v21, %v2250_v46 }
 0x405   : > { %4842 = vmatpush.bf16.msk.msrb.mxu0 %vm12997_vm0, %v4841_v25  ;;  %v12999_v25 = vld [vmem:[#allocation89_spill] sm:$0xff]  ;;  %vm13002_vm0 = vmmov %vm13001_vm1 }
 0x406   : > { %vm13000_vm15 = vnez %v12999_v25 }
 0x407   : > { %v8658_v19 = vpop.permute.xlu1 %5598 }
 0x408   : > { %v12094_v45 = vunpack.i.h.bf16 %v8658_v19  ;;  %v12093_v9 = vunpack.i.l.bf16 %v8658_v19  ;;  %v8662_v51 = vpop.permute.xlu0 %5603  ;;  %v8664_v28 = vpop.permute.xlu2 %5638 }
 0x409   : > { %v5605_v15 = vunpack.i.l.bf16 %v8662_v51 }
 0x40a   : > { %v2218_v21 = vsel %vm12998_vm9, %v12093_v9, %v12094_v45  ;;  %vm13003_vm9 = vmmov %vm13002_vm0  ;;  %v13006_v45 = vld [vmem:[#allocation44_spill] sm:$0xff] }
 0x40b   : > { %v4844_v46 = vpack.c.bf16 %v2218_v21, %v8453_v50  ;;  %v13004_v21 = vld [vmem:[#allocation27_spill] sm:$0xff]  ;;  %vm13007_vm11 = vnez %v13006_v45 }
 0x40d   : > { %4845 = vmatpush.bf16.msk.msrb.mxu0 %vm13000_vm15, %v4844_v46  ;;  %vm13005_vm15 = vnez %v13004_v21 }
 0x40f   : > { %v8675_v62 = vpop.permute.xlu1 %5618 }
 0x410   : > { %v5644_v6 = vpop.permute.xlu2 %5643 }
 0x411   : > { %v5646_v22 = vunpack.i.h.bf16 %v5644_v6  ;;  %v5645_v10 = vunpack.i.l.bf16 %v5644_v6  ;;  %v13008_v6 = vld [vmem:[#allocation46_spill] sm:$0xff] }
 0x412   : > { %vm13009_vm5 = vnez %v13008_v6 }
 0x413   : > { %v2312_v47 = vsel %vm13001_vm1, %v5645_v10, %v5646_v22  ;;  %v2313_v9 = vsel %vm13002_vm0, %v5586_v60, %v5645_v10  ;;  %vm13010_vm1 = vcmask 1043456  }
 0x414   : > { %v2317_v46 = vsel %vm13005_vm15, %v2313_v9, 0.0  ;;  %v2318_v25 = vsel %vm13007_vm11, %v2312_v47, 0.0  ;;  %vm13011_vm0 = vmmov %vm13010_vm1 }
 0x415   : > { %v8677_v42 = vpop.permute.xlu0 %5623  ;;  %v2357_v52 = vpack.c.bf16 %v2317_v46, %v2317_v46  ;;  %v2358_v13 = vpack.c.bf16 %v2318_v25, %v2318_v25  ;;  %vm13012_vm14 = vmmov %vm13011_vm0 }
 0x416   : > { %v12103_v41 = vunpack.i.l.bf16 %v8677_v42  ;;  %v13043_v7 = vunpack.i.l.bf16 %v8677_v42 }
 0x417   : > { %v8694_v12 = vpop.permute.xlu1 %5633  ;;  %v2378_v10 = vsel %vm13010_vm1, %v2357_v52, 0  ;;  %v2381_v60 = vsel %vm13011_vm0, %v2358_v13, 0  ;;  %vm13016_vm0 = vcmp.lt.s32.totalorder %v6480_v14, 113 }
 0x418   : > { %v2311_v50 = vsel %vm13003_vm9, %v5646_v22, %v12103_v41  ;;  %2415 = vmatpush.bf16.msra.mxu1 %v2378_v10  ;;  %2429 = vmatpush.bf16.msra.mxu2 %v2381_v60  ;;  %v8699_v41 = vpop.permute.xlu2 %5678  ;;  %vm13018_vm11 = vmmov %vm13016_vm0 }
 0x419   : > { %v2319_v35 = vsel %vm13009_vm5, %v2311_v50, 0.0  ;;  %v12104_v50 = vunpack.i.l.bf16 %v8694_v12  ;;  %vm13017_vm5 = vmmov %vm13016_vm0 }
 0x41a   : > { %v2359_v53 = vpack.c.bf16 %v2319_v35, %v2319_v35  ;;  %v12106_v35 = vunpack.i.l.bf16 %v8646_v26 }
 0x41c   : > { %v2384_v22 = vsel %vm13012_vm14, %v2359_v53, 0  ;;  %vm13013_vm14 = vcmp.lt.s32.totalorder %v6480_v14, 112 }
 0x41d   : > { %v5654_v9 = vpop.permute.xlu0 %5653  ;;  %2443 = vmatpush.bf16.msrb.mxu3 %v2384_v22  ;;  %vm13014_vm9 = vmmov %vm13013_vm14 }
 0x41e   : > { %v5656_v47 = vunpack.i.h.bf16 %v5654_v9  ;;  %v5655_v6 = vunpack.i.l.bf16 %v5654_v9  ;;  %vm13015_vm1 = vmmov %vm13014_vm9 }
 0x41f   : > { %v5649_v25 = vpop.permute.xlu1 %5648 }
 0x420   : > { %v5651_v46 = vunpack.i.h.bf16 %v5649_v25  ;;  %v5650_v45 = vunpack.i.l.bf16 %v5649_v25  ;;  %v2279_v53 = vsel %vm13013_vm14, %v5656_v47, %v12104_v50  ;;  %v2280_v13 = vsel %vm13014_vm9, %v5655_v6, %v5656_v47  ;;  %v8721_v54 = vpop.permute.xlu2 %5688  ;;  %v13019_v47 = vld [vmem:[#allocation88_spill] sm:$0xff] }
 0x421   : > { %v2281_v10 = vsel %vm13015_vm1, %v5596_v44, %v5655_v6  ;;  %vm13020_vm14 = vnez %v13019_v47  ;;  %v13021_v44 = vld [vmem:[#allocation93_spill] sm:$0xff]  ;;  %v13023_v6 = vld [vmem:[#allocation94_spill] sm:$0xff] }
 0x422   : > { %v2247_v60 = vsel %vm13016_vm0, %v5651_v46, %v12106_v35  ;;  %v2248_v22 = vsel %vm13017_vm5, %v5650_v45, %v5651_v46  ;;  %v2249_v9 = vsel %vm13018_vm11, %v5591_v34, %v5650_v45  ;;  %vm13022_vm9 = vnez %v13021_v44  ;;  %v13030_v44 = vld [vmem:[#allocation90_spill] sm:$0xff] }
 0x423   : > { %v4880_v25 = vpack.c.bf16 %v2279_v53, %v2247_v60  ;;  %v4854_v21 = vpack.c.bf16 %v2281_v10, %v2249_v9  ;;  %v4867_v50 = vpack.c.bf16 %v2280_v13, %v2248_v22  ;;  %vm13024_vm1 = vnez %v13023_v6 }
 0x424   : > { %v5606_v35 = vunpack.i.h.bf16 %v8662_v51  ;;  %v12108_v45 = vunpack.i.l.bf16 %v8664_v28  ;;  %v5611_v10 = vunpack.i.h.bf16 %v8634_v30  ;;  %vm13025_vm5 = vcmp.lt.s32.totalorder %v6480_v14, 127 }
 0x425   : > { %v8703_v52 = vpop.permute.xlu0 %5668  ;;  %4855 = vmatpush.bf16.msk.msra.mxu1 %vm13020_vm14, %v4854_v21  ;;  %4868 = vmatpush.bf16.msk.msra.mxu2 %vm13022_vm9, %v4867_v50  ;;  %v5610_v21 = vunpack.i.l.bf16 %v8634_v30  ;;  %vm13026_vm11 = vmmov %vm13025_vm5  ;;  %v13027_v51 = vunpack.i.h.bf16 %v8658_v19  ;;  %v5621_v6 = vunpack.i.h.bf16 %v8675_v62 }
 0x426   : > { %4881 = vmatpush.bf16.msk.msrb.mxu3 %vm13024_vm1, %v4880_v25  ;;  %vm13028_vm0 = vmmov %vm13025_vm5  ;;  %vm13029_vm1 = vcmp.lt.s32.totalorder %v6480_v14, 15 }
 0x427   : > { %v5659_v46 = vpop.permute.xlu1 %5658  ;;  %v2153_v30 = vsel %vm13029_vm1, %v5605_v15, %v5606_v35 }
 0x428   : > { %v5661_v34 = vunpack.i.h.bf16 %v5659_v46  ;;  %v5660_v53 = vunpack.i.l.bf16 %v5659_v46 }
 0x42a   : > { %v2215_v50 = vsel %vm13025_vm5, %v5661_v34, %v12108_v45  ;;  %v2216_v60 = vsel %vm13026_vm11, %v5660_v53, %v5661_v34  ;;  %v2217_v22 = vsel %vm13028_vm0, %v13027_v51, %v5660_v53  ;;  %v12109_v45 = vunpack.i.l.bf16 %v8675_v62  ;;  %v13032_v34 = vld [vmem:[#allocation96_spill] sm:$0xff]  ;;  %v8765_v51 = vpop.permute.xlu2 %5693 }
 0x42b   : > { %v4883_v9 = vpack.c.bf16 %v2215_v50, %v8544_v55  ;;  %v4857_v25 = vpack.c.bf16 %v2217_v22, %v8446_v0  ;;  %v4870_v46 = vpack.c.bf16 %v2216_v60, %v8479_v32  ;;  %vm13031_vm5 = vnez %v13030_v44  ;;  %v13035_v50 = vld [vmem:[#allocation97_spill] sm:$0xff] }
 0x42c   : > { %vm13033_vm11 = vnez %v13032_v34  ;;  %vm13034_vm0 = vcmp.lt.s32.totalorder %v6480_v14, 1  ;;  %v5616_v0 = vunpack.i.h.bf16 %v8636_v3  ;;  %v5615_v32 = vunpack.i.l.bf16 %v8636_v3  ;;  %v5279_v3 = vld [vmem:[%s11709_s4] sm:$0x30] }
 0x42d   : > { %v8732_v13 = vpop.permute.xlu0 %5673  ;;  %4858 = vmatpush.bf16.msk.msra.mxu1 %vm13031_vm5, %v4857_v25  ;;  %4871 = vmatpush.bf16.msk.msra.mxu2 %vm13033_vm11, %v4870_v46  ;;  %v2185_v55 = vsel %vm13034_vm0, %v5610_v21, %v5611_v10  ;;  %vm13036_vm1 = vnez %v13035_v50  ;;  %v5626_v60 = vunpack.i.h.bf16 %v8677_v42  ;;  %vm13037_vm0 = vcmp.lt.s32.totalorder %v6480_v14, 16 }
 0x42e   : > { %4884 = vmatpush.bf16.msk.msrb.mxu3 %vm13036_vm1, %v4883_v9  ;;  %v4873_v25 = vpack.c.bf16 %v2185_v55, %v2153_v30  ;;  %v2121_v46 = vsel %vm13037_vm0, %v12109_v45, %v5621_v6  ;;  %v5680_v34 = vunpack.i.l.bf16 %v8699_v41  ;;  %v4838_v45 = vld [vmem:[%s11709_s4] sm:$0xf]  ;;  %vm13038_vm0 = vcmp.lt.s32.totalorder %v6480_v14, 17 }
 0x42f   : > { %v8767_v22 = vpop.permute.xlu1 %5663  ;;  %v2089_v53 = vsel %vm13038_vm0, %v5615_v32, %v5616_v0  ;;  %v13039_v9 = vunpack.i.l.bf16 %v8703_v52  ;;  %vm13040_vm1 = vcmp.lt.s32.totalorder %v6480_v14, 1  ;;  %vm13044_vm11 = vcmp.lt.s32.totalorder %v6480_v14, 111 }
 0x430   : > { %v13041_v11 = vunpack.i.l.bf16 %v8767_v22  ;;  %v4876_v2 = vpack.c.bf16 %v2121_v46, %v2089_v53  ;;  %v2310_v49 = vsel %vm13044_vm11, %v13043_v7, %v5626_v60  ;;  %v13046_v57 = vunpack.i.l.bf16 %v8732_v13 }
 0x431   : > { %4874 = vmatpush.bf16.msk.msra.mxu2 %vm8104_vm4, %v4873_v25  ;;  %v2184_v25 = vsel %vm13040_vm1, %v5611_v10, %v13039_v9  ;;  %vm13042_vm4 = vcmp.lt.s32.totalorder %v6480_v14, 15  ;;  %vm13047_vm1 = vcmp.lt.s32.totalorder %v6480_v14, 17  ;;  %vm13048_vm5 = vcmp.lt.s32.totalorder %v6480_v14, 1 }
 0x432   : > { %v2152_v44 = vsel %vm13042_vm4, %v5606_v35, %v13041_v11  ;;  %vm13045_vm0 = vmmov %vm13042_vm4  ;;  %v2088_v10 = vsel %vm13047_vm1, %v5616_v0, %v13046_v57  ;;  %v8812_v30 = vor.u32 %v5279_v3, %v4838_v45  ;;  %v13049_v11 = vunpack.i.h.bf16 %v8699_v41  ;;  %v13058_v3 = vld [vmem:[#allocation91_spill] sm:$0xff] }
 0x433   : > { %v4886_v47 = vpack.c.bf16 %v2184_v25, %v2152_v44  ;;  %v2154_v33 = vsel %vm13045_vm0, %v5680_v34, %v5605_v15  ;;  %vm13050_vm4 = vmmov %vm13045_vm0  ;;  %vm13053_vm0 = vnez %v12784_v5  ;;  %v13054_v57 = vunpack.i.l.bf16 %v8765_v51 }
 0x434   : > { %v2155_v42 = vsel %vm13050_vm4, %v13049_v11, %v5680_v34  ;;  %vm13052_vm11 = vmmov %vm13048_vm5  ;;  %v5690_v34 = vunpack.i.l.bf16 %v8721_v54  ;;  %vm13059_vm4 = vnez %v13058_v3 }
 0x435   : > { %v8776_v50 = vpop.permute.xlu0 %5683  ;;  %4877 = vmatpush.bf16.msk.msra.mxu2 %vm8168_vm6, %v4876_v2  ;;  %4887 = vmatpush.bf16.msk.msrb.mxu3 %vm13053_vm0, %v4886_v47  ;;  %vm13066_vm0 = vcmp.lt.s32.totalorder %v6480_v14, 17 }
 0x436   : > { %v5685_v55 = vunpack.i.l.bf16 %v8776_v50  ;;  %v13051_v7 = vunpack.i.h.bf16 %v8776_v50 }
 0x437   : > { %v5704_v53 = vpop.permute.xlu1 %5703 }
 0x438   : > { %v2186_v9 = vsel %vm13048_vm5, %v5685_v55, %v5610_v21  ;;  %v2187_v15 = vsel %vm13052_vm11, %v13051_v7, %v5685_v55  ;;  %vm13055_vm5 = vcmp.lt.s32.totalorder %v6480_v14, 16  ;;  %v5691_v21 = vunpack.i.h.bf16 %v8721_v54 }
 0x439   : > { %v4860_v35 = vpack.c.bf16 %v2186_v9, %v2154_v33  ;;  %v2120_v44 = vsel %vm13055_vm5, %v5621_v6, %v13054_v57  ;;  %v4847_v45 = vpack.c.bf16 %v2187_v15, %v2155_v42  ;;  %v13056_v33 = vld [vmem:[#allocation56_spill] sm:$0xff]  ;;  %v5706_v46 = vunpack.i.h.bf16 %v5704_v53 }
 0x43a   : > { %v4889_v0 = vpack.c.bf16 %v2120_v44, %v2088_v10  ;;  %vm13057_vm1 = vnez %v13056_v33  ;;  %v5705_v47 = vunpack.i.l.bf16 %v5704_v53  ;;  %vm13060_vm11 = vcmask 588800  }
 0x43b   : > { %4861 = vmatpush.bf16.msk.msra.mxu1 %vm8080_vm2, %v4860_v35  ;;  %v2320_v2 = vsel %vm13057_vm1, %v2310_v49, 0.0  ;;  %4848 = vmatpush.bf16.msk.msrb.mxu0 %vm13059_vm4, %v4847_v45  ;;  %v5631_v55 = vunpack.i.h.bf16 %v8646_v26  ;;  %vm13061_vm5 = vnez %v12794_v61  ;;  %v13062_v49 = vunpack.i.l.bf16 %v8623_v38 }
 0x43c   : > { %4878 = vmatmul.msk.bf16.vlgmr.msra.gmra.mxu2 %vm13060_vm11, %v8812_v30  ;;  %4890 = vmatpush.bf16.msk.msrb.mxu3 %vm13061_vm5, %v4889_v0  ;;  %vm13063_vm1 = vcmp.lt.s32.totalorder %v6480_v14, 111  ;;  %v2360_v7 = vpack.c.bf16 %v2320_v2, %v2320_v2  ;;  %v5636_v15 = vunpack.i.h.bf16 %v8694_v12  ;;  %v2090_v35 = vsel %vm13066_vm0, %v5690_v34, %v5615_v32  ;;  %vm13067_vm5 = vmmov %vm13066_vm0  ;;  %v13073_v0 = vld [vmem:[#allocation52_spill] sm:$0xff] }
 0x43d   : > { %v8840_v6 = vpop.permute.xlu0 %5698  ;;  %v2315_v9 = vsel %vm13063_vm1, %v5706_v46, %v13062_v49  ;;  %vm13064_vm4 = vmmov %vm13063_vm1  ;;  %v2091_v38 = vsel %vm13067_vm5, %v5691_v21, %v5690_v34  ;;  %v13068_v57 = vunpack.i.l.bf16 %v8675_v62  ;;  %vm13072_vm0 = vnez %v12484_v39  ;;  %v5729_v49 = vpop.permute.xlu2 %5728 }
 0x43e   : > { %v12121_v25 = vunpack.i.h.bf16 %v8840_v6  ;;  %v5700_v10 = vunpack.i.l.bf16 %v8840_v6  ;;  %v2308_v11 = vsel %vm13064_vm4, %v5705_v47, %v5706_v46  ;;  %vm13065_vm11 = vmmov %vm13063_vm1  ;;  %vm13069_vm1 = vcmp.lt.s32.totalorder %v6480_v14, 16 }
 0x43f   : > { %v2309_v42 = vsel %vm13065_vm11, %v5626_v60, %v5705_v47  ;;  %vm13070_vm4 = vmmov %vm13069_vm1  ;;  %vm13071_vm11 = vcmask 588800   ;;  %v2322_v32 = vsel %vm13072_vm0, %v2308_v11, 0.0  ;;  %vm13074_vm6 = vnez %v13073_v0 }
 0x440   : > { %v2122_v44 = vsel %vm13069_vm1, %v5700_v10, %v13068_v57  ;;  %v2123_v60 = vsel %vm13070_vm4, %v12121_v25, %v5700_v10  ;;  %4891 = vmatmul.msk.bf16.vlgmr.msrb.gmra.mxu3 %vm13071_vm11, %v8812_v30  ;;  %v2323_v34 = vsel %vm13074_vm6, %v2315_v9, 0.0  ;;  %v2362_v62 = vpack.c.bf16 %v2322_v32, %v2322_v32  ;;  %v5719_v57 = vpop.permute.xlu1 %5718 }
 0x441   : > { %v4863_v45 = vpack.c.bf16 %v2122_v44, %v2090_v35  ;;  %v4850_v53 = vpack.c.bf16 %v2123_v60, %v2091_v38  ;;  %v2363_v2 = vpack.c.bf16 %v2323_v34, %v2323_v34  ;;  %vm13075_vm5 = vnez %v12457_v24  ;;  %v13082_v44 = vld [vmem:[#allocation92_spill] sm:$0xff] }
 0x442   : > { %v2321_v46 = vsel %vm13075_vm5, %v2309_v42, 0.0  ;;  %v13076_v47 = vunpack.i.l.bf16 %v8646_v26  ;;  %vm13077_vm1 = vcmp.lt.s32.totalorder %v6480_v14, 113  ;;  %vm13078_vm4 = vnez %v12840_v17 }
 0x443   : > { %4864 = vmatpush.bf16.msk.msra.mxu1 %vm13078_vm4, %v4863_v45  ;;  %v2361_v35 = vpack.c.bf16 %v2321_v46, %v2321_v46  ;;  %v5641_v11 = vunpack.i.h.bf16 %v8664_v28  ;;  %v13079_v9 = vunpack.i.l.bf16 %v8694_v12  ;;  %vm13080_vm11 = vcmp.lt.s32.totalorder %v6480_v14, 112 }
 0x444   : > { %v2246_v10 = vsel %vm13077_vm1, %v13076_v47, %v5631_v55  ;;  %vm13081_vm6 = vcmask 1043456   ;;  %vm13083_vm0 = vnez %v13082_v44  ;;  %v5721_v60 = vunpack.i.h.bf16 %v5719_v57 }
 0x445   : > { %v2278_v38 = vsel %vm13080_vm11, %v13079_v9, %v5636_v15  ;;  %v2393_v42 = vsel %vm13081_vm6, %v2362_v62, 0  ;;  %4851 = vmatpush.bf16.msk.msrb.mxu0 %vm13083_vm0, %v4850_v53  ;;  %vm13084_vm5 = vmmov %vm13081_vm6  ;;  %v5720_v32 = vunpack.i.l.bf16 %v5719_v57  ;;  %v5709_v12 = vpop.permute.xlu0 %5708  ;;  %v5731_v46 = vunpack.i.h.bf16 %v5729_v49 }
 0x446   : > { %v2396_v26 = vsel %vm13084_vm5, %v2363_v2, 0  ;;  %2485 = vmatpush.bf16.msrb.mxu2 %v2393_v42  ;;  %vm13085_vm1 = vmmov %vm13084_vm5  ;;  %v5730_v47 = vunpack.i.l.bf16 %v5729_v49  ;;  %v5711_v9 = vunpack.i.h.bf16 %v5709_v12  ;;  %v5710_v62 = vunpack.i.l.bf16 %v5709_v12  ;;  %v13101_v12 = vld [vmem:[#allocation95_spill] sm:$0xff] }
 0x447   : > { %2499 = vmatpush.bf16.msra.mxu3 %v2396_v26  ;;  %v2387_v45 = vsel %vm13085_vm1, %v2360_v7, 0  ;;  %vm13086_vm4 = vmmov %vm13085_vm1  ;;  %v4893_v25 = vpack.c.bf16 %v2278_v38, %v2246_v10  ;;  %v5666_v53 = vunpack.i.h.bf16 %v8767_v22  ;;  %v13087_v2 = vunpack.i.l.bf16 %v8638_v8 }
 0x448   : > { %v2390_v34 = vsel %vm13086_vm4, %v2361_v35, 0  ;;  %vm13088_vm6 = vmmov %vm13080_vm11  ;;  %vm13090_vm4 = vcmask 588800   ;;  %v13093_v10 = vunpack.i.l.bf16 %v8640_v27  ;;  %vm13094_vm0 = vcmp.lt.s32.totalorder %v6480_v14, 113 }
 0x449   : > { %2457 = vmatpush.bf16.msra.mxu0 %v2387_v45  ;;  %2471 = vmatpush.bf16.msrb.mxu1 %v2390_v34  ;;  %v2283_v57 = vsel %vm13088_vm6, %v5721_v60, %v13087_v2  ;;  %vm13089_vm5 = vmmov %vm13088_vm6  ;;  %v13097_v42 = vunpack.i.l.bf16 %v8664_v28 }
 0x44a   : > { %v2276_v7 = vsel %vm13089_vm5, %v5720_v32, %v5721_v60  ;;  %4852 = vmatmul.msk.bf16.vlgmr.msrb.gmra.mxu0 %vm13090_vm4, %v8812_v30  ;;  %vm13091_vm11 = vmmov %vm13090_vm4  ;;  %v2251_v8 = vsel %vm13094_vm0, %v5711_v9, %v13093_v10  ;;  %v13110_v10 = vld [vmem:[#allocation98_spill] sm:$0xff] }
 0x44b   : > { %4865 = vmatmul.msk.bf16.vlgmr.msra.gmra.mxu1 %vm13091_vm11, %v8812_v30  ;;  %vm13092_vm1 = vmmov %vm13089_vm5  ;;  %vm13098_vm5 = vcmp.lt.s32.totalorder %v6480_v14, 127  ;;  %v4932_v60 = vpack.c.bf16 %v2283_v57, %v2251_v8 }
 0x44c   : > { %v2277_v49 = vsel %vm13092_vm1, %v5636_v15, %v5720_v32  ;;  %vm13095_vm2 = vmmov %vm13094_vm0  ;;  %v2214_v26 = vsel %vm13098_vm5, %v13097_v42, %v5641_v11  ;;  %v5671_v15 = vunpack.i.h.bf16 %v8703_v52  ;;  %vm13106_vm1 = vcmp.lt.s32.totalorder %v6480_v14, 15 }
 0x44d   : > { %v2244_v35 = vsel %vm13095_vm2, %v5710_v62, %v5711_v9  ;;  %vm13096_vm6 = vmmov %vm13094_vm0  ;;  %vm13102_vm2 = vnez %v13101_v12  ;;  %v4896_v9 = vpack.c.bf16 %v2214_v26, %v8518_v37  ;;  %v13108_v37 = vunpack.i.l.bf16 %v8703_v52 }
 0x44e   : > { %v2245_v38 = vsel %vm13096_vm6, %v5631_v55, %v5710_v62  ;;  %v4919_v34 = vpack.c.bf16 %v2276_v7, %v2244_v35  ;;  %vm13099_vm4 = vmmov %vm13098_vm5  ;;  %4894 = vmatpush.bf16.msk.msra.mxu0 %vm13102_vm2, %v4893_v25  ;;  %v13103_v55 = vunpack.i.l.bf16 %v8658_v19  ;;  %v5676_v62 = vunpack.i.h.bf16 %v8732_v13  ;;  %v5714_v7 = vpop.permute.xlu0 %5713 }
 0x44f   : > { %v4906_v45 = vpack.c.bf16 %v2277_v49, %v2245_v38  ;;  %v2212_v27 = vsel %vm13099_vm4, %v5730_v47, %v5731_v46  ;;  %vm13100_vm0 = vmmov %vm13099_vm4  ;;  %vm13107_vm6 = vnez %v12831_v16  ;;  %vm13109_vm5 = vcmp.lt.s32.totalorder %v6480_v14, 1 }
 0x450   : > { %v2213_v32 = vsel %vm13100_vm0, %v5641_v11, %v5730_v47  ;;  %vm13104_vm11 = vmmov %vm13100_vm0  ;;  %4920 = vmatpush.bf16.msk.msrb.mxu2 %vm8253_vm13, %v4919_v34  ;;  %v13105_v11 = vunpack.i.l.bf16 %v8767_v22  ;;  %v5724_v47 = vpop.permute.xlu1 %5723  ;;  %4933 = vmatpush.bf16.msk.msra.mxu3 %vm13107_vm6, %v4932_v60  ;;  %v2183_v49 = vsel %vm13109_vm5, %v13108_v37, %v5671_v15  ;;  %vm13111_vm4 = vnez %v13110_v10 }
 0x451   : > { %v2219_v28 = vsel %vm13104_vm11, %v5731_v46, %v13103_v55  ;;  %4907 = vmatpush.bf16.msk.msrb.mxu1 %vm8233_vm10, %v4906_v45  ;;  %v4909_v19 = vpack.c.bf16 %v2213_v32, %v8525_v56  ;;  %v4922_v46 = vpack.c.bf16 %v2212_v27, %v8600_v29  ;;  %v5726_v2 = vunpack.i.h.bf16 %v5724_v47  ;;  %vm13113_vm0 = vmmov %vm13109_vm5 }
 0x452   : > { %v2151_v25 = vsel %vm13106_vm1, %v13105_v11, %v5666_v53  ;;  %v5725_v57 = vunpack.i.l.bf16 %v5724_v47  ;;  %v4935_v22 = vpack.c.bf16 %v2219_v28, %v8583_v20  ;;  %4897 = vmatpush.bf16.msk.msra.mxu0 %vm13111_vm4, %v4896_v9  ;;  %v5716_v8 = vunpack.i.h.bf16 %v5714_v7  ;;  %vm13114_vm11 = vmmov %vm13113_vm0  ;;  %v5734_v20 = vpop.permute.xlu2 %5733 }
 0x453   : > { %v5715_v35 = vunpack.i.l.bf16 %v5714_v7  ;;  %v5696_v38 = vunpack.i.h.bf16 %v8765_v51  ;;  %v4899_v56 = vpack.c.bf16 %v2183_v49, %v2151_v25  ;;  %v13112_v29 = vunpack.i.h.bf16 %v8776_v50  ;;  %vm13115_vm1 = vmmov %vm13113_vm0 }
 0x454   : > { %v2181_v52 = vsel %vm13114_vm11, %v5725_v57, %v5726_v2  ;;  %4923 = vmatpush.bf16.msk.msrb.mxu2 %vm8307_vm12, %v4922_v46  ;;  %v2182_v26 = vsel %vm13115_vm1, %v5671_v15, %v5725_v57  ;;  %v13116_v60 = vunpack.i.h.bf16 %v8699_v41  ;;  %vm13117_vm5 = vcmp.lt.s32.totalorder %v6480_v14, 15 }
 0x455   : > { %v2180_v42 = vsel %vm13113_vm0, %v5726_v2, %v13112_v29  ;;  %4910 = vmatpush.bf16.msk.msrb.mxu1 %vm8298_vm8, %v4909_v19  ;;  %vm13118_vm0 = vmmov %vm13117_vm5  ;;  %vm13120_vm8 = vnez %v12859_v31  ;;  %v13121_v27 = vunpack.i.l.bf16 %v8732_v13  ;;  %vm13122_vm12 = vcmp.lt.s32.totalorder %v6480_v14, 17  ;;  %v9029_v29 = vpop.f32.mrf.mxu3 }
 0x456   : > { %v2148_v50 = vsel %vm13117_vm5, %v5716_v8, %v13116_v60  ;;  %v2149_v45 = vsel %vm13118_vm0, %v5715_v35, %v5716_v8  ;;  %vm13119_vm11 = vmmov %vm13118_vm0  ;;  %4936 = vmatpush.bf16.msk.msra.mxu3 %vm13120_vm8, %v4935_v22  ;;  %vm13123_vm1 = vnez %v12823_v58  ;;  %v13124_v28 = vunpack.i.l.bf16 %v8765_v51  ;;  %v5739_v25 = vpop.permute.xlu0 %5738  ;;  %v13136_v8 = vld [vmem:[#allocation81_spill] sm:$0xff]  ;;  %13148 = vst [vmem:[#allocation98_spill] sm:$0xff] %v9029_v29 }
 0x457   : > { %v2150_v34 = vsel %vm13119_vm11, %v5666_v53, %v5715_v35  ;;  %v2087_v32 = vsel %vm13122_vm12, %v13121_v27, %v5676_v62  ;;  %v4925_v55 = vpack.c.bf16 %v2181_v52, %v2149_v45  ;;  %v4938_v41 = vpack.c.bf16 %v2180_v42, %v2148_v50  ;;  %4900 = vmatpush.bf16.msk.msra.mxu0 %vm13123_vm1, %v4899_v56  ;;  %v9023_v35 = vpop.f32.mrf.mxu2  ;;  %v9027_v56 = vpop.f32.mrf.mxu1 }
 0x458   : > { %v4912_v15 = vpack.c.bf16 %v2182_v26, %v2150_v34  ;;  %vm13125_vm5 = vcmp.lt.s32.totalorder %v6480_v14, 16  ;;  %v5736_v53 = vunpack.i.h.bf16 %v5734_v20  ;;  %v5735_v11 = vunpack.i.l.bf16 %v5734_v20  ;;  %13145 = vst [vmem:[#allocation91_spill] sm:$0xff] %v9023_v35  ;;  %v9031_v42 = vpop.permute.xlu1 %2512 }
 0x459   : > { %v2119_v9 = vsel %vm13125_vm5, %v13124_v28, %v5696_v38  ;;  %4926 = vmatpush.bf16.msk.msrb.mxu2 %vm8353_vm3, %v4925_v55  ;;  %vm13126_vm12 = vnez %v12893_v18  ;;  %vm13127_vm0 = vnez %v12855_v48  ;;  %v5741_v51 = vunpack.i.h.bf16 %v5739_v25  ;;  %13147 = vst [vmem:[#allocation95_spill] sm:$0xff] %v9027_v56 }
 0x45a   : > { %4913 = vmatpush.bf16.msk.msrb.mxu1 %vm8345_vm7, %v4912_v15  ;;  %v4902_v13 = vpack.c.bf16 %v2119_v9, %v2087_v32  ;;  %4939 = vmatpush.bf16.msk.msra.mxu3 %vm13126_vm12, %v4938_v41  ;;  %v5740_v47 = vunpack.i.l.bf16 %v5739_v25  ;;  %vm13128_vm11 = vcmp.lt.s32.totalorder %v6480_v14, 17  ;;  %v13131_v57 = vunpack.i.h.bf16 %v8840_v6  ;;  %v13140_v6 = vld [vmem:[#allocation3_spill] sm:$0xff]  ;;  %v9034_v26 = vpop.permute.xlu2 %2538 }
 0x45b   : > { %v2084_v19 = vsel %vm13128_vm11, %v5736_v53, %v5691_v21  ;;  %vm13129_vm5 = vmmov %vm13128_vm11  ;;  %vm13132_vm12 = vcmp.lt.s32.totalorder %v6480_v14, 16  ;;  %vm13135_vm11 = vcmask 588800  }
 0x45c   : > { %4903 = vmatpush.bf16.msk.msra.mxu0 %vm13127_vm0, %v4902_v13  ;;  %v2085_v46 = vsel %vm13129_vm5, %v5735_v11, %v5736_v53  ;;  %vm13130_vm3 = vmmov %vm13129_vm5  ;;  %v2116_v7 = vsel %vm13132_vm12, %v5741_v51, %v13131_v57  ;;  %vm13137_vm5 = vnez %v13136_v8  ;;  %v13153_v53 = vld [vmem:[#allocation105_spill] sm:$0xff] }
 0x45d   : > { %v2086_v2 = vsel %vm13130_vm3, %v5676_v62, %v5735_v11  ;;  %vm13133_vm0 = vmmov %vm13132_vm12  ;;  %v4941_v21 = vpack.c.bf16 %v2116_v7, %v2084_v19  ;;  %v13138_v62 = vld [vmem:[#allocation86_spill] sm:$0xff]  ;;  %vm13141_vm12 = vnez %v13140_v6  ;;  %v13154_v11 = vmax.f32 %v13153_v53, 0.0 }
 0x45e   : > { %v2117_v37 = vsel %vm13133_vm0, %v5740_v47, %v5741_v51  ;;  %vm13134_vm7 = vmmov %vm13133_vm0  ;;  %vm13139_vm3 = vnez %v13138_v62  ;;  %v13155_v51 = vld [vmem:[#allocation104_spill] sm:$0xff] }
 0x45f   : > { %v2118_v54 = vsel %vm13134_vm7, %v5696_v38, %v5740_v47  ;;  %v4928_v22 = vpack.c.bf16 %v2117_v37, %v2085_v46  ;;  %4904 = vmatmul.msk.bf16.vlgmr.msra.gmra.mxu0 %vm13135_vm11, %v8812_v30  ;;  %4942 = vmatpush.bf16.msk.msra.mxu3 %vm13141_vm12, %v4941_v21  ;;  %vm13142_vm0 = vmmov %vm13135_vm11  ;;  %v9025_v38 = vpop.f32.mrf.mxu0  ;;  %v2586_v13 = vrot.slane %v13154_v11, 4  ;;  %v13156_v47 = vmax.f32 %v13155_v51, 0.0  ;;  %v13157_v46 = vld [vmem:[#allocation11_spill] sm:$0xff]  ;;  %v13159_v37 = vld [vmem:[#allocation112_spill] sm:$0xff] }
 0x460   : > { %v4915_v49 = vpack.c.bf16 %v2118_v54, %v2086_v2  ;;  %vm13143_vm7 = vmmov %vm13142_vm0  ;;  %13146 = vst [vmem:[#allocation92_spill] sm:$0xff] %v9025_v38  ;;  %v13158_v2 = vmax.f32 %v13157_v46, 0.0  ;;  %v13160_v54 = vmax.f32 %v13159_v37, 0.0  ;;  %v13216_v38 = vld [vmem:[#allocation96_spill] sm:$0xff] }
 0x461   : > { %4929 = vmatpush.bf16.msk.msrb.mxu2 %vm13139_vm3, %v4928_v22  ;;  %vm13144_vm1 = vmmov %vm13142_vm0  ;;  %v2587_v19 = vrot.slane %v13156_v47, 4 }
 0x462   : > { %4916 = vmatpush.bf16.msk.msrb.mxu1 %vm13137_vm5, %v4915_v49  ;;  %4943 = vmatmul.msk.bf16.vlgmr.msra.gmra.mxu3 %vm13144_vm1, %v8812_v30  ;;  %v2588_v57 = vrot.slane %v13158_v2, 4  ;;  %v2589_v49 = vrot.slane %v13160_v54, 4  ;;  %vm13161_vm1 = vcmask 1043456   ;;  %v13171_v54 = vld [vmem:[#allocation116_spill] sm:$0xff] }
 0x463   : > { %vm13162_vm11 = vmmov %vm13161_vm1 }
 0x464   : > { %4930 = vmatmul.msk.bf16.vlgmr.msrb.gmra.mxu2 %vm13143_vm7, %v8812_v30 }
 0x465   : > { %4917 = vmatmul.msk.bf16.vlgmr.msrb.gmra.mxu1 %vm13142_vm0, %v8812_v30  ;;  %vm13163_vm0 = vmmov %vm13161_vm1 }
 0x466   : > { %vm13164_vm7 = vmmov %vm13163_vm0 }
 0x4bf   : > { %v2435_v52 = vpop.f32.mrf.mxu2 }
 0x4c0   : > { %v2522_v20 = vmul.f32 %v9031_v42, %v2435_v52 }
 0x4c2   : > { %v9037_v60 = vadd.f32 %v9034_v26, %v2522_v20 }
 0x4c3   : > { %v2449_v27 = vpop.f32.mrf.mxu3 }
 0x4c4   : > { %13149 = vst [vmem:[#allocation117_spill] sm:$0xff] %v9037_v60  ;;  %v2523_v32 = vmul.f32 %v9031_v42, %v2449_v27  ;;  %v12131_v41 = vmax.f32 %v9037_v60, 0.0  ;;  %v13190_v60 = vld [vmem:[#allocation44_spill] sm:$0xff] }
 0x4c5   : > { %vm13191_vm12 = vnez %v13190_v60  ;;  %v13200_v60 = vld [vmem:[#allocation87_spill] sm:$0xff] }
 0x4c6   : > { %v9050_v28 = vadd.f32 %v9034_v26, %v2523_v32  ;;  %v9076_v52 = vsel %vm13163_vm0, %v2588_v57, %v12131_v41 }
 0x4c7   : > { %v2407_v50 = vpop.f32.mrf.mxu0  ;;  %v9097_v27 = vpop.f32.mrf.mxu2 }
 0x4c8   : > { %v2421_v30 = vpop.f32.mrf.mxu1  ;;  %v2520_v45 = vmul.f32 %v9031_v42, %v2407_v50  ;;  %13152 = vst [vmem:[#allocation120_spill] sm:$0xff] %v9050_v28  ;;  %v12128_v7 = vmax.f32 %v9050_v28, 0.0 }
 0x4c9   : > { %v2521_v34 = vmul.f32 %v9031_v42, %v2421_v30  ;;  %13166 = vst [vmem:[#allocation104_spill] sm:$0xff] %v9097_v27 }
 0x4ca   : > { %v9043_v15 = vadd.f32 %v9034_v26, %v2520_v45  ;;  %v9081_v20 = vsel %vm13164_vm7, %v2589_v49, %v12128_v7  ;;  %v13172_v49 = vmax.f32 %v13171_v54, 0.0  ;;  %vm13183_vm7 = vmmov %vm13163_vm0 }
 0x4cb   : > { %v9046_v55 = vadd.f32 %v9034_v26, %v2521_v34  ;;  %v5762_v30 = vpack.i.bf16 %v9081_v20, %v9076_v52  ;;  %v9106_v47 = vpop.f32.mrf.mxu3 }
 0x4cc   : > { %13150 = vst [vmem:[#allocation118_spill] sm:$0xff] %v9043_v15  ;;  %v12127_v9 = vmax.f32 %v9043_v15, 0.0 }
 0x4cd   : > { %13151 = vst [vmem:[#allocation119_spill] sm:$0xff] %v9046_v55  ;;  %v12135_v25 = vmax.f32 %v9046_v55, 0.0  ;;  %5763 = vrot.lane.b32.xlu0 %v5762_v30, %s6256_s30 }
 0x4ce   : > { %v9066_v22 = vsel %vm13161_vm1, %v2586_v13, %v12127_v9  ;;  %13167 = vst [vmem:[#allocation11_spill] sm:$0xff] %v9106_v47  ;;  %vm13175_vm1 = vmmov %vm13163_vm0 }
 0x4cf   : > { %v9071_v21 = vsel %vm13162_vm11, %v2587_v19, %v12135_v25  ;;  %v9090_v45 = vpop.f32.mrf.mxu0  ;;  %v5792_v34 = vpack.i.bf16 %v9081_v20, %v9066_v22  ;;  %vm13176_vm11 = vmmov %vm13163_vm0 }
 0x4d0   : > { %v5747_v50 = vpack.i.bf16 %v9071_v21, %v9066_v22  ;;  %13165 = vst [vmem:[#allocation105_spill] sm:$0xff] %v9090_v45  ;;  %v5807_v53 = vpack.i.bf16 %v9076_v52, %v9071_v21  ;;  %v9114_v2 = vpop.f32.mrf.mxu1 }
 0x4d1   : > { %13170 = vst [vmem:[#allocation122_spill] sm:$0xff] %v9114_v2 }
 0x4d2   : > { %5748 = vrot.lane.b32.xlu2 %v5747_v50, %s6257_s11  ;;  %5743 = vrot.lane.b32.xlu1 %v5747_v50, %s6256_s30 }
 0x4d5   : > { %5768 = vrot.lane.b32.xlu0 %v5762_v30, %s6257_s11 }
 0x4da   : > { %5753 = vrot.lane.b32.xlu1 %v5747_v50, %s6255_s29  ;;  %5793 = vrot.lane.b32.xlu2 %v5792_v34, %s6259_s14 }
 0x4dc   : > { %v2463_v32 = vpop.f32.mrf.mxu0 }
 0x4dd   : > { %v2524_v11 = vmul.f32 %v9031_v42, %v2463_v32  ;;  %5778 = vrot.lane.b32.xlu0 %v5762_v30, %s6258_s12  ;;  %v13173_v32 = vld [vmem:[#allocation16_spill] sm:$0xff] }
 0x4df   : > { %v9109_v19 = vadd.f32 %v9034_v26, %v2524_v11  ;;  %v13174_v11 = vmax.f32 %v13173_v32, 0.0 }
 0x4e1   : > { %13168 = vst [vmem:[#allocation112_spill] sm:$0xff] %v9109_v19  ;;  %v12130_v37 = vmax.f32 %v9109_v19, 0.0 }
 0x4e2   : > { %5758 = vrot.lane.b32.xlu1 %v5747_v50, %s6258_s12  ;;  %5808 = vrot.lane.b32.xlu2 %v5807_v53, %s6254_s28  ;;  %v2592_v50 = vrot.slane %v13172_v49, 4  ;;  %v2477_v49 = vpop.f32.mrf.mxu1 }
 0x4e5   : > { %5783 = vrot.lane.b32.xlu0 %v5807_v53, %s6259_s14 }
 0x4e7   : > { %v2491_v13 = vpop.f32.mrf.mxu2 }
 0x4e8   : > { %v2526_v51 = vmul.f32 %v9031_v42, %v2491_v13  ;;  %v2590_v13 = vrot.slane %v13174_v11, 4 }
 0x4ea   : > { %v9112_v46 = vadd.f32 %v9034_v26, %v2526_v51  ;;  %5818 = vrot.lane.b32.xlu2 %v5792_v34, %s6254_s28  ;;  %5773 = vrot.lane.b32.xlu1 %v5762_v30, %s6255_s29  ;;  %v9133_v9 = vsel %vm13176_vm11, %v2590_v13, %v12130_v37  ;;  %v2505_v30 = vpop.f32.mrf.mxu3 }
 0x4eb   : > { %v2527_v7 = vmul.f32 %v9031_v42, %v2505_v30 }
 0x4ec   : > { %13169 = vst [vmem:[#allocation121_spill] sm:$0xff] %v9112_v46  ;;  %v12129_v57 = vmax.f32 %v9112_v46, 0.0  ;;  %v13187_v46 = vld [vmem:[#allocation20_spill] sm:$0xff] }
 0x4ed   : > { %5813 = vrot.lane.b32.xlu0 %v5792_v34, %s6252_s26  ;;  %v9143_v32 = vadd.f32 %v9034_v26, %v2527_v7 }
 0x4ee   : > { %v9128_v51 = vsel %vm13175_vm1, %v2592_v50, %v12129_v57  ;;  %v2525_v50 = vmul.f32 %v9031_v42, %v2477_v49  ;;  %v13179_v57 = vld [vmem:[#allocation115_spill] sm:$0xff]  ;;  %v13181_v42 = vld [vmem:[#allocation110_spill] sm:$0xff]  ;;  %vm13184_vm1 = vcmp.lt.s32.totalorder %v6480_v14, 111 }
 0x4ef   : > { %v5822_v54 = vpack.i.bf16 %v9128_v51, %v9133_v9  ;;  %13177 = vst [vmem:[#allocation116_spill] sm:$0xff] %v9143_v32  ;;  %v12133_v13 = vmax.f32 %v9143_v32, 0.0  ;;  %v13180_v37 = vmax.f32 %v13179_v57, 0.0  ;;  %v13182_v49 = vmax.f32 %v13181_v42, 0.0  ;;  %v746_v57 = vld [vmem:[%s11714_s9 + $0x28] sm:$0xf]  ;;  %vm13185_vm11 = vmmov %vm13184_vm1 }
 0x4f0   : > { %v9146_v11 = vadd.f32 %v9034_v26, %v2525_v50 }
 0x4f1   : > { %v2593_v41 = vrot.slane %v13180_v37, 4  ;;  %v2591_v7 = vrot.slane %v13182_v49, 4  ;;  %v1544_v37 = vld [vmem:[%s11714_s9 + $0x58] sm:$0xf]  ;;  %v2610_v49 = vld [vmem:[%s11714_s9 + $0x80] sm:$0xff] }
 0x4f2   : > { %5823 = vrot.lane.b32.xlu2 %v5822_v54, %s6256_s30  ;;  %5788 = vrot.lane.b32.xlu1 %v5807_v53, %s6253_s27  ;;  %13178 = vst [vmem:[#allocation16_spill] sm:$0xff] %v9146_v11  ;;  %v12134_v30 = vmax.f32 %v9146_v11, 0.0 }
 0x4f3   : > { %v9160_v26 = vsel %vm13163_vm0, %v2593_v41, %v12133_v13  ;;  %v5877_v41 = vpack.i.bf16 %v9133_v9, %v9128_v51  ;;  %vm13186_vm0 = vmmov %vm13184_vm1 }
 0x4f4   : > { %v9165_v50 = vsel %vm13183_vm7, %v2591_v7, %v12134_v30  ;;  %v748_v7 = vld [vmem:[%s11714_s9 + $0x38] sm:$0xf]  ;;  %vm13188_vm7 = vnez %v13187_v46 }
 0x4f5   : > { %5828 = vrot.lane.b32.xlu0 %v5822_v54, %s6257_s11 }
 0x4fa   : > { %5833 = vrot.lane.b32.xlu2 %v5822_v54, %s6255_s29  ;;  %5798 = vrot.lane.b32.xlu1 %v5792_v34, %s6253_s27  ;;  %v5842_v34 = vpack.i.bf16 %v9165_v50, %v9160_v26 }
 0x4fd   : > { %5843 = vrot.lane.b32.xlu0 %v5842_v34, %s6259_s14 }
 0x502   : > { %5838 = vrot.lane.b32.xlu2 %v5822_v54, %s6258_s12  ;;  %5803 = vrot.lane.b32.xlu1 %v5807_v53, %s6252_s26  ;;  %v5892_v53 = vpack.i.bf16 %v9128_v51, %v9165_v50  ;;  %v1542_v54 = vld [vmem:[%s11714_s9 + $0x48] sm:$0xf] }
 0x505   : > { %5853 = vrot.lane.b32.xlu0 %v5842_v34, %s6256_s30 }
 0x50a   : > { %5858 = vrot.lane.b32.xlu1 %v5842_v34, %s6252_s26  ;;  %5848 = vrot.lane.b32.xlu2 %v5842_v34, %s6253_s27 }
 0x50d   : > { %2658 = vrot.lane.b32.xlu0 %v9160_v26, %s6254_s28 }
 0x512   : > { %5863 = vrot.lane.b32.xlu1 %v5842_v34, %s6257_s11  ;;  %5868 = vrot.lane.b32.xlu2 %v5842_v34, %s6255_s29 }
 0x515   : > { %5873 = vrot.lane.b32.xlu0 %v5842_v34, %s6258_s12  ;;  %v2065_v34 = vld [vmem:[%s11714_s9 + $0x68] sm:$0xf] }
 0x51a   : > { %5878 = vrot.lane.b32.xlu1 %v5877_v41, %s6259_s14  ;;  %5883 = vrot.lane.b32.xlu2 %v5877_v41, %s6253_s27 }
 0x51d   : > { %5888 = vrot.lane.b32.xlu0 %v5877_v41, %s6252_s26 }
 0x522   : > { %5893 = vrot.lane.b32.xlu1 %v5892_v53, %s6254_s28  ;;  %2652 = vrot.lane.b32.xlu2 %v9133_v9, %s6254_s28  ;;  %v2611_v53 = vld [vmem:[%s11714_s9 + $0x88] sm:$0xff] }
 0x525   : > { %1995 = vperm.xlu0 %5299, %v1542_v54  }
 0x52a   : > { %1448 = vperm.xlu1 %5445, %v746_v57   ;;  %2021 = vperm.xlu2 %5446, %v1544_v37   ;;  %v2067_v57 = vld [vmem:[%s11714_s9 + $0x78] sm:$0xf] }
 0x52c   : > { %v9199_v42 = vpop.permute.xlu2 %5748 }
 0x52d   : > { %2517 = vperm.xlu0 %5299, %v2065_v34   ;;  %v12146_v27 = vunpack.i.l.bf16 %v9199_v42 }
 0x532   : > { %3042 = vperm.xlu1 %5445, %v2610_v49   ;;  %1474 = vperm.xlu2 %5446, %v748_v7  }
 0x534   : > { %v9210_v41 = vpop.permute.xlu2 %5793 }
 0x535   : > { %2543 = vperm.xlu0 %5299, %v2067_v57  }
 0x53a   : > { %3055 = vperm.xlu1 %5445, %v2611_v53  }
 0x53c   : > { %v9218_v37 = vpop.permute.xlu2 %5808 }
 0x53d   : > { %v5811_v6 = vunpack.i.h.bf16 %v9218_v37  ;;  %v5810_v62 = vunpack.i.l.bf16 %v9218_v37 }
 0x53f   : > { %v5764_v34 = vpop.permute.xlu0 %5763 }
 0x540   : > { %v5766_v30 = vunpack.i.h.bf16 %v5764_v34  ;;  %v5765_v25 = vunpack.i.l.bf16 %v5764_v34 }
 0x542   : > { %v2856_v53 = vsel %vm13185_vm11, %v5765_v25, %v5766_v30 }
 0x543   : > { %v2862_v34 = vsel %vm13191_vm12, %v2856_v53, 0.0 }
 0x544   : > { %v9220_v54 = vpop.permute.xlu1 %5743  ;;  %v9222_v13 = vpop.permute.xlu2 %5818  ;;  %v2902_v47 = vpack.c.bf16 %v2862_v34, %v2862_v34  ;;  %v13198_v34 = vld [vmem:[#allocation46_spill] sm:$0xff] }
 0x545   : > { %v5746_v49 = vunpack.i.h.bf16 %v9220_v54  ;;  %v12144_v7 = vunpack.i.l.bf16 %v9220_v54  ;;  %vm13199_vm12 = vnez %v13198_v34 }
 0x547   : > { %v2858_v32 = vsel %vm13184_vm1, %v12144_v7, %v5746_v49  ;;  %v2857_v57 = vsel %vm13186_vm0, %v5746_v49, %v5765_v25  ;;  %v5751_v7 = vunpack.i.h.bf16 %v9199_v42  ;;  %vm13192_vm1 = vcmask 1043456  }
 0x548   : > { %v2860_v11 = vsel %vm13188_vm7, %v2858_v32, 0.0  ;;  %v2861_v28 = vsel %vm13005_vm15, %v2857_v57, 0.0  ;;  %vm13193_vm11 = vmmov %vm13192_vm1  ;;  %v9252_v57 = vpop.permute.xlu0 %5768  ;;  %vm13201_vm7 = vnez %v13200_v60  ;;  %vm13202_vm15 = vcmask 1043456   ;;  %v13204_v60 = vld [vmem:[#allocation89_spill] sm:$0xff] }
 0x549   : > { %v2900_v19 = vpack.c.bf16 %v2860_v11, %v2860_v11  ;;  %v2901_v55 = vpack.c.bf16 %v2861_v28, %v2861_v28  ;;  %vm13194_vm0 = vmmov %vm13192_vm1 }
 0x54a   : > { %v2919_v11 = vsel %vm13194_vm0, %v2902_v47, 0  ;;  %vm13197_vm0 = vcmp.lt.s32.totalorder %v6480_v14, 111 }
 0x54b   : > { %v2913_v2 = vsel %vm13192_vm1, %v2900_v19, 0  ;;  %v2916_v32 = vsel %vm13193_vm11, %v2901_v55, 0  ;;  %2965 = vmatpush.bf16.msra.mxu2 %v2919_v11  ;;  %vm13195_vm1 = vcmp.lt.s32.totalorder %v6480_v14, 113  ;;  %vm13196_vm11 = vcmp.lt.s32.totalorder %v6480_v14, 112 }
 0x54c   : > { %v9243_v45 = vpop.permute.xlu1 %5753  ;;  %2939 = vmatpush.bf16.msrb.mxu0 %v2913_v2  ;;  %v9245_v25 = vpop.permute.xlu2 %5823  ;;  %2952 = vmatpush.bf16.msra.mxu1 %v2916_v32  ;;  %v2794_v19 = vsel %vm13195_vm1, %v12146_v27, %v5751_v7  ;;  %vm13203_vm1 = vcmp.lt.s32.totalorder %v6480_v14, 127 }
 0x54d   : > { %v5756_v49 = vunpack.i.h.bf16 %v9243_v45  ;;  %v12147_v28 = vunpack.i.l.bf16 %v9243_v45  ;;  %v12148_v53 = vunpack.i.l.bf16 %v9245_v25 }
 0x54f   : > { %v2826_v55 = vsel %vm13196_vm11, %v12147_v28, %v5756_v49  ;;  %v2855_v47 = vsel %vm13197_vm0, %v5766_v30, %v12148_v53  ;;  %vm13208_vm0 = vcmp.lt.s32.totalorder %v6480_v14, 112 }
 0x550   : > { %v4945_v2 = vpack.c.bf16 %v2826_v55, %v2794_v19  ;;  %v2863_v32 = vsel %vm13199_vm12, %v2855_v47, 0.0  ;;  %v5779_v29 = vpop.permute.xlu0 %5778  ;;  %v5771_v47 = vunpack.i.h.bf16 %v9252_v57 }
 0x551   : > { %v2903_v11 = vpack.c.bf16 %v2863_v32, %v2863_v32  ;;  %v5781_v32 = vunpack.i.h.bf16 %v5779_v29 }
 0x552   : > { %4946 = vmatpush.bf16.msk.msrb.mxu0 %vm13201_vm7, %v4945_v2  ;;  %vm13205_vm7 = vnez %v13204_v60 }
 0x553   : > { %v2922_v27 = vsel %vm13202_vm15, %v2903_v11, 0  ;;  %v5780_v11 = vunpack.i.l.bf16 %v5779_v29  ;;  %vm13206_vm15 = vcmp.lt.s32.totalorder %v6480_v14, 113 }
 0x554   : > { %v9271_v46 = vpop.permute.xlu1 %5758  ;;  %2978 = vmatpush.bf16.msrb.mxu3 %v2922_v27  ;;  %v9280_v55 = vpop.permute.xlu2 %5833  ;;  %v5770_v27 = vunpack.i.l.bf16 %v9252_v57  ;;  %vm13207_vm11 = vmmov %vm13206_vm15 }
 0x555   : > { %v5761_v28 = vunpack.i.h.bf16 %v9271_v46  ;;  %v12149_v15 = vunpack.i.l.bf16 %v9271_v46  ;;  %v13281_v4 = vunpack.i.l.bf16 %v9280_v55 }
 0x557   : > { %v2762_v30 = vsel %vm13203_vm1, %v12149_v15, %v5761_v28  ;;  %v2792_v15 = vsel %vm13206_vm15, %v5770_v27, %v5771_v47  ;;  %vm13209_vm1 = vmmov %vm13208_vm0  ;;  %vm13219_vm15 = vcmp.lt.s32.totalorder %v6480_v14, 1 }
 0x558   : > { %v4948_v19 = vpack.c.bf16 %v2762_v30, %v9066_v22  ;;  %v9286_v35 = vpop.permute.xlu0 %5783  ;;  %v2793_v22 = vsel %vm13207_vm11, %v5751_v7, %v5770_v27 }
 0x559   : > { %v5786_v27 = vunpack.i.h.bf16 %v9286_v35 }
 0x55a   : > { %4949 = vmatpush.bf16.msk.msrb.mxu0 %vm13205_vm7, %v4948_v19  ;;  %vm13210_vm7 = vcmp.lt.s32.totalorder %v6480_v14, 127 }
 0x55b   : > { %v2760_v29 = vsel %vm13210_vm7, %v5780_v11, %v5781_v32  ;;  %vm13211_vm12 = vmmov %vm13210_vm7  ;;  %vm13224_vm7 = vcmp.lt.s32.totalorder %v6480_v14, 112 }
 0x55c   : > { %v5774_v2 = vpop.permute.xlu1 %5773  ;;  %v9300_v56 = vpop.permute.xlu2 %5838 }
 0x55d   : > { %v5776_v53 = vunpack.i.h.bf16 %v5774_v2  ;;  %v5775_v34 = vunpack.i.l.bf16 %v5774_v2  ;;  %v2761_v2 = vsel %vm13211_vm12, %v5761_v28, %v5780_v11  ;;  %v13214_v11 = vld [vmem:[#allocation90_spill] sm:$0xff] }
 0x55e   : > { %vm13215_vm12 = vnez %v13214_v11 }
 0x55f   : > { %v2824_v30 = vsel %vm13208_vm0, %v5775_v34, %v5776_v53  ;;  %v2825_v19 = vsel %vm13209_vm1, %v5756_v49, %v5775_v34  ;;  %v5785_v49 = vunpack.i.l.bf16 %v9286_v35  ;;  %v4974_v34 = vpack.c.bf16 %v2760_v29, %v9076_v52  ;;  %vm13223_vm1 = vmmov %vm13219_vm15 }
 0x560   : > { %v4958_v57 = vpack.c.bf16 %v2825_v19, %v2793_v22  ;;  %v4971_v60 = vpack.c.bf16 %v2824_v30, %v2792_v15  ;;  %v4961_v15 = vpack.c.bf16 %v2761_v2, %v9071_v21  ;;  %v9310_v28 = vpop.permute.xlu0 %5813  ;;  %v5795_v2 = vunpack.i.l.bf16 %v9210_v41 }
 0x562   : > { %4959 = vmatpush.bf16.msk.msra.mxu1 %vm13020_vm14, %v4958_v57  ;;  %4972 = vmatpush.bf16.msk.msra.mxu2 %vm13022_vm9, %v4971_v60  ;;  %vm13217_vm14 = vnez %v13216_v38  ;;  %vm13218_vm9 = vcmp.lt.s32.totalorder %v6480_v14, 15  ;;  %v13220_v60 = vld [vmem:[#allocation99_spill] sm:$0xff] }
 0x563   : > { %v2697_v57 = vsel %vm13218_vm9, %v5785_v49, %v5786_v27  ;;  %vm13221_vm11 = vnez %v13220_v60  ;;  %vm13222_vm0 = vmmov %vm13218_vm9  ;;  %vm13228_vm9 = vnez %v12807_v1 }
 0x564   : > { %v5789_v22 = vpop.permute.xlu1 %5788  ;;  %v9322_v52 = vpop.permute.xlu2 %5848  ;;  %v2698_v38 = vsel %vm13222_vm0, %v5795_v2, %v5785_v49  ;;  %v13226_v49 = vunpack.i.l.bf16 %v9300_v56  ;;  %vm13232_vm0 = vmmov %vm13223_vm1 }
 0x565   : > { %v5791_v30 = vunpack.i.h.bf16 %v5789_v22  ;;  %v5790_v19 = vunpack.i.l.bf16 %v5789_v22 }
 0x566   : > { %4962 = vmatpush.bf16.msk.msra.mxu1 %vm13215_vm12, %v4961_v15  ;;  %4975 = vmatpush.bf16.msk.msra.mxu2 %vm13217_vm14, %v4974_v34  ;;  %v12150_v34 = vunpack.i.l.bf16 %v9280_v55  ;;  %vm13225_vm12 = vcmp.lt.s32.totalorder %v6480_v14, 113  ;;  %vm13227_vm14 = vcmp.lt.s32.totalorder %v6480_v14, 127 }
 0x567   : > { %v2729_v35 = vsel %vm13219_vm15, %v5790_v19, %v5791_v30 }
 0x568   : > { %v4977_v21 = vpack.c.bf16 %v2729_v35, %v2697_v57  ;;  %v9328_v15 = vpop.permute.xlu0 %5828  ;;  %v2823_v35 = vsel %vm13224_vm7, %v5776_v53, %v12150_v34  ;;  %v12153_v53 = vunpack.i.l.bf16 %v9222_v13  ;;  %vm13234_vm7 = vcmp.lt.s32.totalorder %v6480_v14, 17 }
 0x569   : > { %v12151_v11 = vunpack.i.l.bf16 %v9328_v15 }
 0x56a   : > { %4978 = vmatpush.bf16.msk.msra.mxu2 %vm13221_vm11, %v4977_v21  ;;  %vm13231_vm11 = vcmp.lt.s32.totalorder %v6480_v14, 16 }
 0x56b   : > { %v2791_v60 = vsel %vm13225_vm12, %v5771_v47, %v12151_v11  ;;  %v5796_v47 = vunpack.i.h.bf16 %v9210_v41  ;;  %v2665_v1 = vsel %vm13231_vm11, %v5810_v62, %v5811_v6  ;;  %vm13235_vm12 = vmmov %vm13234_vm7 }
 0x56c   : > { %v9324_v29 = vpop.permute.xlu1 %5798  ;;  %v4984_v22 = vpack.c.bf16 %v2823_v35, %v2791_v60  ;;  %v5815_v35 = vunpack.i.l.bf16 %v9310_v28 }
 0x56d   : > { %v5800_v7 = vunpack.i.l.bf16 %v9324_v29  ;;  %v12152_v8 = vunpack.i.h.bf16 %v9324_v29 }
 0x56f   : > { %v2730_v57 = vsel %vm13223_vm1, %v5800_v7, %v5790_v19  ;;  %v2759_v19 = vsel %vm13227_vm14, %v5781_v32, %v13226_v49  ;;  %v9369_v49 = vpop.permute.xlu2 %5868  ;;  %vm13233_vm1 = vmmov %vm13231_vm11 }
 0x570   : > { %v4964_v21 = vpack.c.bf16 %v2730_v57, %v2698_v38  ;;  %v13229_v38 = vld [vmem:[#allocation94_spill] sm:$0xff]  ;;  %v4987_v37 = vpack.c.bf16 %v2759_v19, %v9081_v20  ;;  %v9360_v32 = vpop.permute.xlu0 %5843  ;;  %v2666_v19 = vsel %vm13233_vm1, %v12153_v53, %v5810_v62  ;;  %v5816_v62 = vunpack.i.h.bf16 %v9310_v28 }
 0x571   : > { %vm13230_vm15 = vnez %v13229_v38  ;;  %v5850_v38 = vunpack.i.l.bf16 %v9322_v52  ;;  %vm13243_vm1 = vnez %v12840_v17 }
 0x572   : > { %4965 = vmatpush.bf16.msk.msra.mxu1 %vm13228_vm9, %v4964_v21  ;;  %4985 = vmatpush.bf16.msk.msrb.mxu3 %vm13230_vm15, %v4984_v22  ;;  %v2728_v22 = vsel %vm13232_vm0, %v5791_v30, %v12152_v8  ;;  %v13236_v30 = vld [vmem:[#allocation97_spill] sm:$0xff]  ;;  %vm13238_vm9 = vcmp.lt.s32.totalorder %v6480_v14, 15  ;;  %vm13239_vm15 = vmmov %vm13232_vm0 }
 0x573   : > { %vm13237_vm14 = vnez %v13236_v30  ;;  %v2696_v8 = vsel %vm13238_vm9, %v5786_v27, %v5796_v47  ;;  %v2731_v20 = vsel %vm13239_vm15, %v5850_v38, %v5800_v7  ;;  %vm13241_vm11 = vmmov %vm13238_vm9  ;;  %vm13248_vm9 = vnez %v13058_v3 }
 0x574   : > { %v5804_v57 = vpop.permute.xlu1 %5803  ;;  %v4990_v48 = vpack.c.bf16 %v2728_v22, %v2696_v8  ;;  %vm13242_vm0 = vmmov %vm13234_vm7  ;;  %v9409_v8 = vld [vmem:[%s11710_s5] sm:$0xf]  ;;  %vm13249_vm15 = vcmask 588800   ;;  %v5871_v3 = vunpack.i.h.bf16 %v9369_v49 }
 0x575   : > { %v5806_v60 = vunpack.i.h.bf16 %v5804_v57  ;;  %v5805_v34 = vunpack.i.l.bf16 %v5804_v57 }
 0x576   : > { %4988 = vmatpush.bf16.msk.msrb.mxu3 %vm13237_vm14, %v4987_v37  ;;  %vm13247_vm14 = vcmp.lt.s32.totalorder %v6480_v14, 16 }
 0x577   : > { %v2633_v57 = vsel %vm13234_vm7, %v5805_v34, %v5806_v60  ;;  %v2634_v11 = vsel %vm13235_vm12, %v5815_v35, %v5805_v34  ;;  %v13240_v34 = vunpack.i.l.bf16 %v9360_v32  ;;  %v2632_v27 = vsel %vm13242_vm0, %v5806_v60, %v5816_v62 }
 0x578   : > { %v4967_v53 = vpack.c.bf16 %v2666_v19, %v2634_v11  ;;  %v4980_v21 = vpack.c.bf16 %v2665_v1, %v2633_v57  ;;  %vm13244_vm7 = vnez %v12846_v43  ;;  %vm13245_vm12 = vnez %v12784_v5  ;;  %v5854_v11 = vpop.permute.xlu0 %5853 }
 0x579   : > { %v2699_v37 = vsel %vm13241_vm11, %v13240_v34, %v5795_v2  ;;  %v13246_v2 = vunpack.i.h.bf16 %v9222_v13  ;;  %vm13250_vm11 = vmmov %vm13249_vm15  ;;  %v5826_v5 = vunpack.i.h.bf16 %v9245_v25  ;;  %vm13251_vm0 = vnez %v12794_v61 }
 0x57a   : > { %v4951_v30 = vpack.c.bf16 %v2731_v20, %v2699_v37  ;;  %4968 = vmatpush.bf16.msk.msra.mxu1 %vm13243_vm1, %v4967_v53  ;;  %4981 = vmatpush.bf16.msk.msra.mxu2 %vm13244_vm7, %v4980_v21  ;;  %v5855_v53 = vunpack.i.l.bf16 %v5854_v11  ;;  %vm13252_vm1 = vcmp.lt.s32.totalorder %v6480_v14, 111  ;;  %v13254_v21 = vunpack.i.l.bf16 %v9220_v54 }
 0x57b   : > { %4991 = vmatpush.bf16.msk.msrb.mxu3 %vm13245_vm12, %v4990_v48  ;;  %v2664_v7 = vsel %vm13247_vm14, %v5811_v6, %v13246_v2  ;;  %v5856_v48 = vunpack.i.h.bf16 %v5854_v11  ;;  %v9429_v6 = vpop.permute.xlu2 %5883  ;;  %vm13253_vm7 = vmmov %vm13252_vm1  ;;  %v13256_v20 = vunpack.i.l.bf16 %v9245_v25  ;;  %v5870_v37 = vunpack.i.l.bf16 %v9369_v49 }
 0x57c   : > { %4952 = vmatpush.bf16.msk.msrb.mxu0 %vm13248_vm9, %v4951_v30  ;;  %v9419_v17 = vpop.permute.xlu1 %5858  ;;  %v4993_v43 = vpack.c.bf16 %v2664_v7, %v2632_v27  ;;  %v2852_v1 = vsel %vm13253_vm7, %v5826_v5, %v5855_v53  ;;  %vm13255_vm12 = vmmov %vm13252_vm1  ;;  %vm13258_vm9 = vnez %v12457_v24  ;;  %v5836_v30 = vunpack.i.h.bf16 %v9280_v55 }
 0x57d   : > { %4969 = vmatmul.msk.bf16.vlgmr.msra.gmra.mxu1 %vm13249_vm15, %v9409_v8  ;;  %4982 = vmatmul.msk.bf16.vlgmr.msra.gmra.mxu2 %vm13250_vm11, %v9409_v8  ;;  %v2853_v60 = vsel %vm13252_vm1, %v5856_v48, %v5826_v5  ;;  %v2859_v22 = vsel %vm13255_vm12, %v5855_v53, %v13254_v21  ;;  %vm13257_vm14 = vmmov %vm13252_vm1  ;;  %vm13259_vm15 = vnez %v12484_v39  ;;  %vm13260_vm11 = vnez %v13073_v0 }
 0x57e   : > { %v2854_v61 = vsel %vm13257_vm14, %v13256_v20, %v5856_v48  ;;  %v2865_v19 = vsel %vm13258_vm9, %v2853_v60, 0.0  ;;  %v2866_v57 = vsel %vm13259_vm15, %v2852_v1, 0.0  ;;  %v2867_v34 = vsel %vm13260_vm11, %v2859_v22, 0.0 }
 0x57f   : > { %4994 = vmatpush.bf16.msk.msrb.mxu3 %vm13251_vm0, %v4993_v43  ;;  %vm13261_vm0 = vcmask 588800   ;;  %v2905_v54 = vpack.c.bf16 %v2865_v19, %v2865_v19  ;;  %v2906_v27 = vpack.c.bf16 %v2866_v57, %v2866_v57  ;;  %v2907_v25 = vpack.c.bf16 %v2867_v34, %v2867_v34 }
 0x580   : > { %v5860_v2 = vunpack.i.l.bf16 %v9419_v17  ;;  %vm13262_vm1 = vcmask 1043456   ;;  %vm13265_vm14 = vnez %v13056_v33  ;;  %v5831_v48 = vunpack.i.h.bf16 %v9328_v15  ;;  %v9460_v1 = vpop.permute.xlu0 %2658 }
 0x581   : > { %v2928_v43 = vsel %vm13262_vm1, %v2905_v54, 0  ;;  %vm13263_vm7 = vmmov %vm13262_vm1  ;;  %v2864_v49 = vsel %vm13265_vm14, %v2854_v61, 0.0  ;;  %v13268_v20 = vunpack.i.l.bf16 %v9243_v45  ;;  %v13270_v61 = vunpack.i.l.bf16 %v9222_v13 }
 0x582   : > { %4995 = vmatmul.msk.bf16.vlgmr.msrb.gmra.mxu3 %vm13261_vm0, %v9409_v8  ;;  %v2931_v11 = vsel %vm13263_vm7, %v2906_v27, 0  ;;  %vm13264_vm12 = vmmov %vm13262_vm1  ;;  %3004 = vmatpush.bf16.msrb.mxu1 %v2928_v43  ;;  %vm13266_vm0 = vcmp.lt.s32.totalorder %v6480_v14, 112  ;;  %vm13272_vm11 = vcmp.lt.s32.totalorder %v6480_v14, 113  ;;  %v13274_v27 = vunpack.i.l.bf16 %v9199_v42 }
 0x583   : > { %v2934_v5 = vsel %vm13264_vm12, %v2907_v25, 0  ;;  %3017 = vmatpush.bf16.msrb.mxu2 %v2931_v11  ;;  %v2821_v21 = vsel %vm13266_vm0, %v5871_v3, %v5836_v30  ;;  %vm13267_vm1 = vmmov %vm13266_vm0  ;;  %vm13271_vm12 = vcmp.lt.s32.totalorder %v6480_v14, 16  ;;  %v2904_v25 = vpack.c.bf16 %v2864_v49, %v2864_v49 }
 0x584   : > { %v5864_v7 = vpop.permute.xlu1 %5863  ;;  %v2820_v22 = vsel %vm13267_vm1, %v5836_v30, %v5870_v37  ;;  %vm13269_vm7 = vmmov %vm13266_vm0  ;;  %v2667_v57 = vsel %vm13271_vm12, %v9460_v1, %v13270_v61  ;;  %3030 = vmatpush.bf16.msra.mxu3 %v2934_v5  ;;  %v2653_v5 = vpop.permute.xlu2 %2652  ;;  %v13277_v42 = vunpack.i.l.bf16 %v9328_v15  ;;  %vm13279_vm12 = vnez %v13082_v44 }
 0x585   : > { %v5866_v53 = vunpack.i.h.bf16 %v5864_v7  ;;  %v5865_v60 = vunpack.i.l.bf16 %v5864_v7  ;;  %v2827_v19 = vsel %vm13269_vm7, %v5870_v37, %v13268_v20  ;;  %vm13273_vm0 = vmmov %vm13272_vm11  ;;  %vm13276_vm7 = vcmp.lt.s32.totalorder %v6480_v14, 17 }
 0x586   : > { %vm13275_vm1 = vmmov %vm13273_vm0  ;;  %v2635_v43 = vsel %vm13276_vm7, %v5860_v2, %v5815_v35  ;;  %v5886_v16 = vunpack.i.h.bf16 %v9429_v6  ;;  %v5885_v20 = vunpack.i.l.bf16 %v9429_v6  ;;  %v5851_v55 = vunpack.i.h.bf16 %v9322_v52 }
 0x587   : > { %v2789_v34 = vsel %vm13272_vm11, %v5866_v53, %v5831_v48  ;;  %v2788_v54 = vsel %vm13273_vm0, %v5831_v48, %v5865_v60  ;;  %v2795_v45 = vsel %vm13275_vm1, %v5865_v60, %v13274_v27  ;;  %v4954_v11 = vpack.c.bf16 %v2667_v57, %v2635_v43  ;;  %vm13278_vm11 = vmmov %vm13273_vm0 }
 0x588   : > { %v5010_v37 = vpack.c.bf16 %v2821_v21, %v2789_v34  ;;  %v5023_v30 = vpack.c.bf16 %v2820_v22, %v2788_v54  ;;  %v5036_v7 = vpack.c.bf16 %v2827_v19, %v2795_v45  ;;  %v2790_v49 = vsel %vm13278_vm11, %v13277_v42, %v5866_v53  ;;  %v5874_v15 = vpop.permute.xlu0 %5873 }
 0x589   : > { %4955 = vmatpush.bf16.msk.msrb.mxu0 %vm13279_vm12, %v4954_v11  ;;  %vm13280_vm0 = vcmask 1043456   ;;  %v5876_v44 = vunpack.i.h.bf16 %v5874_v15  ;;  %v5875_v53 = vunpack.i.l.bf16 %v5874_v15  ;;  %v5841_v22 = vunpack.i.h.bf16 %v9300_v56 }
 0x58a   : > { %5011 = vmatpush.bf16.msk.msrb.mxu1 %vm8233_vm10, %v5010_v37  ;;  %5024 = vmatpush.bf16.msk.msrb.mxu2 %vm8253_vm13, %v5023_v30  ;;  %v2925_v48 = vsel %vm13280_vm0, %v2904_v25, 0  ;;  %vm13282_vm10 = vcmp.lt.s32.totalorder %v6480_v14, 112  ;;  %vm13283_vm13 = vcmask 588800   ;;  %v5846_v61 = vunpack.i.h.bf16 %v9360_v32 }
 0x58b   : > { %5037 = vmatpush.bf16.msk.msra.mxu3 %vm13107_vm6, %v5036_v7  ;;  %v2822_v36 = vsel %vm13282_vm10, %v13281_v4, %v5871_v3  ;;  %vm13284_vm6 = vcmp.lt.s32.totalorder %v6480_v14, 15  ;;  %vm13285_vm1 = vcmp.lt.s32.totalorder %v6480_v14, 127  ;;  %v13286_v34 = vunpack.i.l.bf16 %v9300_v56 }
 0x58c   : > { %v5879_v35 = vpop.permute.xlu1 %5878  ;;  %v4997_v21 = vpack.c.bf16 %v2822_v36, %v2790_v49  ;;  %4956 = vmatmul.msk.bf16.vlgmr.msrb.gmra.mxu0 %vm13283_vm13, %v9409_v8  ;;  %v2757_v57 = vsel %vm13285_vm1, %v5876_v44, %v5841_v22  ;;  %vm13287_vm7 = vmmov %vm13285_vm1  ;;  %v13289_v27 = vunpack.i.l.bf16 %v9271_v46  ;;  %v13291_v56 = vunpack.i.h.bf16 %v9324_v29  ;;  %v9552_v29 = vpop.permute.xlu2 %2021 }
 0x58d   : > { %2991 = vmatpush.bf16.msra.mxu0 %v2925_v48  ;;  %v5881_v60 = vunpack.i.h.bf16 %v5879_v35  ;;  %v5880_v19 = vunpack.i.l.bf16 %v5879_v35  ;;  %v2758_v6 = vsel %vm13287_vm7, %v13286_v34, %v5876_v44  ;;  %vm13288_vm11 = vmmov %vm13285_vm1  ;;  %v5013_v12 = vpack.c.bf16 %v2757_v57, %v9165_v50  ;;  %v13323_v34 = vld [vmem:[#allocation22_spill] sm:$0xff] }
 0x58e   : > { %v2756_v54 = vsel %vm13288_vm11, %v5841_v22, %v5875_v53  ;;  %vm13290_vm12 = vmmov %vm13285_vm1  ;;  %v5861_v50 = vunpack.i.h.bf16 %v9419_v17  ;;  %v13298_v52 = vunpack.i.l.bf16 %v9360_v32  ;;  %vm13300_vm11 = vnez %v12903_v23 }
 0x58f   : > { %v2695_v3 = vsel %vm13284_vm6, %v5796_v47, %v5881_v60  ;;  %v2763_v41 = vsel %vm13290_vm12, %v5875_v53, %v13289_v27  ;;  %v5000_v47 = vpack.c.bf16 %v2758_v6, %v9133_v9  ;;  %v5026_v45 = vpack.c.bf16 %v2756_v54, %v9128_v51  ;;  %vm13294_vm10 = vmmov %vm13284_vm6  ;;  %5014 = vmatpush.bf16.msk.msrb.mxu1 %vm13300_vm11, %v5013_v12 }
 0x590   : > { %v5039_v25 = vpack.c.bf16 %v2763_v41, %v9160_v26  ;;  %v2693_v30 = vsel %vm13294_vm10, %v5846_v61, %v5880_v19  ;;  %vm13295_vm13 = vmmov %vm13284_vm6  ;;  %v13301_v43 = vunpack.i.h.bf16 %v9222_v13  ;;  %vm13302_vm12 = vcmp.lt.s32.totalorder %v6480_v14, 16  ;;  %v5889_v10 = vpop.permute.xlu0 %5888  ;;  %v13325_v41 = vld [vmem:[#allocation3_spill] sm:$0xff] }
 0x591   : > { %4998 = vmatpush.bf16.msk.msra.mxu0 %vm13102_vm2, %v4997_v21  ;;  %vm13292_vm2 = vcmp.lt.s32.totalorder %v6480_v14, 1  ;;  %v2694_v9 = vsel %vm13295_vm13, %v5881_v60, %v5846_v61  ;;  %vm13299_vm7 = vmmov %vm13294_vm10  ;;  %v5891_v23 = vunpack.i.h.bf16 %v5889_v10  ;;  %v5890_v4 = vunpack.i.l.bf16 %v5889_v10  ;;  %v13322_v61 = vld [vmem:[#allocation5_spill] sm:$0xff] }
 0x592   : > { %v2727_v37 = vsel %vm13292_vm2, %v13291_v56, %v5886_v16  ;;  %vm13293_vm0 = vmmov %vm13292_vm2  ;;  %v2663_v11 = vsel %vm13302_vm12, %v13301_v43, %v2653_v5  ;;  %vm13303_vm2 = vnez %v12906_v59  ;;  %5040 = vmatpush.bf16.msk.msra.mxu3 %vm13120_vm8, %v5039_v25  ;;  %vm13307_vm8 = vcmp.lt.s32.totalorder %v6480_v14, 17  ;;  %v13329_v56 = vld [vmem:[#allocation24_spill] sm:$0xff]  ;;  %v13338_v10 = vld [vmem:[#allocation101_spill] sm:$0xff] }
 0x593   : > { %v2724_v46 = vsel %vm13293_vm0, %v5885_v20, %v5850_v38  ;;  %vm13296_vm6 = vmmov %vm13293_vm0  ;;  %v2692_v38 = vsel %vm13299_vm7, %v5880_v19, %v13298_v52  ;;  %v5003_v42 = vpack.c.bf16 %v2727_v37, %v2695_v3  ;;  %5027 = vmatpush.bf16.msk.msrb.mxu2 %vm13303_vm2, %v5026_v45  ;;  %v2630_v31 = vsel %vm13307_vm8, %v5891_v23, %v5861_v50  ;;  %v13328_v45 = vld [vmem:[#allocation6_spill] sm:$0xff] }
 0x594   : > { %v2725_v51 = vsel %vm13296_vm6, %v5851_v55, %v5885_v20  ;;  %vm13297_vm1 = vmmov %vm13293_vm0  ;;  %v5894_v7 = vpop.permute.xlu1 %5893  ;;  %v5042_v36 = vpack.c.bf16 %v2724_v46, %v2692_v38  ;;  %vm13311_vm7 = vnez %v12823_v58  ;;  %vm13312_vm11 = vnez %v12924_v63  ;;  %v13317_v58 = vld [vmem:[#allocation100_spill] sm:$0xff]  ;;  %v9616_v54 = vpop.permute.xlu2 %1474  ;;  %v13333_v52 = vld [vmem:[#allocation34_spill] sm:$0xff] }
 0x595   : > { %v2726_v26 = vsel %vm13297_vm1, %v5886_v16, %v5851_v55  ;;  %5001 = vmatpush.bf16.msk.msra.mxu0 %vm13111_vm4, %v5000_v47  ;;  %v5896_v32 = vunpack.i.h.bf16 %v5894_v7  ;;  %v5895_v49 = vunpack.i.l.bf16 %v5894_v7  ;;  %v5029_v35 = vpack.c.bf16 %v2725_v51, %v2693_v30  ;;  %vm13304_vm4 = vmmov %vm13302_vm12  ;;  %v13327_v47 = vld [vmem:[#allocation2_spill] sm:$0xff]  ;;  %v13330_v46 = vld [vmem:[#allocation36_spill] sm:$0xff] }
 0x596   : > { %v5016_v48 = vpack.c.bf16 %v2726_v26, %v2694_v9  ;;  %vm13305_vm0 = vmmov %vm13304_vm4  ;;  %vm13313_vm12 = vnez %v12930_v40  ;;  %vm13314_vm2 = vnez %v12893_v18  ;;  %v9606_v63 = vshra.s32 %v6480_v14, 8  ;;  %v13320_v40 = vld [vmem:[#allocation82_spill] sm:$0xff]  ;;  %v13321_v18 = vld [vmem:[#allocation76_spill] sm:$0xff] }
 0x597   : > { %v2660_v13 = vsel %vm13304_vm4, %v5896_v32, %v9460_v1  ;;  %v2661_v60 = vsel %vm13305_vm0, %v5895_v49, %v5896_v32  ;;  %vm13306_vm10 = vmmov %vm13305_vm0  ;;  %5030 = vmatpush.bf16.msk.msrb.mxu2 %vm13313_vm12, %v5029_v35  ;;  %5043 = vmatpush.bf16.msk.msra.mxu3 %vm13314_vm2, %v5042_v36  ;;  %vm13318_vm4 = vnez %v13317_v58  ;;  %v9614_v6 = vshra.s32 %v13323_v34, 8  ;;  %v13332_v26 = vld [vmem:[#allocation38_spill] sm:$0xff]  ;;  %v13334_v7 = vld [vmem:[#allocation109_spill] sm:$0xff] }
 0x598   : > { %v2662_v59 = vsel %vm13306_vm10, %v2653_v5, %v5895_v49  ;;  %vm13308_vm13 = vmmov %vm13307_vm8  ;;  %5017 = vmatpush.bf16.msk.msrb.mxu1 %vm13312_vm11, %v5016_v48  ;;  %v1996_v57 = vpop.permute.xlu0 %1995  ;;  %vm13326_vm0 = vnez %v13325_v41  ;;  %v9625_v37 = vshra.s32 %v13329_v56, 8  ;;  %v9628_v30 = vshra.s32 %v13330_v46, 8  ;;  %v13336_v32 = vld [vmem:[#allocation113_spill] sm:$0xff]  ;;  %v13339_v35 = vld [vmem:[#allocation102_spill] sm:$0xff] }
 0x599   : > { %v2631_v15 = vsel %vm13308_vm13, %v5816_v62, %v5891_v23  ;;  %vm13309_vm6 = vmmov %vm13307_vm8  ;;  %5004 = vmatpush.bf16.msk.msra.mxu0 %vm13311_vm7, %v5003_v42  ;;  %v5019_v44 = vpack.c.bf16 %v2662_v59, %v2630_v31  ;;  %v13315_v62 = vld [vmem:[#allocation17_spill] sm:$0xff]  ;;  %v2006_v25 = vmul.f32 %v1996_v57, %v13328_v45  ;;  %v9638_v38 = vshra.s32 %v13333_v52, 8  ;;  %v13344_v58 = vld [vmem:[#allocation103_spill] sm:$0xff] }
 0x59a   : > { %v2628_v21 = vsel %vm13309_vm6, %v5890_v4, %v5860_v2  ;;  %vm13310_vm1 = vmmov %vm13309_vm6  ;;  %v5006_v5 = vpack.c.bf16 %v2663_v11, %v2631_v15  ;;  %v9598_v17 = vshra.s32 %v13315_v62, 8  ;;  %v13316_v2 = vld [vmem:[#allocation23_spill] sm:$0xff]  ;;  %v2007_v43 = vmul.f32 %v1996_v57, %v13334_v7  ;;  %v13335_v11 = vld [vmem:[#allocation114_spill] sm:$0xff] }
 0x59b   : > { %v2629_v1 = vsel %vm13310_vm1, %v5861_v50, %v5890_v4  ;;  %v5045_v53 = vpack.c.bf16 %v2660_v13, %v2628_v21  ;;  %v9601_v22 = vshra.s32 %v13316_v2, 8  ;;  %v9635_v50 = vshra.s32 %v13332_v26, 8  ;;  %v13342_v21 = vld [vmem:[#allocation92_spill] sm:$0xff]  ;;  %v13346_v34 = vld [vmem:[#allocation91_spill] sm:$0xff] }
 0x59c   : > { %v5032_v28 = vpack.c.bf16 %v2661_v60, %v2629_v1  ;;  %v1449_v16 = vpop.permute.xlu1 %1448  ;;  %5020 = vmatpush.bf16.msk.msrb.mxu1 %vm13137_vm5, %v5019_v44  ;;  %vm13331_vm5 = vcmask 588800   ;;  %v2008_v42 = vmul.f32 %v1996_v57, %v13335_v11  ;;  %v2009_v49 = vmul.f32 %v1996_v57, %v13336_v32 }
 0x59d   : > { %5007 = vmatpush.bf16.msk.msra.mxu0 %vm13318_vm4, %v5006_v5  ;;  %v1459_v19 = vmul.f32 %v1449_v16, %v13320_v40  ;;  %v1460_v55 = vmul.f32 %v1449_v16, %v13321_v18  ;;  %v1461_v3 = vmul.f32 %v1449_v16, %v13322_v61  ;;  %5046 = vmatpush.bf16.msk.msra.mxu3 %vm13326_vm0, %v5045_v53  ;;  %vm482_vm10 = vcmp.eq.s32.totalorder %v9606_v63, 1  ;;  %v13343_v5 = vld [vmem:[#allocation95_spill] sm:$0xff] }
 0x59e   : > { %5033 = vmatpush.bf16.msk.msrb.mxu2 %vm13139_vm3, %v5032_v28  ;;  %v1462_v12 = vmul.f32 %v1449_v16, %v13327_v47  ;;  %vm13337_vm3 = vmmov %vm13331_vm5  ;;  %v1463_v48 = vmul.f32 %v1449_v16, %v13338_v10  ;;  %v1464_v23 = vmul.f32 %v1449_v16, %v13339_v35  ;;  %vm483_vm6 = vcmp.eq.s32.totalorder %v9598_v17, 1  ;;  %v13345_v40 = vld [vmem:[#allocation107_spill] sm:$0xff] }
 0x59f   : > { %v1485_v9 = vadd.f32 %v9616_v54, %v1459_v19  ;;  %v1486_v51 = vadd.f32 %v9616_v54, %v1460_v55  ;;  %5021 = vmatmul.msk.bf16.vlgmr.msrb.gmra.mxu1 %vm13337_vm3, %v9409_v8  ;;  %v1487_v4 = vadd.f32 %v9616_v54, %v1461_v3  ;;  %vm13340_vm8 = vmmov %vm13337_vm3  ;;  %v2032_v13 = vadd.f32 %v9552_v29, %v2006_v25 }
 0x5a0   : > { %5008 = vmatmul.msk.bf16.vlgmr.msra.gmra.mxu0 %vm13331_vm5, %v9409_v8  ;;  %vm13341_vm13 = vmmov %vm13337_vm3  ;;  %v1488_v36 = vadd.f32 %v9616_v54, %v1462_v12  ;;  %v2033_v60 = vadd.f32 %v9552_v29, %v2007_v43  ;;  %v2034_v59 = vadd.f32 %v9552_v29, %v2008_v42  ;;  %vm12155_vm1 = vcmp.eq.s32.totalorder %v9601_v22, 1  ;;  %v13347_v12 = vld [vmem:[#allocation98_spill] sm:$0xff] }
 0x5a1   : > { %5034 = vmatmul.msk.bf16.vlgmr.msrb.gmra.mxu2 %vm13340_vm8, %v9409_v8  ;;  %5047 = vmatmul.msk.bf16.vlgmr.msra.gmra.mxu3 %vm13341_vm13, %v9409_v8  ;;  %v1501_v31 = vmax.f32 %v1485_v9, 0.0  ;;  %v1502_v15 = vmax.f32 %v1486_v51, 0.0  ;;  %v2010_v1 = vmul.f32 %v1996_v57, %v13342_v21  ;;  %v2011_v44 = vmul.f32 %v1996_v57, %v13343_v5 }
 0x5a2   : > { %v2035_v8 = vadd.f32 %v9552_v29, %v2009_v49  ;;  %v2048_v28 = vmax.f32 %v2032_v13, 0.0  ;;  %v2049_v53 = vmax.f32 %v2033_v60, 0.0  ;;  %v2050_v62 = vmax.f32 %v2034_v59, 0.0 }
 0x5a3   : > { %vm12156_vm7 = vcmp.eq.s32.totalorder %v9614_v6, 1  ;;  %vm474_vm11 = vcmp.eq.s32.totalorder %v9606_v63, 0  ;;  %vm475_vm12 = vcmp.eq.s32.totalorder %v9598_v17, 0  ;;  %v1503_v2 = vmax.f32 %v1487_v4, 0.0 }
 0x5a4   : > { %v1465_v20 = vmul.f32 %v1449_v16, %v13344_v58  ;;  %v1466_v19 = vmul.f32 %v1449_v16, %v13345_v40  ;;  %v1489_v18 = vadd.f32 %v9616_v54, %v1463_v48  ;;  %v3146_v55 = vrot.slane %v2048_v28, 4 }
 0x5a5   : > { %v3147_v61 = vrot.slane %v2049_v53, 4  ;;  %v3148_v3 = vrot.slane %v2050_v62, 4  ;;  %vm12157_vm2 = vcmp.eq.s32.totalorder %v9625_v37, 1  ;;  %v2012_v27 = vmul.f32 %v1996_v57, %v13346_v34 }
 0x5a6   : > { %v1490_v41 = vadd.f32 %v9616_v54, %v1464_v23  ;;  %v1504_v47 = vmax.f32 %v1488_v36, 0.0  ;;  %v2013_v45 = vmul.f32 %v1996_v57, %v13347_v12  ;;  %v2036_v25 = vadd.f32 %v9552_v29, %v2010_v1 }
 0x5a7   : > { %vm12159_vm4 = vcmp.eq.s32.totalorder %v9628_v30, 1  ;;  %v2037_v16 = vadd.f32 %v9552_v29, %v2011_v44  ;;  %v2038_v56 = vadd.f32 %v9552_v29, %v2012_v27  ;;  %v2051_v46 = vmax.f32 %v2035_v8, 0.0 }
 0x5a8   : > { %vm13348_vm0 = vcmask 1043456   ;;  %v2039_v51 = vadd.f32 %v9552_v29, %v2013_v45  ;;  %v2052_v26 = vmax.f32 %v2036_v25, 0.0  ;;  %vm12161_vm8 = vcmp.eq.s32.totalorder %v9635_v50, 1 }
 0x5a9   : > { %v9677_v9 = vsel %vm13348_vm0, %v1501_v31, %v3146_v55  ;;  %vm13349_vm5 = vmmov %vm13348_vm0  ;;  %v2053_v7 = vmax.f32 %v2037_v16, 0.0  ;;  %v2054_v43 = vmax.f32 %v2038_v56, 0.0  ;;  %v3149_v11 = vrot.slane %v2051_v46, 4 }
 0x5aa   : > { %v9681_v52 = vsel %vm13349_vm5, %v1502_v15, %v3147_v61  ;;  %vm13350_vm3 = vmmov %vm13348_vm0  ;;  %v3352_v42 = vsel %vm482_vm10, %v9677_v9, 0.0  ;;  %v1491_v32 = vadd.f32 %v9616_v54, %v1465_v20  ;;  %v1505_v49 = vmax.f32 %v1489_v18, 0.0 }
 0x5ab   : > { %v9684_v57 = vsel %vm13350_vm3, %v1503_v2, %v3148_v3  ;;  %v3150_v29 = vrot.slane %v2052_v26, 4  ;;  %v3353_v10 = vsel %vm483_vm6, %v9681_v52, 0.0  ;;  %v2055_v48 = vmax.f32 %v2039_v51, 0.0  ;;  %vm13351_vm13 = vmmov %vm13348_vm0 }
 0x5ac   : > { %v3151_v35 = vrot.slane %v2053_v7, 4  ;;  %v9695_v23 = vsel %vm13351_vm13, %v1504_v47, %v3149_v11  ;;  %v3368_v4 = vadd.f32 %v3353_v10, %v3352_v42  ;;  %v1492_v36 = vadd.f32 %v9616_v54, %v1466_v19  ;;  %vm13352_vm5 = vmmov %vm13350_vm3 }
 0x5ad   : > { %v3152_v13 = vrot.slane %v2054_v43, 4  ;;  %v3354_v60 = vsel %vm12155_vm1, %v9684_v57, 0.0  ;;  %vm12158_vm0 = vcmp.eq.s32.totalorder %v9606_v63, 2  ;;  %v1506_v59 = vmax.f32 %v1490_v41, 0.0  ;;  %vm13353_vm13 = vmmov %vm13352_vm5 }
 0x5ae   : > { %v9703_v31 = vsel %vm13352_vm5, %v1505_v49, %v3150_v29  ;;  %v3369_v15 = vadd.f32 %v3368_v4, %v3354_v60  ;;  %vm12160_vm3 = vcmp.eq.s32.totalorder %v9598_v17, 2  ;;  %v1507_v21 = vmax.f32 %v1491_v32, 0.0  ;;  %vm13354_vm1 = vmmov %vm13353_vm13 }
 0x5af   : > { %v3355_v1 = vsel %vm12156_vm7, %v9695_v23, 0.0  ;;  %v3197_v54 = vsel %vm474_vm11, %v9677_v9, 0.0  ;;  %v3198_v5 = vsel %vm475_vm12, %v9681_v52, 0.0  ;;  %v3153_v44 = vrot.slane %v2055_v48, 4 }
 0x5b0   : > { %v9716_v8 = vsel %vm13353_vm13, %v1506_v59, %v3151_v35  ;;  %v3370_v28 = vadd.f32 %v3369_v15, %v3355_v1  ;;  %vm476_vm5 = vcmp.eq.s32.totalorder %v9601_v22, 0  ;;  %v1508_v53 = vmax.f32 %v1492_v36, 0.0 }
 0x5b1   : > { %v9720_v62 = vsel %vm13354_vm1, %v1507_v21, %v3152_v13  ;;  %v3356_v2 = vsel %vm12157_vm2, %v9703_v31, 0.0  ;;  %vm12172_vm7 = vcmp.eq.s32.totalorder %v9614_v6, 0  ;;  %v3213_v20 = vadd.f32 %v3198_v5, %v3197_v54 }
 0x5b2   : > { %v3371_v58 = vadd.f32 %v3370_v28, %v3356_v2  ;;  %v3490_v40 = vsel %vm12158_vm0, %v9677_v9, 0.0  ;;  %v3491_v19 = vsel %vm12160_vm3, %v9681_v52, 0.0  ;;  %vm12162_vm13 = vcmp.eq.s32.totalorder %v9638_v38, 1 }
 0x5b3   : > { %v3357_v18 = vsel %vm12159_vm4, %v9716_v8, 0.0  ;;  %v3199_v55 = vsel %vm476_vm5, %v9684_v57, 0.0  ;;  %vm12163_vm1 = vcmp.eq.s32.totalorder %v9601_v22, 2  ;;  %vm13355_vm2 = vcmask 1043456  }
 0x5b4   : > { %v9741_v61 = vsel %vm13355_vm2, %v1508_v53, %v3153_v44  ;;  %v3372_v3 = vadd.f32 %v3371_v58, %v3357_v18  ;;  %vm12170_vm0 = vcmp.eq.s32.totalorder %v9625_v37, 0  ;;  %v3214_v34 = vadd.f32 %v3213_v20, %v3199_v55  ;;  %v2507_v55 = vpop.f32.mrf.mxu3 }
 0x5b5   : > { %v3358_v27 = vsel %vm12161_vm8, %v9720_v62, 0.0  ;;  %v3200_v41 = vsel %vm12172_vm7, %v9695_v23, 0.0  ;;  %vm12164_vm4 = vcmp.eq.s32.totalorder %v9614_v6, 2  ;;  %v3506_v47 = vadd.f32 %v3491_v19, %v3490_v40  ;;  %v2479_v40 = vpop.f32.mrf.mxu1  ;;  %v2493_v19 = vpop.f32.mrf.mxu2 }
 0x5b6   : > { %v3373_v12 = vadd.f32 %v3372_v3, %v3358_v27  ;;  %vm12165_vm3 = vcmp.eq.s32.totalorder %v9628_v30, 0  ;;  %v3215_v45 = vadd.f32 %v3214_v34, %v3200_v41  ;;  %v3492_v25 = vsel %vm12163_vm1, %v9684_v57, 0.0  ;;  %v2465_v34 = vpop.f32.mrf.mxu0  ;;  %v9825_v27 = vpop.permute.xlu1 %3042 }
 0x5b7   : > { %v3359_v16 = vsel %vm12162_vm13, %v9741_v61, 0.0  ;;  %v3201_v56 = vsel %vm12170_vm0, %v9703_v31, 0.0  ;;  %vm12166_vm2 = vcmp.eq.s32.totalorder %v9625_v37, 2  ;;  %v3507_v46 = vadd.f32 %v3506_v47, %v3492_v25  ;;  %v2518_v41 = vpop.permute.xlu0 %2517 }
 0x5b8   : > { %v3374_v51 = vadd.f32 %v3373_v12, %v3359_v16  ;;  %vm12167_vm8 = vcmp.eq.s32.totalorder %v9635_v50, 0  ;;  %v3216_v26 = vadd.f32 %v3215_v45, %v3201_v56  ;;  %v3493_v7 = vsel %vm12164_vm4, %v9695_v23, 0.0 }
 0x5b9   : > { %v3202_v43 = vsel %vm12165_vm3, %v9716_v8, 0.0  ;;  %v3508_v11 = vadd.f32 %v3507_v46, %v3493_v7  ;;  %vm12169_vm13 = vcmp.eq.s32.totalorder %v9638_v38, 0  ;;  %vm12168_vm1 = vcmp.eq.s32.totalorder %v9628_v30, 2  ;;  %v13356_v46 = vld [vmem:[#allocation105_spill] sm:$0xff] }
 0x5ba   : > { %3375 = vadd.xlane.f32.xlu2 %v3374_v51  ;;  %v3217_v42 = vadd.f32 %v3216_v26, %v3202_v43  ;;  %v3494_v32 = vsel %vm12166_vm2, %v9703_v31, 0.0  ;;  %v3203_v49 = vsel %vm12167_vm8, %v9720_v62, 0.0  ;;  %v3204_v48 = vsel %vm12169_vm13, %v9741_v61, 0.0  ;;  %v13357_v43 = vld [vmem:[#allocation122_spill] sm:$0xff] }
 0x5bb   : > { %v3509_v29 = vadd.f32 %v3508_v11, %v3494_v32  ;;  %v3495_v35 = vsel %vm12168_vm1, %v9716_v8, 0.0  ;;  %vm12176_vm4 = vcmp.eq.s32.totalorder %v9598_v17, 3  ;;  %vm12177_vm3 = vcmp.eq.s32.totalorder %v9606_v63, 3 }
 0x5bc   : > { %v3218_v10 = vadd.f32 %v3217_v42, %v3203_v49  ;;  %vm12171_vm2 = vcmp.eq.s32.totalorder %v9635_v50, 2  ;;  %vm12178_vm8 = vcmp.eq.s32.totalorder %v9601_v22, 3  ;;  %v3628_v13 = vsel %vm12177_vm3, %v9677_v9, 0.0 }
 0x5bd   : > { %v3510_v36 = vadd.f32 %v3509_v29, %v3495_v35  ;;  %v3629_v60 = vsel %vm12176_vm4, %v9681_v52, 0.0  ;;  %v3496_v59 = vsel %vm12171_vm2, %v9720_v62, 0.0  ;;  %vm12173_vm1 = vcmp.eq.s32.totalorder %v9638_v38, 2 }
 0x5be   : > { %v3219_v4 = vadd.f32 %v3218_v10, %v3204_v48  ;;  %vm501_vm13 = vcmp.eq.s32.totalorder %v9614_v6, 3  ;;  %v3644_v21 = vadd.f32 %v3629_v60, %v3628_v13  ;;  %v3630_v1 = vsel %vm12178_vm8, %v9684_v57, 0.0  ;;  %v9829_v16 = vpop.permute.xlu1 %3055  ;;  %v13358_v48 = vld [vmem:[#allocation104_spill] sm:$0xff] }
 0x5bf   : > { %v3511_v15 = vadd.f32 %v3510_v36, %v3496_v59  ;;  %vm502_vm0 = vcmp.eq.s32.totalorder %v9625_v37, 3  ;;  %v3497_v52 = vsel %vm12173_vm1, %v9741_v61, 0.0  ;;  %v3631_v54 = vsel %vm501_vm13, %v9695_v23, 0.0  ;;  %v2544_v56 = vpop.permute.xlu0 %2543 }
 0x5c0   : > { %3220 = vadd.xlane.f32.xlu1 %v3219_v4  ;;  %v3645_v9 = vadd.f32 %v3644_v21, %v3630_v1  ;;  %vm503_vm2 = vcmp.eq.s32.totalorder %v9628_v30, 3  ;;  %v3632_v28 = vsel %vm502_vm0, %v9703_v31, 0.0  ;;  %vm12175_vm7 = vcmp.eq.s32.totalorder %v9635_v50, 3 }
 0x5c1   : > { %v3512_v5 = vadd.f32 %v3511_v15, %v3497_v52  ;;  %v3633_v53 = vsel %vm503_vm2, %v9716_v8, 0.0  ;;  %vm12174_vm1 = vcmp.eq.s32.totalorder %v9638_v38, 3  ;;  %v3634_v23 = vsel %vm12175_vm7, %v9720_v62, 0.0 }
 0x5c2   : > { %v3646_v44 = vadd.f32 %v3645_v9, %v3631_v54  ;;  %v3635_v31 = vsel %vm12174_vm1, %v9741_v61, 0.0  ;;  %v2528_v51 = vmul.f32 %v2518_v41, %v13356_v46  ;;  %v2529_v11 = vmul.f32 %v2518_v41, %v13357_v43  ;;  %v13360_v9 = vld [vmem:[#allocation11_spill] sm:$0xff] }
 0x5c3   : > { %v2530_v35 = vmul.f32 %v2518_v41, %v13358_v48  ;;  %vm13359_vm1 = vcmask 1043456   ;;  %v2531_v52 = vmul.f32 %v2518_v41, %v13360_v9 }
 0x5c4   : > { %v3647_v57 = vadd.f32 %v3646_v44, %v3632_v28  ;;  %v2554_v32 = vadd.f32 %v2544_v56, %v2528_v51  ;;  %v2555_v49 = vadd.f32 %v2544_v56, %v2529_v11  ;;  %vm13361_vm7 = vmmov %vm13359_vm1  ;;  %v2532_v44 = vmul.f32 %v2518_v41, %v2465_v34 }
 0x5c5   : > { %v2556_v59 = vadd.f32 %v2544_v56, %v2530_v35  ;;  %v2534_v51 = vmul.f32 %v2518_v41, %v2493_v19 }
 0x5c6   : > { %v3648_v2 = vadd.f32 %v3647_v57, %v3633_v53  ;;  %v2570_v60 = vmax.f32 %v2554_v32, 0.0  ;;  %v2571_v15 = vmax.f32 %v2555_v49, 0.0  ;;  %v2557_v57 = vadd.f32 %v2544_v56, %v2531_v52 }
 0x5c7   : > { %v2572_v28 = vmax.f32 %v2556_v59, 0.0  ;;  %v2560_v59 = vadd.f32 %v2544_v56, %v2534_v51 }
 0x5c8   : > { %3513 = vadd.xlane.f32.xlu1 %v3512_v5  ;;  %v3649_v58 = vadd.f32 %v3648_v2, %v3634_v23  ;;  %v2558_v23 = vadd.f32 %v2544_v56, %v2532_v44 }
 0x5ca   : > { %v9823_v20 = vadd.f32 %v3649_v58, %v3635_v31  ;;  %v2574_v43 = vmax.f32 %v2558_v23, 0.0 }
 0x5fa   : > { %v2958_v18 = vpop.f32.mrf.mxu1 }
 0x5fb   : > { %v3046_v25 = vmul.f32 %v9825_v27, %v2958_v18 }
 0x5fd   : > { %v9838_v42 = vadd.f32 %v9829_v16, %v3046_v25  ;;  %v2573_v25 = vmax.f32 %v2557_v57, 0.0 }
 0x5ff   : > { %v3067_v36 = vmax.f32 %v9838_v42, 0.0 }
 0x600   : > { %v2971_v3 = vpop.f32.mrf.mxu2 }
 0x601   : > { %v3047_v7 = vmul.f32 %v9825_v27, %v2971_v3  ;;  %v3171_v54 = vsel %vm13361_vm7, %v2571_v15, %v3067_v36  ;;  %vm13362_vm7 = vmmov %vm13359_vm1 }
 0x602   : > { %v2960_v8 = vpop.f32.mrf.mxu1  ;;  %v3206_v58 = vsel %vm475_vm12, %v3171_v54, 0.0  ;;  %v3361_v31 = vsel %vm483_vm6, %v3171_v54, 0.0  ;;  %v3637_v32 = vsel %vm12176_vm4, %v3171_v54, 0.0  ;;  %vm13366_vm4 = vcmp.eq.s32.totalorder %v9614_v6, 1 }
 0x603   : > { %v9843_v4 = vadd.f32 %v9829_v16, %v3047_v7  ;;  %v2533_v8 = vmul.f32 %v2518_v41, %v2479_v40  ;;  %v2535_v40 = vmul.f32 %v2518_v41, %v2507_v55 }
 0x605   : > { %v2984_v47 = vpop.f32.mrf.mxu3  ;;  %v3068_v1 = vmax.f32 %v9843_v4, 0.0  ;;  %v2561_v44 = vadd.f32 %v2544_v56, %v2535_v40 }
 0x606   : > { %v3048_v13 = vmul.f32 %v9825_v27, %v2984_v47 }
 0x607   : > { %v9869_v18 = vsel %vm13362_vm7, %v2572_v28, %v3068_v1  ;;  %v2577_v40 = vmax.f32 %v2561_v44, 0.0 }
 0x608   : > { %v2973_v12 = vpop.f32.mrf.mxu2  ;;  %v9856_v5 = vadd.f32 %v9829_v16, %v3048_v13  ;;  %v3207_v49 = vsel %vm476_vm5, %v9869_v18, 0.0  ;;  %v3638_v15 = vsel %vm12178_vm8, %v9869_v18, 0.0  ;;  %vm13368_vm8 = vcmp.eq.s32.totalorder %v9625_v37, 0 }
 0x609   : > { %v2945_v62 = vpop.f32.mrf.mxu0 }
 0x60a   : > { %v3045_v45 = vmul.f32 %v9825_v27, %v2945_v62  ;;  %v3069_v34 = vmax.f32 %v9856_v5, 0.0 }
 0x60c   : > { %v9833_v26 = vadd.f32 %v9829_v16, %v3045_v45  ;;  %v9893_v48 = vsel %vm13362_vm7, %v2573_v25, %v3069_v34 }
 0x60d   : > { %v2986_v61 = vpop.f32.mrf.mxu3  ;;  %v3363_v57 = vsel %vm13366_vm4, %v9893_v48, 0.0  ;;  %vm13370_vm4 = vcmask 1043456  }
 0x60e   : > { %v3066_v29 = vmax.f32 %v9833_v26, 0.0  ;;  %v2559_v61 = vadd.f32 %v2544_v56, %v2533_v8  ;;  %v13410_v26 = vld [vmem:[#allocation84_spill] sm:$0xff] }
 0x610   : > { %v3170_v21 = vsel %vm13359_vm1, %v2570_v60, %v3066_v29  ;;  %vm13363_vm1 = vcmp.eq.s32.totalorder %v9601_v22, 1  ;;  %v2575_v52 = vmax.f32 %v2559_v61, 0.0 }
 0x611   : > { %v2947_v10 = vpop.f32.mrf.mxu0  ;;  %v3205_v53 = vsel %vm474_vm11, %v3170_v21, 0.0  ;;  %v3360_v2 = vsel %vm482_vm10, %v3170_v21, 0.0  ;;  %v3636_v7 = vsel %vm12177_vm3, %v3170_v21, 0.0  ;;  %vm13367_vm3 = vcmp.eq.s32.totalorder %v9625_v37, 1 }
 0x612   : > { %v3222_v47 = vadd.f32 %v3206_v58, %v3205_v53  ;;  %v3377_v12 = vadd.f32 %v3361_v31, %v3360_v2  ;;  %v3362_v10 = vsel %vm13363_vm1, %v9869_v18, 0.0  ;;  %v3653_v13 = vadd.f32 %v3637_v32, %v3636_v7  ;;  %vm13364_vm1 = vmmov %vm13362_vm7 }
 0x613   : > { %vm13365_vm7 = vcmp.eq.s32.totalorder %v9614_v6, 0 }
 0x614   : > { %v3378_v41 = vadd.f32 %v3377_v12, %v3362_v10  ;;  %v3223_v35 = vadd.f32 %v3222_v47, %v3207_v49  ;;  %v3208_v28 = vsel %vm13365_vm7, %v9893_v48, 0.0  ;;  %v3654_v25 = vadd.f32 %v3653_v13, %v3638_v15 }
 0x615   : > { %vm13373_vm7 = vcmp.eq.s32.totalorder %v9628_v30, 0 }
 0x616   : > { %v3379_v47 = vadd.f32 %v3378_v41, %v3363_v57  ;;  %v3224_v12 = vadd.f32 %v3223_v35, %v3208_v28 }
 0x61c   : > { %v3010_v45 = vpop.f32.mrf.mxu1 }
 0x61d   : > { %v2997_v3 = vpop.f32.mrf.mxu0  ;;  %v3050_v46 = vmul.f32 %v9825_v27, %v3010_v45 }
 0x61e   : > { %v3049_v62 = vmul.f32 %v9825_v27, %v2997_v3 }
 0x61f   : > { %v9888_v19 = vadd.f32 %v9829_v16, %v3050_v46 }
 0x620   : > { %v9877_v11 = vadd.f32 %v9829_v16, %v3049_v62 }
 0x621   : > { %v3071_v60 = vmax.f32 %v9888_v19, 0.0 }
 0x622   : > { %v3070_v55 = vmax.f32 %v9877_v11, 0.0  ;;  %v13413_v11 = vld [vmem:[#allocation80_spill] sm:$0xff] }
 0x623   : > { %v3175_v45 = vsel %vm13370_vm4, %v2575_v52, %v3071_v60  ;;  %v13414_v19 = vmax.f32 %v13413_v11, 0.0 }
 0x624   : > { %v3174_v9 = vsel %vm13364_vm1, %v2574_v43, %v3070_v55  ;;  %v3023_v53 = vpop.f32.mrf.mxu2  ;;  %v3036_v2 = vpop.f32.mrf.mxu3  ;;  %vm13369_vm1 = vcmp.eq.s32.totalorder %v9606_v63, 2  ;;  %v2576_v43 = vmax.f32 %v2560_v59, 0.0  ;;  %v3210_v41 = vsel %vm13373_vm7, %v3175_v45, 0.0 }
 0x625   : > { %v3364_v23 = vsel %vm13367_vm3, %v3174_v9, 0.0  ;;  %v3209_v58 = vsel %vm13368_vm8, %v3174_v9, 0.0  ;;  %v3051_v31 = vmul.f32 %v9825_v27, %v3023_v53  ;;  %v3052_v56 = vmul.f32 %v9825_v27, %v3036_v2  ;;  %v2999_v3 = vpop.f32.mrf.mxu0  ;;  %v3012_v8 = vpop.f32.mrf.mxu1 }
 0x626   : > { %v3498_v62 = vsel %vm13369_vm1, %v3170_v21, 0.0  ;;  %v3380_v51 = vadd.f32 %v3379_v47, %v3364_v23  ;;  %v3225_v27 = vadd.f32 %v3224_v12, %v3209_v58  ;;  %vm13371_vm8 = vcmp.eq.s32.totalorder %v9598_v17, 2  ;;  %vm13374_vm1 = vmmov %vm13370_vm4 }
 0x627   : > { %v9921_v61 = vadd.f32 %v9829_v16, %v3051_v31  ;;  %v9924_v46 = vadd.f32 %v9829_v16, %v3052_v56  ;;  %v3499_v7 = vsel %vm13371_vm8, %v3171_v54, 0.0  ;;  %v3639_v21 = vsel %vm501_vm13, %v9893_v48, 0.0  ;;  %vm13375_vm4 = vmmov %vm13374_vm1 }
 0x628   : > { %v3515_v32 = vadd.f32 %v3499_v7, %v3498_v62  ;;  %vm13372_vm3 = vcmp.eq.s32.totalorder %v9628_v30, 1  ;;  %v3640_v54 = vsel %vm502_vm0, %v3174_v9, 0.0  ;;  %v3655_v35 = vadd.f32 %v3654_v25, %v3639_v21 }
 0x629   : > { %v3072_v49 = vmax.f32 %v9921_v61, 0.0  ;;  %v3073_v10 = vmax.f32 %v9924_v46, 0.0  ;;  %v3365_v16 = vsel %vm13372_vm3, %v3175_v45, 0.0  ;;  %v3226_v52 = vadd.f32 %v3225_v27, %v3210_v41 }
 0x62a   : > { %v3381_v15 = vadd.f32 %v3380_v51, %v3365_v16  ;;  %vm13376_vm8 = vcmp.eq.s32.totalorder %v9635_v50, 1  ;;  %vm13377_vm3 = vcmp.eq.s32.totalorder %v9635_v50, 0  ;;  %v3656_v58 = vadd.f32 %v3655_v35, %v3640_v54 }
 0x62b   : > { %v3176_v13 = vsel %vm13374_vm1, %v2576_v43, %v3072_v49  ;;  %v3177_v59 = vsel %vm13375_vm4, %v2577_v40, %v3073_v10  ;;  %vm13378_vm7 = vcmp.eq.s32.totalorder %v9601_v22, 2  ;;  %vm13379_vm1 = vcmp.eq.s32.totalorder %v9638_v38, 1 }
 0x62c   : > { %v3025_v44 = vpop.f32.mrf.mxu2  ;;  %v3038_v28 = vpop.f32.mrf.mxu3  ;;  %v3366_v57 = vsel %vm13376_vm8, %v3176_v13, 0.0  ;;  %v3211_v53 = vsel %vm13377_vm3, %v3176_v13, 0.0  ;;  %v3500_v31 = vsel %vm13378_vm7, %v9869_v18, 0.0  ;;  %v3367_v56 = vsel %vm13379_vm1, %v3177_v59, 0.0 }
 0x62d   : > { %v3382_v2 = vadd.f32 %v3381_v15, %v3366_v57  ;;  %v3227_v23 = vadd.f32 %v3226_v52, %v3211_v53  ;;  %vm13380_vm4 = vcmp.eq.s32.totalorder %v9638_v38, 0  ;;  %v3516_v12 = vadd.f32 %v3515_v32, %v3500_v31  ;;  %v3376_v15 = vpop.xlane.xlu2 %3375 }
 0x62e   : > { %v3212_v3 = vsel %vm13380_vm4, %v3177_v59, 0.0  ;;  %v3641_v62 = vsel %vm503_vm2, %v3175_v45, 0.0  ;;  %vm13381_vm8 = vcmp.eq.s32.totalorder %v9635_v50, 3  ;;  %vm13382_vm3 = vcmp.eq.s32.totalorder %v9614_v6, 2 }
 0x62f   : > { %v3383_v8 = vadd.f32 %v3382_v2, %v3367_v56  ;;  %v3228_v47 = vadd.f32 %v3227_v23, %v3212_v3  ;;  %v3642_v25 = vsel %vm13381_vm8, %v3176_v13, 0.0  ;;  %v3657_v51 = vadd.f32 %v3656_v58, %v3641_v62 }
 0x630   : > { %v3501_v18 = vsel %vm13382_vm3, %v9893_v48, 0.0  ;;  %vm13383_vm7 = vcmp.eq.s32.totalorder %v9625_v37, 2  ;;  %vm13384_vm1 = vcmp.eq.s32.totalorder %v9638_v38, 3  ;;  %vm13385_vm4 = vcmp.eq.s32.totalorder %v9628_v30, 2 }
 0x631   : > { %3384 = vadd.xlane.f32.xlu0 %v3383_v8  ;;  %3229 = vadd.xlane.f32.xlu2 %v3228_v47  ;;  %v3502_v27 = vsel %vm13383_vm7, %v3174_v9, 0.0  ;;  %v3658_v7 = vadd.f32 %v3657_v51, %v3642_v25  ;;  %v3517_v43 = vadd.f32 %v3516_v12, %v3501_v18  ;;  %v3643_v21 = vsel %vm13384_vm1, %v3177_v59, 0.0  ;;  %v3178_v51 = vld [vmem:[%s11714_s9 + $0xa0] sm:$0xf] }
 0x632   : > { %v3503_v16 = vsel %vm13385_vm4, %v3175_v45, 0.0  ;;  %vm13386_vm8 = vcmp.eq.s32.totalorder %v9635_v50, 2  ;;  %vm13387_vm3 = vcmp.eq.s32.totalorder %v9638_v38, 2  ;;  %v3386_v57 = vmul.f32 0.00390625, %v3376_v15 }
 0x633   : > { %v3518_v40 = vadd.f32 %v3517_v43, %v3502_v27  ;;  %v3659_v32 = vadd.f32 %v3658_v7, %v3643_v21  ;;  %v3504_v41 = vsel %vm13386_vm8, %v3176_v13, 0.0  ;;  %v3505_v9 = vsel %vm13387_vm3, %v3177_v59, 0.0  ;;  %v3221_v52 = vpop.xlane.xlu1 %3220 }
 0x634   : > { %v3231_v53 = vmul.f32 0.00390625, %v3221_v52  ;;  %vm12179_vm7 = vcmask 130048   ;;  %vm13388_vm1 = vcmask 1041408   ;;  %vm3261_vm4 = vcmask 31744  }
 0x635   : > { %v3519_v48 = vadd.f32 %v3518_v40, %v3503_v16  ;;  %v5280_v16 = vld [vmem:[%s11712_s7] sm:$0xff]  ;;  %vm13389_vm8 = vmmov %vm13388_vm1  ;;  %v3113_v42 = vrot.slane %v3073_v10, 4 }
 0x636   : > { %vm13390_vm3 = vmmov %vm13388_vm1 }
 0x637   : > { %v3520_v54 = vadd.f32 %v3519_v48, %v3504_v41 }
 0x639   : > { %3660 = vadd.xlane.f32.xlu0 %v3659_v32  ;;  %3651 = vadd.xlane.f32.xlu2 %v9823_v20  ;;  %v3521_v35 = vadd.f32 %v3520_v54, %v3505_v9  ;;  %v3233_v20 = vld [vmem:[%s11711_s6] sm:$0x3] }
 0x63b   : > { %v3514_v8 = vpop.xlane.xlu1 %3513 }
 0x63c   : > { %v3524_v12 = vmul.f32 0.00390625, %v3514_v8 }
 0x641   : > { %3522 = vadd.xlane.f32.xlu2 %v3521_v35 }
 0x6a4   : > { %v3385_v44 = vpop.xlane.xlu0 %3384  ;;  %v3230_v28 = vpop.xlane.xlu2 %3229 }
 0x6a5   : > { %v3387_v45 = vmul.f32 0.00390625, %v3385_v44  ;;  %v3232_v2 = vmul.f32 0.00390625, %v3230_v28 }
 0x6a7   : > { %v3388_v23 = vpack.c.bf16 %v3387_v45, %v3386_v57  ;;  %v3234_v13 = vpack.c.bf16 %v3232_v2, %v3231_v53 }
 0x6a9   : > { %3246 = vmatpush.bf16.msrb.mxu0 %v3234_v13  ;;  %3396 = vmatpush.bf16.msra.mxu2 %v3388_v23 }
 0x6ac   : > { %5054 = vmatmul.msk.bf16.vlgmr.msra.gmra.mxu2 %vm12179_vm7, %v3233_v20  ;;  %v3661_v59 = vpop.xlane.xlu0 %3660  ;;  %5048 = vmatmul.msk.bf16.vlgmr.msrb.gmra.mxu0 %vm12179_vm7, %v3233_v20  ;;  %v3652_v58 = vpop.xlane.xlu2 %3651 }
 0x6ad   : > { %v3663_v31 = vmul.f32 0.00390625, %v3661_v59  ;;  %v3662_v56 = vmul.f32 0.00390625, %v3652_v58 }
 0x6af   : > { %v3664_v3 = vpack.c.bf16 %v3663_v31, %v3662_v56  ;;  %v3179_v31 = vld [vmem:[%s11714_s9 + $0xa8] sm:$0xff]  ;;  %v3180_v56 = vld [vmem:[%s11714_s9 + $0xb0] sm:$0xff] }
 0x6b1   : > { %3672 = vmatpush.bf16.msrb.mxu2 %v3664_v3 }
 0x6b4   : > { %v3523_v47 = vpop.xlane.xlu2 %3522 }
 0x6b5   : > { %v3525_v62 = vmul.f32 0.00390625, %v3523_v47 }
 0x6b7   : > { %v3526_v25 = vpack.c.bf16 %v3525_v62, %v3524_v12 }
 0x6b9   : > { %3534 = vmatpush.bf16.msra.mxu0 %v3526_v25 }
 0x6bc   : > { %5056 = vmatmul.msk.bf16.vlgmr.msra.gmra.mxu0 %vm12179_vm7, %v3233_v20  ;;  %5058 = vmatmul.msk.bf16.vlgmr.msrb.gmra.mxu2 %vm12179_vm7, %v3233_v20 }
 0x729   : > { %v3248_v18 = vpop.f32.mrf.mxu0 }
 0x72a   : > { %v3249_v27 = vadd.f32 %v3248_v18, %v3178_v51 }
 0x72c   : > { %v3252_v7 = vmax.f32 %v3249_v27, 0.0 }
 0x72e   : > { %v3255_v43 = vpack.c.bf16 %v3252_v7, %v3252_v7 }
 0x72f   : > { %v3398_v40 = vpop.f32.mrf.mxu2 }
 0x730   : > { %v3399_v21 = vadd.f32 %v3398_v40, %v3178_v51  ;;  %v3266_v32 = vsel %vm13388_vm1, %v3255_v43, 0 }
 0x731   : > { %v3250_v41 = vpop.f32.mrf.mxu0  ;;  %3275 = vmatpush.bf16.msra.mxu1 %v3266_v32 }
 0x732   : > { %v3402_v48 = vmax.f32 %v3399_v21, 0.0 }
 0x734   : > { %v3403_v54 = vpack.c.bf16 %v3402_v48, %v3402_v48  ;;  %5053 = vmatmul.msk.bf16.vlgmr.msra.gmra.mxu1 %vm3261_vm4, %v5280_v16 }
 0x736   : > { %v3405_v9 = vsel %vm13389_vm8, %v3403_v54, 0  ;;  %vm3282_vm8 = vcmask 7168  }
 0x737   : > { %v3400_v35 = vpop.f32.mrf.mxu2  ;;  %3414 = vmatpush.bf16.msrb.mxu3 %v3405_v9 }
 0x739   : > { %v3536_v15 = vpop.f32.mrf.mxu0 }
 0x73a   : > { %v3537_v52 = vadd.f32 %v3536_v15, %v3178_v51  ;;  %5055 = vmatmul.msk.bf16.vlgmr.msrb.gmra.mxu3 %vm3261_vm4, %v5280_v16 }
 0x73c   : > { %v3540_v44 = vmax.f32 %v3537_v52, 0.0 }
 0x73e   : > { %v3541_v28 = vpack.c.bf16 %v3540_v44, %v3540_v44 }
 0x73f   : > { %v3674_v57 = vpop.f32.mrf.mxu2 }
 0x740   : > { %v3675_v53 = vadd.f32 %v3674_v57, %v3178_v51  ;;  %v3543_v45 = vsel %vm13390_vm3, %v3541_v28, 0 }
 0x741   : > { %v3538_v2 = vpop.f32.mrf.mxu0  ;;  %3552 = vmatpush.bf16.msrb.mxu1 %v3543_v45 }
 0x742   : > { %v3678_v23 = vmax.f32 %v3675_v53, 0.0 }
 0x744   : > { %v3679_v13 = vpack.c.bf16 %v3678_v23, %v3678_v23  ;;  %5057 = vmatmul.msk.bf16.vlgmr.msrb.gmra.mxu1 %vm3261_vm4, %v5280_v16 }
 0x746   : > { %v3681_v20 = vsel %vm13388_vm1, %v3679_v13, 0 }
 0x747   : > { %v3676_v59 = vpop.f32.mrf.mxu2  ;;  %3690 = vmatpush.bf16.msra.mxu3 %v3681_v20 }
 0x74a   : > { %5059 = vmatmul.msk.bf16.vlgmr.msra.gmra.mxu3 %vm3261_vm4, %v5280_v16  ;;  %vm13409_vm4 = vcmask 1043456  }
 0x74b   : > { %vm13412_vm3 = vmmov %vm13409_vm4 }
 0x74c   : > { %vm13415_vm1 = vmmov %vm13412_vm3 }
 0x74d   : > { %vm13421_vm7 = vmmov %vm13415_vm1 }
 0x7b1   : > { %v3277_v58 = vpop.f32.mrf.mxu1 }
 0x7b2   : > { %v3278_v3 = vadd.f32 %v3277_v58, %v3179_v31 }
 0x7b4   : > { %v3283_v12 = vsel %vm3282_vm8, %v3278_v3, -inf }
 0x7b9   : > { %v3279_v8 = vpop.f32.mrf.mxu1 }
 0x7ba   : > { %v3280_v47 = vadd.f32 %v3279_v8, %v3180_v56 }
 0x7bc   : > { %v3284_v62 = vsel %vm3282_vm8, %v3280_v47, -inf }
 0x7bd   : > { %v3285_v25 = vmax.f32 %v3283_v12, %v3284_v62  ;;  %v3416_v51 = vpop.f32.mrf.mxu3 }
 0x7be   : > { %v3417_v40 = vadd.f32 %v3416_v51, %v3179_v31 }
 0x7bf   : > { %v3286_v18 = vrot.slane %v3285_v25, 4 }
 0x7c0   : > { %v3421_v48 = vsel %vm3282_vm8, %v3417_v40, -inf }
 0x7c1   : > { %v3287_v27 = vmax.f32 %v3285_v25, %v3286_v18  ;;  %v3554_v7 = vpop.f32.mrf.mxu1 }
 0x7c2   : > { %v3555_v54 = vadd.f32 %v3554_v7, %v3179_v31 }
 0x7c3   : > { %v3288_v43 = vrot.slane %v3287_v27, 2 }
 0x7c4   : > { %v3559_v45 = vsel %vm3282_vm8, %v3555_v54, -inf }
 0x7c5   : > { %v3289_v21 = vmax.f32 %v3287_v27, %v3288_v43  ;;  %v3418_v32 = vpop.f32.mrf.mxu3 }
 0x7c6   : > { %v3419_v16 = vadd.f32 %v3418_v32, %v3180_v56 }
 0x7c7   : > { %v3290_v41 = vrot.slane %v3289_v21, 1 }
 0x7c8   : > { %v3422_v9 = vsel %vm3282_vm8, %v3419_v16, -inf }
 0x7c9   : > { %v3291_v35 = vmax.f32 %v3289_v21, %v3290_v41  ;;  %v3423_v15 = vmax.f32 %v3421_v48, %v3422_v9  ;;  %v3556_v52 = vpop.f32.mrf.mxu1 }
 0x7ca   : > { %v3557_v44 = vadd.f32 %v3556_v52, %v3180_v56 }
 0x7cb   : > { %v3292_v28 = vsub.f32 %v3278_v3, %v3291_v35  ;;  %v3293_v57 = vsub.f32 %v3280_v47, %v3291_v35  ;;  %v3424_v53 = vrot.slane %v3423_v15, 4 }
 0x7cc   : > { %v3560_v2 = vsel %vm3282_vm8, %v3557_v44, -inf }
 0x7cd   : > { %v3294_v23 = vmul.f32 1.442695, %v3292_v28  ;;  %v3296_v13 = vmul.f32 1.442695, %v3293_v57  ;;  %v3425_v20 = vmax.f32 %v3423_v15, %v3424_v53  ;;  %v3561_v59 = vmax.f32 %v3559_v45, %v3560_v2  ;;  %v3692_v58 = vpop.f32.mrf.mxu3 }
 0x7ce   : > { %v3693_v3 = vadd.f32 %v3692_v58, %v3179_v31 }
 0x7cf   : > { %6217 = vpow2.f32 %v3294_v23  ;;  %v3426_v8 = vrot.slane %v3425_v20, 2  ;;  %v3562_v12 = vrot.slane %v3561_v59, 4 }
 0x7d0   : > { %6219 = vpow2.f32 %v3296_v13  ;;  %v3697_v28 = vsel %vm3282_vm8, %v3693_v3, -inf }
 0x7d1   : > { %v3427_v62 = vmax.f32 %v3425_v20, %v3426_v8  ;;  %v3563_v25 = vmax.f32 %v3561_v59, %v3562_v12 }
 0x7d3   : > { %v3428_v51 = vrot.slane %v3427_v62, 1  ;;  %v3564_v18 = vrot.slane %v3563_v25, 2 }
 0x7d5   : > { %v10007_v47 = vpop.eup %6217  ;;  %v3429_v27 = vmax.f32 %v3427_v62, %v3428_v51  ;;  %v3565_v7 = vmax.f32 %v3563_v25, %v3564_v18  ;;  %v3694_v43 = vpop.f32.mrf.mxu3 }
 0x7d6   : > { %v6220_v21 = vpop.eup %6219  ;;  %v3298_v32 = vsel %vm3282_vm8, %v10007_v47, 0.0  ;;  %v3695_v41 = vadd.f32 %v3694_v43, %v3180_v56 }
 0x7d7   : > { %v3299_v48 = vsel %vm3282_vm8, %v6220_v21, 0.0  ;;  %v3430_v9 = vsub.f32 %v3417_v40, %v3429_v27  ;;  %v3431_v35 = vsub.f32 %v3419_v16, %v3429_v27  ;;  %v3566_v15 = vrot.slane %v3565_v7, 1 }
 0x7d8   : > { %v3300_v52 = vadd.f32 %v3299_v48, %v3298_v32  ;;  %v3698_v31 = vsel %vm3282_vm8, %v3695_v41, -inf }
 0x7d9   : > { %v3432_v57 = vmul.f32 1.442695, %v3430_v9  ;;  %v3434_v53 = vmul.f32 1.442695, %v3431_v35  ;;  %v3567_v45 = vmax.f32 %v3565_v7, %v3566_v15  ;;  %v3699_v2 = vmax.f32 %v3697_v28, %v3698_v31 }
 0x7da   : > { %v3301_v23 = vrot.slane %v3300_v52, 4 }
 0x7db   : > { %6221 = vpow2.f32 %v3432_v57  ;;  %v3568_v13 = vsub.f32 %v3555_v54, %v3567_v45  ;;  %v3569_v20 = vsub.f32 %v3557_v44, %v3567_v45  ;;  %v3700_v59 = vrot.slane %v3699_v2, 4 }
 0x7dc   : > { %v3302_v56 = vadd.f32 %v3301_v23, %v3300_v52  ;;  %6223 = vpow2.f32 %v3434_v53 }
 0x7dd   : > { %v3570_v58 = vmul.f32 1.442695, %v3568_v13  ;;  %v3572_v40 = vmul.f32 1.442695, %v3569_v20  ;;  %v3701_v16 = vmax.f32 %v3699_v2, %v3700_v59 }
 0x7de   : > { %v3303_v8 = vrot.slane %v3302_v56, 2 }
 0x7df   : > { %6225 = vpow2.f32 %v3570_v58  ;;  %v3702_v12 = vrot.slane %v3701_v16, 2 }
 0x7e0   : > { %v3304_v62 = vadd.f32 %v3303_v8, %v3302_v56  ;;  %6227 = vpow2.f32 %v3572_v40 }
 0x7e1   : > { %v6222_v25 = vpop.eup %6221  ;;  %v3703_v51 = vmax.f32 %v3701_v16, %v3702_v12 }
 0x7e2   : > { %v6224_v18 = vpop.eup %6223  ;;  %v3436_v27 = vsel %vm3282_vm8, %v6222_v25, 0.0  ;;  %v3305_v7 = vrot.slane %v3304_v62, 1 }
 0x7e3   : > { %v3437_v54 = vsel %vm3282_vm8, %v6224_v18, 0.0  ;;  %v3704_v44 = vrot.slane %v3703_v51, 1 }
 0x7e4   : > { %v3438_v43 = vadd.f32 %v3437_v54, %v3436_v27  ;;  %v3306_v32 = vadd.f32 %v3305_v7, %v3304_v62 }
 0x7e5   : > { %v6226_v48 = vpop.eup %6225  ;;  %v3705_v9 = vmax.f32 %v3703_v51, %v3704_v44 }
 0x7e6   : > { %v6228_v35 = vpop.eup %6227  ;;  %v3439_v15 = vrot.slane %v3438_v43, 4  ;;  %v3574_v52 = vsel %vm3282_vm8, %v6226_v48, 0.0  ;;  %6229 = vrcp.f32 %v3306_v32 }
 0x7e7   : > { %v3575_v28 = vsel %vm3282_vm8, %v6228_v35, 0.0  ;;  %v3706_v31 = vsub.f32 %v3693_v3, %v3705_v9  ;;  %v3707_v57 = vsub.f32 %v3695_v41, %v3705_v9 }
 0x7e8   : > { %v3440_v53 = vadd.f32 %v3439_v15, %v3438_v43  ;;  %v3576_v45 = vadd.f32 %v3575_v28, %v3574_v52 }
 0x7e9   : > { %v3708_v2 = vmul.f32 1.442695, %v3706_v31  ;;  %v3710_v23 = vmul.f32 1.442695, %v3707_v57 }
 0x7ea   : > { %v3441_v13 = vrot.slane %v3440_v53, 2  ;;  %v3577_v20 = vrot.slane %v3576_v45, 4 }
 0x7eb   : > { %6231 = vpow2.f32 %v3708_v2 }
 0x7ec   : > { %v6230_v59 = vpop.eup %6229  ;;  %v3442_v56 = vadd.f32 %v3441_v13, %v3440_v53  ;;  %v3578_v58 = vadd.f32 %v3577_v20, %v3576_v45  ;;  %6233 = vpow2.f32 %v3710_v23 }
 0x7ed   : > { %v3309_v40 = vmul.f32 %v6230_v59, %v6220_v21  ;;  %v3308_v16 = vmul.f32 %v6230_v59, %v10007_v47  ;;  %v13391_v59 = vld [vmem:[#allocation4_spill] sm:$0xff] }
 0x7ee   : > { %v3579_v8 = vrot.slane %v3578_v58, 2  ;;  %v3443_v12 = vrot.slane %v3442_v56, 1 }
 0x7ef   : > { %3317 = vperm.xlu1 %5445, %v3309_v40   ;;  %3312 = vperm.xlu0 %5299, %v3308_v16   ;;  %v13395_v16 = vld [vmem:[#allocation106_spill] sm:$0xff] }
 0x7f0   : > { %v3580_v3 = vadd.f32 %v3579_v8, %v3578_v58  ;;  %v3444_v41 = vadd.f32 %v3443_v12, %v3442_v56  ;;  %v13393_v56 = vld [vmem:[#allocation9_spill] sm:$0xff]  ;;  %v13396_v8 = vmax.f32 %v13395_v16, 0.0  ;;  %v13397_v12 = vld [vmem:[#allocation75_spill] sm:$0xff] }
 0x7f1   : > { %v6232_v62 = vpop.eup %6231  ;;  %v13394_v58 = vmax.f32 %v13393_v56, 0.0 }
 0x7f2   : > { %v6234_v51 = vpop.eup %6233  ;;  %v3712_v27 = vsel %vm3282_vm8, %v6232_v62, 0.0  ;;  %6235 = vrcp.f32 %v3444_v41  ;;  %v3581_v7 = vrot.slane %v3580_v3, 1 }
 0x7f3   : > { %v3713_v54 = vsel %vm3282_vm8, %v6234_v51, 0.0  ;;  %v3085_v40 = vrot.slane %v13394_v58, 4  ;;  %vm13418_vm8 = vmmov %vm13415_vm1  ;;  %v13428_v58 = vld [vmem:[#allocation85_spill] sm:$0xff] }
 0x7f4   : > { %v3714_v44 = vadd.f32 %v3713_v54, %v3712_v27  ;;  %v3582_v43 = vadd.f32 %v3581_v7, %v3580_v3  ;;  %v13398_v3 = vmax.f32 %v13397_v12, 0.0  ;;  %v13401_v54 = vld [vmem:[#allocation77_spill] sm:$0xff] }
 0x7f6   : > { %v3715_v32 = vrot.slane %v3714_v44, 4  ;;  %6237 = vrcp.f32 %v3582_v43  ;;  %v3086_v41 = vrot.slane %v13398_v3, 4  ;;  %v13433_v3 = vld [vmem:[#allocation117_spill] sm:$0xff] }
 0x7f8   : > { %v6236_v21 = vpop.eup %6235  ;;  %v3716_v47 = vadd.f32 %v3715_v32, %v3714_v44  ;;  %v13403_v44 = vld [vmem:[#allocation111_spill] sm:$0xff] }
 0x7f9   : > { %v3446_v9 = vmul.f32 %v6236_v21, %v6222_v25  ;;  %v3447_v15 = vmul.f32 %v6236_v21, %v6224_v18  ;;  %v13392_v25 = vmax.f32 %v13391_v59, 0.0  ;;  %v13404_v43 = vmax.f32 %v13403_v44, 0.0  ;;  %v13405_v21 = vld [vmem:[#allocation74_spill] sm:$0xff] }
 0x7fa   : > { %v3717_v52 = vrot.slane %v3716_v47, 2 }
 0x7fb   : > { %3450 = vperm.xlu2 %5446, %v3446_v9   ;;  %3455 = vperm.xlu0 %5299, %v3447_v15   ;;  %v3082_v18 = vrot.slane %v13392_v25, 4  ;;  %v3087_v32 = vrot.slane %v13404_v43, 4  ;;  %v13425_v25 = vld [vmem:[#allocation79_spill] sm:$0xff]  ;;  %v13442_v43 = vld [vmem:[#allocation112_spill] sm:$0xff] }
 0x7fc   : > { %v6238_v28 = vpop.eup %6237  ;;  %v3718_v31 = vadd.f32 %v3717_v52, %v3716_v47  ;;  %v13406_v47 = vmax.f32 %v13405_v21, 0.0  ;;  %v3107_v52 = vrot.slane %v3067_v36, 4  ;;  %v13407_v36 = vld [vmem:[#allocation7_spill] sm:$0xff] }
 0x7fd   : > { %v3584_v57 = vmul.f32 %v6238_v28, %v6226_v48  ;;  %v3585_v2 = vmul.f32 %v6238_v28, %v6228_v35  ;;  %v3083_v48 = vrot.slane %v13396_v8, 4  ;;  %v13399_v35 = vld [vmem:[#allocation108_spill] sm:$0xff]  ;;  %v3108_v28 = vrot.slane %v3068_v1, 4  ;;  %v13430_v8 = vld [vmem:[#allocation119_spill] sm:$0xff] }
 0x7fe   : > { %v3719_v53 = vrot.slane %v3718_v31, 1  ;;  %v13400_v27 = vmax.f32 %v13399_v35, 0.0  ;;  %v3088_v9 = vrot.slane %v13406_v47, 4  ;;  %v13408_v1 = vmax.f32 %v13407_v36, 0.0  ;;  %v13444_v47 = vld [vmem:[#allocation16_spill] sm:$0xff] }
 0x7ff   : > { %3588 = vperm.xlu1 %5445, %v3584_v57   ;;  %v3106_v57 = vrot.slane %v3066_v29, 4  ;;  %v13411_v29 = vmax.f32 %v13410_v26, 0.0 }
 0x800   : > { %v3720_v45 = vadd.f32 %v3719_v53, %v3718_v31  ;;  %v3084_v7 = vrot.slane %v13400_v27, 4  ;;  %v3109_v31 = vrot.slane %v3069_v34, 4  ;;  %v3110_v53 = vrot.slane %v3070_v55, 4  ;;  %v13436_v27 = vld [vmem:[#allocation120_spill] sm:$0xff] }
 0x801   : > { %v10056_v5 = vsel %vm13409_vm4, %v13408_v1, %v3082_v18  ;;  %v10061_v34 = vsel %vm13412_vm3, %v13411_v29, %v3085_v40  ;;  %v10066_v55 = vsel %vm13415_vm1, %v13414_v19, %v3083_v48  ;;  %vm13424_vm4 = vmmov %vm13415_vm1  ;;  %v13426_v18 = vmax.f32 %v13425_v25, 0.0  ;;  %v13450_v1 = vld [vmem:[#allocation116_spill] sm:$0xff] }
 0x802   : > { %6239 = vrcp.f32 %v3720_v45  ;;  %v3111_v45 = vrot.slane %v3071_v60, 4  ;;  %v13416_v60 = vld [vmem:[#allocation10_spill] sm:$0xff]  ;;  %vm13427_vm3 = vmmov %vm13415_vm1  ;;  %v13429_v40 = vmax.f32 %v13428_v58, 0.0  ;;  %v13431_v48 = vmax.f32 %v13430_v8, 0.0 }
 0x803   : > { %3593 = vperm.xlu0 %5299, %v3585_v2   ;;  %v3112_v2 = vrot.slane %v3072_v49, 4  ;;  %v13417_v61 = vmax.f32 %v13416_v60, 0.0  ;;  %v13419_v49 = vld [vmem:[#allocation78_spill] sm:$0xff]  ;;  %v10086_v56 = vsel %vm13427_vm3, %v13426_v18, %v3087_v32  ;;  %vm13441_vm3 = vmmov %vm13415_vm1  ;;  %v13443_v32 = vmax.f32 %v13442_v43, 0.0 }
 0x804   : > { %v13420_v10 = vmax.f32 %v13419_v49, 0.0  ;;  %v10091_v16 = vsel %vm13415_vm1, %v13429_v40, %v3088_v9  ;;  %v13445_v9 = vmax.f32 %v13444_v47, 0.0  ;;  %v13451_v26 = vmax.f32 %v13450_v1, 0.0 }
 0x805   : > { %v10071_v46 = vsel %vm13418_vm8, %v13417_v61, %v3086_v41  ;;  %vm13432_vm8 = vmmov %vm13415_vm1  ;;  %v13434_v41 = vmax.f32 %v13433_v3, 0.0  ;;  %v10116_v21 = vsel %vm13415_vm1, %v13443_v32, %v3110_v53 }
 0x806   : > { %v10096_v12 = vsel %vm13432_vm8, %v13431_v48, %v3107_v52  ;;  %vm13446_vm8 = vmmov %vm13415_vm1 }
 0x807   : > { %v10121_v52 = vsel %vm13446_vm8, %v13445_v9, %v3111_v45  ;;  %vm13455_vm8 = vcmp.eq.s32.totalorder %v9625_v37, 0 }
 0x808   : > { %v6240_v23 = vpop.eup %6239 }
 0x809   : > { %v3722_v13 = vmul.f32 %v6240_v23, %v6232_v62  ;;  %v3723_v20 = vmul.f32 %v6240_v23, %v6234_v51  ;;  %v13402_v62 = vmax.f32 %v13401_v54, 0.0  ;;  %v10076_v23 = vsel %vm13421_vm7, %v13420_v10, %v3084_v7  ;;  %vm13435_vm7 = vmmov %vm13415_vm1 }
 0x80a   : > { %v10101_v35 = vsel %vm13435_vm7, %v13434_v41, %v3108_v28  ;;  %v13437_v7 = vmax.f32 %v13436_v27, 0.0  ;;  %v13447_v28 = vld [vmem:[#allocation121_spill] sm:$0xff]  ;;  %vm13449_vm7 = vmmov %vm13415_vm1 }
 0x80b   : > { %3726 = vperm.xlu2 %5446, %v3722_v13   ;;  %3731 = vperm.xlu1 %5445, %v3723_v20   ;;  %v3089_v51 = vrot.slane %v13402_v62, 4  ;;  %v13422_v13 = vld [vmem:[#allocation83_spill] sm:$0xff]  ;;  %v13439_v62 = vld [vmem:[#allocation118_spill] sm:$0xff]  ;;  %v13448_v36 = vmax.f32 %v13447_v28, 0.0 }
 0x80c   : > { %v13423_v20 = vmax.f32 %v13422_v13, 0.0 }
 0x80e   : > { %v10081_v59 = vsel %vm13424_vm4, %v13423_v20, %v3089_v51  ;;  %vm13438_vm4 = vmmov %vm13415_vm1  ;;  %v13440_v51 = vmax.f32 %v13439_v62, 0.0 }
 0x80f   : > { %v10106_v54 = vsel %vm13438_vm4, %v13437_v7, %v3109_v31  ;;  %v10126_v31 = vsel %vm13449_vm7, %v13448_v36, %v3112_v2  ;;  %vm13452_vm4 = vmmov %vm13415_vm1  ;;  %vm13456_vm7 = vcmp.eq.s32.totalorder %v9628_v30, 0 }
 0x810   : > { %v10111_v44 = vsel %vm13441_vm3, %v13440_v51, %v3106_v57  ;;  %v10131_v57 = vsel %vm13452_vm4, %v13451_v26, %v3113_v42  ;;  %vm13453_vm3 = vcmp.eq.s32.totalorder %v9614_v6, 0  ;;  %vm13457_vm4 = vcmp.eq.s32.totalorder %v9635_v50, 0 }
 0x811   : > { %vm13454_vm1 = vmmov %vm13453_vm3 }
 0x855   : > { %v3451_v29 = vpop.permute.xlu2 %3450 }
 0x861   : > { %v3313_v15 = vpop.permute.xlu0 %3312  ;;  %v3318_v4 = vpop.permute.xlu1 %3317 }
 0x862   : > { %v3328_v53 = vsel %vm474_vm11, %v3318_v4, 0.0  ;;  %v3329_v11 = vsel %vm475_vm12, %v3318_v4, 0.0  ;;  %v3330_v45 = vsel %vm476_vm5, %v3318_v4, 0.0  ;;  %v3331_v19 = vsel %vm13453_vm3, %v3318_v4, 0.0  ;;  %vm13461_vm3 = vmmov %vm13457_vm4 }
 0x863   : > { %v3320_v2 = vsel %vm474_vm11, %v3313_v15, 0.0  ;;  %v3321_v42 = vsel %vm475_vm12, %v3313_v15, 0.0  ;;  %v3322_v60 = vsel %vm476_vm5, %v3313_v15, 0.0  ;;  %v3323_v61 = vsel %vm13454_vm1, %v3313_v15, 0.0  ;;  %vm13459_vm12 = vmmov %vm13455_vm8 }
 0x864   : > { %v3324_v10 = vsel %vm13455_vm8, %v3313_v15, 0.0  ;;  %v3325_v13 = vsel %vm13456_vm7, %v3313_v15, 0.0  ;;  %v3326_v20 = vsel %vm13457_vm4, %v3313_v15, 0.0  ;;  %vm13458_vm11 = vcmp.eq.s32.totalorder %v9638_v38, 0  ;;  %vm13460_vm5 = vmmov %vm13456_vm7 }
 0x865   : > { %v3327_v25 = vsel %vm13458_vm11, %v3313_v15, 0.0  ;;  %v3332_v18 = vsel %vm13459_vm12, %v3318_v4, 0.0  ;;  %v3333_v58 = vsel %vm13460_vm5, %v3318_v4, 0.0  ;;  %v3334_v40 = vsel %vm13461_vm3, %v3318_v4, 0.0  ;;  %vm13462_vm1 = vmmov %vm13458_vm11 }
 0x866   : > { %v3335_v8 = vsel %vm13462_vm1, %v3318_v4, 0.0  ;;  %v3458_v3 = vsel %vm482_vm10, %v3451_v29, %v3320_v2  ;;  %v3459_v41 = vsel %vm483_vm6, %v3451_v29, %v3321_v42  ;;  %vm13463_vm8 = vcmp.eq.s32.totalorder %v9601_v22, 1 }
 0x867   : > { %v3460_v15 = vsel %vm13463_vm8, %v3451_v29, %v3322_v60  ;;  %vm13464_vm7 = vcmp.eq.s32.totalorder %v9614_v6, 1  ;;  %vm13465_vm4 = vcmp.eq.s32.totalorder %v9625_v37, 1  ;;  %vm13466_vm11 = vcmp.eq.s32.totalorder %v9628_v30, 1 }
 0x868   : > { %v3461_v27 = vsel %vm13464_vm7, %v3451_v29, %v3323_v61  ;;  %v3462_v7 = vsel %vm13465_vm4, %v3451_v29, %v3324_v10  ;;  %v3463_v62 = vsel %vm13466_vm11, %v3451_v29, %v3325_v13  ;;  %vm13467_vm12 = vcmp.eq.s32.totalorder %v9635_v50, 1 }
 0x869   : > { %v3464_v4 = vsel %vm13467_vm12, %v3451_v29, %v3326_v20  ;;  %vm13468_vm5 = vcmp.eq.s32.totalorder %v9638_v38, 1  ;;  %vm13469_vm3 = vcmp.eq.s32.totalorder %v9606_v63, 2  ;;  %vm13470_vm1 = vcmp.eq.s32.totalorder %v9598_v17, 2 }
 0x86a   : > { %v3465_v51 = vsel %vm13468_vm5, %v3451_v29, %v3327_v25  ;;  %vm13471_vm8 = vcmp.eq.s32.totalorder %v9601_v22, 2  ;;  %vm13472_vm7 = vcmp.eq.s32.totalorder %v9614_v6, 2  ;;  %vm13473_vm4 = vcmp.eq.s32.totalorder %v9625_v37, 2  ;;  %v3727_v29 = vpop.permute.xlu2 %3726 }
 0x86b   : > { %vm13474_vm11 = vcmp.eq.s32.totalorder %v9628_v30, 2  ;;  %vm13475_vm12 = vcmp.eq.s32.totalorder %v9635_v50, 2  ;;  %vm13476_vm5 = vcmp.eq.s32.totalorder %v9638_v38, 2 }
 0x86d   : > { %v3456_v49 = vpop.permute.xlu0 %3455 }
 0x86e   : > { %v3466_v2 = vsel %vm482_vm10, %v3456_v49, %v3328_v53  ;;  %v3467_v42 = vsel %vm483_vm6, %v3456_v49, %v3329_v11  ;;  %vm13482_vm10 = vcmp.eq.s32.totalorder %v9635_v50, 3  ;;  %vm13483_vm6 = vcmp.eq.s32.totalorder %v9638_v38, 3 }
 0x871   : > { %v3589_v48 = vpop.permute.xlu1 %3588 }
 0x872   : > { %v3596_v43 = vsel %vm13469_vm3, %v3589_v48, %v3458_v3  ;;  %v3597_v32 = vsel %vm13470_vm1, %v3589_v48, %v3459_v41  ;;  %v3598_v47 = vsel %vm13471_vm8, %v3589_v48, %v3460_v15  ;;  %v3599_v9 = vsel %vm13472_vm7, %v3589_v48, %v3461_v27 }
 0x873   : > { %v3600_v28 = vsel %vm13473_vm4, %v3589_v48, %v3462_v7  ;;  %v3601_v36 = vsel %vm13474_vm11, %v3589_v48, %v3463_v62  ;;  %v3602_v1 = vsel %vm13475_vm12, %v3589_v48, %v3464_v4  ;;  %v3603_v26 = vsel %vm13476_vm5, %v3589_v48, %v3465_v51 }
 0x874   : > { %vm13477_vm3 = vcmp.eq.s32.totalorder %v9601_v22, 1  ;;  %vm13478_vm1 = vcmp.eq.s32.totalorder %v9614_v6, 1  ;;  %vm13479_vm8 = vcmp.eq.s32.totalorder %v9606_v63, 3  ;;  %vm13480_vm7 = vcmp.eq.s32.totalorder %v9598_v17, 3 }
 0x875   : > { %v3468_v60 = vsel %vm13477_vm3, %v3456_v49, %v3330_v45  ;;  %v3469_v61 = vsel %vm13478_vm1, %v3456_v49, %v3331_v19  ;;  %v3734_v10 = vsel %vm13479_vm8, %v3727_v29, %v3596_v43  ;;  %v3735_v13 = vsel %vm13480_vm7, %v3727_v29, %v3597_v32  ;;  %v3594_v27 = vpop.permute.xlu0 %3593 }
 0x876   : > { %vm13481_vm4 = vcmp.eq.s32.totalorder %v9601_v22, 3  ;;  %v3737_v53 = vsel %vm501_vm13, %v3727_v29, %v3599_v9  ;;  %v3738_v11 = vsel %vm502_vm0, %v3727_v29, %v3600_v28  ;;  %v3739_v45 = vsel %vm503_vm2, %v3727_v29, %v3601_v36 }
 0x877   : > { %v3736_v20 = vsel %vm13481_vm4, %v3727_v29, %v3598_v47  ;;  %v3740_v19 = vsel %vm13482_vm10, %v3727_v29, %v3602_v1  ;;  %v3741_v25 = vsel %vm13483_vm6, %v3727_v29, %v3603_v26  ;;  %vm13484_vm11 = vcmp.eq.s32.totalorder %v9625_v37, 1 }
 0x878   : > { %v3470_v48 = vsel %vm13484_vm11, %v3456_v49, %v3332_v18  ;;  %vm13485_vm12 = vcmp.eq.s32.totalorder %v9628_v30, 1  ;;  %vm13486_vm5 = vcmp.eq.s32.totalorder %v9635_v50, 1  ;;  %vm13487_vm3 = vcmp.eq.s32.totalorder %v9638_v38, 1 }
 0x879   : > { %v3471_v3 = vsel %vm13485_vm12, %v3456_v49, %v3333_v58  ;;  %v3472_v41 = vsel %vm13486_vm5, %v3456_v49, %v3334_v40  ;;  %v3473_v15 = vsel %vm13487_vm3, %v3456_v49, %v3335_v8  ;;  %v10230_v7 = vmul.f32 %v3734_v10, %v10056_v5 }
 0x87a   : > { %v10233_v62 = vmul.f32 %v3735_v13, %v10066_v55  ;;  %v10236_v4 = vmul.f32 %v3736_v20, %v10076_v23  ;;  %v10239_v18 = vmul.f32 %v3737_v53, %v10061_v34  ;;  %v10242_v58 = vmul.f32 %v3738_v11, %v10071_v46 }
 0x87b   : > { %v10245_v40 = vmul.f32 %v3739_v45, %v10086_v56  ;;  %v10248_v49 = vmul.f32 %v3740_v19, %v10091_v16  ;;  %v10251_v5 = vmul.f32 %v3741_v25, %v10081_v59  ;;  %vm13491_vm1 = vcmp.eq.s32.totalorder %v9606_v63, 2 }
 0x87c   : > { %v3604_v55 = vsel %vm13491_vm1, %v3594_v27, %v3466_v2  ;;  %vm13492_vm8 = vcmp.eq.s32.totalorder %v9598_v17, 2  ;;  %vm13493_vm7 = vcmp.eq.s32.totalorder %v9601_v22, 2  ;;  %vm13494_vm4 = vcmp.eq.s32.totalorder %v9614_v6, 2 }
 0x87d   : > { %13488 = vst [vmem:[#allocation115_spill] sm:$0xff] %v10245_v40  ;;  %v3605_v23 = vsel %vm13492_vm8, %v3594_v27, %v3467_v42  ;;  %v3606_v34 = vsel %vm13493_vm7, %v3594_v27, %v3468_v60  ;;  %v3607_v46 = vsel %vm13494_vm4, %v3594_v27, %v3469_v61  ;;  %vm13495_vm10 = vcmp.eq.s32.totalorder %v9625_v37, 2  ;;  %v3732_v51 = vpop.permute.xlu1 %3731 }
 0x87e   : > { %13489 = vst [vmem:[#allocation110_spill] sm:$0xff] %v10248_v49  ;;  %v3608_v56 = vsel %vm13495_vm10, %v3594_v27, %v3470_v48  ;;  %vm13496_vm6 = vcmp.eq.s32.totalorder %v9628_v30, 2  ;;  %vm13497_vm11 = vcmp.eq.s32.totalorder %v9635_v50, 2  ;;  %vm13498_vm12 = vcmp.eq.s32.totalorder %v9638_v38, 2 }
 0x87f   : > { %13490 = vst [vmem:[#allocation87_spill] sm:$0xff] %v10251_v5  ;;  %v3609_v16 = vsel %vm13496_vm6, %v3594_v27, %v3471_v3  ;;  %v3610_v59 = vsel %vm13497_vm11, %v3594_v27, %v3472_v41  ;;  %v3611_v8 = vsel %vm13498_vm12, %v3594_v27, %v3473_v15  ;;  %vm13499_vm5 = vcmp.eq.s32.totalorder %v9606_v63, 3 }
 0x880   : > { %v3742_v43 = vsel %vm13499_vm5, %v3732_v51, %v3604_v55  ;;  %vm13500_vm3 = vcmp.eq.s32.totalorder %v9598_v17, 3  ;;  %vm13501_vm1 = vcmp.eq.s32.totalorder %v9601_v22, 3  ;;  %v3745_v9 = vsel %vm501_vm13, %v3732_v51, %v3607_v46 }
 0x881   : > { %v3743_v32 = vsel %vm13500_vm3, %v3732_v51, %v3605_v23  ;;  %v3744_v47 = vsel %vm13501_vm1, %v3732_v51, %v3606_v34  ;;  %v3746_v28 = vsel %vm502_vm0, %v3732_v51, %v3608_v56  ;;  %v3747_v36 = vsel %vm503_vm2, %v3732_v51, %v3609_v16 }
 0x882   : > { %vm13502_vm8 = vcmp.eq.s32.totalorder %v9635_v50, 3  ;;  %vm13503_vm7 = vcmp.eq.s32.totalorder %v9638_v38, 3  ;;  %v10286_v17 = vmul.f32 %v3742_v43, %v10111_v44  ;;  %v10289_v22 = vmul.f32 %v3743_v32, %v10096_v12 }
 0x883   : > { %v3748_v1 = vsel %vm13502_vm8, %v3732_v51, %v3610_v59  ;;  %v3749_v63 = vsel %vm13503_vm7, %v3732_v51, %v3611_v8  ;;  %v10292_v6 = vmul.f32 %v3744_v47, %v10101_v35  ;;  %v10295_v37 = vmul.f32 %v3745_v9, %v10106_v54 }
 0x884   : > { %v10298_v30 = vmul.f32 %v3746_v28, %v10116_v21  ;;  %v10301_v50 = vmul.f32 %v3747_v36, %v10121_v52  ;;  %v10304_v38 = vmul.f32 %v3748_v1, %v10126_v31  ;;  %v10307_v44 = vmul.f32 %v3749_v63, %v10131_v57 }
 0x885   : > { %v10311_v12 = vpack.i.bf16 %v10292_v6, %v10236_v4  ;;  %v10315_v35 = vpack.i.bf16 %v10289_v22, %v10233_v62  ;;  %v10319_v54 = vpack.i.bf16 %v10286_v17, %v10230_v7  ;;  %v10323_v21 = vpack.i.bf16 %v10295_v37, %v10239_v18 }
 0x886   : > { %13504 = vst [vmem:[#allocation89_spill] sm:$0xff] %v10301_v50  ;;  %v10327_v52 = vpack.i.bf16 %v10301_v50, %v10245_v40  ;;  %v10331_v31 = vpack.i.bf16 %v10298_v30, %v10242_v58  ;;  %v10335_v57 = vpack.i.bf16 %v10307_v44, %v10251_v5  ;;  %v10343_v26 = vpack.i.bf16 %v10304_v38, %v10248_v49 }
 0x887   : > { %13505 = vst [vmem:[#allocation88_spill] sm:$0xff] %v10304_v38  ;;  %5908 = vrot.lane.b32.xlu1 %v10311_v12, %s6252_s26  ;;  %5903 = vrot.lane.b32.xlu2 %v10315_v35, %s6252_s26  ;;  %vm13507_vm0 = vcmp.lt.s32.totalorder %v6480_v14, 17 }
 0x888   : > { %13506 = vst [vmem:[#allocation93_spill] sm:$0xff] %v10307_v44  ;;  %5898 = vrot.lane.b32.xlu0 %v10319_v54, %s6252_s26  ;;  %vm13509_vm13 = vmmov %vm13507_vm0 }
 0x889   : > { %vm13511_vm2 = vmmov %vm13507_vm0 }
 0x88a   : > { %vm13512_vm4 = vmmov %vm13507_vm0 }
 0x88b   : > { %vm13513_vm10 = vmmov %vm13507_vm0 }
 0x88c   : > { %vm13514_vm6 = vmmov %vm13507_vm0 }
 0x88d   : > { %vm13515_vm11 = vmmov %vm13507_vm0 }
 0x88e   : > { %vm13517_vm12 = vmmov %vm13507_vm0 }
 0x88f   : > { %5923 = vrot.lane.b32.xlu1 %v10327_v52, %s6252_s26  ;;  %5918 = vrot.lane.b32.xlu2 %v10331_v31, %s6252_s26  ;;  %vm13519_vm5 = vmmov %vm13507_vm0 }
 0x890   : > { %5913 = vrot.lane.b32.xlu0 %v10323_v21, %s6252_s26  ;;  %vm13521_vm3 = vmmov %vm13507_vm0 }
 0x891   : > { %vm13522_vm1 = vmmov %vm13507_vm0 }
 0x892   : > { %vm13524_vm8 = vmmov %vm13507_vm0 }
 0x893   : > { %vm13526_vm7 = vmmov %vm13507_vm0 }
 0x897   : > { %5933 = vrot.lane.b32.xlu2 %v10335_v57, %s6252_s26  ;;  %5938 = vrot.lane.b32.xlu1 %v10319_v54, %s6254_s28 }
 0x898   : > { %5928 = vrot.lane.b32.xlu0 %v10343_v26, %s6252_s26 }
 0x89f   : > { %5948 = vrot.lane.b32.xlu2 %v10311_v12, %s6254_s28  ;;  %5953 = vrot.lane.b32.xlu1 %v10323_v21, %s6254_s28 }
 0x8a0   : > { %5943 = vrot.lane.b32.xlu0 %v10315_v35, %s6254_s28 }
 0x8a7   : > { %5963 = vrot.lane.b32.xlu2 %v10327_v52, %s6254_s28  ;;  %5968 = vrot.lane.b32.xlu1 %v10343_v26, %s6254_s28 }
 0x8a8   : > { %5958 = vrot.lane.b32.xlu0 %v10331_v31, %s6254_s28 }
 0x8af   : > { %5978 = vrot.lane.b32.xlu2 %v10319_v54, %s6259_s14  ;;  %5983 = vrot.lane.b32.xlu1 %v10315_v35, %s6259_s14 }
 0x8b0   : > { %5973 = vrot.lane.b32.xlu0 %v10335_v57, %s6254_s28 }
 0x8b7   : > { %5993 = vrot.lane.b32.xlu2 %v10323_v21, %s6259_s14  ;;  %5998 = vrot.lane.b32.xlu1 %v10331_v31, %s6259_s14 }
 0x8b8   : > { %5988 = vrot.lane.b32.xlu0 %v10311_v12, %s6259_s14 }
 0x8bf   : > { %6008 = vrot.lane.b32.xlu2 %v10343_v26, %s6259_s14  ;;  %6013 = vrot.lane.b32.xlu1 %v10335_v57, %s6259_s14 }
 0x8c0   : > { %6003 = vrot.lane.b32.xlu0 %v10327_v52, %s6259_s14 }
 0x8c7   : > { %6023 = vrot.lane.b32.xlu2 %v10315_v35, %s6253_s27  ;;  %6028 = vrot.lane.b32.xlu1 %v10311_v12, %s6253_s27 }
 0x8c8   : > { %6018 = vrot.lane.b32.xlu0 %v10319_v54, %s6253_s27 }
 0x8cf   : > { %6038 = vrot.lane.b32.xlu2 %v10331_v31, %s6253_s27  ;;  %6043 = vrot.lane.b32.xlu1 %v10327_v52, %s6253_s27 }
 0x8d0   : > { %6033 = vrot.lane.b32.xlu0 %v10323_v21, %s6253_s27 }
 0x8d7   : > { %6053 = vrot.lane.b32.xlu2 %v10335_v57, %s6253_s27  ;;  %6058 = vrot.lane.b32.xlu1 %v10315_v35, %s6255_s29 }
 0x8d8   : > { %6048 = vrot.lane.b32.xlu0 %v10343_v26, %s6253_s27 }
 0x8df   : > { %6068 = vrot.lane.b32.xlu2 %v10315_v35, %s6257_s11  ;;  %6073 = vrot.lane.b32.xlu1 %v10311_v12, %s6257_s11 }
 0x8e0   : > { %6063 = vrot.lane.b32.xlu0 %v10311_v12, %s6255_s29 }
 0x8e1   : > { %v5904_v53 = vpop.permute.xlu2 %5903 }
 0x8e2   : > { %v5906_v48 = vunpack.i.h.bf16 %v5904_v53  ;;  %v5905_v3 = vunpack.i.l.bf16 %v5904_v53 }
 0x8e7   : > { %6083 = vrot.lane.b32.xlu2 %v10315_v35, %s6258_s12  ;;  %6088 = vrot.lane.b32.xlu1 %v10311_v12, %s6258_s12 }
 0x8e8   : > { %6078 = vrot.lane.b32.xlu0 %v10319_v54, %s6255_s29 }
 0x8e9   : > { %v5919_v11 = vpop.permute.xlu2 %5918 }
 0x8ea   : > { %v5921_v1 = vunpack.i.h.bf16 %v5919_v11  ;;  %v5920_v63 = vunpack.i.l.bf16 %v5919_v11 }
 0x8ef   : > { %6098 = vrot.lane.b32.xlu2 %v10319_v54, %s6258_s12  ;;  %6103 = vrot.lane.b32.xlu1 %v10323_v21, %s6255_s29 }
 0x8f0   : > { %6093 = vrot.lane.b32.xlu0 %v10319_v54, %s6257_s11 }
 0x8f1   : > { %v5934_v45 = vpop.permute.xlu2 %5933 }
 0x8f2   : > { %v5936_v55 = vunpack.i.h.bf16 %v5934_v45  ;;  %v5935_v46 = vunpack.i.l.bf16 %v5934_v45 }
 0x8f7   : > { %6113 = vrot.lane.b32.xlu2 %v10323_v21, %s6257_s11  ;;  %6118 = vrot.lane.b32.xlu1 %v10331_v31, %s6257_s11 }
 0x8f8   : > { %6108 = vrot.lane.b32.xlu0 %v10331_v31, %s6255_s29 }
 0x8f9   : > { %v5909_v19 = vpop.permute.xlu1 %5908  ;;  %v10447_v25 = vpop.permute.xlu2 %5948 }
 0x8fa   : > { %v5911_v41 = vunpack.i.h.bf16 %v5909_v19  ;;  %v5910_v15 = vunpack.i.l.bf16 %v5909_v19  ;;  %v5899_v27 = vpop.permute.xlu0 %5898 }
 0x8fb   : > { %v5901_v23 = vunpack.i.h.bf16 %v5899_v27  ;;  %v5900_v34 = vunpack.i.l.bf16 %v5899_v27 }
 0x8fc   : > { %v10451_v56 = vsel %vm13507_vm0, %v5905_v3, %v5910_v15  ;;  %v10455_v16 = vsel %vm13509_vm13, %v5906_v48, %v5911_v41  ;;  %vm13529_vm13 = vmmov %vm13507_vm0 }
 0x8fd   : > { %13508 = vst [vmem:[#allocation90_spill] sm:$0xff] %v10451_v56  ;;  %v10461_v8 = vsel %vm13511_vm2, %v5901_v23, %v5906_v48  ;;  %v10465_v51 = vsel %vm13512_vm4, %v5936_v55, %v5901_v23  ;;  %v10469_v43 = vsel %vm13513_vm10, %v5900_v34, %v5905_v3  ;;  %v10473_v32 = vsel %vm13514_vm6, %v5935_v46, %v5900_v34  ;;  %vm13531_vm2 = vmmov %vm13507_vm0 }
 0x8fe   : > { %13510 = vst [vmem:[#allocation96_spill] sm:$0xff] %v10455_v16  ;;  %vm13533_vm4 = vcmp.lt.s32.totalorder %v6480_v14, 16 }
 0x8ff   : > { %6128 = vrot.lane.b32.xlu2 %v10311_v12, %s6256_s30  ;;  %6133 = vrot.lane.b32.xlu1 %v10323_v21, %s6258_s12  ;;  %vm13534_vm10 = vmmov %vm13533_vm4 }
 0x900   : > { %6123 = vrot.lane.b32.xlu0 %v10315_v35, %s6256_s30  ;;  %vm13535_vm6 = vmmov %vm13533_vm4 }
 0x901   : > { %v5924_v28 = vpop.permute.xlu1 %5923  ;;  %v10485_v36 = vpop.permute.xlu2 %5963 }
 0x902   : > { %v5926_v53 = vunpack.i.h.bf16 %v5924_v28  ;;  %v5925_v45 = vunpack.i.l.bf16 %v5924_v28  ;;  %v5914_v19 = vpop.permute.xlu0 %5913 }
 0x903   : > { %v5916_v48 = vunpack.i.h.bf16 %v5914_v19  ;;  %v5915_v3 = vunpack.i.l.bf16 %v5914_v19 }
 0x904   : > { %v10489_v27 = vsel %vm13515_vm11, %v5920_v63, %v5925_v45  ;;  %v10493_v12 = vsel %vm13517_vm12, %v5921_v1, %v5926_v53  ;;  %vm13537_vm11 = vmmov %vm13533_vm4 }
 0x905   : > { %13516 = vst [vmem:[#allocation99_spill] sm:$0xff] %v10489_v27  ;;  %v10499_v23 = vsel %vm13519_vm5, %v5916_v48, %v5921_v1  ;;  %v10503_v11 = vsel %vm13521_vm3, %v5911_v41, %v5916_v48  ;;  %v10507_v34 = vsel %vm13522_vm1, %v5915_v3, %v5920_v63  ;;  %v10511_v28 = vsel %vm13524_vm8, %v5910_v15, %v5915_v3  ;;  %vm13538_vm12 = vmmov %vm13533_vm4 }
 0x906   : > { %13518 = vst [vmem:[#allocation94_spill] sm:$0xff] %v10493_v12  ;;  %vm13540_vm5 = vmmov %vm13533_vm4 }
 0x907   : > { %13520 = vst [vmem:[#allocation97_spill] sm:$0xff] %v10499_v23  ;;  %6143 = vrot.lane.b32.xlu2 %v10327_v52, %s6255_s29  ;;  %6148 = vrot.lane.b32.xlu1 %v10343_v26, %s6255_s29  ;;  %vm13541_vm3 = vmmov %vm13533_vm4 }
 0x908   : > { %13523 = vst [vmem:[#allocation17_spill] sm:$0xff] %v10507_v34  ;;  %6138 = vrot.lane.b32.xlu0 %v10331_v31, %s6258_s12  ;;  %vm13543_vm1 = vmmov %vm13541_vm3 }
 0x909   : > { %13525 = vst [vmem:[#allocation23_spill] sm:$0xff] %v10511_v28  ;;  %v10523_v41 = vpop.permute.xlu2 %5978  ;;  %v10525_v1 = vpop.permute.xlu1 %5938  ;;  %vm13545_vm8 = vmmov %vm13543_vm1 }
 0x90a   : > { %v5929_v15 = vpop.permute.xlu0 %5928  ;;  %v5940_v61 = vunpack.i.l.bf16 %v10525_v1 }
 0x90b   : > { %v5931_v63 = vunpack.i.h.bf16 %v5929_v15  ;;  %v5930_v48 = vunpack.i.l.bf16 %v5929_v15  ;;  %v5941_v15 = vunpack.i.h.bf16 %v10525_v1 }
 0x90d   : > { %v10529_v3 = vsel %vm13526_vm7, %v5931_v63, %v5936_v55  ;;  %v10533_v20 = vsel %vm13507_vm0, %v5926_v53, %v5931_v63  ;;  %v10537_v13 = vsel %vm13529_vm13, %v5930_v48, %v5935_v46  ;;  %v10541_v19 = vsel %vm13531_vm2, %v5925_v45, %v5930_v48  ;;  %vm13547_vm7 = vmmov %vm13543_vm1 }
 0x90e   : > { %13527 = vst [vmem:[#allocation100_spill] sm:$0xff] %v10529_v3  ;;  %v5951_v53 = vunpack.i.h.bf16 %v10447_v25  ;;  %v5950_v45 = vunpack.i.l.bf16 %v10447_v25  ;;  %vm13549_vm0 = vmmov %vm13543_vm1  ;;  %vm13553_vm2 = vcmp.lt.s32.totalorder %v6480_v14, 15 }
 0x90f   : > { %13528 = vst [vmem:[#allocation81_spill] sm:$0xff] %v10533_v20  ;;  %6158 = vrot.lane.b32.xlu2 %v10327_v52, %s6257_s11  ;;  %6163 = vrot.lane.b32.xlu1 %v10343_v26, %s6257_s11  ;;  %vm13551_vm13 = vmmov %vm13549_vm0 }
 0x910   : > { %13530 = vst [vmem:[#allocation82_spill] sm:$0xff] %v10537_v13  ;;  %6153 = vrot.lane.b32.xlu0 %v10319_v54, %s6256_s30 }
 0x911   : > { %13532 = vst [vmem:[#allocation76_spill] sm:$0xff] %v10541_v19  ;;  %v10553_v55 = vpop.permute.xlu2 %5993  ;;  %v5954_v46 = vpop.permute.xlu1 %5953 }
 0x912   : > { %v5956_v63 = vunpack.i.h.bf16 %v5954_v46  ;;  %v5955_v48 = vunpack.i.l.bf16 %v5954_v46  ;;  %v5944_v10 = vpop.permute.xlu0 %5943 }
 0x913   : > { %v5946_v59 = vunpack.i.h.bf16 %v5944_v10  ;;  %v5945_v35 = vunpack.i.l.bf16 %v5944_v10 }
 0x914   : > { %v10561_v60 = vsel %vm13533_vm4, %v5951_v53, %v5956_v63  ;;  %v10565_v54 = vsel %vm13534_vm10, %v5950_v45, %v5955_v48  ;;  %vm13554_vm4 = vmmov %vm13553_vm2 }
 0x915   : > { %v10571_v46 = vsel %vm13535_vm6, %v5946_v59, %v5951_v53  ;;  %v10575_v10 = vsel %vm13537_vm11, %v5941_v15, %v5946_v59  ;;  %v10579_v1 = vsel %vm13538_vm12, %v5945_v35, %v5950_v45  ;;  %v10583_v42 = vsel %vm13540_vm5, %v5940_v61, %v5945_v35  ;;  %vm13555_vm10 = vmmov %vm13549_vm0 }
 0x916   : > { %13536 = vst [vmem:[#allocation5_spill] sm:$0xff] %v10571_v46  ;;  %v5966_v35 = vunpack.i.h.bf16 %v10485_v36  ;;  %v5965_v45 = vunpack.i.l.bf16 %v10485_v36  ;;  %vm13557_vm6 = vmmov %vm13549_vm0 }
 0x917   : > { %13539 = vst [vmem:[#allocation22_spill] sm:$0xff] %v10579_v1  ;;  %6173 = vrot.lane.b32.xlu2 %v10343_v26, %s6258_s12  ;;  %6178 = vrot.lane.b32.xlu1 %v10323_v21, %s6256_s30  ;;  %vm13558_vm11 = vmmov %vm13549_vm0 }
 0x918   : > { %6168 = vrot.lane.b32.xlu0 %v10327_v52, %s6258_s12  ;;  %vm13560_vm12 = vmmov %vm13549_vm0 }
 0x919   : > { %v10595_v59 = vpop.permute.xlu2 %6008  ;;  %v5969_v53 = vpop.permute.xlu1 %5968  ;;  %vm13561_vm5 = vmmov %vm13553_vm2 }
 0x91a   : > { %v5971_v9 = vunpack.i.h.bf16 %v5969_v53  ;;  %v5970_v47 = vunpack.i.l.bf16 %v5969_v53  ;;  %v5959_v2 = vpop.permute.xlu0 %5958 }
 0x91b   : > { %v5961_v25 = vunpack.i.h.bf16 %v5959_v2  ;;  %v5960_v29 = vunpack.i.l.bf16 %v5959_v2 }
 0x91c   : > { %v10601_v19 = vsel %vm13541_vm3, %v5966_v35, %v5971_v9  ;;  %v10605_v21 = vsel %vm13543_vm1, %v5965_v45, %v5970_v47  ;;  %vm13563_vm3 = vmmov %vm13553_vm2 }
 0x91d   : > { %13542 = vst [vmem:[#allocation86_spill] sm:$0xff] %v10601_v19  ;;  %v10611_v13 = vsel %vm13545_vm8, %v5961_v25, %v5966_v35  ;;  %v10615_v36 = vsel %vm13547_vm7, %v5956_v63, %v5961_v25  ;;  %v10619_v2 = vsel %vm13549_vm0, %v5960_v29, %v5965_v45  ;;  %v10623_v53 = vsel %vm13551_vm13, %v5955_v48, %v5960_v29  ;;  %vm13565_vm1 = vmmov %vm13553_vm2 }
 0x91e   : > { %13544 = vst [vmem:[#allocation3_spill] sm:$0xff] %v10605_v21  ;;  %v5981_v29 = vunpack.i.h.bf16 %v10523_v41  ;;  %v5980_v48 = vunpack.i.l.bf16 %v10523_v41  ;;  %vm13566_vm8 = vmmov %vm13565_vm1 }
 0x91f   : > { %13546 = vst [vmem:[#allocation2_spill] sm:$0xff] %v10611_v13  ;;  %6188 = vrot.lane.b32.xlu2 %v10335_v57, %s6255_s29  ;;  %6193 = vrot.lane.b32.xlu1 %v10335_v57, %s6257_s11  ;;  %vm13567_vm7 = vmmov %vm13565_vm1 }
 0x920   : > { %13548 = vst [vmem:[#allocation6_spill] sm:$0xff] %v10615_v36  ;;  %6183 = vrot.lane.b32.xlu0 %v10331_v31, %s6256_s30  ;;  %vm13568_vm0 = vmmov %vm13565_vm1 }
 0x921   : > { %13550 = vst [vmem:[#allocation24_spill] sm:$0xff] %v10619_v2  ;;  %v10635_v63 = vpop.permute.xlu2 %6023  ;;  %v5984_v25 = vpop.permute.xlu1 %5983  ;;  %vm13569_vm13 = vmmov %vm13568_vm0 }
 0x922   : > { %13552 = vst [vmem:[#allocation36_spill] sm:$0xff] %v10623_v53  ;;  %v5986_v35 = vunpack.i.h.bf16 %v5984_v25  ;;  %v5985_v45 = vunpack.i.l.bf16 %v5984_v25  ;;  %v5974_v3 = vpop.permute.xlu0 %5973 }
 0x923   : > { %v5976_v20 = vunpack.i.h.bf16 %v5974_v3  ;;  %v5975_v21 = vunpack.i.l.bf16 %v5974_v3 }
 0x924   : > { %v10641_v19 = vsel %vm13553_vm2, %v5981_v29, %v5986_v35  ;;  %v10645_v27 = vsel %vm13554_vm4, %v5980_v48, %v5985_v45  ;;  %vm13571_vm2 = vmmov %vm13568_vm0 }
 0x925   : > { %v10651_v12 = vsel %vm13555_vm10, %v5971_v9, %v5976_v20  ;;  %v10655_v41 = vsel %vm13557_vm6, %v5976_v20, %v5941_v15  ;;  %v10659_v3 = vsel %vm13558_vm11, %v5970_v47, %v5975_v21  ;;  %v10663_v25 = vsel %vm13560_vm12, %v5975_v21, %v5940_v61  ;;  %vm13572_vm4 = vmmov %vm13568_vm0 }
 0x926   : > { %13556 = vst [vmem:[#allocation38_spill] sm:$0xff] %v10651_v12  ;;  %v5996_v61 = vunpack.i.h.bf16 %v10553_v55  ;;  %v5995_v9 = vunpack.i.l.bf16 %v10553_v55  ;;  %v3766_v12 = vld [vmem:[%s11714_s9 + $0x90] sm:$0xff]  ;;  %v3767_v55 = vld [vmem:[%s11714_s9 + $0x98] sm:$0xff]  ;;  %vm13574_vm10 = vmmov %vm13568_vm0 }
 0x927   : > { %13559 = vst [vmem:[#allocation34_spill] sm:$0xff] %v10659_v3  ;;  %6203 = vrot.lane.b32.xlu2 %v10327_v52, %s6256_s30  ;;  %6208 = vrot.lane.b32.xlu1 %v10343_v26, %s6256_s30  ;;  %vm13575_vm6 = vmmov %vm13568_vm0 }
 0x928   : > { %6198 = vrot.lane.b32.xlu0 %v10335_v57, %s6258_s12  ;;  %vm13577_vm11 = vmmov %vm13568_vm0  ;;  %s13912_s12 = sshll.u32 %s13914_s17, 4 }
 0x929   : > { %v10675_v20 = vpop.permute.xlu2 %6038  ;;  %v5999_v47 = vpop.permute.xlu1 %5998  ;;  %vm13579_vm12 = vmmov %vm13568_vm0  ;;  %s11671_s24 = scalar_lea.vmem %s11715_s10, %s13912_s12 }
 0x92a   : > { %v6001_v15 = vunpack.i.h.bf16 %v5999_v47  ;;  %v6000_v21 = vunpack.i.l.bf16 %v5999_v47  ;;  %v5989_v49 = vpop.permute.xlu0 %5988 }
 0x92b   : > { %v5991_v31 = vunpack.i.h.bf16 %v5989_v49  ;;  %v5990_v3 = vunpack.i.l.bf16 %v5989_v49 }
 0x92c   : > { %v10681_v52 = vsel %vm13561_vm5, %v5996_v61, %v6001_v15  ;;  %v10685_v26 = vsel %vm13563_vm3, %v5995_v9, %v6000_v21  ;;  %vm13581_vm5 = vmmov %vm13568_vm0  ;;  %vm13583_vm3 = vcmp.lt.s32.totalorder %v6480_v14, 1 }
 0x92d   : > { %13562 = vst [vmem:[#allocation109_spill] sm:$0xff] %v10681_v52  ;;  %v10697_v49 = vsel %vm13565_vm1, %v5991_v31, %v5996_v61  ;;  %v10701_v38 = vsel %vm13566_vm8, %v5986_v35, %v5991_v31  ;;  %v10705_v0 = vsel %vm13567_vm7, %v5990_v3, %v5995_v9  ;;  %v10709_v2 = vsel %vm13568_vm0, %v5985_v45, %v5990_v3  ;;  %vm13585_vm1 = vmmov %vm13583_vm3  ;;  %v13607_v52 = vld [vmem:[#allocation37_spill] sm:$0xff] }
 0x92e   : > { %13564 = vst [vmem:[#allocation114_spill] sm:$0xff] %v10685_v26  ;;  %v6011_v61 = vunpack.i.h.bf16 %v10595_v59  ;;  %v6010_v9 = vunpack.i.l.bf16 %v10595_v59  ;;  %vm13587_vm8 = vmmov %vm13585_vm1 }
 0x92f   : > { %4572 = vperm.xlu2 %5446, %v3766_v12   ;;  %4585 = vperm.xlu1 %5445, %v3767_v55   ;;  %vm13589_vm7 = vmmov %vm13585_vm1 }
 0x930   : > { %6213 = vrot.lane.b32.xlu0 %v10335_v57, %s6256_s30  ;;  %vm13590_vm0 = vmmov %vm13585_vm1 }
 0x931   : > { %v10717_v35 = vpop.permute.xlu2 %6053  ;;  %v6014_v31 = vpop.permute.xlu1 %6013 }
 0x932   : > { %v6016_v45 = vunpack.i.h.bf16 %v6014_v31  ;;  %v6015_v3 = vunpack.i.l.bf16 %v6014_v31  ;;  %v6004_v5 = vpop.permute.xlu0 %6003 }
 0x933   : > { %v6006_v44 = vunpack.i.h.bf16 %v6004_v5  ;;  %v6005_v13 = vunpack.i.l.bf16 %v6004_v5 }
 0x934   : > { %v10723_v47 = vsel %vm13569_vm13, %v6011_v61, %v6016_v45  ;;  %v10727_v12 = vsel %vm13571_vm2, %v6016_v45, %v5981_v29  ;;  %v10731_v57 = vsel %vm13572_vm4, %v6010_v9, %v6015_v3  ;;  %v10735_v59 = vsel %vm13574_vm10, %v6015_v3, %v5980_v48  ;;  %vm13593_vm13 = vmmov %vm13590_vm0 }
 0x935   : > { %13570 = vst [vmem:[#allocation113_spill] sm:$0xff] %v10723_v47  ;;  %v10743_v31 = vsel %vm13575_vm6, %v6006_v44, %v6011_v61  ;;  %v10747_v29 = vsel %vm13577_vm11, %v6001_v15, %v6006_v44  ;;  %v10751_v45 = vsel %vm13579_vm12, %v6005_v13, %v6010_v9  ;;  %v10755_v48 = vsel %vm13581_vm5, %v6000_v21, %v6005_v13  ;;  %vm13595_vm2 = vmmov %vm13590_vm0 }
 0x936   : > { %13573 = vst [vmem:[#allocation101_spill] sm:$0xff] %v10731_v57  ;;  %v6041_v57 = vunpack.i.h.bf16 %v10675_v20  ;;  %v6040_v13 = vunpack.i.l.bf16 %v10675_v20  ;;  %vm13597_vm4 = vmmov %vm13590_vm0  ;;  %vm13599_vm10 = vcmp.lt.s32.totalorder %v6480_v14, 112  ;;  %vm13604_vm5 = vcmp.lt.s32.totalorder %v6480_v14, 113 }
 0x937   : > { %13576 = vst [vmem:[#allocation102_spill] sm:$0xff] %v10743_v31  ;;  %vm13600_vm6 = vmmov %vm13599_vm10 }
 0x938   : > { %13578 = vst [vmem:[#allocation92_spill] sm:$0xff] %v10747_v29 }
 0x939   : > { %13580 = vst [vmem:[#allocation95_spill] sm:$0xff] %v10751_v45  ;;  %v10761_v61 = vpop.permute.xlu2 %6068  ;;  %v10763_v55 = vpop.permute.xlu1 %6028 }
 0x93a   : > { %13582 = vst [vmem:[#allocation103_spill] sm:$0xff] %v10755_v48  ;;  %v10765_v44 = vpop.permute.xlu0 %6018  ;;  %v12207_v3 = vunpack.i.h.bf16 %v10763_v55  ;;  %v13592_v23 = vunpack.i.l.bf16 %v10763_v55 }
 0x941   : > { %v10767_v15 = vpop.permute.xlu2 %6083  ;;  %v6044_v9 = vpop.permute.xlu1 %6043 }
 0x942   : > { %v6046_v21 = vunpack.i.h.bf16 %v6044_v9  ;;  %v6045_v47 = vunpack.i.l.bf16 %v6044_v9  ;;  %v6034_v34 = vpop.permute.xlu0 %6033  ;;  %v6086_v16 = vunpack.i.h.bf16 %v10767_v15 }
 0x943   : > { %v6036_v48 = vunpack.i.h.bf16 %v6034_v34  ;;  %v6035_v5 = vunpack.i.l.bf16 %v6034_v34 }
 0x944   : > { %v10775_v31 = vsel %vm13583_vm3, %v6041_v57, %v6046_v21  ;;  %v10779_v29 = vsel %vm13585_vm1, %v6040_v13, %v6045_v47  ;;  %vm13606_vm3 = vmmov %vm13604_vm5  ;;  %vm13608_vm1 = vnez %v13607_v52 }
 0x945   : > { %13584 = vst [vmem:[#allocation107_spill] sm:$0xff] %v10775_v31  ;;  %v10785_v9 = vsel %vm13587_vm8, %v6036_v48, %v6041_v57  ;;  %v10791_v34 = vsel %vm13589_vm7, %v12207_v3, %v6036_v48  ;;  %v10795_v45 = vsel %vm13590_vm0, %v6035_v5, %v6040_v13  ;;  %v10801_v39 = vsel %vm13593_vm13, %v13592_v23, %v6035_v5  ;;  %vm5088_vm8 = vmpackc.low %vm13608_vm1, %vm13608_vm1 }
 0x946   : > { %13586 = vst [vmem:[#allocation91_spill] sm:$0xff] %v10779_v29  ;;  %v6070_v57 = vunpack.i.l.bf16 %v10761_v61  ;;  %vm13609_vm7 = vcmp.lt.s32.totalorder %v6480_v14, 127 }
 0x947   : > { %13588 = vst [vmem:[#allocation98_spill] sm:$0xff] %v10785_v9  ;;  %vm13610_vm0 = vmmov %vm13609_vm7 }
 0x948   : > { %13591 = vst [vmem:[#allocation105_spill] sm:$0xff] %v10795_v45  ;;  %v13616_v45 = vld [vmem:[#allocation25_spill] sm:$0xff] }
 0x949   : > { %v10807_v29 = vpop.permute.xlu2 %6098  ;;  %v6059_v48 = vpop.permute.xlu1 %6058 }
 0x94a   : > { %v10809_v3 = vpop.permute.xlu0 %6048  ;;  %v6061_v36 = vunpack.i.h.bf16 %v6059_v48  ;;  %v6060_v40 = vunpack.i.l.bf16 %v6059_v48  ;;  %v13629_v28 = vunpack.i.h.bf16 %v10807_v29 }
 0x94b   : > { %13594 = vst [vmem:[#allocation122_spill] sm:$0xff] %v10809_v3  ;;  %v12213_v13 = vunpack.i.h.bf16 %v10809_v3  ;;  %v12216_v31 = vunpack.i.l.bf16 %v10809_v3 }
 0x94d   : > { %v10817_v23 = vsel %vm13595_vm2, %v6046_v21, %v12213_v13  ;;  %v10823_v5 = vsel %vm13597_vm4, %v6045_v47, %v12216_v31  ;;  %v6071_v31 = vunpack.i.h.bf16 %v10761_v61  ;;  %v13601_v21 = vld [vmem:[#allocation21_spill] sm:$0xff]  ;;  %vm13613_vm4 = vmmov %vm13600_vm6 }
 0x94e   : > { %13596 = vst [vmem:[#allocation104_spill] sm:$0xff] %v10817_v23  ;;  %vm13602_vm11 = vcmp.le.s32.totalorder %v13601_v21, 14 }
 0x94f   : > { %13598 = vst [vmem:[#allocation11_spill] sm:$0xff] %v10823_v5  ;;  %vm5085_vm12 = vmpackc.low %vm13602_vm11, %vm13602_vm11 }
 0x951   : > { %v10827_v20 = vpop.permute.xlu2 %6113  ;;  %v10829_v53 = vpop.permute.xlu1 %6073 }
 0x952   : > { %v10831_v50 = vpop.permute.xlu0 %6063  ;;  %v13603_v23 = vunpack.i.h.bf16 %v10829_v53  ;;  %v13605_v56 = vunpack.i.l.bf16 %v10829_v53 }
 0x953   : > { %v12220_v3 = vunpack.i.h.bf16 %v10831_v50  ;;  %v12223_v47 = vunpack.i.l.bf16 %v10831_v50 }
 0x954   : > { %v4131_v61 = vsel %vm13604_vm5, %v6071_v31, %v13603_v23 }
 0x955   : > { %v4195_v5 = vsel %vm13599_vm10, %v6061_v36, %v12220_v3  ;;  %v4194_v48 = vsel %vm13600_vm6, %v6060_v40, %v12223_v47  ;;  %v4130_v3 = vsel %vm13606_vm3, %v6070_v57, %v13605_v56  ;;  %vm13615_vm10 = vmmov %vm13613_vm4  ;;  %vm13617_vm6 = vnez %v13616_v45 }
 0x956   : > { %v5086_v13 = vpack.c.bf16 %v4195_v5, %v4194_v48  ;;  %v6085_v5 = vunpack.i.l.bf16 %v10767_v15  ;;  %v5089_v48 = vpack.c.bf16 %v4131_v61, %v4130_v3  ;;  %v13611_v15 = vld [vmem:[#allocation18_spill] sm:$0xff]  ;;  %vm5091_vm11 = vmpackc.low %vm13617_vm6, %vm13617_vm6 }
 0x957   : > { %vm13612_vm13 = vcmp.le.s32.totalorder %v13611_v15, 14 }
 0x958   : > { %5087 = vmatpush.bf16.msk.msra.mxu2 %vm5085_vm12, %v5086_v13  ;;  %vm5060_vm2 = vmpackc.low %vm13612_vm13, %vm13612_vm13  ;;  %vm13618_vm12 = vcmp.lt.s32.totalorder %v6480_v14, 1 }
 0x959   : > { %v10859_v26 = vpop.permute.xlu2 %6128  ;;  %v10861_v47 = vpop.permute.xlu1 %6088  ;;  %vm13619_vm5 = vmmov %vm13618_vm12 }
 0x95a   : > { %v12228_v23 = vunpack.i.h.bf16 %v10861_v47  ;;  %v12230_v33 = vunpack.i.l.bf16 %v10861_v47  ;;  %v10869_v1 = vpop.permute.xlu0 %6078 }
 0x95b   : > { %v12232_v56 = vunpack.i.h.bf16 %v10869_v1  ;;  %v13614_v46 = vunpack.i.l.bf16 %v10869_v1 }
 0x95c   : > { %v4067_v52 = vsel %vm13609_vm7, %v6086_v16, %v12228_v23  ;;  %v4066_v3 = vsel %vm13610_vm0, %v6085_v5, %v12230_v33  ;;  %5090 = vmatpush.bf16.msk.msra.mxu2 %vm5088_vm8, %v5089_v48  ;;  %v6021_v48 = vunpack.i.h.bf16 %v10765_v44  ;;  %v6020_v33 = vunpack.i.l.bf16 %v10765_v44 }
 0x95d   : > { %v5092_v61 = vpack.c.bf16 %v4067_v52, %v4066_v3  ;;  %v4197_v13 = vsel %vm13613_vm4, %v12232_v56, %v6061_v36  ;;  %v4196_v23 = vsel %vm13615_vm10, %v13614_v46, %v6060_v40  ;;  %v12233_v52 = vunpack.i.h.bf16 %v10635_v63 }
 0x95e   : > { %v5061_v9 = vpack.c.bf16 %v4197_v13, %v4196_v23  ;;  %v12234_v3 = vunpack.i.l.bf16 %v10635_v63  ;;  %vm13623_vm8 = vcmp.lt.s32.totalorder %v6480_v14, 113 }
 0x95f   : > { %v4005_v40 = vsel %vm13618_vm12, %v6021_v48, %v12233_v52  ;;  %v13621_v52 = vld [vmem:[#allocation28_spill] sm:$0xff]  ;;  %vm13624_vm7 = vmmov %vm13623_vm8 }
 0x960   : > { %5062 = vmatpush.bf16.msk.msrb.mxu0 %vm5060_vm2, %v5061_v9  ;;  %5093 = vmatpush.bf16.msk.msra.mxu2 %vm5091_vm11, %v5092_v61  ;;  %v4004_v46 = vsel %vm13619_vm5, %v6020_v33, %v12234_v3  ;;  %v13620_v61 = vpack.c.bf16 %v10289_v22, %v10233_v62  ;;  %vm13622_vm3 = vnez %v13621_v52  ;;  %v13625_v9 = vld [vmem:[#allocation33_spill] sm:$0xff]  ;;  %v13627_v52 = vunpack.i.l.bf16 %v10807_v29 }
 0x961   : > { %v10899_v36 = vpop.permute.xlu2 %6143  ;;  %v10901_v56 = vpop.permute.xlu1 %6103  ;;  %vm5063_vm1 = vmpackc.low %vm13622_vm3, %vm13622_vm3  ;;  %vm13626_vm0 = vnez %v13625_v9  ;;  %v5095_v62 = vpack.c.bf16 %v4005_v40, %v4004_v46  ;;  %vm13628_vm2 = vcmp.lt.s32.totalorder %v6480_v14, 127  ;;  %v13631_v9 = vld [vmem:[#allocation19_spill] sm:$0xff]  ;;  %v13633_v46 = vld [vmem:[#allocation70_spill] sm:$0xff]  ;;  %vm13636_vm5 = vcmp.ge.s32.totalorder %v13601_v21, 1 }
 0x962   : > { %v10911_v45 = vpop.permute.xlu0 %6093  ;;  %vm5094_vm13 = vmpackc.low %vm13626_vm0, %vm13626_vm0  ;;  %vm13632_vm10 = vnez %v13631_v9  ;;  %vm13634_vm11 = vnez %v13633_v46  ;;  %v13645_v46 = vld [vmem:[#allocation64_spill] sm:$0xff] }
 0x963   : > { %v12236_v23 = vunpack.i.h.bf16 %v10911_v45  ;;  %v12239_v13 = vunpack.i.l.bf16 %v10911_v45  ;;  %vm13630_vm4 = vmmov %vm13628_vm2 }
 0x964   : > { %4391 = vmatpush.bf16.msra.mxu2 %v13620_v61  ;;  %v4068_v61 = vsel %vm13628_vm2, %v13627_v52, %v6085_v5  ;;  %vm5066_vm6 = vmpackc.low %vm13632_vm10, %vm13632_vm10  ;;  %v13635_v5 = vpack.c.bf16 %v10641_v19, %v10645_v27  ;;  %v13639_v27 = vpack.c.bf16 %v10286_v17, %v10230_v7  ;;  %v13640_v19 = vpack.c.bf16 %v10575_v10, %v10583_v42  ;;  %v13643_v7 = vld [vmem:[#allocation59_spill] sm:$0xff] }
 0x965   : > { %v4133_v3 = vsel %vm13623_vm8, %v12236_v23, %v6071_v31  ;;  %v4132_v44 = vsel %vm13624_vm7, %v12239_v13, %v6070_v57  ;;  %v4069_v31 = vsel %vm13630_vm4, %v13629_v28, %v6086_v16  ;;  %vm5097_vm12 = vmpackc.low %vm13634_vm11, %vm13634_vm11  ;;  %v12238_v16 = vunpack.i.h.bf16 %v10717_v35  ;;  %v13662_v13 = vld [vmem:[#allocation58_spill] sm:$0xff] }
 0x966   : > { %v5064_v22 = vpack.c.bf16 %v4133_v3, %v4132_v44  ;;  %v5067_v3 = vpack.c.bf16 %v4069_v31, %v4068_v61  ;;  %v12237_v28 = vunpack.i.l.bf16 %v10717_v35  ;;  %vm5100_vm3 = vmpackc.low %vm13636_vm5, %vm13636_vm5  ;;  %v4352_v44 = vld [vmem:[%s11713_s8] sm:$0xff]  ;;  %v12244_v17 = vunpack.i.l.bf16 %v10859_v26 }
 0x967   : > { %v13641_v61 = vld [vmem:[#allocation26_spill] sm:$0xff]  ;;  %vm13646_vm4 = vnez %v13645_v46 }
 0x968   : > { %5065 = vmatpush.bf16.msk.msrb.mxu0 %vm5063_vm1, %v5064_v22  ;;  %5096 = vmatpush.bf16.msk.msra.mxu2 %vm5094_vm13, %v5095_v62  ;;  %vm13637_vm1 = vcmp.lt.s32.totalorder %v6480_v14, 1  ;;  %vm13642_vm7 = vnez %v13641_v61  ;;  %vm13644_vm13 = vnez %v13643_v7  ;;  %vm5072_vm10 = vmpackc.low %vm13646_vm4, %vm13646_vm4  ;;  %v13652_v7 = vpack.c.bf16 %v10727_v12, %v10735_v59 }
 0x969   : > { %v10942_v23 = vpop.permute.xlu2 %6158  ;;  %v10944_v57 = vpop.permute.xlu1 %6118  ;;  %v4007_v62 = vsel %vm13637_vm1, %v12238_v16, %v6021_v48  ;;  %vm13638_vm8 = vmmov %vm13637_vm1  ;;  %v4354_v48 = vunpack.c.l.b16 %v4352_v44  ;;  %vm13663_vm4 = vnez %v13662_v13 }
 0x96a   : > { %v10949_v40 = vpop.permute.xlu0 %6108  ;;  %v4006_v22 = vsel %vm13638_vm8, %v12237_v28, %v6020_v33  ;;  %vm5069_vm0 = vmpackc.low %vm13642_vm7, %vm13642_vm7  ;;  %v12245_v33 = vunpack.i.h.bf16 %v10859_v26  ;;  %vm13654_vm8 = vcmask 130048   ;;  %vm13655_vm7 = vcmp.lt.s32.totalorder %v6480_v14, 112 }
 0x96b   : > { %v5070_v31 = vpack.c.bf16 %v4007_v62, %v4006_v22  ;;  %vm5103_vm2 = vmpackc.low %vm13644_vm13, %vm13644_vm13  ;;  %v13649_v22 = vpack.c.bf16 %v10461_v8, %v10469_v43  ;;  %v13661_v28 = vpack.c.bf16 %v10655_v41, %v10663_v25 }
 0x96c   : > { %5068 = vmatpush.bf16.msk.msrb.mxu0 %vm5066_vm6, %v5067_v3  ;;  %5099 = vmatpush.bf16.msk.msra.mxu2 %vm5097_vm12, %v13635_v5  ;;  %v4355_v3 = vunpack.c.h.b16 %v4352_v44  ;;  %vm13647_vm6 = vcmp.lt.s32.totalorder %v6480_v14, 111  ;;  %v13650_v44 = vld [vmem:[#allocation27_spill] sm:$0xff] }
 0x96d   : > { %vm13648_vm11 = vmmov %vm13647_vm6  ;;  %vm13651_vm12 = vnez %v13650_v44 }
 0x96e   : > { %vm5106_vm5 = vmpackc.low %vm13651_vm12, %vm13651_vm12  ;;  %v11014_v61 = vpack.c.b16 %v4355_v3, %v4355_v3  ;;  %v6105_v3 = vunpack.i.l.bf16 %v10901_v56  ;;  %vm13666_vm12 = vcmp.lt.s32.totalorder %v6480_v14, 113 }
 0x970   : > { %4365 = vmatpush.bf16.msrb.mxu0 %v13639_v27  ;;  %5102 = vmatpush.bf16.msk.msra.mxu2 %vm5100_vm3, %v13640_v19  ;;  %v11012_v27 = vpack.c.b16 %v4354_v48, %v4354_v48  ;;  %vm13653_vm3 = vcmp.ge.s32.totalorder %v13611_v15, 1  ;;  %v6106_v48 = vunpack.i.h.bf16 %v10901_v56 }
 0x971   : > { %v10979_v21 = vpop.permute.xlu2 %6173  ;;  %v10981_v52 = vpop.permute.xlu1 %6133  ;;  %vm5075_vm1 = vmpackc.low %vm13653_vm3, %vm13653_vm3 }
 0x972   : > { %v10987_v9 = vpop.permute.xlu0 %6123 }
 0x973   : > { %v6126_v42 = vunpack.i.h.bf16 %v10987_v9  ;;  %v6125_v10 = vunpack.i.l.bf16 %v10987_v9  ;;  %v6110_v9 = vunpack.i.l.bf16 %v10949_v40 }
 0x974   : > { %5071 = vmatpush.bf16.msk.msrb.mxu0 %vm5069_vm0, %v5070_v31  ;;  %5105 = vmatpush.bf16.msk.msra.mxu2 %vm5103_vm2, %v13649_v22  ;;  %v6111_v31 = vunpack.i.h.bf16 %v10949_v40  ;;  %vm13656_vm0 = vmmov %vm13655_vm7  ;;  %v13657_v22 = vunpack.i.l.bf16 %v10869_v1 }
 0x975   : > { %v4259_v5 = vsel %vm13647_vm6, %v6126_v42, %v12245_v33  ;;  %v4258_v62 = vsel %vm13648_vm11, %v6125_v10, %v12244_v17  ;;  %v4190_v56 = vsel %vm13656_vm0, %v6105_v3, %v6110_v9  ;;  %vm13658_vm13 = vmmov %vm13656_vm0 }
 0x976   : > { %v5107_v19 = vpack.c.bf16 %v4259_v5, %v4258_v62  ;;  %v12242_v5 = vunpack.i.h.bf16 %v10944_v57  ;;  %v12243_v62 = vunpack.i.l.bf16 %v10944_v57  ;;  %v4191_v15 = vsel %vm13655_vm7, %v6106_v48, %v6111_v31  ;;  %vm13660_vm2 = vmmov %vm13656_vm0 }
 0x977   : > { %4396 = vmatmul.bf16.vlgmr.msra.gmra.mxu2 %v11012_v27  ;;  %vm13674_vm7 = vmmov %vm13656_vm0 }
 0x978   : > { %5074 = vmatpush.bf16.msk.msrb.mxu0 %vm5072_vm10, %v13652_v7  ;;  %5108 = vmatpush.bf16.msk.msrb.mxu3 %vm5106_vm5, %v5107_v19  ;;  %v13659_v19 = vunpack.i.h.bf16 %v10869_v1  ;;  %vm5078_vm10 = vmpackc.low %vm13663_vm4, %vm13663_vm4  ;;  %v6115_v1 = vunpack.i.l.bf16 %v10827_v20 }
 0x979   : > { %v11021_v8 = vpop.permute.xlu2 %6188  ;;  %v11023_v43 = vpop.permute.xlu1 %6148  ;;  %vm13667_vm5 = vmmov %vm13666_vm12 }
 0x97a   : > { %v12241_v46 = vunpack.i.h.bf16 %v11021_v8  ;;  %v12240_v12 = vunpack.i.l.bf16 %v11021_v8  ;;  %v11033_v59 = vpop.permute.xlu0 %6138  ;;  %v4126_v25 = vsel %vm13667_vm5, %v6115_v1, %v12243_v62 }
 0x97b   : > { %5109 = vmatmul.msk.bf16.vlgmr.msrb.gmra.mxu3 %vm13654_vm8, %v11014_v61  ;;  %v12246_v13 = vunpack.i.h.bf16 %v11033_v59  ;;  %vm13672_vm8 = vmmov %vm13656_vm0  ;;  %vm13675_vm0 = vcmp.lt.s32.totalorder %v6480_v14, 127 }
 0x97c   : > { %v11053_v44 = vsel %vm13658_vm13, %v12240_v12, %v13657_v22  ;;  %v11061_v7 = vsel %vm13660_vm2, %v12241_v46, %v13659_v19  ;;  %5077 = vmatpush.bf16.msk.msrb.mxu0 %vm5075_vm1, %v13661_v28  ;;  %v6116_v22 = vunpack.i.h.bf16 %v10827_v20  ;;  %v13664_v12 = vld [vmem:[#allocation31_spill] sm:$0xff]  ;;  %v5136_v19 = vpack.c.bf16 %v4191_v15, %v4190_v56  ;;  %vm13676_vm13 = vmmov %vm13675_vm0 }
 0x97d   : > { %vm13665_vm6 = vcmp.le.s32.totalorder %v13664_v12, 14  ;;  %v6140_v28 = vunpack.i.l.bf16 %v11033_v59  ;;  %v13668_v20 = vpack.c.bf16 %v10465_v51, %v10473_v32  ;;  %v6136_v56 = vunpack.i.h.bf16 %v10981_v52 }
 0x97e   : > { %vm5135_vm11 = vmpackc.low %vm13665_vm6, %vm13665_vm6  ;;  %v4127_v41 = vsel %vm13666_vm12, %v6116_v22, %v12242_v5  ;;  %v6135_v46 = vunpack.i.l.bf16 %v10981_v52  ;;  %v13669_v5 = vld [vmem:[#allocation50_spill] sm:$0xff]  ;;  %v13671_v51 = vunpack.i.l.bf16 %v10831_v50  ;;  %v13673_v52 = vunpack.i.h.bf16 %v10831_v50 }
 0x97f   : > { %vm13670_vm3 = vnez %v13669_v5  ;;  %v5139_v62 = vpack.c.bf16 %v4127_v41, %v4126_v25  ;;  %v4063_v5 = vsel %vm13675_vm0, %v6136_v56, %v12246_v13  ;;  %v13677_v25 = vld [vmem:[#allocation20_spill] sm:$0xff]  ;;  %v13685_v13 = vunpack.i.h.bf16 %v10829_v53 }
 0x980   : > { %5080 = vmatpush.bf16.msk.msrb.mxu0 %vm5078_vm10, %v13668_v20  ;;  %vm5138_vm1 = vmpackc.low %vm13670_vm3, %vm13670_vm3  ;;  %v4192_v32 = vsel %vm13672_vm8, %v13671_v51, %v6105_v3  ;;  %v4062_v41 = vsel %vm13676_vm13, %v6135_v46, %v6140_v28  ;;  %vm13678_vm2 = vnez %v13677_v25  ;;  %vm13679_vm10 = vcmp.lt.s32.totalorder %v6480_v14, 111  ;;  %v13681_v3 = vld [vmem:[#allocation30_spill] sm:$0xff]  ;;  %v13683_v51 = vld [vmem:[#allocation29_spill] sm:$0xff] }
 0x981   : > { %v11089_v15 = vpop.permute.xlu1 %6163  ;;  %vm5081_vm4 = vmpackc.low %vm13678_vm2, %vm13678_vm2  ;;  %vm13684_vm5 = vnez %v13683_v51  ;;  %v5142_v25 = vpack.c.bf16 %v4063_v5, %v4062_v41  ;;  %vm13686_vm8 = vcmp.lt.s32.totalorder %v6480_v14, 113  ;;  %vm13691_vm13 = vcmp.lt.s32.totalorder %v6480_v14, 112 }
 0x982   : > { %v11093_v16 = vpop.permute.xlu0 %6153  ;;  %vm13680_vm6 = vmmov %vm13679_vm10  ;;  %v13696_v51 = vunpack.i.h.bf16 %v10861_v47 }
 0x983   : > { %v6156_v17 = vunpack.i.h.bf16 %v11093_v16  ;;  %v12247_v33 = vunpack.i.l.bf16 %v11093_v16  ;;  %4370 = vmatmul.bf16.vlgmr.msrb.gmra.mxu0 %v11012_v27  ;;  %vm5141_vm3 = vmpackc.low %vm13684_vm5, %vm13684_vm5 }
 0x984   : > { %5137 = vmatpush.bf16.msk.msra.mxu0 %vm5135_vm11, %v5136_v19  ;;  %v4193_v19 = vsel %vm13674_vm7, %v13673_v52, %v6106_v48  ;;  %vm13682_vm11 = vcmp.le.s32.totalorder %v13681_v3, 14  ;;  %vm13692_vm2 = vmmov %vm13691_vm13 }
 0x985   : > { %v4260_v50 = vsel %vm13679_vm10, %v12247_v33, %v6125_v10  ;;  %v4261_v48 = vsel %vm13680_vm6, %v6156_v17, %v6126_v42  ;;  %vm5110_vm12 = vmpackc.low %vm13682_vm11, %vm13682_vm11  ;;  %v5111_v52 = vpack.c.bf16 %v4193_v19, %v4192_v32  ;;  %v4129_v10 = vsel %vm13686_vm8, %v13685_v13, %v6116_v22  ;;  %v13689_v22 = vld [vmem:[#allocation49_spill] sm:$0xff] }
 0x986   : > { %v5082_v20 = vpack.c.bf16 %v4261_v48, %v4260_v50  ;;  %v13687_v33 = vunpack.i.l.bf16 %v10829_v53  ;;  %v6145_v50 = vunpack.i.l.bf16 %v10899_v36  ;;  %v6161_v32 = vunpack.i.h.bf16 %v10942_v23 }
 0x987   : > { %vm13690_vm7 = vnez %v13689_v22  ;;  %v13694_v13 = vunpack.i.l.bf16 %v10861_v47  ;;  %vm13695_vm10 = vcmp.lt.s32.totalorder %v6480_v14, 127  ;;  %vm13699_vm11 = vcmp.lt.s32.totalorder %v6480_v14, 111  ;;  %v13704_v47 = vld [vmem:[#allocation32_spill] sm:$0xff]  ;;  %v13709_v22 = vld [vmem:[#allocation35_spill] sm:$0xff] }
 0x988   : > { %5140 = vmatpush.bf16.msk.msra.mxu0 %vm5138_vm1, %v5139_v62  ;;  %vm13688_vm1 = vmmov %vm13686_vm8  ;;  %5083 = vmatpush.bf16.msk.msra.mxu1 %vm5081_vm4, %v5082_v20  ;;  %v6146_v62 = vunpack.i.h.bf16 %v10899_v36  ;;  %vm13693_vm4 = vcmask 130048   ;;  %vm13705_vm8 = vcmp.le.s32.totalorder %v13704_v47, 14 }
 0x989   : > { %v4128_v42 = vsel %vm13688_vm1, %v13687_v33, %v6115_v1  ;;  %v6179_v48 = vpop.permute.xlu1 %6178  ;;  %vm5113_vm0 = vmpackc.low %vm13690_vm7, %vm13690_vm7  ;;  %v6160_v33 = vunpack.i.l.bf16 %v10942_v23  ;;  %v4188_v1 = vsel %vm13692_vm2, %v6110_v9, %v6145_v50  ;;  %v4064_v20 = vsel %vm13695_vm10, %v13694_v13, %v6135_v46 }
 0x98a   : > { %v6181_v19 = vunpack.i.h.bf16 %v6179_v48  ;;  %v6180_v5 = vunpack.i.l.bf16 %v6179_v48  ;;  %v11145_v41 = vpop.permute.xlu0 %6168  ;;  %v5114_v53 = vpack.c.bf16 %v4129_v10, %v4128_v42  ;;  %v4189_v36 = vsel %vm13691_vm13, %v6111_v31, %v6146_v62  ;;  %vm13697_vm6 = vmmov %vm13695_vm10  ;;  %v13702_v10 = vld [vmem:[#allocation44_spill] sm:$0xff] }
 0x98b   : > { %5084 = vmatmul.msk.bf16.vlgmr.msra.gmra.mxu1 %vm13693_vm4, %v11014_v61  ;;  %v13698_v31 = vunpack.i.h.bf16 %v10859_v26  ;;  %v13700_v9 = vunpack.i.l.bf16 %v10859_v26  ;;  %vm13703_vm5 = vnez %v13702_v10  ;;  %vm5160_vm1 = vmpackc.low %vm13705_vm8, %vm13705_vm8  ;;  %vm13707_vm7 = vcmp.lt.s32.totalorder %v6480_v14, 113 }
 0x98c   : > { %5112 = vmatpush.bf16.msk.msrb.mxu1 %vm5110_vm12, %v5111_v52  ;;  %5143 = vmatpush.bf16.msk.msra.mxu0 %vm5141_vm3, %v5142_v25  ;;  %v4065_v52 = vsel %vm13697_vm6, %v13696_v51, %v6136_v56  ;;  %vm13701_vm12 = vmmov %vm13699_vm11  ;;  %v13706_v56 = vunpack.i.h.bf16 %v10944_v57  ;;  %v5161_v42 = vpack.c.bf16 %v4189_v36, %v4188_v1  ;;  %v13708_v48 = vpack.c.bf16 %v10295_v37, %v10239_v18  ;;  %v13713_v36 = vld [vmem:[#allocation43_spill] sm:$0xff]  ;;  %v13715_v1 = vld [vmem:[#allocation60_spill] sm:$0xff] }
 0x98d   : > { %v4257_v40 = vsel %vm13699_vm11, %v13698_v31, %v6181_v19  ;;  %v4256_v25 = vsel %vm13701_vm12, %v13700_v9, %v6180_v5  ;;  %vm5131_vm3 = vmpackc.low %vm13703_vm5, %vm13703_vm5  ;;  %vm13710_vm13 = vnez %v13709_v22  ;;  %v5117_v51 = vpack.c.bf16 %v4065_v52, %v4064_v20 }
 0x98e   : > { %v5132_v46 = vpack.c.bf16 %v4257_v40, %v4256_v25  ;;  %v4125_v26 = vsel %vm13707_vm7, %v13706_v56, %v6161_v32  ;;  %vm13712_vm2 = vmmov %vm13707_vm7  ;;  %v6171_v31 = vunpack.i.h.bf16 %v11145_v41  ;;  %v6170_v40 = vunpack.i.l.bf16 %v11145_v41  ;;  %v13718_v25 = vld [vmem:[#allocation53_spill] sm:$0xff]  ;;  %v13767_v41 = vld [vmem:[#allocation23_spill] sm:$0xff] }
 0x98f   : > { %vm13714_vm4 = vnez %v13713_v36  ;;  %v6151_v18 = vunpack.i.h.bf16 %v11023_v43  ;;  %v6150_v37 = vunpack.i.l.bf16 %v11023_v43  ;;  %vm13716_vm6 = vnez %v13715_v1  ;;  %v13732_v36 = vld [vmem:[#allocation39_spill] sm:$0xff] }
 0x990   : > { %5115 = vmatpush.bf16.msk.msrb.mxu1 %vm5113_vm0, %v5114_v53  ;;  %4443 = vmatpush.bf16.msra.mxu0 %v13708_v48  ;;  %vm5116_vm0 = vmpackc.low %vm13710_vm13, %vm13710_vm13  ;;  %v13711_v53 = vunpack.i.l.bf16 %v10944_v57  ;;  %v13717_v52 = vpack.c.bf16 %v10791_v34, %v10801_v39  ;;  %vm13719_vm12 = vnez %v13718_v25  ;;  %vm13721_vm8 = vcmp.lt.s32.totalorder %v6480_v14, 127  ;;  %v13749_v25 = vld [vmem:[#allocation68_spill] sm:$0xff] }
 0x991   : > { %5133 = vmatpush.bf16.msk.msra.mxu3 %vm5131_vm3, %v5132_v46  ;;  %vm5144_vm10 = vmpackc.low %vm13714_vm4, %vm13714_vm4  ;;  %v11206_v57 = vpop.permute.xlu1 %6193  ;;  %vm13720_vm3 = vcmask 130048   ;;  %v4060_v10 = vsel %vm13721_vm8, %v6140_v28, %v6170_v40  ;;  %v13722_v46 = vunpack.i.h.bf16 %v11033_v59  ;;  %v13727_v48 = vunpack.i.h.bf16 %v10635_v63 }
 0x992   : > { %v4124_v13 = vsel %vm13712_vm2, %v13711_v53, %v6160_v33  ;;  %vm5163_vm11 = vmpackc.low %vm13716_vm6, %vm13716_vm6  ;;  %v11214_v9 = vpop.permute.xlu0 %6183  ;;  %v13729_v59 = vunpack.i.l.bf16 %v10763_v55  ;;  %v13730_v22 = vunpack.i.l.bf16 %v10635_v63  ;;  %vm13733_vm4 = vnez %v13732_v36 }
 0x993   : > { %v5164_v20 = vpack.c.bf16 %v4125_v26, %v4124_v13  ;;  %vm5147_vm5 = vmpackc.low %vm13719_vm12, %vm13719_vm12  ;;  %v6186_v34 = vunpack.i.h.bf16 %v11214_v9  ;;  %v6185_v56 = vunpack.i.l.bf16 %v11214_v9  ;;  %v13724_v26 = vld [vmem:[#allocation46_spill] sm:$0xff]  ;;  %v6166_v13 = vunpack.i.h.bf16 %v11089_v15 }
 0x994   : > { %5118 = vmatpush.bf16.msk.msrb.mxu1 %vm5116_vm0, %v5117_v51  ;;  %5146 = vmatpush.bf16.msk.msra.mxu0 %vm5144_vm10, %v13717_v52  ;;  %vm13725_vm7 = vnez %v13724_v26  ;;  %vm13728_vm0 = vcmp.lt.s32.totalorder %v6480_v14, 1  ;;  %v6165_v51 = vunpack.i.l.bf16 %v11089_v15  ;;  %vm5119_vm10 = vmpackc.low %vm13733_vm4, %vm13733_vm4  ;;  %vm13734_vm6 = vcmp.lt.s32.totalorder %v6480_v14, 112  ;;  %v13738_v52 = vld [vmem:[#allocation42_spill] sm:$0xff] }
 0x995   : > { %5162 = vmatpush.bf16.msk.msrb.mxu3 %vm5160_vm1, %v5161_v42  ;;  %vm13723_vm1 = vmmov %vm13721_vm8  ;;  %v13726_v42 = vunpack.i.h.bf16 %v10763_v55  ;;  %v4187_v1 = vsel %vm13734_vm6, %v6146_v62, %v6151_v18  ;;  %vm13736_vm8 = vcmp.lt.s32.totalorder %v6480_v14, 111  ;;  %vm13747_vm12 = vcmp.lt.s32.totalorder %v6480_v14, 113 }
 0x996   : > { %5134 = vmatmul.msk.bf16.vlgmr.msra.gmra.mxu3 %vm13720_vm3, %v11014_v61  ;;  %v4061_v39 = vsel %vm13723_vm1, %v13722_v46, %v6171_v31  ;;  %vm5156_vm13 = vmpackc.low %vm13725_vm7, %vm13725_vm7  ;;  %v4255_v55 = vsel %vm13736_vm8, %v6181_v19, %v6186_v34  ;;  %v6204_v19 = vpop.permute.xlu2 %6203  ;;  %v13803_v43 = vunpack.i.h.bf16 %v10807_v29 }
 0x997   : > { %v4003_v28 = vsel %vm13728_vm0, %v13727_v48, %v13726_v42  ;;  %vm13731_vm2 = vmmov %vm13728_vm0  ;;  %v5167_v46 = vpack.c.bf16 %v4061_v39, %v4060_v10  ;;  %v6176_v39 = vunpack.i.h.bf16 %v10979_v21  ;;  %v6205_v42 = vunpack.i.l.bf16 %v6204_v19 }
 0x998   : > { %v4002_v53 = vsel %vm13731_vm2, %v13730_v22, %v13729_v59  ;;  %vm13735_vm3 = vmmov %vm13734_vm6  ;;  %vm13742_vm2 = vcmp.ge.s32.totalorder %v13664_v12, 1  ;;  %v13753_v48 = vpack.c.bf16 %v10561_v60, %v10565_v54  ;;  %v13754_v22 = vld [vmem:[#allocation72_spill] sm:$0xff] }
 0x999   : > { %5165 = vmatpush.bf16.msk.msrb.mxu3 %vm5163_vm11, %v5164_v20  ;;  %v4186_v63 = vsel %vm13735_vm3, %v6145_v50, %v6150_v37  ;;  %v13737_v20 = vpack.c.bf16 %v10292_v6, %v10236_v4  ;;  %vm13739_vm11 = vnez %v13738_v52  ;;  %vm13740_vm0 = vmmov %vm13736_vm8  ;;  %v13741_v50 = vpack.c.bf16 %v10697_v49, %v10705_v0  ;;  %v11317_v23 = vpop.permute.xlu1 %6208 }
 0x99a   : > { %vm5166_vm1 = vmpackc.low %vm13739_vm11, %vm13739_vm11  ;;  %v4254_v62 = vsel %vm13740_vm0, %v6180_v5, %v6185_v56  ;;  %v5120_v6 = vpack.c.bf16 %v4003_v28, %v4002_v53  ;;  %v13745_v5 = vld [vmem:[#allocation45_spill] sm:$0xff]  ;;  %v5186_v0 = vpack.c.bf16 %v4187_v1, %v4186_v63  ;;  %v4123_v49 = vsel %vm13747_vm12, %v6161_v32, %v6166_v13  ;;  %v13751_v32 = vld [vmem:[#allocation55_spill] sm:$0xff]  ;;  %v11329_v59 = vpop.permute.xlu0 %6198 }
 0x99b   : > { %4417 = vmatpush.bf16.msrb.mxu1 %v13737_v20  ;;  %5149 = vmatpush.bf16.msk.msra.mxu0 %vm5147_vm5, %v13741_v50  ;;  %vm11286_vm6 = vmpackc.low %vm13742_vm2, %vm13742_vm2  ;;  %v5157_v10 = vpack.c.bf16 %v4255_v55, %v4254_v62  ;;  %vm13746_vm3 = vcmp.le.s32.totalorder %v13745_v5, 14  ;;  %vm13750_vm11 = vnez %v13749_v25  ;;  %v6211_v26 = vunpack.i.h.bf16 %v11317_v23  ;;  %v13776_v50 = vld [vmem:[#allocation65_spill] sm:$0xff] }
 0x99c   : > { %vm5185_vm8 = vmpackc.low %vm13746_vm3, %vm13746_vm3  ;;  %v6210_v28 = vunpack.i.l.bf16 %v11317_v23  ;;  %vm13755_vm7 = vnez %v13754_v22  ;;  %v6175_v53 = vunpack.i.l.bf16 %v10979_v21  ;;  %v13760_v63 = vpack.c.bf16 %v10298_v30, %v10242_v58  ;;  %v13830_v23 = vld [vmem:[#allocation107_spill] sm:$0xff] }
 0x99d   : > { %vm13748_vm5 = vmmov %vm13747_vm12  ;;  %5168 = vmatpush.bf16.msk.msrb.mxu3 %vm5166_vm1, %v5167_v46  ;;  %5158 = vmatpush.bf16.msk.msrb.mxu2 %vm5156_vm13, %v5157_v10  ;;  %vm13752_vm1 = vnez %v13751_v32  ;;  %vm13761_vm12 = vcmp.ge.s32.totalorder %v13681_v3, 1  ;;  %v6196_v20 = vunpack.i.h.bf16 %v11206_v57  ;;  %v6195_v52 = vunpack.i.l.bf16 %v11206_v57  ;;  %v13765_v3 = vld [vmem:[#allocation51_spill] sm:$0xff]  ;;  %v13773_v57 = vld [vmem:[#allocation98_spill] sm:$0xff] }
 0x99e   : > { %v4122_v12 = vsel %vm13748_vm5, %v6160_v33, %v6165_v51  ;;  %vm5122_vm0 = vmpackc.low %vm13750_vm11, %vm13750_vm11  ;;  %v6206_v33 = vunpack.i.h.bf16 %v6204_v19  ;;  %v13764_v30 = vpack.c.bf16 %v10701_v38, %v10709_v2  ;;  %v13769_v38 = vld [vmem:[#allocation54_spill] sm:$0xff]  ;;  %v13774_v46 = vld [vmem:[#allocation105_spill] sm:$0xff]  ;;  %v13778_v4 = vunpack.i.l.bf16 %v10911_v45 }
 0x99f   : > { %5121 = vmatpush.bf16.msk.msrb.mxu1 %vm5119_vm10, %v5120_v6  ;;  %vm5153_vm2 = vmpackc.low %vm13752_vm1, %vm13752_vm1  ;;  %5152 = vmatpush.bf16.msk.msra.mxu0 %vm11286_vm6, %v13753_v48  ;;  %v5189_v36 = vpack.c.bf16 %v4123_v49, %v4122_v12  ;;  %vm13756_vm10 = vcmp.lt.s32.totalorder %v6480_v14, 127  ;;  %vm13757_vm6 = vcmp.lt.s32.totalorder %v6480_v14, 111  ;;  %vm13770_vm11 = vnez %v13769_v38  ;;  %v13782_v49 = vld [vmem:[#allocation5_spill] sm:$0xff]  ;;  %v13783_v12 = vld [vmem:[#allocation22_spill] sm:$0xff] }
 0x9a0   : > { %vm5188_vm13 = vmpackc.low %vm13755_vm7, %vm13755_vm7  ;;  %v4059_v60 = vsel %vm13756_vm10, %v6171_v31, %v6176_v39  ;;  %v4251_v54 = vsel %vm13757_vm6, %v6206_v33, %v6211_v26  ;;  %v4058_v55 = vsel %vm13756_vm10, %v6170_v40, %v6175_v53  ;;  %v13768_v40 = vpack.c.bf16 %v10503_v11, %v13767_v41  ;;  %v13771_v11 = vld [vmem:[#allocation40_spill] sm:$0xff]  ;;  %v13785_v32 = vld [vmem:[#allocation71_spill] sm:$0xff] }
 0x9a1   : > { %5187 = vmatpush.bf16.msk.msra.mxu2 %vm5185_vm8, %v5186_v0  ;;  %vm5206_vm4 = vmpackc.low %vm13258_vm9, %vm13258_vm9  ;;  %vm13759_vm8 = vcmask 130048   ;;  %4469 = vmatpush.bf16.msrb.mxu3 %v13760_v63  ;;  %v5192_v2 = vpack.c.bf16 %v4059_v60, %v4058_v55  ;;  %v13775_v62 = vpack.c.bf16 %v13773_v57, %v13774_v46  ;;  %v13780_v6 = vunpack.i.h.bf16 %v10911_v45  ;;  %v13812_v41 = vld [vmem:[#allocation89_spill] sm:$0xff] }
 0x9a2   : > { %vm13758_vm3 = vmmov %vm13757_vm6  ;;  %5159 = vmatmul.msk.bf16.vlgmr.msrb.gmra.mxu2 %vm13759_vm8, %v11014_v61  ;;  %vm13766_vm6 = vnez %v13765_v3  ;;  %vm13772_vm8 = vcmp.le.s32.totalorder %v13771_v11, 14  ;;  %v6201_v10 = vunpack.i.h.bf16 %v11329_v59  ;;  %v6200_v0 = vunpack.i.l.bf16 %v11329_v59  ;;  %v6214_v22 = vpop.permute.xlu0 %6213 }
 0x9a3   : > { %v4250_v1 = vsel %vm13758_vm3, %v6205_v42, %v6210_v28  ;;  %vm11358_vm5 = vmpackc.low %vm13761_vm12, %vm13761_vm12  ;;  %5124 = vmatpush.bf16.msk.msrb.mxu1 %vm5122_vm0, %v13764_v30  ;;  %5155 = vmatpush.bf16.msk.msra.mxu0 %vm5153_vm2, %v13768_v40  ;;  %vm13777_vm2 = vnez %v13776_v50  ;;  %v13784_v25 = vpack.c.bf16 %v13782_v49, %v13783_v12  ;;  %vm13787_vm10 = vcmp.lt.s32.totalorder %v6480_v14, 111  ;;  %v13808_v30 = vld [vmem:[#allocation90_spill] sm:$0xff]  ;;  %v13813_v40 = vld [vmem:[#allocation115_spill] sm:$0xff] }
 0x9a4   : > { %v5207_v58 = vpack.c.bf16 %v4251_v54, %v4250_v1  ;;  %vm5169_vm3 = vmpackc.low %vm13766_vm6, %vm13766_vm6  ;;  %v4253_v45 = vsel %vm13787_vm10, %v6186_v34, %v6206_v33  ;;  %v13789_v59 = vpack.c.bf16 %v11061_v7, %v11053_v44  ;;  %v13792_v60 = vunpack.i.h.bf16 %v11021_v8  ;;  %v13797_v54 = vld [vmem:[#allocation109_spill] sm:$0xff]  ;;  %v13798_v1 = vld [vmem:[#allocation114_spill] sm:$0xff] }
 0x9a5   : > { %5190 = vmatpush.bf16.msk.msra.mxu2 %vm5188_vm13, %v5189_v36  ;;  %vm5191_vm0 = vmpackc.low %vm13770_vm11, %vm13770_vm11  ;;  %5171 = vmatpush.bf16.msk.msrb.mxu3 %vm5169_vm3, %v13775_v62  ;;  %vm13779_vm13 = vcmp.lt.s32.totalorder %v6480_v14, 113  ;;  %v13790_v36 = vld [vmem:[#allocation15_spill] sm:$0xff]  ;;  %vm13793_vm11 = vcmp.lt.s32.totalorder %v6480_v14, 112  ;;  %v6216_v33 = vunpack.i.h.bf16 %v6214_v22  ;;  %v13799_v63 = vpack.c.bf16 %v13797_v54, %v13798_v1  ;;  %v13834_v12 = vld [vmem:[#allocation12_spill] sm:$0xff] }
 0x9a6   : > { %vm5235_vm1 = vmpackc.low %vm13772_vm8, %vm13772_vm8  ;;  %v4134_v24 = vsel %vm13779_vm13, %v6195_v52, %v13778_v4  ;;  %4448 = vmatmul.bf16.vlgmr.msra.gmra.mxu0 %v11012_v27  ;;  %v4185_v9 = vsel %vm13793_vm11, %v6151_v18, %v13792_v60  ;;  %v13805_v31 = vunpack.i.l.bf16 %v10807_v29  ;;  %v13814_v38 = vpack.c.bf16 %v13812_v41, %v13813_v40  ;;  %v13815_v29 = vld [vmem:[#allocation48_spill] sm:$0xff]  ;;  %v13819_v62 = vld [vmem:[#allocation47_spill] sm:$0xff] }
 0x9a7   : > { %5208 = vmatpush.bf16.msk.msrb.mxu0 %vm5206_vm4, %v5207_v58  ;;  %vm5128_vm7 = vmpackc.low %vm13777_vm2, %vm13777_vm2  ;;  %5127 = vmatpush.bf16.msk.msrb.mxu1 %vm11358_vm5, %v13784_v25  ;;  %vm13786_vm4 = vnez %v13785_v32  ;;  %vm13791_vm5 = vnez %v13790_v36  ;;  %v13807_v58 = vld [vmem:[#allocation96_spill] sm:$0xff]  ;;  %v13826_v4 = vld [vmem:[#allocation67_spill] sm:$0xff]  ;;  %v13845_v34 = vunpack.i.l.bf16 %v10717_v35 }
 0x9a8   : > { %vm13781_vm9 = vmmov %vm13779_vm13  ;;  %v13809_v3 = vpack.c.bf16 %v13807_v58, %v13808_v30  ;;  %v13842_v36 = vld [vmem:[#allocation122_spill] sm:$0xff]  ;;  %v13857_v1 = vld [vmem:[#allocation69_spill] sm:$0xff] }
 0x9a9   : > { %v4135_v19 = vsel %vm13781_vm9, %v6196_v20, %v13780_v6  ;;  %vm5172_vm12 = vmpackc.low %vm13786_vm4, %vm13786_vm4  ;;  %5193 = vmatpush.bf16.msk.msra.mxu2 %vm5191_vm0, %v5192_v2  ;;  %vm13804_vm9 = vcmp.lt.s32.totalorder %v6480_v14, 127  ;;  %v13843_v60 = vunpack.i.h.bf16 %v13842_v36  ;;  %v13868_v58 = vld [vmem:[#allocation8_spill] sm:$0xff]  ;;  %v13878_v41 = vld [vmem:[#allocation113_spill] sm:$0xff] }
 0x9aa   : > { %vm13788_vm6 = vmmov %vm13787_vm10  ;;  %v5239_v7 = vpack.c.bf16 %v4135_v19, %v4134_v24  ;;  %5174 = vmatpush.bf16.msk.msrb.mxu3 %vm5172_vm12, %v13799_v63  ;;  %v13828_v24 = vld [vmem:[#allocation73_spill] sm:$0xff]  ;;  %v13860_v63 = vunpack.i.l.bf16 %v11093_v16  ;;  %v13870_v30 = vld [vmem:[#allocation52_spill] sm:$0xff] }
 0x9ab   : > { %v4252_v48 = vsel %vm13788_vm6, %v6185_v56, %v6205_v42  ;;  %5237 = vmatpush.bf16.msk.msra.mxu0 %vm5235_vm1, %v13789_v59  ;;  %vm5238_vm3 = vmpackc.low %vm13791_vm5, %vm13791_vm5  ;;  %v13795_v56 = vunpack.i.l.bf16 %v11021_v8  ;;  %v6215_v42 = vunpack.i.l.bf16 %v6214_v22  ;;  %vm13800_vm1 = vcmp.ge.s32.totalorder %v13704_v47, 1  ;;  %5130 = vmatpush.bf16.msk.msrb.mxu1 %vm5128_vm7, %v13809_v3  ;;  %v13810_v47 = vld [vmem:[#allocation62_spill] sm:$0xff]  ;;  %v13876_v3 = vld [vmem:[#allocation99_spill] sm:$0xff] }
 0x9ac   : > { %vm5181_vm0 = vmpackc.low %vm13265_vm14, %vm13265_vm14  ;;  %v5182_v8 = vpack.c.bf16 %v4253_v45, %v4252_v48  ;;  %vm13811_vm12 = vnez %v13810_v47  ;;  %vm13816_vm6 = vcmp.le.s32.totalorder %v13815_v29, 14  ;;  %vm13820_vm7 = vnez %v13819_v62  ;;  %v13838_v45 = vld [vmem:[#allocation97_spill] sm:$0xff]  ;;  %v13904_v6 = vld [vmem:[#allocation3_spill] sm:$0xff] }
 0x9ad   : > { %vm13796_vm8 = vmmov %vm13793_vm11  ;;  %4495 = vmatpush.bf16.msra.mxu2 %v13814_v38  ;;  %vm13817_vm11 = vcmp.lt.s32.totalorder %v6480_v14, 113  ;;  %vm13827_vm14 = vnez %v13826_v4  ;;  %v13839_v48 = vld [vmem:[#allocation17_spill] sm:$0xff]  ;;  %v13841_v22 = vunpack.i.h.bf16 %v10717_v35 }
 0x9ae   : > { %v4184_v44 = vsel %vm13796_vm8, %v6150_v37, %v13795_v56  ;;  %vm11465_vm13 = vmpackc.low %vm13800_vm1, %vm13800_vm1  ;;  %v4071_v37 = vsel %vm13804_vm9, %v6201_v10, %v13803_v43  ;;  %v4120_v57 = vsel %vm13817_vm11, %v6165_v51, %v6195_v52  ;;  %vm13821_vm8 = vcmp.lt.s32.totalorder %v6480_v14, 111  ;;  %4422 = vmatmul.bf16.vlgmr.msrb.gmra.mxu1 %v11012_v27  ;;  %v13852_v56 = vld [vmem:[#allocation93_spill] sm:$0xff]  ;;  %v13863_v43 = vld [vmem:[#allocation2_spill] sm:$0xff] }
 0x9af   : > { %vm13806_vm4 = vmmov %vm13804_vm9  ;;  %5240 = vmatpush.bf16.msk.msra.mxu0 %vm5238_vm3, %v5239_v7  ;;  %v5211_v2 = vpack.c.bf16 %v4185_v9, %v4184_v44  ;;  %5183 = vmatpush.bf16.msk.msra.mxu1 %vm5181_vm0, %v5182_v8  ;;  %v4249_v51 = vsel %vm13821_vm8, %v6211_v26, %v6216_v33  ;;  %vm13829_vm9 = vnez %v13828_v24  ;;  %v13831_v26 = vld [vmem:[#allocation91_spill] sm:$0xff]  ;;  %v13840_v59 = vpack.c.bf16 %v13838_v45, %v13839_v48  ;;  %v13855_v35 = vld [vmem:[#allocation57_spill] sm:$0xff] }
 0x9b0   : > { %v4070_v55 = vsel %vm13806_vm4, %v6200_v0, %v13805_v31  ;;  %vm5194_vm10 = vmpackc.low %vm13811_vm12, %vm13811_vm12  ;;  %v13853_v44 = vld [vmem:[#allocation87_spill] sm:$0xff]  ;;  %v13879_v40 = vld [vmem:[#allocation101_spill] sm:$0xff] }
 0x9b1   : > { %vm5210_vm5 = vmpackc.low %vm13816_vm6, %vm13816_vm6  ;;  %v5242_v50 = vpack.c.bf16 %v4071_v37, %v4070_v55  ;;  %vm13835_vm6 = vnez %v13834_v12  ;;  %v13854_v7 = vpack.c.bf16 %v13852_v56, %v13853_v44  ;;  %v13864_v37 = vld [vmem:[#allocation24_spill] sm:$0xff]  ;;  %v13866_v55 = vld [vmem:[#allocation41_spill] sm:$0xff]  ;;  %v13880_v38 = vpack.c.bf16 %v13878_v41, %v13879_v40 }
 0x9b2   : > { %vm13818_vm2 = vmmov %vm13817_vm11  ;;  %vm13836_vm11 = vcmp.lt.s32.totalorder %v6480_v14, 127  ;;  %v13865_v31 = vpack.c.bf16 %v13863_v43, %v13864_v37  ;;  %v13898_v24 = vld [vmem:[#allocation100_spill] sm:$0xff]  ;;  %v13908_v12 = vld [vmem:[#allocation81_spill] sm:$0xff] }
 0x9b3   : > { %v4121_v46 = vsel %vm13818_vm2, %v6166_v13, %v6196_v20  ;;  %vm5241_vm3 = vmpackc.low %vm13820_vm7, %vm13820_vm7  ;;  %v13823_v13 = vld [vmem:[#allocation6_spill] sm:$0xff]  ;;  %v13824_v20 = vld [vmem:[#allocation36_spill] sm:$0xff]  ;;  %5212 = vmatpush.bf16.msk.msrb.mxu1 %vm5210_vm5, %v5211_v2  ;;  %v4057_v25 = vsel %vm13836_vm11, %v6176_v39, %v6201_v10  ;;  %v13846_v39 = vunpack.i.l.bf16 %v13842_v36  ;;  %vm13848_vm2 = vcmp.ge.s32.totalorder %v13745_v5, 1 }
 0x9b4   : > { %vm13822_vm1 = vmmov %vm13821_vm8  ;;  %v13825_v52 = vpack.c.bf16 %v13823_v13, %v13824_v20  ;;  %5243 = vmatpush.bf16.msk.msra.mxu0 %vm5241_vm3, %v5242_v50  ;;  %v5214_v19 = vpack.c.bf16 %v4121_v46, %v4120_v57  ;;  %v13850_v10 = vld [vmem:[#allocation103_spill] sm:$0xff]  ;;  %vm13856_vm3 = vnez %v13855_v35  ;;  %v13885_v57 = vld [vmem:[#allocation104_spill] sm:$0xff] }
 0x9b5   : > { %v4248_v15 = vsel %vm13822_vm1, %v6210_v28, %v6215_v42  ;;  %vm5178_vm0 = vmpackc.low %vm13827_vm14, %vm13827_vm14  ;;  %v13832_v28 = vpack.c.bf16 %v13830_v23, %v13831_v26  ;;  %vm13858_vm1 = vnez %v13857_v1  ;;  %v13881_v2 = vld [vmem:[#allocation63_spill] sm:$0xff]  ;;  %v13888_v50 = vld [vmem:[#allocation38_spill] sm:$0xff] }
 0x9b6   : > { %5177 = vmatpush.bf16.msk.msrb.mxu3 %vm11465_vm13, %v13825_v52  ;;  %vm5213_vm4 = vmpackc.low %vm13829_vm9, %vm13829_vm9  ;;  %v5232_v49 = vpack.c.bf16 %v4249_v51, %v4248_v15  ;;  %vm13861_vm9 = vcmp.lt.s32.totalorder %v6480_v14, 111  ;;  %v13886_v46 = vld [vmem:[#allocation11_spill] sm:$0xff]  ;;  %v13889_v51 = vld [vmem:[#allocation34_spill] sm:$0xff] }
 0x9b7   : > { %5196 = vmatpush.bf16.msk.msra.mxu2 %vm5194_vm10, %v13832_v28  ;;  %vm5231_vm13 = vmpackc.low %vm13259_vm15, %vm13259_vm15  ;;  %vm13844_vm15 = vcmp.lt.s32.totalorder %v6480_v14, 1  ;;  %5215 = vmatpush.bf16.msk.msrb.mxu1 %vm5213_vm4, %v5214_v19  ;;  %v4262_v18 = vsel %vm13861_vm9, %v6215_v42, %v13860_v63  ;;  %v13872_v14 = vld [vmem:[#allocation88_spill] sm:$0xff]  ;;  %v13875_v42 = vld [vmem:[#allocation94_spill] sm:$0xff]  ;;  %v13887_v62 = vpack.c.bf16 %v13885_v57, %v13886_v46  ;;  %v13890_v15 = vpack.c.bf16 %v13888_v50, %v13889_v51 }
 0x9b8   : > { %vm5197_vm5 = vmpackc.low %vm13835_vm6, %vm13835_vm6  ;;  %v3993_v9 = vsel %vm13844_vm15, %v13843_v60, %v13841_v22  ;;  %4547 = vmatpush.bf16.msra.mxu0 %v13854_v7  ;;  %v13877_v47 = vpack.c.bf16 %v13875_v42, %v13876_v3  ;;  %v13891_v13 = vld [vmem:[#allocation61_spill] sm:$0xff]  ;;  %v13895_v20 = vld [vmem:[#allocation102_spill] sm:$0xff]  ;;  %v11662_v60 = vpop.permute.xlu1 %4585 }
 0x9b9   : > { %vm13837_vm12 = vmmov %vm13836_vm11  ;;  %v13896_v52 = vld [vmem:[#allocation95_spill] sm:$0xff]  ;;  %v13899_v23 = vld [vmem:[#allocation82_spill] sm:$0xff] }
 0x9ba   : > { %v4056_v32 = vsel %vm13837_vm12, %v6175_v53, %v6200_v0  ;;  %5180 = vmatpush.bf16.msk.msrb.mxu3 %vm5178_vm0, %v13840_v59  ;;  %vm13847_vm10 = vmmov %vm13844_vm15  ;;  %v13849_v53 = vld [vmem:[#allocation92_spill] sm:$0xff]  ;;  %vm13859_vm0 = vcmask 130048   ;;  %vm13871_vm12 = vnez %v13870_v30  ;;  %v13897_v4 = vpack.c.bf16 %v13895_v20, %v13896_v52  ;;  %v13903_v28 = vld [vmem:[#allocation86_spill] sm:$0xff]  ;;  %v11659_v59 = vpop.permute.xlu2 %4572 }
 0x9bb   : > { %v3992_v21 = vsel %vm13847_vm10, %v13846_v39, %v13845_v34  ;;  %vm5200_vm7 = vmpackc.low %vm13848_vm2, %vm13848_vm2  ;;  %v13851_v0 = vpack.c.bf16 %v13849_v53, %v13850_v10  ;;  %v5217_v54 = vpack.c.bf16 %v4057_v25, %v4056_v32  ;;  %5209 = vmatmul.msk.bf16.vlgmr.msrb.gmra.mxu0 %vm13859_vm0, %v11014_v61  ;;  %vm13882_vm10 = vnez %v13881_v2  ;;  %v13909_v25 = vld [vmem:[#allocation76_spill] sm:$0xff]  ;;  %v6241_v39 = vld [vmem:[%s6335_s21 + $0x8] sm:$0xff] }
 0x9bc   : > { %vm5216_vm8 = vmpackc.low %vm13856_vm3, %vm13856_vm3  ;;  %v5245_v5 = vpack.c.bf16 %v3993_v9, %v3992_v21  ;;  %v13900_v26 = vpack.c.bf16 %v13898_v24, %v13899_v23  ;;  %v13905_v19 = vpack.c.bf16 %v13903_v28, %v13904_v6  ;;  %v6242_v7 = vld [vmem:[%s6335_s21] sm:$0xff]  ;;  %v5260_v3 = vld [vmem:[%s6335_s21 + $0x10] sm:$0xff] }
 0x9bd   : > { %5199 = vmatpush.bf16.msk.msra.mxu2 %vm5197_vm5, %v13851_v0  ;;  %4474 = vmatmul.bf16.vlgmr.msrb.gmra.mxu3 %v11012_v27  ;;  %vm5244_vm14 = vmpackc.low %vm13858_vm1, %vm13858_vm1  ;;  %vm13869_vm5 = vnez %v13868_v58  ;;  %vm13892_vm1 = vnez %v13891_v13  ;;  %v5265_v6 = vld [vmem:[%s6335_s21 + $0x28] sm:$0xff] }
 0x9be   : > { %5233 = vmatpush.bf16.msk.msra.mxu3 %vm5231_vm13, %v5232_v49  ;;  %5218 = vmatpush.bf16.msk.msrb.mxu1 %vm5216_vm8, %v5217_v54  ;;  %vm13862_vm4 = vmmov %vm13861_vm9  ;;  %vm13867_vm13 = vnez %v13866_v55  ;;  %v13906_v49 = vld [vmem:[#allocation13_spill] sm:$0xff] }
 0x9bf   : > { %v4263_v8 = vsel %vm13862_vm4, %v6216_v33, %v6156_v17  ;;  %5246 = vmatpush.bf16.msk.msra.mxu0 %vm5244_vm14, %v5245_v5  ;;  %vm5203_vm6 = vmpackc.low %vm13867_vm13, %vm13867_vm13  ;;  %v13873_v17 = vld [vmem:[#allocation110_spill] sm:$0xff]  ;;  %vm13901_vm4 = vcmp.ge.s32.totalorder %v13815_v29, 1  ;;  %v13910_v29 = vpack.c.bf16 %v13908_v12, %v13909_v25 }
 0x9c0   : > { %vm5247_vm11 = vmpackc.low %vm13869_vm5, %vm13869_vm5  ;;  %v5257_v16 = vpack.c.bf16 %v4263_v8, %v4262_v18  ;;  %v13874_v33 = vpack.c.bf16 %v13872_v14, %v13873_v17  ;;  %vm13907_vm5 = vnez %v13906_v49 }
 0x9c1   : > { %5202 = vmatpush.bf16.msk.msra.mxu2 %vm5200_vm7, %v13865_v31  ;;  %vm5256_vm15 = vmpackc.low %vm13871_vm12, %vm13871_vm12  ;;  %vm13883_vm7 = vcmp.ge.s32.totalorder %v13771_v11, 1  ;;  %v13893_v11 = vld [vmem:[#allocation14_spill] sm:$0xff]  ;;  %v5261_v31 = vld [vmem:[%s6335_s21 + $0x18] sm:$0xff] }
 0x9c2   : > { %4521 = vmatpush.bf16.msrb.mxu1 %v13874_v33  ;;  %vm5219_vm2 = vmpackc.low %vm13882_vm10, %vm13882_vm10 }
 0x9c3   : > { %5249 = vmatpush.bf16.msk.msra.mxu0 %vm5247_vm11, %v13880_v38  ;;  %vm5250_vm3 = vmpackc.low %vm13883_vm7, %vm13883_vm7 }
 0x9c4   : > { %vm13884_vm8 = vmmov %vm13859_vm0  ;;  %vm13894_vm0 = vnez %v13893_v11 }
 0x9c5   : > { %5205 = vmatpush.bf16.msk.msra.mxu2 %vm5203_vm6, %v13877_v47  ;;  %5184 = vmatmul.msk.bf16.vlgmr.msra.gmra.mxu1 %vm13884_vm8, %v11014_v61  ;;  %vm5222_vm14 = vmpackc.low %vm13892_vm1, %vm13892_vm1 }
 0x9c6   : > { %5221 = vmatpush.bf16.msk.msrb.mxu1 %vm5219_vm2, %v13887_v62  ;;  %vm5253_vm9 = vmpackc.low %vm13894_vm0, %vm13894_vm0 }
 0x9c7   : > { %5252 = vmatpush.bf16.msk.msra.mxu0 %vm5250_vm3, %v13890_v15  ;;  %vm5225_vm13 = vmpackc.low %vm13901_vm4, %vm13901_vm4  ;;  %v5264_v15 = vld [vmem:[%s6335_s21 + $0x20] sm:$0xff] }
 0x9c8   : > { %4500 = vmatmul.bf16.vlgmr.msra.gmra.mxu2 %v11012_v27  ;;  %vm13902_vm6 = vmmov %vm13884_vm8 }
 0x9c9   : > { %5258 = vmatpush.bf16.msk.msrb.mxu2 %vm5256_vm15, %v5257_v16  ;;  %vm5228_vm11 = vmpackc.low %vm13907_vm5, %vm13907_vm5 }
 0x9ca   : > { %5224 = vmatpush.bf16.msk.msrb.mxu1 %vm5222_vm14, %v13897_v4  ;;  %vm13911_vm12 = vmmov %vm13902_vm6 }
 0x9cb   : > { %5255 = vmatpush.bf16.msk.msra.mxu0 %vm5253_vm9, %v13900_v26 }
 0x9cd   : > { %5234 = vmatmul.msk.bf16.vlgmr.msra.gmra.mxu3 %vm13902_vm6, %v11014_v61 }
 0x9ce   : > { %5227 = vmatpush.bf16.msk.msrb.mxu1 %vm5225_vm13, %v13905_v19  ;;  %4552 = vmatmul.bf16.vlgmr.msra.gmra.mxu0 %v11012_v27 }
 0x9d2   : > { %5230 = vmatpush.bf16.msk.msrb.mxu1 %vm5228_vm11, %v13910_v29 }
 0x9d5   : > { %4526 = vmatmul.bf16.vlgmr.msrb.gmra.mxu1 %v11012_v27 }
 0x9d8   : > { %5259 = vmatmul.msk.bf16.vlgmr.msrb.gmra.mxu2 %vm13911_vm12, %v11014_v61 }
 0x9fa   : > { %v4397_v32 = vpop.f32.mrf.mxu2 }
 0x9fe   : > { %v4410_v45 = vpop.f32.mrf.mxu3 }
 0x9ff   : > { %v4411_v48 = vadd.f32 %v4410_v45, %v4397_v32 }
 0xa00   : > { %v4371_v22 = vpop.f32.mrf.mxu0 }
 0xa01   : > { %v4576_v36 = vmul.f32 %v11659_v59, %v4411_v48 }
 0xa02   : > { %v4399_v34 = vpop.f32.mrf.mxu2 }
 0xa03   : > { %v4589_v9 = vadd.f32 %v11662_v60, %v4576_v36  ;;  %v5268_v36 = vld [vmem:[%s6335_s21 + $0x30] sm:$0xff] }
 0xa05   : > { %v4597_v21 = vadd.f32 %v6241_v39, %v4589_v9 }
 0xa06   : > { %v4412_v27 = vpop.f32.mrf.mxu3 }
 0xa07   : > { %v4599_v61 = vmax.f32 %v4597_v21, 0.0 }
 0xa08   : > { %v4384_v53 = vpop.f32.mrf.mxu1  ;;  %v4373_v10 = vpop.f32.mrf.mxu0 }
 0xa09   : > { %4601 = vst [vmem:[%s11671_s24 + $0x8] sm:$0xff] %v4599_v61  ;;  %v4385_v0 = vadd.f32 %v4384_v53, %v4371_v22 }
 0xa0b   : > { %v4575_v56 = vmul.f32 %v11659_v59, %v4385_v0  ;;  %v5269_v0 = vld [vmem:[%s6335_s21 + $0x38] sm:$0xff] }
 0xa0d   : > { %v4588_v44 = vadd.f32 %v11662_v60, %v4575_v56 }
 0xa0f   : > { %v4596_v35 = vadd.f32 %v6242_v7, %v4588_v44 }
 0xa10   : > { %v4386_v54 = vpop.f32.mrf.mxu1 }
 0xa11   : > { %v4598_v1 = vmax.f32 %v4596_v35, 0.0 }
 0xa13   : > { %4600 = vst [vmem:[%s11671_s24] sm:$0xff] %v4598_v1 }
 0xa19   : > { %v4436_v5 = vpop.f32.mrf.mxu3 }
 0xa21   : > { %v4438_v63 = vpop.f32.mrf.mxu3 }
 0xa23   : > { %v4449_v18 = vpop.f32.mrf.mxu0 }
 0xa25   : > { %v4462_v8 = vpop.f32.mrf.mxu2 }
 0xa26   : > { %v4463_v43 = vadd.f32 %v4462_v8, %v4449_v18 }
 0xa28   : > { %v4578_v37 = vmul.f32 %v11659_v59, %v4463_v43 }
 0xa2a   : > { %v4591_v55 = vadd.f32 %v11662_v60, %v4578_v37 }
 0xa2b   : > { %v4423_v58 = vpop.f32.mrf.mxu1  ;;  %v4451_v14 = vpop.f32.mrf.mxu0 }
 0xa2c   : > { %v4605_v30 = vadd.f32 %v5261_v31, %v4591_v55  ;;  %v4437_v16 = vadd.f32 %v4436_v5, %v4423_v58 }
 0xa2d   : > { %v4464_v17 = vpop.f32.mrf.mxu2 }
 0xa2e   : > { %v4607_v33 = vmax.f32 %v4605_v30, 0.0  ;;  %v4577_v42 = vmul.f32 %v11659_v59, %v4437_v16 }
 0xa30   : > { %5263 = vst [vmem:[%s11671_s24 + $0x18] sm:$0xff] %v4607_v33  ;;  %v4590_v47 = vadd.f32 %v11662_v60, %v4577_v42 }
 0xa32   : > { %v4604_v41 = vadd.f32 %v5260_v3, %v4590_v47 }
 0xa33   : > { %v4425_v40 = vpop.f32.mrf.mxu1 }
 0xa34   : > { %v4606_v38 = vmax.f32 %v4604_v41, 0.0 }
 0xa36   : > { %5262 = vst [vmem:[%s11671_s24 + $0x10] sm:$0xff] %v4606_v38 }
 0xa38   : > { %v4514_v2 = vpop.f32.mrf.mxu0 }
 0xa40   : > { %v4475_v57 = vpop.f32.mrf.mxu3  ;;  %v4516_v50 = vpop.f32.mrf.mxu0 }
 0xa42   : > { %v4488_v46 = vpop.f32.mrf.mxu1 }
 0xa43   : > { %v4489_v62 = vadd.f32 %v4488_v46, %v4475_v57 }
 0xa45   : > { %v4579_v51 = vmul.f32 %v11659_v59, %v4489_v62 }
 0xa47   : > { %v4592_v13 = vadd.f32 %v11662_v60, %v4579_v51 }
 0xa48   : > { %v4477_v11 = vpop.f32.mrf.mxu3 }
 0xa49   : > { %v4613_v20 = vadd.f32 %v5264_v15, %v4592_v13 }
 0xa4a   : > { %v4490_v24 = vpop.f32.mrf.mxu1 }
 0xa4b   : > { %v4501_v52 = vpop.f32.mrf.mxu2  ;;  %v4615_v23 = vmax.f32 %v4613_v20, 0.0  ;;  %v4553_v26 = vpop.f32.mrf.mxu0 }
 0xa4c   : > { %v4515_v4 = vadd.f32 %v4514_v2, %v4501_v52 }
 0xa4d   : > { %5266 = vst [vmem:[%s11671_s24 + $0x20] sm:$0xff] %v4615_v23 }
 0xa4e   : > { %v4580_v28 = vmul.f32 %v11659_v59, %v4515_v4 }
 0xa50   : > { %v4593_v19 = vadd.f32 %v11662_v60, %v4580_v28  ;;  %v4540_v49 = vpop.f32.mrf.mxu3 }
 0xa52   : > { %v4614_v12 = vadd.f32 %v5265_v6, %v4593_v19  ;;  %v4527_v32 = vpop.f32.mrf.mxu1 }
 0xa53   : > { %v4503_v25 = vpop.f32.mrf.mxu2  ;;  %v4541_v45 = vadd.f32 %v4540_v49, %v4527_v32  ;;  %v4555_v48 = vpop.f32.mrf.mxu0 }
 0xa54   : > { %v4616_v29 = vmax.f32 %v4614_v12, 0.0 }
 0xa55   : > { %v4581_v22 = vmul.f32 %v11659_v59, %v4541_v45 }
 0xa56   : > { %5267 = vst [vmem:[%s11671_s24 + $0x28] sm:$0xff] %v4616_v29 }
 0xa57   : > { %v4594_v9 = vadd.f32 %v11662_v60, %v4581_v22 }
 0xa58   : > { %v4542_v34 = vpop.f32.mrf.mxu3 }
 0xa59   : > { %v4622_v39 = vadd.f32 %v5268_v36, %v4594_v9 }
 0xa5a   : > { %v4529_v61 = vpop.f32.mrf.mxu1 }
 0xa5b   : > { %v4566_v21 = vpop.f32.mrf.mxu2  ;;  %v4624_v53 = vmax.f32 %v4622_v39, 0.0 }
 0xa5c   : > { %v4567_v27 = vadd.f32 %v4566_v21, %v4553_v26 }
 0xa5d   : > { %5270 = vst [vmem:[%s11671_s24 + $0x30] sm:$0xff] %v4624_v53 }
 0xa5e   : > { %v4582_v10 = vmul.f32 %v11659_v59, %v4567_v27 }
 0xa60   : > { %v4595_v56 = vadd.f32 %v11662_v60, %v4582_v10 }
 0xa62   : > { %v4623_v44 = vadd.f32 %v5269_v0, %v4595_v56 }
 0xa63   : > { %v4568_v7 = vpop.f32.mrf.mxu2 }
 0xa64   : > { %v4625_v35 = vmax.f32 %v4623_v44, 0.0 }
 0xa66   : > { %5271 = vst [vmem:[%s11671_s24 + $0x38] sm:$0xff] %v4625_v35 }
 0xa67 PF: > { %s20_s13 = sadd.s32 1, %s6249_s13  }
 0xa68   : > { %p17_p4 = scmp.ge.s32.totalorder %s20_s13, 4  }
 0xa6a   :  { %19 = sbr.rel (!%p17_p4) target bundleno = 1 (0x1), region = 96 }

</bundles_post_ra>
